<compile_context>
chip_gen: v7x
topology: tpu7x:2x2x1
jax: 0.10.0
libtpu: 0.0.40
codegen_flags: <defaults>
</compile_context>

<pallas_src>
import functools

import jax
import jax.numpy as jnp
import numpy as np
from jax.experimental import pallas as pl
from jax.experimental.pallas import tpu as pltpu


_DEFAULT_TILE_ROWS = 8
_VMEM_LIMIT = 48 * 1024 * 1024
_GOFF = 8  # guard rows so DMA destinations stay sublane-aligned


def _pick_tile_rows(H, pool):
    for th in range(min(_DEFAULT_TILE_ROWS, H), 0, -1):
        if H % th == 0 and (not pool or th % 2 == 0):
            return th
    raise ValueError(f"unsupported spatial height {H}")


# ----------------------------------------------------------------------------
# Shared per-tile conv body: halo DMA + 3x3 SAME conv (+bias, +optional ReLU).
# Returns the (TH*W, Cout) f32 activation for image `n`, row-tile `h`.
# ----------------------------------------------------------------------------
def _conv_tile(x_hbm, xbuf, sem, w_ref, b_ref, n, h, *, TH, W, HT, relu):
    Cin = xbuf.shape[-1]
    Cout = w_ref.shape[-1]
    tile_rows = TH * W
    row0_flat = (n * (TH * HT) + h * TH) * W  # flat row of first output row

    # main body rows -> xbuf[GOFF+W : GOFF+W+TH*W]
    main = pltpu.make_async_copy(
        x_hbm.at[pl.ds(row0_flat, tile_rows)],
        xbuf.at[pl.ds(_GOFF + W, tile_rows)],
        sem.at[0])
    main.start()

    # top halo row (image row h*TH - 1) or zeros at the image border.
    @pl.when(h > 0)
    def _():
        cp = pltpu.make_async_copy(
            x_hbm.at[pl.ds(row0_flat - W, W)],
            xbuf.at[pl.ds(_GOFF, W)],
            sem.at[1])
        cp.start()
        cp.wait()

    @pl.when(h == 0)
    def _():
        xbuf[pl.ds(_GOFF, W)] = jnp.zeros((W, Cin), xbuf.dtype)

    # bottom halo row (image row h*TH + TH) or zeros at the image border.
    @pl.when(h < HT - 1)
    def _():
        cp = pltpu.make_async_copy(
            x_hbm.at[pl.ds(row0_flat + tile_rows, W)],
            xbuf.at[pl.ds(_GOFF + (TH + 1) * W, W)],
            sem.at[2])
        cp.start()
        cp.wait()

    @pl.when(h == HT - 1)
    def _():
        xbuf[pl.ds(_GOFF + (TH + 1) * W, W)] = jnp.zeros((W, Cin), xbuf.dtype)

    # guard rows (only ever read at masked tap positions; keep them zero).
    xbuf[pl.ds(0, _GOFF)] = jnp.zeros((_GOFF, Cin), xbuf.dtype)
    xbuf[pl.ds(_GOFF + (TH + 2) * W, _GOFF)] = jnp.zeros((_GOFF, Cin), xbuf.dtype)

    main.wait()

    # column masks for the left/right taps (SAME padding along W).
    col = jax.lax.broadcasted_iota(jnp.int32, (tile_rows, Cin), 0) % W
    not_first_col = col != 0
    not_last_col = col != (W - 1)

    fuse_taps = (Cin % 128 == 0)  # lane-aligned concat -> K = 3*Cin on the MXU
    acc = jnp.zeros((tile_rows, Cout), jnp.float32)
    for dh in range(3):
        base = _GOFF - 1 + dh * W
        left = jnp.where(not_first_col, xbuf[pl.ds(base + 0, tile_rows)], 0.0)
        center = xbuf[pl.ds(base + 1, tile_rows)]
        right = jnp.where(not_last_col, xbuf[pl.ds(base + 2, tile_rows)], 0.0)
        if fuse_taps:
            taps = jnp.concatenate([left, center, right], axis=1)
            acc = acc + jnp.dot(taps.astype(jnp.bfloat16), w_ref[dh],
                                preferred_element_type=jnp.float32)
        else:
            for dw, tap in enumerate((left, center, right)):
                acc = acc + jnp.dot(
                    tap.astype(jnp.bfloat16),
                    w_ref[dh, pl.ds(dw * Cin, Cin), :],
                    preferred_element_type=jnp.float32)

    acc = acc + b_ref[...]
    if relu:
        acc = jnp.maximum(acc, 0.0)
    return acc


# ----------------------------------------------------------------------------
# Conv kernel (optionally with a fused 2x2/stride-2 max-pool epilogue).
# ----------------------------------------------------------------------------
def _conv_row_kernel(x_hbm, w_ref, b_ref, o_ref, *scratch, TH, W, HT, relu, pool):
    if pool:
        xbuf, pbuf, sem = scratch
    else:
        xbuf, sem = scratch
    n = pl.program_id(0)
    h = pl.program_id(1)
    Cout = w_ref.shape[-1]
    acc = _conv_tile(x_hbm, xbuf, sem, w_ref, b_ref, n, h,
                     TH=TH, W=W, HT=HT, relu=relu)
    if not pool:
        o_ref[...] = acc.reshape(1, TH * W, Cout)
    else:
        # two image rows per pbuf row; pooled quad lives at sublanes
        # {2j, 2j+1, W+2j, W+2j+1} of the same pbuf row.
        pbuf[...] = acc.reshape(TH // 2, 2 * W, Cout)
        p00 = pbuf[:, pl.ds(0, W // 2, stride=2), :]
        p01 = pbuf[:, pl.ds(1, W // 2, stride=2), :]
        p10 = pbuf[:, pl.ds(W, W // 2, stride=2), :]
        p11 = pbuf[:, pl.ds(W + 1, W // 2, stride=2), :]
        pooled = jnp.maximum(jnp.maximum(p00, p01), jnp.maximum(p10, p11))
        o_ref[...] = pooled.reshape(1, (TH // 2) * (W // 2), Cout)


# ----------------------------------------------------------------------------
# Final conv + ReLU + squared-difference reduction (per-tile partial sums).
# ----------------------------------------------------------------------------
def _conv_mse_kernel(x_hbm, y_hbm, w_ref, b_ref, o_ref, xbuf, ybuf, sem,
                     *, TH, W, HT):
    n = pl.program_id(0)
    h = pl.program_id(1)
    fx = _conv_tile(x_hbm, xbuf, sem, w_ref, b_ref, n, h,
                    TH=TH, W=W, HT=HT, relu=True)
    fy = _conv_tile(y_hbm, ybuf, sem, w_ref, b_ref, n, h,
                    TH=TH, W=W, HT=HT, relu=True)
    d = fx - fy
    o_ref[...] = jnp.sum(d * d).reshape(1, 1, 1, 1)


# ----------------------------------------------------------------------------
# Host wrappers.
# ----------------------------------------------------------------------------
def conv3x3(x, w_folded, b, *, relu=True, pool=False):
    """3x3 SAME conv (+bias, +ReLU, optional fused 2x2 maxpool). NHWC f32."""
    N, H, W, Cin = x.shape
    Cout = w_folded.shape[-1]
    if pool:
        assert H % 2 == 0 and W % 2 == 0, "2x2 maxpool needs even H, W"
    TH = _pick_tile_rows(H, pool)
    HT = H // TH
    out_h, out_w = (H // 2, W // 2) if pool else (H, W)
    rows_out = (TH // 2) * (W // 2) if pool else TH * W

    x_flat = x.reshape(N * H * W, Cin)
    scratch = [pltpu.VMEM(((TH + 2) * W + 2 * _GOFF, Cin), jnp.float32)]
    if pool:
        scratch.append(pltpu.VMEM((TH // 2, 2 * W, Cout), jnp.float32))
    scratch.append(pltpu.SemaphoreType.DMA((3,)))

    kernel = functools.partial(_conv_row_kernel, TH=TH, W=W, HT=HT,
                               relu=relu, pool=pool)
    out = pl.pallas_call(
        kernel,
        out_shape=jax.ShapeDtypeStruct((N, HT * rows_out, Cout), jnp.float32),
        grid_spec=pltpu.PrefetchScalarGridSpec(
            num_scalar_prefetch=0,
            grid=(N, HT),
            in_specs=[
                pl.BlockSpec(memory_space=pl.ANY),                      # x (HBM)
                pl.BlockSpec((3, w_folded.shape[1], Cout),
                             lambda n, h: (0, 0, 0)),                   # weights
                pl.BlockSpec((1, Cout), lambda n, h: (0, 0)),           # bias
            ],
            out_specs=pl.BlockSpec((1, rows_out, Cout), lambda n, h: (n, h, 0)),
            scratch_shapes=scratch,
        ),
        compiler_params=pltpu.CompilerParams(
            dimension_semantics=("parallel", "parallel"),
            vmem_limit_bytes=_VMEM_LIMIT),
    )(x_flat, w_folded, b.reshape(1, Cout))
    return out.reshape(N, out_h, out_w, Cout)


def conv3x3_mse(x, y, w_folded, b):
    """Fused final conv+ReLU on both branches and sum of squared differences."""
    N, H, W, Cin = x.shape
    Cout = w_folded.shape[-1]
    TH = _pick_tile_rows(H, False)
    HT = H // TH
    x_flat = x.reshape(N * H * W, Cin)
    y_flat = y.reshape(N * H * W, Cin)

    kernel = functools.partial(_conv_mse_kernel, TH=TH, W=W, HT=HT)
    partial_sums = pl.pallas_call(
        kernel,
        out_shape=jax.ShapeDtypeStruct((N, HT, 1, 1), jnp.float32),
        grid_spec=pltpu.PrefetchScalarGridSpec(
            num_scalar_prefetch=0,
            grid=(N, HT),
            in_specs=[
                pl.BlockSpec(memory_space=pl.ANY),
                pl.BlockSpec(memory_space=pl.ANY),
                pl.BlockSpec((3, w_folded.shape[1], Cout),
                             lambda n, h: (0, 0, 0)),
                pl.BlockSpec((1, Cout), lambda n, h: (0, 0)),
            ],
            out_specs=pl.BlockSpec((1, 1, 1, 1), lambda n, h: (n, h, 0, 0)),
            scratch_shapes=[
                pltpu.VMEM(((TH + 2) * W + 2 * _GOFF, Cin), jnp.float32),
                pltpu.VMEM(((TH + 2) * W + 2 * _GOFF, Cin), jnp.float32),
                pltpu.SemaphoreType.DMA((3,)),
            ],
        ),
        compiler_params=pltpu.CompilerParams(
            dimension_semantics=("parallel", "parallel"),
            vmem_limit_bytes=_VMEM_LIMIT),
    )(x_flat, y_flat, w_folded, b.reshape(1, Cout))
    return jnp.sum(partial_sums)


# ----------------------------------------------------------------------------
# Model: deterministic parameter init + forward pass.
# ----------------------------------------------------------------------------
_CONV_SHAPES = [(3, 3, 3, 64), (3, 3, 64, 64), (3, 3, 64, 128), (3, 3, 128, 128)]


def init_params(key):
    params = []
    for i, s in enumerate(_CONV_SHAPES):
        kw, kb = jax.random.split(jax.random.fold_in(key, i))
        fan_in = s[0] * s[1] * s[2]
        w = jax.random.normal(kw, s, jnp.float32) * jnp.sqrt(2.0 / fan_in)
        b = jax.random.normal(kb, (s[3],), jnp.float32) * 0.01
        params.append((w, b))
    return params


def _fold_weights(w):
    # HWIO (3, 3, Cin, Cout) -> (3, 3*Cin, Cout) bf16 MXU operand.
    kh, kw, cin, cout = w.shape
    return w.reshape(kh, kw * cin, cout).astype(jnp.bfloat16)


def vgg_perceptual_loss(x_nchw, y_nchw, params):
    (w1, b1), (w2, b2), (w3, b3), (w4, b4) = params
    w1f, w2f, w3f, w4f = (_fold_weights(w) for w in (w1, w2, w3, w4))

    def trunk(img):
        a = jnp.transpose(img, (0, 2, 3, 1)).astype(jnp.float32)  # NCHW -> NHWC
        a = conv3x3(a, w1f, b1, relu=True, pool=False)   # 3   -> 64
        a = conv3x3(a, w2f, b2, relu=True, pool=True)    # 64  -> 64 (+maxpool)
        a = conv3x3(a, w3f, b3, relu=True, pool=False)   # 64  -> 128
        return a

    fx3 = trunk(x_nchw)
    fy3 = trunk(y_nchw)
    # conv4 + ReLU + (fx - fy)^2 reduction fused; final features never hit HBM.
    sq_sum = conv3x3_mse(fx3, fy3, w4f, b4)
    n_elems = fx3.shape[0] * fx3.shape[1] * fx3.shape[2] * w4f.shape[-1]
    return sq_sum / n_elems


# ----------------------------------------------------------------------------
# Pure-JAX reference (correctness check only).
# ----------------------------------------------------------------------------
def _ref_conv(x, w, b, relu):
    out = jax.lax.conv_general_dilated(
        x, w, (1, 1), "SAME",
        dimension_numbers=("NHWC", "HWIO", "NHWC"),
        precision=jax.lax.Precision.HIGHEST) + b
    return jnp.maximum(out, 0.0) if relu else out


def _ref_loss(x_nchw, y_nchw, params):
    (w1, b1), (w2, b2), (w3, b3), (w4, b4) = params

    def feats(img):
        a = jnp.transpose(img, (0, 2, 3, 1)).astype(jnp.float32)
        a = _ref_conv(a, w1, b1, True)
        a = _ref_conv(a, w2, b2, True)
        a = jax.lax.reduce_window(a, -jnp.inf, jax.lax.max,
                                  (1, 2, 2, 1), (1, 2, 2, 1), "VALID")
        a = _ref_conv(a, w3, b3, True)
        a = _ref_conv(a, w4, b4, True)
        return a

    return jnp.mean((feats(x_nchw) - feats(y_nchw)) ** 2)


if __name__ == "__main__":
    key = jax.random.PRNGKey(0)
    kx, ky, kp = jax.random.split(key, 3)
    N, C, H, W = 2, 3, 16, 16
    x = jax.random.normal(kx, (N, C, H, W), jnp.float32)
    y = jax.random.normal(ky, (N, C, H, W), jnp.float32)
    params = init_params(kp)

    loss = jax.block_until_ready(jax.jit(vgg_perceptual_loss)(x, y, params))
    ref = jax.block_until_ready(jax.jit(_ref_loss)(x, y, params))

    np.testing.assert_allclose(np.asarray(loss), np.asarray(ref),
                               rtol=3e-2, atol=1e-5)
    print("KERNEL_OK")
</pallas_src>

<mosaic_0001>
module attributes {stable_mosaic.version = 11 : i64} {
  func.func @_conv_row_kernel(%arg0: i32, %arg1: i32, %arg2: memref<512x3xf32, #tpu.memory_space<any>>, %arg3: memref<3x9x64xbf16, #tpu.memory_space<vmem>>, %arg4: memref<1x64xf32, #tpu.memory_space<vmem>>, %arg5: memref<1x128x64xf32, #tpu.memory_space<vmem>>, %arg6: memref<176x3xf32, #tpu.memory_space<vmem>>, %arg7: memref<3x!tpu.dma_semaphore, #tpu.memory_space<semaphore_mem>>) attributes {dimension_semantics = [#tpu.dimension_semantics<parallel>, #tpu.dimension_semantics<parallel>], iteration_bounds = array<i64: 2, 2>, scalar_prefetch = 0 : i64, scratch_operands = 2 : i64, tpu.core_type = #tpu.core_type<tc>, window_params = [{}, {pipeline_mode = #tpu.pipeline_mode<synchronous>, transform_indices = @transform_1, window_bounds = array<i64: 3, 9, 64>}, {pipeline_mode = #tpu.pipeline_mode<synchronous>, transform_indices = @transform_2, window_bounds = array<i64: 1, 64>}, {transform_indices = @transform_3, window_bounds = array<i64: 1, 128, 64>}]} {
    %c16_i32 = arith.constant 16 : i32
    %0 = arith.muli %arg0, %c16_i32 : i32
    %c8_i32 = arith.constant 8 : i32
    %1 = arith.muli %arg1, %c8_i32 : i32
    %2 = arith.addi %0, %1 : i32
    %c16_i32_0 = arith.constant 16 : i32
    %3 = arith.muli %2, %c16_i32_0 : i32
    %c0_i32 = arith.constant 0 : i32
    %c0_i32_1 = arith.constant 0 : i32
    %4 = tpu.memref_slice %arg2[%3, %c0_i32_1] : memref<512x3xf32, #tpu.memory_space<any>> -> memref<128x3xf32, #tpu.memory_space<any>>
    %c24_i32 = arith.constant 24 : i32
    %c0_i32_2 = arith.constant 0 : i32
    %5 = tpu.memref_slice %arg6[%c24_i32, %c0_i32_2] : memref<176x3xf32, #tpu.memory_space<vmem>> -> memref<128x3xf32, #tpu.memory_space<vmem>>
    %6 = tpu.memref_slice %arg7[%c0_i32] : memref<3x!tpu.dma_semaphore, #tpu.memory_space<semaphore_mem>> -> memref<1x!tpu.dma_semaphore, #tpu.memory_space<semaphore_mem>>
    %7 = tpu.memref_squeeze %6 : memref<1x!tpu.dma_semaphore, #tpu.memory_space<semaphore_mem>> -> memref<!tpu.dma_semaphore, #tpu.memory_space<semaphore_mem>>
    tpu.enqueue_dma source(%4 : memref<128x3xf32, #tpu.memory_space<any>>) target(%5 : memref<128x3xf32, #tpu.memory_space<vmem>>) target_semaphore(%7 : memref<!tpu.dma_semaphore, #tpu.memory_space<semaphore_mem>>)
    %c0_i32_3 = arith.constant 0 : i32
    %8 = arith.cmpi sgt, %arg1, %c0_i32_3 : i32
    %9 = arith.extui %8 : i1 to i32
    %c0_i32_4 = arith.constant 0 : i32
    %10 = arith.cmpi ne, %9, %c0_i32_4 : i32
    scf.if %10 {
      %c16_i32_78 = arith.constant 16 : i32
      %123 = arith.subi %3, %c16_i32_78 : i32
      %c1_i32_79 = arith.constant 1 : i32
      %c0_i32_80 = arith.constant 0 : i32
      %124 = tpu.memref_slice %arg2[%123, %c0_i32_80] : memref<512x3xf32, #tpu.memory_space<any>> -> memref<16x3xf32, #tpu.memory_space<any>>
      %c8_i32_81 = arith.constant 8 : i32
      %c0_i32_82 = arith.constant 0 : i32
      %125 = tpu.memref_slice %arg6[%c8_i32_81, %c0_i32_82] : memref<176x3xf32, #tpu.memory_space<vmem>> -> memref<16x3xf32, #tpu.memory_space<vmem>>
      %126 = tpu.memref_slice %arg7[%c1_i32_79] : memref<3x!tpu.dma_semaphore, #tpu.memory_space<semaphore_mem>> -> memref<1x!tpu.dma_semaphore, #tpu.memory_space<semaphore_mem>>
      %127 = tpu.memref_squeeze %126 : memref<1x!tpu.dma_semaphore, #tpu.memory_space<semaphore_mem>> -> memref<!tpu.dma_semaphore, #tpu.memory_space<semaphore_mem>>
      tpu.enqueue_dma source(%124 : memref<16x3xf32, #tpu.memory_space<any>>) target(%125 : memref<16x3xf32, #tpu.memory_space<vmem>>) target_semaphore(%127 : memref<!tpu.dma_semaphore, #tpu.memory_space<semaphore_mem>>)
      %c1_i32_83 = arith.constant 1 : i32
      %c0_i32_84 = arith.constant 0 : i32
      %128 = tpu.memref_slice %arg2[%123, %c0_i32_84] : memref<512x3xf32, #tpu.memory_space<any>> -> memref<16x3xf32, #tpu.memory_space<any>>
      %c8_i32_85 = arith.constant 8 : i32
      %c0_i32_86 = arith.constant 0 : i32
      %129 = tpu.memref_slice %arg6[%c8_i32_85, %c0_i32_86] : memref<176x3xf32, #tpu.memory_space<vmem>> -> memref<16x3xf32, #tpu.memory_space<vmem>>
      %130 = tpu.memref_slice %arg7[%c1_i32_83] : memref<3x!tpu.dma_semaphore, #tpu.memory_space<semaphore_mem>> -> memref<1x!tpu.dma_semaphore, #tpu.memory_space<semaphore_mem>>
      %131 = tpu.memref_squeeze %130 : memref<1x!tpu.dma_semaphore, #tpu.memory_space<semaphore_mem>> -> memref<!tpu.dma_semaphore, #tpu.memory_space<semaphore_mem>>
      tpu.wait_dma2 semaphore(%131 : memref<!tpu.dma_semaphore, #tpu.memory_space<semaphore_mem>>) src(%128 : memref<16x3xf32, #tpu.memory_space<any>>) dst(%129 : memref<16x3xf32, #tpu.memory_space<vmem>>)
    } else {
    }
    %c0_i32_5 = arith.constant 0 : i32
    %11 = arith.cmpi eq, %arg1, %c0_i32_5 : i32
    %12 = arith.extui %11 : i1 to i32
    %c0_i32_6 = arith.constant 0 : i32
    %13 = arith.cmpi ne, %12, %c0_i32_6 : i32
    scf.if %13 {
      %cst_78 = arith.constant 0.000000e+00 : f32
      %123 = vector.broadcast %cst_78 : f32 to vector<16x3xf32>
      %c8_79 = arith.constant 8 : index
      %c0_80 = arith.constant 0 : index
      %124 = vector.load %arg6[%c8_79, %c0_80] : memref<176x3xf32, #tpu.memory_space<vmem>>, vector<16x3xf32>
      tpu.vector_store %arg6[%c8_79, %c0_80], %123 {strides = array<i32>} : memref<176x3xf32, #tpu.memory_space<vmem>>, vector<16x3xf32>,
    } else {
    }
    %c1_i32 = arith.constant 1 : i32
    %14 = arith.cmpi slt, %arg1, %c1_i32 : i32
    %15 = arith.extui %14 : i1 to i32
    %c0_i32_7 = arith.constant 0 : i32
    %16 = arith.cmpi ne, %15, %c0_i32_7 : i32
    scf.if %16 {
      %c128_i32 = arith.constant 128 : i32
      %123 = arith.addi %3, %c128_i32 : i32
      %c2_i32 = arith.constant 2 : i32
      %c0_i32_78 = arith.constant 0 : i32
      %124 = tpu.memref_slice %arg2[%123, %c0_i32_78] : memref<512x3xf32, #tpu.memory_space<any>> -> memref<16x3xf32, #tpu.memory_space<any>>
      %c152_i32 = arith.constant 152 : i32
      %c0_i32_79 = arith.constant 0 : i32
      %125 = tpu.memref_slice %arg6[%c152_i32, %c0_i32_79] : memref<176x3xf32, #tpu.memory_space<vmem>> -> memref<16x3xf32, #tpu.memory_space<vmem>>
      %126 = tpu.memref_slice %arg7[%c2_i32] : memref<3x!tpu.dma_semaphore, #tpu.memory_space<semaphore_mem>> -> memref<1x!tpu.dma_semaphore, #tpu.memory_space<semaphore_mem>>
      %127 = tpu.memref_squeeze %126 : memref<1x!tpu.dma_semaphore, #tpu.memory_space<semaphore_mem>> -> memref<!tpu.dma_semaphore, #tpu.memory_space<semaphore_mem>>
      tpu.enqueue_dma source(%124 : memref<16x3xf32, #tpu.memory_space<any>>) target(%125 : memref<16x3xf32, #tpu.memory_space<vmem>>) target_semaphore(%127 : memref<!tpu.dma_semaphore, #tpu.memory_space<semaphore_mem>>)
      %c2_i32_80 = arith.constant 2 : i32
      %c0_i32_81 = arith.constant 0 : i32
      %128 = tpu.memref_slice %arg2[%123, %c0_i32_81] : memref<512x3xf32, #tpu.memory_space<any>> -> memref<16x3xf32, #tpu.memory_space<any>>
      %c152_i32_82 = arith.constant 152 : i32
      %c0_i32_83 = arith.constant 0 : i32
      %129 = tpu.memref_slice %arg6[%c152_i32_82, %c0_i32_83] : memref<176x3xf32, #tpu.memory_space<vmem>> -> memref<16x3xf32, #tpu.memory_space<vmem>>
      %130 = tpu.memref_slice %arg7[%c2_i32_80] : memref<3x!tpu.dma_semaphore, #tpu.memory_space<semaphore_mem>> -> memref<1x!tpu.dma_semaphore, #tpu.memory_space<semaphore_mem>>
      %131 = tpu.memref_squeeze %130 : memref<1x!tpu.dma_semaphore, #tpu.memory_space<semaphore_mem>> -> memref<!tpu.dma_semaphore, #tpu.memory_space<semaphore_mem>>
      tpu.wait_dma2 semaphore(%131 : memref<!tpu.dma_semaphore, #tpu.memory_space<semaphore_mem>>) src(%128 : memref<16x3xf32, #tpu.memory_space<any>>) dst(%129 : memref<16x3xf32, #tpu.memory_space<vmem>>)
    } else {
    }
    %c1_i32_8 = arith.constant 1 : i32
    %17 = arith.cmpi eq, %arg1, %c1_i32_8 : i32
    %18 = arith.extui %17 : i1 to i32
    %c0_i32_9 = arith.constant 0 : i32
    %19 = arith.cmpi ne, %18, %c0_i32_9 : i32
    scf.if %19 {
      %cst_78 = arith.constant 0.000000e+00 : f32
      %123 = vector.broadcast %cst_78 : f32 to vector<16x3xf32>
      %c152 = arith.constant 152 : index
      %c0_79 = arith.constant 0 : index
      %124 = vector.load %arg6[%c152, %c0_79] : memref<176x3xf32, #tpu.memory_space<vmem>>, vector<16x3xf32>
      tpu.vector_store %arg6[%c152, %c0_79], %123 {strides = array<i32>} : memref<176x3xf32, #tpu.memory_space<vmem>>, vector<16x3xf32>,
    } else {
    }
    %cst = arith.constant 0.000000e+00 : f32
    %20 = vector.broadcast %cst : f32 to vector<8x3xf32>
    %c0 = arith.constant 0 : index
    %c0_10 = arith.constant 0 : index
    %21 = vector.load %arg6[%c0, %c0_10] : memref<176x3xf32, #tpu.memory_space<vmem>>, vector<8x3xf32>
    tpu.vector_store %arg6[%c0, %c0_10], %20 {strides = array<i32>} : memref<176x3xf32, #tpu.memory_space<vmem>>, vector<8x3xf32>,
    %cst_11 = arith.constant 0.000000e+00 : f32
    %22 = vector.broadcast %cst_11 : f32 to vector<8x3xf32>
    %c168 = arith.constant 168 : index
    %c0_12 = arith.constant 0 : index
    %23 = vector.load %arg6[%c168, %c0_12] : memref<176x3xf32, #tpu.memory_space<vmem>>, vector<8x3xf32>
    tpu.vector_store %arg6[%c168, %c0_12], %22 {strides = array<i32>} : memref<176x3xf32, #tpu.memory_space<vmem>>, vector<8x3xf32>,
    %c0_i32_13 = arith.constant 0 : i32
    %c0_i32_14 = arith.constant 0 : i32
    %24 = tpu.memref_slice %arg2[%3, %c0_i32_14] : memref<512x3xf32, #tpu.memory_space<any>> -> memref<128x3xf32, #tpu.memory_space<any>>
    %c24_i32_15 = arith.constant 24 : i32
    %c0_i32_16 = arith.constant 0 : i32
    %25 = tpu.memref_slice %arg6[%c24_i32_15, %c0_i32_16] : memref<176x3xf32, #tpu.memory_space<vmem>> -> memref<128x3xf32, #tpu.memory_space<vmem>>
    %26 = tpu.memref_slice %arg7[%c0_i32_13] : memref<3x!tpu.dma_semaphore, #tpu.memory_space<semaphore_mem>> -> memref<1x!tpu.dma_semaphore, #tpu.memory_space<semaphore_mem>>
    %27 = tpu.memref_squeeze %26 : memref<1x!tpu.dma_semaphore, #tpu.memory_space<semaphore_mem>> -> memref<!tpu.dma_semaphore, #tpu.memory_space<semaphore_mem>>
    tpu.wait_dma2 semaphore(%27 : memref<!tpu.dma_semaphore, #tpu.memory_space<semaphore_mem>>) src(%24 : memref<128x3xf32, #tpu.memory_space<any>>) dst(%25 : memref<128x3xf32, #tpu.memory_space<vmem>>)
    %28 = tpu.iota {dimensions = array<i32: 0>} : vector<128x3xi32>
    %c16_i32_17 = arith.constant 16 : i32
    %c0_i32_18 = arith.constant 0 : i32
    %29 = arith.cmpi eq, %c16_i32_17, %c0_i32_18 : i32
    %c1_i32_19 = arith.constant 1 : i32
    %30 = arith.select %29, %c1_i32_19, %c16_i32_17 : i32
    %31 = vector.broadcast %30 : i32 to vector<128x3xi32>
    %32 = arith.remsi %28, %31 : vector<128x3xi32>
    %c0_i32_20 = arith.constant 0 : i32
    %33 = vector.broadcast %c0_i32_20 : i32 to vector<128x3xi32>
    %34 = arith.cmpi ne, %32, %33 : vector<128x3xi32>
    %c0_i32_21 = arith.constant 0 : i32
    %35 = vector.broadcast %c0_i32_21 : i32 to vector<128x3xi32>
    %36 = arith.cmpi slt, %32, %35 : vector<128x3xi32>
    %c0_i32_22 = arith.constant 0 : i32
    %37 = arith.cmpi slt, %30, %c0_i32_22 : i32
    %38 = vector.broadcast %37 : i1 to vector<128x3xi1>
    %39 = vector.broadcast %38 : vector<128x3xi1> to vector<128x3xi1>
    %40 = arith.xori %36, %39 : vector<128x3xi1>
    %41 = arith.andi %40, %34 : vector<128x3xi1>
    %42 = vector.broadcast %30 : i32 to vector<128x3xi32>
    %43 = arith.addi %32, %42 : vector<128x3xi32>
    %44 = arith.select %41, %43, %32 : vector<128x3xi1>, vector<128x3xi32>
    %c0_i32_23 = arith.constant 0 : i32
    %45 = vector.broadcast %c0_i32_23 : i32 to vector<128x3xi32>
    %46 = arith.cmpi ne, %44, %45 : vector<128x3xi32>
    %c15_i32 = arith.constant 15 : i32
    %47 = vector.broadcast %c15_i32 : i32 to vector<128x3xi32>
    %48 = arith.cmpi ne, %44, %47 : vector<128x3xi32>
    %cst_24 = arith.constant 0.000000e+00 : f32
    %49 = vector.broadcast %cst_24 : f32 to vector<128x64xf32>
    %c7 = arith.constant 7 : index
    %c0_25 = arith.constant 0 : index
    %50 = vector.load %arg6[%c7, %c0_25] : memref<176x3xf32, #tpu.memory_space<vmem>>, vector<128x3xf32>
    %cst_26 = arith.constant 0.000000e+00 : f32
    %51 = vector.broadcast %cst_26 : f32 to vector<128x3xf32>
    %52 = arith.select %46, %50, %51 : vector<128x3xi1>, vector<128x3xf32>
    %c8 = arith.constant 8 : index
    %c0_27 = arith.constant 0 : index
    %53 = vector.load %arg6[%c8, %c0_27] : memref<176x3xf32, #tpu.memory_space<vmem>>, vector<128x3xf32>
    %c9 = arith.constant 9 : index
    %c0_28 = arith.constant 0 : index
    %54 = vector.load %arg6[%c9, %c0_28] : memref<176x3xf32, #tpu.memory_space<vmem>>, vector<128x3xf32>
    %cst_29 = arith.constant 0.000000e+00 : f32
    %55 = vector.broadcast %cst_29 : f32 to vector<128x3xf32>
    %56 = arith.select %48, %54, %55 : vector<128x3xi1>, vector<128x3xf32>
    %57 = arith.truncf %52 : vector<128x3xf32> to vector<128x3xbf16>
    %c0_30 = arith.constant 0 : index
    %c0_31 = arith.constant 0 : index
    %c0_32 = arith.constant 0 : index
    %58 = vector.load %arg3[%c0_30, %c0_31, %c0_32] : memref<3x9x64xbf16, #tpu.memory_space<vmem>>, vector<1x3x64xbf16>
    %59 = vector.shape_cast %58 : vector<1x3x64xbf16> to vector<3x64xbf16>
    %cst_33 = arith.constant dense<0.000000e+00> : vector<128x64xf32>
    %60 = tpu.matmul %57, %59, %cst_33 {dimension_numbers = #tpu.dot_dimension_numbers<[1], [0], [0], [1], [0, 0, 1, 1], [], []>} : vector<128x3xbf16>, vector<3x64xbf16>, vector<128x64xf32> -> vector<128x64xf32>
    %61 = arith.addf %49, %60 : vector<128x64xf32>
    %62 = arith.truncf %53 : vector<128x3xf32> to vector<128x3xbf16>
    %c0_34 = arith.constant 0 : index
    %c3 = arith.constant 3 : index
    %c0_35 = arith.constant 0 : index
    %63 = vector.load %arg3[%c0_34, %c3, %c0_35] : memref<3x9x64xbf16, #tpu.memory_space<vmem>>, vector<1x3x64xbf16>
    %64 = vector.shape_cast %63 : vector<1x3x64xbf16> to vector<3x64xbf16>
    %cst_36 = arith.constant dense<0.000000e+00> : vector<128x64xf32>
    %65 = tpu.matmul %62, %64, %cst_36 {dimension_numbers = #tpu.dot_dimension_numbers<[1], [0], [0], [1], [0, 0, 1, 1], [], []>} : vector<128x3xbf16>, vector<3x64xbf16>, vector<128x64xf32> -> vector<128x64xf32>
    %66 = arith.addf %61, %65 : vector<128x64xf32>
    %67 = arith.truncf %56 : vector<128x3xf32> to vector<128x3xbf16>
    %c0_37 = arith.constant 0 : index
    %c6 = arith.constant 6 : index
    %c0_38 = arith.constant 0 : index
    %68 = vector.load %arg3[%c0_37, %c6, %c0_38] : memref<3x9x64xbf16, #tpu.memory_space<vmem>>, vector<1x3x64xbf16>
    %69 = vector.shape_cast %68 : vector<1x3x64xbf16> to vector<3x64xbf16>
    %cst_39 = arith.constant dense<0.000000e+00> : vector<128x64xf32>
    %70 = tpu.matmul %67, %69, %cst_39 {dimension_numbers = #tpu.dot_dimension_numbers<[1], [0], [0], [1], [0, 0, 1, 1], [], []>} : vector<128x3xbf16>, vector<3x64xbf16>, vector<128x64xf32> -> vector<128x64xf32>
    %71 = arith.addf %66, %70 : vector<128x64xf32>
    %c23 = arith.constant 23 : index
    %c0_40 = arith.constant 0 : index
    %72 = vector.load %arg6[%c23, %c0_40] : memref<176x3xf32, #tpu.memory_space<vmem>>, vector<128x3xf32>
    %cst_41 = arith.constant 0.000000e+00 : f32
    %73 = vector.broadcast %cst_41 : f32 to vector<128x3xf32>
    %74 = arith.select %46, %72, %73 : vector<128x3xi1>, vector<128x3xf32>
    %c24 = arith.constant 24 : index
    %c0_42 = arith.constant 0 : index
    %75 = vector.load %arg6[%c24, %c0_42] : memref<176x3xf32, #tpu.memory_space<vmem>>, vector<128x3xf32>
    %c25 = arith.constant 25 : index
    %c0_43 = arith.constant 0 : index
    %76 = vector.load %arg6[%c25, %c0_43] : memref<176x3xf32, #tpu.memory_space<vmem>>, vector<128x3xf32>
    %cst_44 = arith.constant 0.000000e+00 : f32
    %77 = vector.broadcast %cst_44 : f32 to vector<128x3xf32>
    %78 = arith.select %48, %76, %77 : vector<128x3xi1>, vector<128x3xf32>
    %79 = arith.truncf %74 : vector<128x3xf32> to vector<128x3xbf16>
    %c1 = arith.constant 1 : index
    %c0_45 = arith.constant 0 : index
    %c0_46 = arith.constant 0 : index
    %80 = vector.load %arg3[%c1, %c0_45, %c0_46] : memref<3x9x64xbf16, #tpu.memory_space<vmem>>, vector<1x3x64xbf16>
    %81 = vector.shape_cast %80 : vector<1x3x64xbf16> to vector<3x64xbf16>
    %cst_47 = arith.constant dense<0.000000e+00> : vector<128x64xf32>
    %82 = tpu.matmul %79, %81, %cst_47 {dimension_numbers = #tpu.dot_dimension_numbers<[1], [0], [0], [1], [0, 0, 1, 1], [], []>} : vector<128x3xbf16>, vector<3x64xbf16>, vector<128x64xf32> -> vector<128x64xf32>
    %83 = arith.addf %71, %82 : vector<128x64xf32>
    %84 = arith.truncf %75 : vector<128x3xf32> to vector<128x3xbf16>
    %c1_48 = arith.constant 1 : index
    %c3_49 = arith.constant 3 : index
    %c0_50 = arith.constant 0 : index
    %85 = vector.load %arg3[%c1_48, %c3_49, %c0_50] : memref<3x9x64xbf16, #tpu.memory_space<vmem>>, vector<1x3x64xbf16>
    %86 = vector.shape_cast %85 : vector<1x3x64xbf16> to vector<3x64xbf16>
    %cst_51 = arith.constant dense<0.000000e+00> : vector<128x64xf32>
    %87 = tpu.matmul %84, %86, %cst_51 {dimension_numbers = #tpu.dot_dimension_numbers<[1], [0], [0], [1], [0, 0, 1, 1], [], []>} : vector<128x3xbf16>, vector<3x64xbf16>, vector<128x64xf32> -> vector<128x64xf32>
    %88 = arith.addf %83, %87 : vector<128x64xf32>
    %89 = arith.truncf %78 : vector<128x3xf32> to vector<128x3xbf16>
    %c1_52 = arith.constant 1 : index
    %c6_53 = arith.constant 6 : index
    %c0_54 = arith.constant 0 : index
    %90 = vector.load %arg3[%c1_52, %c6_53, %c0_54] : memref<3x9x64xbf16, #tpu.memory_space<vmem>>, vector<1x3x64xbf16>
    %91 = vector.shape_cast %90 : vector<1x3x64xbf16> to vector<3x64xbf16>
    %cst_55 = arith.constant dense<0.000000e+00> : vector<128x64xf32>
    %92 = tpu.matmul %89, %91, %cst_55 {dimension_numbers = #tpu.dot_dimension_numbers<[1], [0], [0], [1], [0, 0, 1, 1], [], []>} : vector<128x3xbf16>, vector<3x64xbf16>, vector<128x64xf32> -> vector<128x64xf32>
    %93 = arith.addf %88, %92 : vector<128x64xf32>
    %c39 = arith.constant 39 : index
    %c0_56 = arith.constant 0 : index
    %94 = vector.load %arg6[%c39, %c0_56] : memref<176x3xf32, #tpu.memory_space<vmem>>, vector<128x3xf32>
    %cst_57 = arith.constant 0.000000e+00 : f32
    %95 = vector.broadcast %cst_57 : f32 to vector<128x3xf32>
    %96 = arith.select %46, %94, %95 : vector<128x3xi1>, vector<128x3xf32>
    %c40 = arith.constant 40 : index
    %c0_58 = arith.constant 0 : index
    %97 = vector.load %arg6[%c40, %c0_58] : memref<176x3xf32, #tpu.memory_space<vmem>>, vector<128x3xf32>
    %c41 = arith.constant 41 : index
    %c0_59 = arith.constant 0 : index
    %98 = vector.load %arg6[%c41, %c0_59] : memref<176x3xf32, #tpu.memory_space<vmem>>, vector<128x3xf32>
    %cst_60 = arith.constant 0.000000e+00 : f32
    %99 = vector.broadcast %cst_60 : f32 to vector<128x3xf32>
    %100 = arith.select %48, %98, %99 : vector<128x3xi1>, vector<128x3xf32>
    %101 = arith.truncf %96 : vector<128x3xf32> to vector<128x3xbf16>
    %c2 = arith.constant 2 : index
    %c0_61 = arith.constant 0 : index
    %c0_62 = arith.constant 0 : index
    %102 = vector.load %arg3[%c2, %c0_61, %c0_62] : memref<3x9x64xbf16, #tpu.memory_space<vmem>>, vector<1x3x64xbf16>
    %103 = vector.shape_cast %102 : vector<1x3x64xbf16> to vector<3x64xbf16>
    %cst_63 = arith.constant dense<0.000000e+00> : vector<128x64xf32>
    %104 = tpu.matmul %101, %103, %cst_63 {dimension_numbers = #tpu.dot_dimension_numbers<[1], [0], [0], [1], [0, 0, 1, 1], [], []>} : vector<128x3xbf16>, vector<3x64xbf16>, vector<128x64xf32> -> vector<128x64xf32>
    %105 = arith.addf %93, %104 : vector<128x64xf32>
    %106 = arith.truncf %97 : vector<128x3xf32> to vector<128x3xbf16>
    %c2_64 = arith.constant 2 : index
    %c3_65 = arith.constant 3 : index
    %c0_66 = arith.constant 0 : index
    %107 = vector.load %arg3[%c2_64, %c3_65, %c0_66] : memref<3x9x64xbf16, #tpu.memory_space<vmem>>, vector<1x3x64xbf16>
    %108 = vector.shape_cast %107 : vector<1x3x64xbf16> to vector<3x64xbf16>
    %cst_67 = arith.constant dense<0.000000e+00> : vector<128x64xf32>
    %109 = tpu.matmul %106, %108, %cst_67 {dimension_numbers = #tpu.dot_dimension_numbers<[1], [0], [0], [1], [0, 0, 1, 1], [], []>} : vector<128x3xbf16>, vector<3x64xbf16>, vector<128x64xf32> -> vector<128x64xf32>
    %110 = arith.addf %105, %109 : vector<128x64xf32>
    %111 = arith.truncf %100 : vector<128x3xf32> to vector<128x3xbf16>
    %c2_68 = arith.constant 2 : index
    %c6_69 = arith.constant 6 : index
    %c0_70 = arith.constant 0 : index
    %112 = vector.load %arg3[%c2_68, %c6_69, %c0_70] : memref<3x9x64xbf16, #tpu.memory_space<vmem>>, vector<1x3x64xbf16>
    %113 = vector.shape_cast %112 : vector<1x3x64xbf16> to vector<3x64xbf16>
    %cst_71 = arith.constant dense<0.000000e+00> : vector<128x64xf32>
    %114 = tpu.matmul %111, %113, %cst_71 {dimension_numbers = #tpu.dot_dimension_numbers<[1], [0], [0], [1], [0, 0, 1, 1], [], []>} : vector<128x3xbf16>, vector<3x64xbf16>, vector<128x64xf32> -> vector<128x64xf32>
    %115 = arith.addf %110, %114 : vector<128x64xf32>
    %c0_72 = arith.constant 0 : index
    %c0_73 = arith.constant 0 : index
    %116 = vector.load %arg4[%c0_72, %c0_73] : memref<1x64xf32, #tpu.memory_space<vmem>>, vector<1x64xf32>
    %117 = vector.broadcast %116 : vector<1x64xf32> to vector<128x64xf32>
    %118 = arith.addf %115, %117 : vector<128x64xf32>
    %cst_74 = arith.constant 0.000000e+00 : f32
    %119 = vector.broadcast %cst_74 : f32 to vector<128x64xf32>
    %120 = arith.maximumf %118, %119 : vector<128x64xf32>
    %121 = vector.shape_cast %120 : vector<128x64xf32> to vector<1x128x64xf32>
    %c0_75 = arith.constant 0 : index
    %c0_76 = arith.constant 0 : index
    %c0_77 = arith.constant 0 : index
    %122 = vector.load %arg5[%c0_75, %c0_76, %c0_77] : memref<1x128x64xf32, #tpu.memory_space<vmem>>, vector<1x128x64xf32>
    tpu.vector_store %arg5[%c0_75, %c0_76, %c0_77], %121 {strides = array<i32>} : memref<1x128x64xf32, #tpu.memory_space<vmem>>, vector<1x128x64xf32>,
    return
  }
  func.func @transform_1(%arg0: i32, %arg1: i32) -> (i32, i32, i32) {
    %c0_i32 = arith.constant 0 : i32
    %c0_i32_0 = arith.constant 0 : i32
    %c0_i32_1 = arith.constant 0 : i32
    %c0_i32_2 = arith.constant 0 : i32
    return %c0_i32, %c0_i32_0, %c0_i32_1 : i32, i32, i32
  }
  func.func @transform_2(%arg0: i32, %arg1: i32) -> (i32, i32) {
    %c0_i32 = arith.constant 0 : i32
    %c0_i32_0 = arith.constant 0 : i32
    %c0_i32_1 = arith.constant 0 : i32
    return %c0_i32, %c0_i32_0 : i32, i32
  }
  func.func @transform_3(%arg0: i32, %arg1: i32) -> (i32, i32, i32) {
    %c0_i32 = arith.constant 0 : i32
    %c0_i32_0 = arith.constant 0 : i32
    return %arg0, %arg1, %c0_i32 : i32, i32, i32
  }
}

module attributes {stable_mosaic.version = 11 : i64} {
  func.func @_conv_row_kernel(%arg0: i32, %arg1: i32, %arg2: memref<128x64xf32, #tpu.memory_space<any>>, %arg3: memref<3x192x128xbf16, #tpu.memory_space<vmem>>, %arg4: memref<1x128xf32, #tpu.memory_space<vmem>>, %arg5: memref<1x64x128xf32, #tpu.memory_space<vmem>>, %arg6: memref<96x64xf32, #tpu.memory_space<vmem>>, %arg7: memref<3x!tpu.dma_semaphore, #tpu.memory_space<semaphore_mem>>) attributes {dimension_semantics = [#tpu.dimension_semantics<parallel>, #tpu.dimension_semantics<parallel>], iteration_bounds = array<i64: 2, 1>, scalar_prefetch = 0 : i64, scratch_operands = 2 : i64, tpu.core_type = #tpu.core_type<tc>, window_params = [{}, {pipeline_mode = #tpu.pipeline_mode<synchronous>, transform_indices = @transform_1, window_bounds = array<i64: 3, 192, 128>}, {pipeline_mode = #tpu.pipeline_mode<synchronous>, transform_indices = @transform_2, window_bounds = array<i64: 1, 128>}, {transform_indices = @transform_3, window_bounds = array<i64: 1, 64, 128>}]} {
    %c8_i32 = arith.constant 8 : i32
    %0 = arith.muli %arg0, %c8_i32 : i32
    %c8_i32_0 = arith.constant 8 : i32
    %1 = arith.muli %arg1, %c8_i32_0 : i32
    %2 = arith.addi %0, %1 : i32
    %c8_i32_1 = arith.constant 8 : i32
    %3 = arith.muli %2, %c8_i32_1 : i32
    %c0_i32 = arith.constant 0 : i32
    %c0_i32_2 = arith.constant 0 : i32
    %4 = tpu.memref_slice %arg2[%3, %c0_i32_2] : memref<128x64xf32, #tpu.memory_space<any>> -> memref<64x64xf32, #tpu.memory_space<any>>
    %c16_i32 = arith.constant 16 : i32
    %c0_i32_3 = arith.constant 0 : i32
    %5 = tpu.memref_slice %arg6[%c16_i32, %c0_i32_3] : memref<96x64xf32, #tpu.memory_space<vmem>> -> memref<64x64xf32, #tpu.memory_space<vmem>>
    %6 = tpu.memref_slice %arg7[%c0_i32] : memref<3x!tpu.dma_semaphore, #tpu.memory_space<semaphore_mem>> -> memref<1x!tpu.dma_semaphore, #tpu.memory_space<semaphore_mem>>
    %7 = tpu.memref_squeeze %6 : memref<1x!tpu.dma_semaphore, #tpu.memory_space<semaphore_mem>> -> memref<!tpu.dma_semaphore, #tpu.memory_space<semaphore_mem>>
    tpu.enqueue_dma source(%4 : memref<64x64xf32, #tpu.memory_space<any>>) target(%5 : memref<64x64xf32, #tpu.memory_space<vmem>>) target_semaphore(%7 : memref<!tpu.dma_semaphore, #tpu.memory_space<semaphore_mem>>)
    %c0_i32_4 = arith.constant 0 : i32
    %8 = arith.cmpi sgt, %arg1, %c0_i32_4 : i32
    %9 = arith.extui %8 : i1 to i32
    %c0_i32_5 = arith.constant 0 : i32
    %10 = arith.cmpi ne, %9, %c0_i32_5 : i32
    scf.if %10 {
      %c8_i32_79 = arith.constant 8 : i32
      %123 = arith.subi %3, %c8_i32_79 : i32
      %c1_i32_80 = arith.constant 1 : i32
      %c0_i32_81 = arith.constant 0 : i32
      %124 = tpu.memref_slice %arg2[%123, %c0_i32_81] : memref<128x64xf32, #tpu.memory_space<any>> -> memref<8x64xf32, #tpu.memory_space<any>>
      %c8_i32_82 = arith.constant 8 : i32
      %c0_i32_83 = arith.constant 0 : i32
      %125 = tpu.memref_slice %arg6[%c8_i32_82, %c0_i32_83] : memref<96x64xf32, #tpu.memory_space<vmem>> -> memref<8x64xf32, #tpu.memory_space<vmem>>
      %126 = tpu.memref_slice %arg7[%c1_i32_80] : memref<3x!tpu.dma_semaphore, #tpu.memory_space<semaphore_mem>> -> memref<1x!tpu.dma_semaphore, #tpu.memory_space<semaphore_mem>>
      %127 = tpu.memref_squeeze %126 : memref<1x!tpu.dma_semaphore, #tpu.memory_space<semaphore_mem>> -> memref<!tpu.dma_semaphore, #tpu.memory_space<semaphore_mem>>
      tpu.enqueue_dma source(%124 : memref<8x64xf32, #tpu.memory_space<any>>) target(%125 : memref<8x64xf32, #tpu.memory_space<vmem>>) target_semaphore(%127 : memref<!tpu.dma_semaphore, #tpu.memory_space<semaphore_mem>>)
      %c1_i32_84 = arith.constant 1 : i32
      %c0_i32_85 = arith.constant 0 : i32
      %128 = tpu.memref_slice %arg2[%123, %c0_i32_85] : memref<128x64xf32, #tpu.memory_space<any>> -> memref<8x64xf32, #tpu.memory_space<any>>
      %c8_i32_86 = arith.constant 8 : i32
      %c0_i32_87 = arith.constant 0 : i32
      %129 = tpu.memref_slice %arg6[%c8_i32_86, %c0_i32_87] : memref<96x64xf32, #tpu.memory_space<vmem>> -> memref<8x64xf32, #tpu.memory_space<vmem>>
      %130 = tpu.memref_slice %arg7[%c1_i32_84] : memref<3x!tpu.dma_semaphore, #tpu.memory_space<semaphore_mem>> -> memref<1x!tpu.dma_semaphore, #tpu.memory_space<semaphore_mem>>
      %131 = tpu.memref_squeeze %130 : memref<1x!tpu.dma_semaphore, #tpu.memory_space<semaphore_mem>> -> memref<!tpu.dma_semaphore, #tpu.memory_space<semaphore_mem>>
      tpu.wait_dma2 semaphore(%131 : memref<!tpu.dma_semaphore, #tpu.memory_space<semaphore_mem>>) src(%128 : memref<8x64xf32, #tpu.memory_space<any>>) dst(%129 : memref<8x64xf32, #tpu.memory_space<vmem>>)
    } else {
    }
    %c0_i32_6 = arith.constant 0 : i32
    %11 = arith.cmpi eq, %arg1, %c0_i32_6 : i32
    %12 = arith.extui %11 : i1 to i32
    %c0_i32_7 = arith.constant 0 : i32
    %13 = arith.cmpi ne, %12, %c0_i32_7 : i32
    scf.if %13 {
      %cst_79 = arith.constant 0.000000e+00 : f32
      %123 = vector.broadcast %cst_79 : f32 to vector<8x64xf32>
      %c8_80 = arith.constant 8 : index
      %c0_81 = arith.constant 0 : index
      %124 = vector.load %arg6[%c8_80, %c0_81] : memref<96x64xf32, #tpu.memory_space<vmem>>, vector<8x64xf32>
      tpu.vector_store %arg6[%c8_80, %c0_81], %123 {strides = array<i32>} : memref<96x64xf32, #tpu.memory_space<vmem>>, vector<8x64xf32>,
    } else {
    }
    %c0_i32_8 = arith.constant 0 : i32
    %14 = arith.cmpi slt, %arg1, %c0_i32_8 : i32
    %15 = arith.extui %14 : i1 to i32
    %c0_i32_9 = arith.constant 0 : i32
    %16 = arith.cmpi ne, %15, %c0_i32_9 : i32
    scf.if %16 {
      %c64_i32 = arith.constant 64 : i32
      %123 = arith.addi %3, %c64_i32 : i32
      %c2_i32 = arith.constant 2 : i32
      %c0_i32_79 = arith.constant 0 : i32
      %124 = tpu.memref_slice %arg2[%123, %c0_i32_79] : memref<128x64xf32, #tpu.memory_space<any>> -> memref<8x64xf32, #tpu.memory_space<any>>
      %c80_i32 = arith.constant 80 : i32
      %c0_i32_80 = arith.constant 0 : i32
      %125 = tpu.memref_slice %arg6[%c80_i32, %c0_i32_80] : memref<96x64xf32, #tpu.memory_space<vmem>> -> memref<8x64xf32, #tpu.memory_space<vmem>>
      %126 = tpu.memref_slice %arg7[%c2_i32] : memref<3x!tpu.dma_semaphore, #tpu.memory_space<semaphore_mem>> -> memref<1x!tpu.dma_semaphore, #tpu.memory_space<semaphore_mem>>
      %127 = tpu.memref_squeeze %126 : memref<1x!tpu.dma_semaphore, #tpu.memory_space<semaphore_mem>> -> memref<!tpu.dma_semaphore, #tpu.memory_space<semaphore_mem>>
      tpu.enqueue_dma source(%124 : memref<8x64xf32, #tpu.memory_space<any>>) target(%125 : memref<8x64xf32, #tpu.memory_space<vmem>>) target_semaphore(%127 : memref<!tpu.dma_semaphore, #tpu.memory_space<semaphore_mem>>)
      %c2_i32_81 = arith.constant 2 : i32
      %c0_i32_82 = arith.constant 0 : i32
      %128 = tpu.memref_slice %arg2[%123, %c0_i32_82] : memref<128x64xf32, #tpu.memory_space<any>> -> memref<8x64xf32, #tpu.memory_space<any>>
      %c80_i32_83 = arith.constant 80 : i32
      %c0_i32_84 = arith.constant 0 : i32
      %129 = tpu.memref_slice %arg6[%c80_i32_83, %c0_i32_84] : memref<96x64xf32, #tpu.memory_space<vmem>> -> memref<8x64xf32, #tpu.memory_space<vmem>>
      %130 = tpu.memref_slice %arg7[%c2_i32_81] : memref<3x!tpu.dma_semaphore, #tpu.memory_space<semaphore_mem>> -> memref<1x!tpu.dma_semaphore, #tpu.memory_space<semaphore_mem>>
      %131 = tpu.memref_squeeze %130 : memref<1x!tpu.dma_semaphore, #tpu.memory_space<semaphore_mem>> -> memref<!tpu.dma_semaphore, #tpu.memory_space<semaphore_mem>>
      tpu.wait_dma2 semaphore(%131 : memref<!tpu.dma_semaphore, #tpu.memory_space<semaphore_mem>>) src(%128 : memref<8x64xf32, #tpu.memory_space<any>>) dst(%129 : memref<8x64xf32, #tpu.memory_space<vmem>>)
    } else {
    }
    %c0_i32_10 = arith.constant 0 : i32
    %17 = arith.cmpi eq, %arg1, %c0_i32_10 : i32
    %18 = arith.extui %17 : i1 to i32
    %c0_i32_11 = arith.constant 0 : i32
    %19 = arith.cmpi ne, %18, %c0_i32_11 : i32
    scf.if %19 {
      %cst_79 = arith.constant 0.000000e+00 : f32
      %123 = vector.broadcast %cst_79 : f32 to vector<8x64xf32>
      %c80 = arith.constant 80 : index
      %c0_80 = arith.constant 0 : index
      %124 = vector.load %arg6[%c80, %c0_80] : memref<96x64xf32, #tpu.memory_space<vmem>>, vector<8x64xf32>
      tpu.vector_store %arg6[%c80, %c0_80], %123 {strides = array<i32>} : memref<96x64xf32, #tpu.memory_space<vmem>>, vector<8x64xf32>,
    } else {
    }
    %cst = arith.constant 0.000000e+00 : f32
    %20 = vector.broadcast %cst : f32 to vector<8x64xf32>
    %c0 = arith.constant 0 : index
    %c0_12 = arith.constant 0 : index
    %21 = vector.load %arg6[%c0, %c0_12] : memref<96x64xf32, #tpu.memory_space<vmem>>, vector<8x64xf32>
    tpu.vector_store %arg6[%c0, %c0_12], %20 {strides = array<i32>} : memref<96x64xf32, #tpu.memory_space<vmem>>, vector<8x64xf32>,
    %cst_13 = arith.constant 0.000000e+00 : f32
    %22 = vector.broadcast %cst_13 : f32 to vector<8x64xf32>
    %c88 = arith.constant 88 : index
    %c0_14 = arith.constant 0 : index
    %23 = vector.load %arg6[%c88, %c0_14] : memref<96x64xf32, #tpu.memory_space<vmem>>, vector<8x64xf32>
    tpu.vector_store %arg6[%c88, %c0_14], %22 {strides = array<i32>} : memref<96x64xf32, #tpu.memory_space<vmem>>, vector<8x64xf32>,
    %c0_i32_15 = arith.constant 0 : i32
    %c0_i32_16 = arith.constant 0 : i32
    %24 = tpu.memref_slice %arg2[%3, %c0_i32_16] : memref<128x64xf32, #tpu.memory_space<any>> -> memref<64x64xf32, #tpu.memory_space<any>>
    %c16_i32_17 = arith.constant 16 : i32
    %c0_i32_18 = arith.constant 0 : i32
    %25 = tpu.memref_slice %arg6[%c16_i32_17, %c0_i32_18] : memref<96x64xf32, #tpu.memory_space<vmem>> -> memref<64x64xf32, #tpu.memory_space<vmem>>
    %26 = tpu.memref_slice %arg7[%c0_i32_15] : memref<3x!tpu.dma_semaphore, #tpu.memory_space<semaphore_mem>> -> memref<1x!tpu.dma_semaphore, #tpu.memory_space<semaphore_mem>>
    %27 = tpu.memref_squeeze %26 : memref<1x!tpu.dma_semaphore, #tpu.memory_space<semaphore_mem>> -> memref<!tpu.dma_semaphore, #tpu.memory_space<semaphore_mem>>
    tpu.wait_dma2 semaphore(%27 : memref<!tpu.dma_semaphore, #tpu.memory_space<semaphore_mem>>) src(%24 : memref<64x64xf32, #tpu.memory_space<any>>) dst(%25 : memref<64x64xf32, #tpu.memory_space<vmem>>)
    %28 = tpu.iota {dimensions = array<i32: 0>} : vector<64x64xi32>
    %c8_i32_19 = arith.constant 8 : i32
    %c0_i32_20 = arith.constant 0 : i32
    %29 = arith.cmpi eq, %c8_i32_19, %c0_i32_20 : i32
    %c1_i32 = arith.constant 1 : i32
    %30 = arith.select %29, %c1_i32, %c8_i32_19 : i32
    %31 = vector.broadcast %30 : i32 to vector<64x64xi32>
    %32 = arith.remsi %28, %31 : vector<64x64xi32>
    %c0_i32_21 = arith.constant 0 : i32
    %33 = vector.broadcast %c0_i32_21 : i32 to vector<64x64xi32>
    %34 = arith.cmpi ne, %32, %33 : vector<64x64xi32>
    %c0_i32_22 = arith.constant 0 : i32
    %35 = vector.broadcast %c0_i32_22 : i32 to vector<64x64xi32>
    %36 = arith.cmpi slt, %32, %35 : vector<64x64xi32>
    %c0_i32_23 = arith.constant 0 : i32
    %37 = arith.cmpi slt, %30, %c0_i32_23 : i32
    %38 = vector.broadcast %37 : i1 to vector<64x64xi1>
    %39 = vector.broadcast %38 : vector<64x64xi1> to vector<64x64xi1>
    %40 = arith.xori %36, %39 : vector<64x64xi1>
    %41 = arith.andi %40, %34 : vector<64x64xi1>
    %42 = vector.broadcast %30 : i32 to vector<64x64xi32>
    %43 = arith.addi %32, %42 : vector<64x64xi32>
    %44 = arith.select %41, %43, %32 : vector<64x64xi1>, vector<64x64xi32>
    %c0_i32_24 = arith.constant 0 : i32
    %45 = vector.broadcast %c0_i32_24 : i32 to vector<64x64xi32>
    %46 = arith.cmpi ne, %44, %45 : vector<64x64xi32>
    %c7_i32 = arith.constant 7 : i32
    %47 = vector.broadcast %c7_i32 : i32 to vector<64x64xi32>
    %48 = arith.cmpi ne, %44, %47 : vector<64x64xi32>
    %cst_25 = arith.constant 0.000000e+00 : f32
    %49 = vector.broadcast %cst_25 : f32 to vector<64x128xf32>
    %c7 = arith.constant 7 : index
    %c0_26 = arith.constant 0 : index
    %50 = vector.load %arg6[%c7, %c0_26] : memref<96x64xf32, #tpu.memory_space<vmem>>, vector<64x64xf32>
    %cst_27 = arith.constant 0.000000e+00 : f32
    %51 = vector.broadcast %cst_27 : f32 to vector<64x64xf32>
    %52 = arith.select %46, %50, %51 : vector<64x64xi1>, vector<64x64xf32>
    %c8 = arith.constant 8 : index
    %c0_28 = arith.constant 0 : index
    %53 = vector.load %arg6[%c8, %c0_28] : memref<96x64xf32, #tpu.memory_space<vmem>>, vector<64x64xf32>
    %c9 = arith.constant 9 : index
    %c0_29 = arith.constant 0 : index
    %54 = vector.load %arg6[%c9, %c0_29] : memref<96x64xf32, #tpu.memory_space<vmem>>, vector<64x64xf32>
    %cst_30 = arith.constant 0.000000e+00 : f32
    %55 = vector.broadcast %cst_30 : f32 to vector<64x64xf32>
    %56 = arith.select %48, %54, %55 : vector<64x64xi1>, vector<64x64xf32>
    %57 = arith.truncf %52 : vector<64x64xf32> to vector<64x64xbf16>
    %c0_31 = arith.constant 0 : index
    %c0_32 = arith.constant 0 : index
    %c0_33 = arith.constant 0 : index
    %58 = vector.load %arg3[%c0_31, %c0_32, %c0_33] : memref<3x192x128xbf16, #tpu.memory_space<vmem>>, vector<1x64x128xbf16>
    %59 = vector.shape_cast %58 : vector<1x64x128xbf16> to vector<64x128xbf16>
    %cst_34 = arith.constant dense<0.000000e+00> : vector<64x128xf32>
    %60 = tpu.matmul %57, %59, %cst_34 {dimension_numbers = #tpu.dot_dimension_numbers<[1], [0], [0], [1], [0, 0, 1, 1], [], []>} : vector<64x64xbf16>, vector<64x128xbf16>, vector<64x128xf32> -> vector<64x128xf32>
    %61 = arith.addf %49, %60 : vector<64x128xf32>
    %62 = arith.truncf %53 : vector<64x64xf32> to vector<64x64xbf16>
    %c0_35 = arith.constant 0 : index
    %c64 = arith.constant 64 : index
    %c0_36 = arith.constant 0 : index
    %63 = vector.load %arg3[%c0_35, %c64, %c0_36] : memref<3x192x128xbf16, #tpu.memory_space<vmem>>, vector<1x64x128xbf16>
    %64 = vector.shape_cast %63 : vector<1x64x128xbf16> to vector<64x128xbf16>
    %cst_37 = arith.constant dense<0.000000e+00> : vector<64x128xf32>
    %65 = tpu.matmul %62, %64, %cst_37 {dimension_numbers = #tpu.dot_dimension_numbers<[1], [0], [0], [1], [0, 0, 1, 1], [], []>} : vector<64x64xbf16>, vector<64x128xbf16>, vector<64x128xf32> -> vector<64x128xf32>
    %66 = arith.addf %61, %65 : vector<64x128xf32>
    %67 = arith.truncf %56 : vector<64x64xf32> to vector<64x64xbf16>
    %c0_38 = arith.constant 0 : index
    %c128 = arith.constant 128 : index
    %c0_39 = arith.constant 0 : index
    %68 = vector.load %arg3[%c0_38, %c128, %c0_39] : memref<3x192x128xbf16, #tpu.memory_space<vmem>>, vector<1x64x128xbf16>
    %69 = vector.shape_cast %68 : vector<1x64x128xbf16> to vector<64x128xbf16>
    %cst_40 = arith.constant dense<0.000000e+00> : vector<64x128xf32>
    %70 = tpu.matmul %67, %69, %cst_40 {dimension_numbers = #tpu.dot_dimension_numbers<[1], [0], [0], [1], [0, 0, 1, 1], [], []>} : vector<64x64xbf16>, vector<64x128xbf16>, vector<64x128xf32> -> vector<64x128xf32>
    %71 = arith.addf %66, %70 : vector<64x128xf32>
    %c15 = arith.constant 15 : index
    %c0_41 = arith.constant 0 : index
    %72 = vector.load %arg6[%c15, %c0_41] : memref<96x64xf32, #tpu.memory_space<vmem>>, vector<64x64xf32>
    %cst_42 = arith.constant 0.000000e+00 : f32
    %73 = vector.broadcast %cst_42 : f32 to vector<64x64xf32>
    %74 = arith.select %46, %72, %73 : vector<64x64xi1>, vector<64x64xf32>
    %c16 = arith.constant 16 : index
    %c0_43 = arith.constant 0 : index
    %75 = vector.load %arg6[%c16, %c0_43] : memref<96x64xf32, #tpu.memory_space<vmem>>, vector<64x64xf32>
    %c17 = arith.constant 17 : index
    %c0_44 = arith.constant 0 : index
    %76 = vector.load %arg6[%c17, %c0_44] : memref<96x64xf32, #tpu.memory_space<vmem>>, vector<64x64xf32>
    %cst_45 = arith.constant 0.000000e+00 : f32
    %77 = vector.broadcast %cst_45 : f32 to vector<64x64xf32>
    %78 = arith.select %48, %76, %77 : vector<64x64xi1>, vector<64x64xf32>
    %79 = arith.truncf %74 : vector<64x64xf32> to vector<64x64xbf16>
    %c1 = arith.constant 1 : index
    %c0_46 = arith.constant 0 : index
    %c0_47 = arith.constant 0 : index
    %80 = vector.load %arg3[%c1, %c0_46, %c0_47] : memref<3x192x128xbf16, #tpu.memory_space<vmem>>, vector<1x64x128xbf16>
    %81 = vector.shape_cast %80 : vector<1x64x128xbf16> to vector<64x128xbf16>
    %cst_48 = arith.constant dense<0.000000e+00> : vector<64x128xf32>
    %82 = tpu.matmul %79, %81, %cst_48 {dimension_numbers = #tpu.dot_dimension_numbers<[1], [0], [0], [1], [0, 0, 1, 1], [], []>} : vector<64x64xbf16>, vector<64x128xbf16>, vector<64x128xf32> -> vector<64x128xf32>
    %83 = arith.addf %71, %82 : vector<64x128xf32>
    %84 = arith.truncf %75 : vector<64x64xf32> to vector<64x64xbf16>
    %c1_49 = arith.constant 1 : index
    %c64_50 = arith.constant 64 : index
    %c0_51 = arith.constant 0 : index
    %85 = vector.load %arg3[%c1_49, %c64_50, %c0_51] : memref<3x192x128xbf16, #tpu.memory_space<vmem>>, vector<1x64x128xbf16>
    %86 = vector.shape_cast %85 : vector<1x64x128xbf16> to vector<64x128xbf16>
    %cst_52 = arith.constant dense<0.000000e+00> : vector<64x128xf32>
    %87 = tpu.matmul %84, %86, %cst_52 {dimension_numbers = #tpu.dot_dimension_numbers<[1], [0], [0], [1], [0, 0, 1, 1], [], []>} : vector<64x64xbf16>, vector<64x128xbf16>, vector<64x128xf32> -> vector<64x128xf32>
    %88 = arith.addf %83, %87 : vector<64x128xf32>
    %89 = arith.truncf %78 : vector<64x64xf32> to vector<64x64xbf16>
    %c1_53 = arith.constant 1 : index
    %c128_54 = arith.constant 128 : index
    %c0_55 = arith.constant 0 : index
    %90 = vector.load %arg3[%c1_53, %c128_54, %c0_55] : memref<3x192x128xbf16, #tpu.memory_space<vmem>>, vector<1x64x128xbf16>
    %91 = vector.shape_cast %90 : vector<1x64x128xbf16> to vector<64x128xbf16>
    %cst_56 = arith.constant dense<0.000000e+00> : vector<64x128xf32>
    %92 = tpu.matmul %89, %91, %cst_56 {dimension_numbers = #tpu.dot_dimension_numbers<[1], [0], [0], [1], [0, 0, 1, 1], [], []>} : vector<64x64xbf16>, vector<64x128xbf16>, vector<64x128xf32> -> vector<64x128xf32>
    %93 = arith.addf %88, %92 : vector<64x128xf32>
    %c23 = arith.constant 23 : index
    %c0_57 = arith.constant 0 : index
    %94 = vector.load %arg6[%c23, %c0_57] : memref<96x64xf32, #tpu.memory_space<vmem>>, vector<64x64xf32>
    %cst_58 = arith.constant 0.000000e+00 : f32
    %95 = vector.broadcast %cst_58 : f32 to vector<64x64xf32>
    %96 = arith.select %46, %94, %95 : vector<64x64xi1>, vector<64x64xf32>
    %c24 = arith.constant 24 : index
    %c0_59 = arith.constant 0 : index
    %97 = vector.load %arg6[%c24, %c0_59] : memref<96x64xf32, #tpu.memory_space<vmem>>, vector<64x64xf32>
    %c25 = arith.constant 25 : index
    %c0_60 = arith.constant 0 : index
    %98 = vector.load %arg6[%c25, %c0_60] : memref<96x64xf32, #tpu.memory_space<vmem>>, vector<64x64xf32>
    %cst_61 = arith.constant 0.000000e+00 : f32
    %99 = vector.broadcast %cst_61 : f32 to vector<64x64xf32>
    %100 = arith.select %48, %98, %99 : vector<64x64xi1>, vector<64x64xf32>
    %101 = arith.truncf %96 : vector<64x64xf32> to vector<64x64xbf16>
    %c2 = arith.constant 2 : index
    %c0_62 = arith.constant 0 : index
    %c0_63 = arith.constant 0 : index
    %102 = vector.load %arg3[%c2, %c0_62, %c0_63] : memref<3x192x128xbf16, #tpu.memory_space<vmem>>, vector<1x64x128xbf16>
    %103 = vector.shape_cast %102 : vector<1x64x128xbf16> to vector<64x128xbf16>
    %cst_64 = arith.constant dense<0.000000e+00> : vector<64x128xf32>
    %104 = tpu.matmul %101, %103, %cst_64 {dimension_numbers = #tpu.dot_dimension_numbers<[1], [0], [0], [1], [0, 0, 1, 1], [], []>} : vector<64x64xbf16>, vector<64x128xbf16>, vector<64x128xf32> -> vector<64x128xf32>
    %105 = arith.addf %93, %104 : vector<64x128xf32>
    %106 = arith.truncf %97 : vector<64x64xf32> to vector<64x64xbf16>
    %c2_65 = arith.constant 2 : index
    %c64_66 = arith.constant 64 : index
    %c0_67 = arith.constant 0 : index
    %107 = vector.load %arg3[%c2_65, %c64_66, %c0_67] : memref<3x192x128xbf16, #tpu.memory_space<vmem>>, vector<1x64x128xbf16>
    %108 = vector.shape_cast %107 : vector<1x64x128xbf16> to vector<64x128xbf16>
    %cst_68 = arith.constant dense<0.000000e+00> : vector<64x128xf32>
    %109 = tpu.matmul %106, %108, %cst_68 {dimension_numbers = #tpu.dot_dimension_numbers<[1], [0], [0], [1], [0, 0, 1, 1], [], []>} : vector<64x64xbf16>, vector<64x128xbf16>, vector<64x128xf32> -> vector<64x128xf32>
    %110 = arith.addf %105, %109 : vector<64x128xf32>
    %111 = arith.truncf %100 : vector<64x64xf32> to vector<64x64xbf16>
    %c2_69 = arith.constant 2 : index
    %c128_70 = arith.constant 128 : index
    %c0_71 = arith.constant 0 : index
    %112 = vector.load %arg3[%c2_69, %c128_70, %c0_71] : memref<3x192x128xbf16, #tpu.memory_space<vmem>>, vector<1x64x128xbf16>
    %113 = vector.shape_cast %112 : vector<1x64x128xbf16> to vector<64x128xbf16>
    %cst_72 = arith.constant dense<0.000000e+00> : vector<64x128xf32>
    %114 = tpu.matmul %111, %113, %cst_72 {dimension_numbers = #tpu.dot_dimension_numbers<[1], [0], [0], [1], [0, 0, 1, 1], [], []>} : vector<64x64xbf16>, vector<64x128xbf16>, vector<64x128xf32> -> vector<64x128xf32>
    %115 = arith.addf %110, %114 : vector<64x128xf32>
    %c0_73 = arith.constant 0 : index
    %c0_74 = arith.constant 0 : index
    %116 = vector.load %arg4[%c0_73, %c0_74] : memref<1x128xf32, #tpu.memory_space<vmem>>, vector<1x128xf32>
    %117 = vector.broadcast %116 : vector<1x128xf32> to vector<64x128xf32>
    %118 = arith.addf %115, %117 : vector<64x128xf32>
    %cst_75 = arith.constant 0.000000e+00 : f32
    %119 = vector.broadcast %cst_75 : f32 to vector<64x128xf32>
    %120 = arith.maximumf %118, %119 : vector<64x128xf32>
    %121 = vector.shape_cast %120 : vector<64x128xf32> to vector<1x64x128xf32>
    %c0_76 = arith.constant 0 : index
    %c0_77 = arith.constant 0 : index
    %c0_78 = arith.constant 0 : index
    %122 = vector.load %arg5[%c0_76, %c0_77, %c0_78] : memref<1x64x128xf32, #tpu.memory_space<vmem>>, vector<1x64x128xf32>
    tpu.vector_store %arg5[%c0_76, %c0_77, %c0_78], %121 {strides = array<i32>} : memref<1x64x128xf32, #tpu.memory_space<vmem>>, vector<1x64x128xf32>,
    return
  }
  func.func @transform_1(%arg0: i32, %arg1: i32) -> (i32, i32, i32) {
    %c0_i32 = arith.constant 0 : i32
    %c0_i32_0 = arith.constant 0 : i32
    %c0_i32_1 = arith.constant 0 : i32
    %c0_i32_2 = arith.constant 0 : i32
    return %c0_i32, %c0_i32_0, %c0_i32_1 : i32, i32, i32
  }
  func.func @transform_2(%arg0: i32, %arg1: i32) -> (i32, i32) {
    %c0_i32 = arith.constant 0 : i32
    %c0_i32_0 = arith.constant 0 : i32
    %c0_i32_1 = arith.constant 0 : i32
    return %c0_i32, %c0_i32_0 : i32, i32
  }
  func.func @transform_3(%arg0: i32, %arg1: i32) -> (i32, i32, i32) {
    %c0_i32 = arith.constant 0 : i32
    %c0_i32_0 = arith.constant 0 : i32
    return %arg0, %arg1, %c0_i32 : i32, i32, i32
  }
}

module attributes {stable_mosaic.version = 11 : i64} {
  func.func @_conv_row_kernel(%arg0: i32, %arg1: i32, %arg2: memref<512x64xf32, #tpu.memory_space<any>>, %arg3: memref<3x192x64xbf16, #tpu.memory_space<vmem>>, %arg4: memref<1x64xf32, #tpu.memory_space<vmem>>, %arg5: memref<1x32x64xf32, #tpu.memory_space<vmem>>, %arg6: memref<176x64xf32, #tpu.memory_space<vmem>>, %arg7: memref<4x32x64xf32, #tpu.memory_space<vmem>>, %arg8: memref<3x!tpu.dma_semaphore, #tpu.memory_space<semaphore_mem>>) attributes {dimension_semantics = [#tpu.dimension_semantics<parallel>, #tpu.dimension_semantics<parallel>], iteration_bounds = array<i64: 2, 2>, scalar_prefetch = 0 : i64, scratch_operands = 3 : i64, tpu.core_type = #tpu.core_type<tc>, window_params = [{}, {pipeline_mode = #tpu.pipeline_mode<synchronous>, transform_indices = @transform_1, window_bounds = array<i64: 3, 192, 64>}, {pipeline_mode = #tpu.pipeline_mode<synchronous>, transform_indices = @transform_2, window_bounds = array<i64: 1, 64>}, {transform_indices = @transform_3, window_bounds = array<i64: 1, 32, 64>}]} {
    %c16_i32 = arith.constant 16 : i32
    %0 = arith.muli %arg0, %c16_i32 : i32
    %c8_i32 = arith.constant 8 : i32
    %1 = arith.muli %arg1, %c8_i32 : i32
    %2 = arith.addi %0, %1 : i32
    %c16_i32_0 = arith.constant 16 : i32
    %3 = arith.muli %2, %c16_i32_0 : i32
    %c0_i32 = arith.constant 0 : i32
    %c0_i32_1 = arith.constant 0 : i32
    %4 = tpu.memref_slice %arg2[%3, %c0_i32_1] : memref<512x64xf32, #tpu.memory_space<any>> -> memref<128x64xf32, #tpu.memory_space<any>>
    %c24_i32 = arith.constant 24 : i32
    %c0_i32_2 = arith.constant 0 : i32
    %5 = tpu.memref_slice %arg6[%c24_i32, %c0_i32_2] : memref<176x64xf32, #tpu.memory_space<vmem>> -> memref<128x64xf32, #tpu.memory_space<vmem>>
    %6 = tpu.memref_slice %arg8[%c0_i32] : memref<3x!tpu.dma_semaphore, #tpu.memory_space<semaphore_mem>> -> memref<1x!tpu.dma_semaphore, #tpu.memory_space<semaphore_mem>>
    %7 = tpu.memref_squeeze %6 : memref<1x!tpu.dma_semaphore, #tpu.memory_space<semaphore_mem>> -> memref<!tpu.dma_semaphore, #tpu.memory_space<semaphore_mem>>
    tpu.enqueue_dma source(%4 : memref<128x64xf32, #tpu.memory_space<any>>) target(%5 : memref<128x64xf32, #tpu.memory_space<vmem>>) target_semaphore(%7 : memref<!tpu.dma_semaphore, #tpu.memory_space<semaphore_mem>>)
    %c0_i32_3 = arith.constant 0 : i32
    %8 = arith.cmpi sgt, %arg1, %c0_i32_3 : i32
    %9 = arith.extui %8 : i1 to i32
    %c0_i32_4 = arith.constant 0 : i32
    %10 = arith.cmpi ne, %9, %c0_i32_4 : i32
    scf.if %10 {
      %c16_i32_91 = arith.constant 16 : i32
      %132 = arith.subi %3, %c16_i32_91 : i32
      %c1_i32_92 = arith.constant 1 : i32
      %c0_i32_93 = arith.constant 0 : i32
      %133 = tpu.memref_slice %arg2[%132, %c0_i32_93] : memref<512x64xf32, #tpu.memory_space<any>> -> memref<16x64xf32, #tpu.memory_space<any>>
      %c8_i32_94 = arith.constant 8 : i32
      %c0_i32_95 = arith.constant 0 : i32
      %134 = tpu.memref_slice %arg6[%c8_i32_94, %c0_i32_95] : memref<176x64xf32, #tpu.memory_space<vmem>> -> memref<16x64xf32, #tpu.memory_space<vmem>>
      %135 = tpu.memref_slice %arg8[%c1_i32_92] : memref<3x!tpu.dma_semaphore, #tpu.memory_space<semaphore_mem>> -> memref<1x!tpu.dma_semaphore, #tpu.memory_space<semaphore_mem>>
      %136 = tpu.memref_squeeze %135 : memref<1x!tpu.dma_semaphore, #tpu.memory_space<semaphore_mem>> -> memref<!tpu.dma_semaphore, #tpu.memory_space<semaphore_mem>>
      tpu.enqueue_dma source(%133 : memref<16x64xf32, #tpu.memory_space<any>>) target(%134 : memref<16x64xf32, #tpu.memory_space<vmem>>) target_semaphore(%136 : memref<!tpu.dma_semaphore, #tpu.memory_space<semaphore_mem>>)
      %c1_i32_96 = arith.constant 1 : i32
      %c0_i32_97 = arith.constant 0 : i32
      %137 = tpu.memref_slice %arg2[%132, %c0_i32_97] : memref<512x64xf32, #tpu.memory_space<any>> -> memref<16x64xf32, #tpu.memory_space<any>>
      %c8_i32_98 = arith.constant 8 : i32
      %c0_i32_99 = arith.constant 0 : i32
      %138 = tpu.memref_slice %arg6[%c8_i32_98, %c0_i32_99] : memref<176x64xf32, #tpu.memory_space<vmem>> -> memref<16x64xf32, #tpu.memory_space<vmem>>
      %139 = tpu.memref_slice %arg8[%c1_i32_96] : memref<3x!tpu.dma_semaphore, #tpu.memory_space<semaphore_mem>> -> memref<1x!tpu.dma_semaphore, #tpu.memory_space<semaphore_mem>>
      %140 = tpu.memref_squeeze %139 : memref<1x!tpu.dma_semaphore, #tpu.memory_space<semaphore_mem>> -> memref<!tpu.dma_semaphore, #tpu.memory_space<semaphore_mem>>
      tpu.wait_dma2 semaphore(%140 : memref<!tpu.dma_semaphore, #tpu.memory_space<semaphore_mem>>) src(%137 : memref<16x64xf32, #tpu.memory_space<any>>) dst(%138 : memref<16x64xf32, #tpu.memory_space<vmem>>)
    } else {
    }
    %c0_i32_5 = arith.constant 0 : i32
    %11 = arith.cmpi eq, %arg1, %c0_i32_5 : i32
    %12 = arith.extui %11 : i1 to i32
    %c0_i32_6 = arith.constant 0 : i32
    %13 = arith.cmpi ne, %12, %c0_i32_6 : i32
    scf.if %13 {
      %cst_91 = arith.constant 0.000000e+00 : f32
      %132 = vector.broadcast %cst_91 : f32 to vector<16x64xf32>
      %c8_92 = arith.constant 8 : index
      %c0_93 = arith.constant 0 : index
      %133 = vector.load %arg6[%c8_92, %c0_93] : memref<176x64xf32, #tpu.memory_space<vmem>>, vector<16x64xf32>
      tpu.vector_store %arg6[%c8_92, %c0_93], %132 {strides = array<i32>} : memref<176x64xf32, #tpu.memory_space<vmem>>, vector<16x64xf32>,
    } else {
    }
    %c1_i32 = arith.constant 1 : i32
    %14 = arith.cmpi slt, %arg1, %c1_i32 : i32
    %15 = arith.extui %14 : i1 to i32
    %c0_i32_7 = arith.constant 0 : i32
    %16 = arith.cmpi ne, %15, %c0_i32_7 : i32
    scf.if %16 {
      %c128_i32 = arith.constant 128 : i32
      %132 = arith.addi %3, %c128_i32 : i32
      %c2_i32 = arith.constant 2 : i32
      %c0_i32_91 = arith.constant 0 : i32
      %133 = tpu.memref_slice %arg2[%132, %c0_i32_91] : memref<512x64xf32, #tpu.memory_space<any>> -> memref<16x64xf32, #tpu.memory_space<any>>
      %c152_i32 = arith.constant 152 : i32
      %c0_i32_92 = arith.constant 0 : i32
      %134 = tpu.memref_slice %arg6[%c152_i32, %c0_i32_92] : memref<176x64xf32, #tpu.memory_space<vmem>> -> memref<16x64xf32, #tpu.memory_space<vmem>>
      %135 = tpu.memref_slice %arg8[%c2_i32] : memref<3x!tpu.dma_semaphore, #tpu.memory_space<semaphore_mem>> -> memref<1x!tpu.dma_semaphore, #tpu.memory_space<semaphore_mem>>
      %136 = tpu.memref_squeeze %135 : memref<1x!tpu.dma_semaphore, #tpu.memory_space<semaphore_mem>> -> memref<!tpu.dma_semaphore, #tpu.memory_space<semaphore_mem>>
      tpu.enqueue_dma source(%133 : memref<16x64xf32, #tpu.memory_space<any>>) target(%134 : memref<16x64xf32, #tpu.memory_space<vmem>>) target_semaphore(%136 : memref<!tpu.dma_semaphore, #tpu.memory_space<semaphore_mem>>)
      %c2_i32_93 = arith.constant 2 : i32
      %c0_i32_94 = arith.constant 0 : i32
      %137 = tpu.memref_slice %arg2[%132, %c0_i32_94] : memref<512x64xf32, #tpu.memory_space<any>> -> memref<16x64xf32, #tpu.memory_space<any>>
      %c152_i32_95 = arith.constant 152 : i32
      %c0_i32_96 = arith.constant 0 : i32
      %138 = tpu.memref_slice %arg6[%c152_i32_95, %c0_i32_96] : memref<176x64xf32, #tpu.memory_space<vmem>> -> memref<16x64xf32, #tpu.memory_space<vmem>>
      %139 = tpu.memref_slice %arg8[%c2_i32_93] : memref<3x!tpu.dma_semaphore, #tpu.memory_space<semaphore_mem>> -> memref<1x!tpu.dma_semaphore, #tpu.memory_space<semaphore_mem>>
      %140 = tpu.memref_squeeze %139 : memref<1x!tpu.dma_semaphore, #tpu.memory_space<semaphore_mem>> -> memref<!tpu.dma_semaphore, #tpu.memory_space<semaphore_mem>>
      tpu.wait_dma2 semaphore(%140 : memref<!tpu.dma_semaphore, #tpu.memory_space<semaphore_mem>>) src(%137 : memref<16x64xf32, #tpu.memory_space<any>>) dst(%138 : memref<16x64xf32, #tpu.memory_space<vmem>>)
    } else {
    }
    %c1_i32_8 = arith.constant 1 : i32
    %17 = arith.cmpi eq, %arg1, %c1_i32_8 : i32
    %18 = arith.extui %17 : i1 to i32
    %c0_i32_9 = arith.constant 0 : i32
    %19 = arith.cmpi ne, %18, %c0_i32_9 : i32
    scf.if %19 {
      %cst_91 = arith.constant 0.000000e+00 : f32
      %132 = vector.broadcast %cst_91 : f32 to vector<16x64xf32>
      %c152 = arith.constant 152 : index
      %c0_92 = arith.constant 0 : index
      %133 = vector.load %arg6[%c152, %c0_92] : memref<176x64xf32, #tpu.memory_space<vmem>>, vector<16x64xf32>
      tpu.vector_store %arg6[%c152, %c0_92], %132 {strides = array<i32>} : memref<176x64xf32, #tpu.memory_space<vmem>>, vector<16x64xf32>,
    } else {
    }
    %cst = arith.constant 0.000000e+00 : f32
    %20 = vector.broadcast %cst : f32 to vector<8x64xf32>
    %c0 = arith.constant 0 : index
    %c0_10 = arith.constant 0 : index
    %21 = vector.load %arg6[%c0, %c0_10] : memref<176x64xf32, #tpu.memory_space<vmem>>, vector<8x64xf32>
    tpu.vector_store %arg6[%c0, %c0_10], %20 {strides = array<i32>} : memref<176x64xf32, #tpu.memory_space<vmem>>, vector<8x64xf32>,
    %cst_11 = arith.constant 0.000000e+00 : f32
    %22 = vector.broadcast %cst_11 : f32 to vector<8x64xf32>
    %c168 = arith.constant 168 : index
    %c0_12 = arith.constant 0 : index
    %23 = vector.load %arg6[%c168, %c0_12] : memref<176x64xf32, #tpu.memory_space<vmem>>, vector<8x64xf32>
    tpu.vector_store %arg6[%c168, %c0_12], %22 {strides = array<i32>} : memref<176x64xf32, #tpu.memory_space<vmem>>, vector<8x64xf32>,
    %c0_i32_13 = arith.constant 0 : i32
    %c0_i32_14 = arith.constant 0 : i32
    %24 = tpu.memref_slice %arg2[%3, %c0_i32_14] : memref<512x64xf32, #tpu.memory_space<any>> -> memref<128x64xf32, #tpu.memory_space<any>>
    %c24_i32_15 = arith.constant 24 : i32
    %c0_i32_16 = arith.constant 0 : i32
    %25 = tpu.memref_slice %arg6[%c24_i32_15, %c0_i32_16] : memref<176x64xf32, #tpu.memory_space<vmem>> -> memref<128x64xf32, #tpu.memory_space<vmem>>
    %26 = tpu.memref_slice %arg8[%c0_i32_13] : memref<3x!tpu.dma_semaphore, #tpu.memory_space<semaphore_mem>> -> memref<1x!tpu.dma_semaphore, #tpu.memory_space<semaphore_mem>>
    %27 = tpu.memref_squeeze %26 : memref<1x!tpu.dma_semaphore, #tpu.memory_space<semaphore_mem>> -> memref<!tpu.dma_semaphore, #tpu.memory_space<semaphore_mem>>
    tpu.wait_dma2 semaphore(%27 : memref<!tpu.dma_semaphore, #tpu.memory_space<semaphore_mem>>) src(%24 : memref<128x64xf32, #tpu.memory_space<any>>) dst(%25 : memref<128x64xf32, #tpu.memory_space<vmem>>)
    %28 = tpu.iota {dimensions = array<i32: 0>} : vector<128x64xi32>
    %c16_i32_17 = arith.constant 16 : i32
    %c0_i32_18 = arith.constant 0 : i32
    %29 = arith.cmpi eq, %c16_i32_17, %c0_i32_18 : i32
    %c1_i32_19 = arith.constant 1 : i32
    %30 = arith.select %29, %c1_i32_19, %c16_i32_17 : i32
    %31 = vector.broadcast %30 : i32 to vector<128x64xi32>
    %32 = arith.remsi %28, %31 : vector<128x64xi32>
    %c0_i32_20 = arith.constant 0 : i32
    %33 = vector.broadcast %c0_i32_20 : i32 to vector<128x64xi32>
    %34 = arith.cmpi ne, %32, %33 : vector<128x64xi32>
    %c0_i32_21 = arith.constant 0 : i32
    %35 = vector.broadcast %c0_i32_21 : i32 to vector<128x64xi32>
    %36 = arith.cmpi slt, %32, %35 : vector<128x64xi32>
    %c0_i32_22 = arith.constant 0 : i32
    %37 = arith.cmpi slt, %30, %c0_i32_22 : i32
    %38 = vector.broadcast %37 : i1 to vector<128x64xi1>
    %39 = vector.broadcast %38 : vector<128x64xi1> to vector<128x64xi1>
    %40 = arith.xori %36, %39 : vector<128x64xi1>
    %41 = arith.andi %40, %34 : vector<128x64xi1>
    %42 = vector.broadcast %30 : i32 to vector<128x64xi32>
    %43 = arith.addi %32, %42 : vector<128x64xi32>
    %44 = arith.select %41, %43, %32 : vector<128x64xi1>, vector<128x64xi32>
    %c0_i32_23 = arith.constant 0 : i32
    %45 = vector.broadcast %c0_i32_23 : i32 to vector<128x64xi32>
    %46 = arith.cmpi ne, %44, %45 : vector<128x64xi32>
    %c15_i32 = arith.constant 15 : i32
    %47 = vector.broadcast %c15_i32 : i32 to vector<128x64xi32>
    %48 = arith.cmpi ne, %44, %47 : vector<128x64xi32>
    %cst_24 = arith.constant 0.000000e+00 : f32
    %49 = vector.broadcast %cst_24 : f32 to vector<128x64xf32>
    %c7 = arith.constant 7 : index
    %c0_25 = arith.constant 0 : index
    %50 = vector.load %arg6[%c7, %c0_25] : memref<176x64xf32, #tpu.memory_space<vmem>>, vector<128x64xf32>
    %cst_26 = arith.constant 0.000000e+00 : f32
    %51 = vector.broadcast %cst_26 : f32 to vector<128x64xf32>
    %52 = arith.select %46, %50, %51 : vector<128x64xi1>, vector<128x64xf32>
    %c8 = arith.constant 8 : index
    %c0_27 = arith.constant 0 : index
    %53 = vector.load %arg6[%c8, %c0_27] : memref<176x64xf32, #tpu.memory_space<vmem>>, vector<128x64xf32>
    %c9 = arith.constant 9 : index
    %c0_28 = arith.constant 0 : index
    %54 = vector.load %arg6[%c9, %c0_28] : memref<176x64xf32, #tpu.memory_space<vmem>>, vector<128x64xf32>
    %cst_29 = arith.constant 0.000000e+00 : f32
    %55 = vector.broadcast %cst_29 : f32 to vector<128x64xf32>
    %56 = arith.select %48, %54, %55 : vector<128x64xi1>, vector<128x64xf32>
    %57 = arith.truncf %52 : vector<128x64xf32> to vector<128x64xbf16>
    %c0_30 = arith.constant 0 : index
    %c0_31 = arith.constant 0 : index
    %c0_32 = arith.constant 0 : index
    %58 = vector.load %arg3[%c0_30, %c0_31, %c0_32] : memref<3x192x64xbf16, #tpu.memory_space<vmem>>, vector<1x64x64xbf16>
    %59 = vector.shape_cast %58 : vector<1x64x64xbf16> to vector<64x64xbf16>
    %cst_33 = arith.constant dense<0.000000e+00> : vector<128x64xf32>
    %60 = tpu.matmul %57, %59, %cst_33 {dimension_numbers = #tpu.dot_dimension_numbers<[1], [0], [0], [1], [0, 0, 1, 1], [], []>} : vector<128x64xbf16>, vector<64x64xbf16>, vector<128x64xf32> -> vector<128x64xf32>
    %61 = arith.addf %49, %60 : vector<128x64xf32>
    %62 = arith.truncf %53 : vector<128x64xf32> to vector<128x64xbf16>
    %c0_34 = arith.constant 0 : index
    %c64 = arith.constant 64 : index
    %c0_35 = arith.constant 0 : index
    %63 = vector.load %arg3[%c0_34, %c64, %c0_35] : memref<3x192x64xbf16, #tpu.memory_space<vmem>>, vector<1x64x64xbf16>
    %64 = vector.shape_cast %63 : vector<1x64x64xbf16> to vector<64x64xbf16>
    %cst_36 = arith.constant dense<0.000000e+00> : vector<128x64xf32>
    %65 = tpu.matmul %62, %64, %cst_36 {dimension_numbers = #tpu.dot_dimension_numbers<[1], [0], [0], [1], [0, 0, 1, 1], [], []>} : vector<128x64xbf16>, vector<64x64xbf16>, vector<128x64xf32> -> vector<128x64xf32>
    %66 = arith.addf %61, %65 : vector<128x64xf32>
    %67 = arith.truncf %56 : vector<128x64xf32> to vector<128x64xbf16>
    %c0_37 = arith.constant 0 : index
    %c128 = arith.constant 128 : index
    %c0_38 = arith.constant 0 : index
    %68 = vector.load %arg3[%c0_37, %c128, %c0_38] : memref<3x192x64xbf16, #tpu.memory_space<vmem>>, vector<1x64x64xbf16>
    %69 = vector.shape_cast %68 : vector<1x64x64xbf16> to vector<64x64xbf16>
    %cst_39 = arith.constant dense<0.000000e+00> : vector<128x64xf32>
    %70 = tpu.matmul %67, %69, %cst_39 {dimension_numbers = #tpu.dot_dimension_numbers<[1], [0], [0], [1], [0, 0, 1, 1], [], []>} : vector<128x64xbf16>, vector<64x64xbf16>, vector<128x64xf32> -> vector<128x64xf32>
    %71 = arith.addf %66, %70 : vector<128x64xf32>
    %c23 = arith.constant 23 : index
    %c0_40 = arith.constant 0 : index
    %72 = vector.load %arg6[%c23, %c0_40] : memref<176x64xf32, #tpu.memory_space<vmem>>, vector<128x64xf32>
    %cst_41 = arith.constant 0.000000e+00 : f32
    %73 = vector.broadcast %cst_41 : f32 to vector<128x64xf32>
    %74 = arith.select %46, %72, %73 : vector<128x64xi1>, vector<128x64xf32>
    %c24 = arith.constant 24 : index
    %c0_42 = arith.constant 0 : index
    %75 = vector.load %arg6[%c24, %c0_42] : memref<176x64xf32, #tpu.memory_space<vmem>>, vector<128x64xf32>
    %c25 = arith.constant 25 : index
    %c0_43 = arith.constant 0 : index
    %76 = vector.load %arg6[%c25, %c0_43] : memref<176x64xf32, #tpu.memory_space<vmem>>, vector<128x64xf32>
    %cst_44 = arith.constant 0.000000e+00 : f32
    %77 = vector.broadcast %cst_44 : f32 to vector<128x64xf32>
    %78 = arith.select %48, %76, %77 : vector<128x64xi1>, vector<128x64xf32>
    %79 = arith.truncf %74 : vector<128x64xf32> to vector<128x64xbf16>
    %c1 = arith.constant 1 : index
    %c0_45 = arith.constant 0 : index
    %c0_46 = arith.constant 0 : index
    %80 = vector.load %arg3[%c1, %c0_45, %c0_46] : memref<3x192x64xbf16, #tpu.memory_space<vmem>>, vector<1x64x64xbf16>
    %81 = vector.shape_cast %80 : vector<1x64x64xbf16> to vector<64x64xbf16>
    %cst_47 = arith.constant dense<0.000000e+00> : vector<128x64xf32>
    %82 = tpu.matmul %79, %81, %cst_47 {dimension_numbers = #tpu.dot_dimension_numbers<[1], [0], [0], [1], [0, 0, 1, 1], [], []>} : vector<128x64xbf16>, vector<64x64xbf16>, vector<128x64xf32> -> vector<128x64xf32>
    %83 = arith.addf %71, %82 : vector<128x64xf32>
    %84 = arith.truncf %75 : vector<128x64xf32> to vector<128x64xbf16>
    %c1_48 = arith.constant 1 : index
    %c64_49 = arith.constant 64 : index
    %c0_50 = arith.constant 0 : index
    %85 = vector.load %arg3[%c1_48, %c64_49, %c0_50] : memref<3x192x64xbf16, #tpu.memory_space<vmem>>, vector<1x64x64xbf16>
    %86 = vector.shape_cast %85 : vector<1x64x64xbf16> to vector<64x64xbf16>
    %cst_51 = arith.constant dense<0.000000e+00> : vector<128x64xf32>
    %87 = tpu.matmul %84, %86, %cst_51 {dimension_numbers = #tpu.dot_dimension_numbers<[1], [0], [0], [1], [0, 0, 1, 1], [], []>} : vector<128x64xbf16>, vector<64x64xbf16>, vector<128x64xf32> -> vector<128x64xf32>
    %88 = arith.addf %83, %87 : vector<128x64xf32>
    %89 = arith.truncf %78 : vector<128x64xf32> to vector<128x64xbf16>
    %c1_52 = arith.constant 1 : index
    %c128_53 = arith.constant 128 : index
    %c0_54 = arith.constant 0 : index
    %90 = vector.load %arg3[%c1_52, %c128_53, %c0_54] : memref<3x192x64xbf16, #tpu.memory_space<vmem>>, vector<1x64x64xbf16>
    %91 = vector.shape_cast %90 : vector<1x64x64xbf16> to vector<64x64xbf16>
    %cst_55 = arith.constant dense<0.000000e+00> : vector<128x64xf32>
    %92 = tpu.matmul %89, %91, %cst_55 {dimension_numbers = #tpu.dot_dimension_numbers<[1], [0], [0], [1], [0, 0, 1, 1], [], []>} : vector<128x64xbf16>, vector<64x64xbf16>, vector<128x64xf32> -> vector<128x64xf32>
    %93 = arith.addf %88, %92 : vector<128x64xf32>
    %c39 = arith.constant 39 : index
    %c0_56 = arith.constant 0 : index
    %94 = vector.load %arg6[%c39, %c0_56] : memref<176x64xf32, #tpu.memory_space<vmem>>, vector<128x64xf32>
    %cst_57 = arith.constant 0.000000e+00 : f32
    %95 = vector.broadcast %cst_57 : f32 to vector<128x64xf32>
    %96 = arith.select %46, %94, %95 : vector<128x64xi1>, vector<128x64xf32>
    %c40 = arith.constant 40 : index
    %c0_58 = arith.constant 0 : index
    %97 = vector.load %arg6[%c40, %c0_58] : memref<176x64xf32, #tpu.memory_space<vmem>>, vector<128x64xf32>
    %c41 = arith.constant 41 : index
    %c0_59 = arith.constant 0 : index
    %98 = vector.load %arg6[%c41, %c0_59] : memref<176x64xf32, #tpu.memory_space<vmem>>, vector<128x64xf32>
    %cst_60 = arith.constant 0.000000e+00 : f32
    %99 = vector.broadcast %cst_60 : f32 to vector<128x64xf32>
    %100 = arith.select %48, %98, %99 : vector<128x64xi1>, vector<128x64xf32>
    %101 = arith.truncf %96 : vector<128x64xf32> to vector<128x64xbf16>
    %c2 = arith.constant 2 : index
    %c0_61 = arith.constant 0 : index
    %c0_62 = arith.constant 0 : index
    %102 = vector.load %arg3[%c2, %c0_61, %c0_62] : memref<3x192x64xbf16, #tpu.memory_space<vmem>>, vector<1x64x64xbf16>
    %103 = vector.shape_cast %102 : vector<1x64x64xbf16> to vector<64x64xbf16>
    %cst_63 = arith.constant dense<0.000000e+00> : vector<128x64xf32>
    %104 = tpu.matmul %101, %103, %cst_63 {dimension_numbers = #tpu.dot_dimension_numbers<[1], [0], [0], [1], [0, 0, 1, 1], [], []>} : vector<128x64xbf16>, vector<64x64xbf16>, vector<128x64xf32> -> vector<128x64xf32>
    %105 = arith.addf %93, %104 : vector<128x64xf32>
    %106 = arith.truncf %97 : vector<128x64xf32> to vector<128x64xbf16>
    %c2_64 = arith.constant 2 : index
    %c64_65 = arith.constant 64 : index
    %c0_66 = arith.constant 0 : index
    %107 = vector.load %arg3[%c2_64, %c64_65, %c0_66] : memref<3x192x64xbf16, #tpu.memory_space<vmem>>, vector<1x64x64xbf16>
    %108 = vector.shape_cast %107 : vector<1x64x64xbf16> to vector<64x64xbf16>
    %cst_67 = arith.constant dense<0.000000e+00> : vector<128x64xf32>
    %109 = tpu.matmul %106, %108, %cst_67 {dimension_numbers = #tpu.dot_dimension_numbers<[1], [0], [0], [1], [0, 0, 1, 1], [], []>} : vector<128x64xbf16>, vector<64x64xbf16>, vector<128x64xf32> -> vector<128x64xf32>
    %110 = arith.addf %105, %109 : vector<128x64xf32>
    %111 = arith.truncf %100 : vector<128x64xf32> to vector<128x64xbf16>
    %c2_68 = arith.constant 2 : index
    %c128_69 = arith.constant 128 : index
    %c0_70 = arith.constant 0 : index
    %112 = vector.load %arg3[%c2_68, %c128_69, %c0_70] : memref<3x192x64xbf16, #tpu.memory_space<vmem>>, vector<1x64x64xbf16>
    %113 = vector.shape_cast %112 : vector<1x64x64xbf16> to vector<64x64xbf16>
    %cst_71 = arith.constant dense<0.000000e+00> : vector<128x64xf32>
    %114 = tpu.matmul %111, %113, %cst_71 {dimension_numbers = #tpu.dot_dimension_numbers<[1], [0], [0], [1], [0, 0, 1, 1], [], []>} : vector<128x64xbf16>, vector<64x64xbf16>, vector<128x64xf32> -> vector<128x64xf32>
    %115 = arith.addf %110, %114 : vector<128x64xf32>
    %c0_72 = arith.constant 0 : index
    %c0_73 = arith.constant 0 : index
    %116 = vector.load %arg4[%c0_72, %c0_73] : memref<1x64xf32, #tpu.memory_space<vmem>>, vector<1x64xf32>
    %117 = vector.broadcast %116 : vector<1x64xf32> to vector<128x64xf32>
    %118 = arith.addf %115, %117 : vector<128x64xf32>
    %cst_74 = arith.constant 0.000000e+00 : f32
    %119 = vector.broadcast %cst_74 : f32 to vector<128x64xf32>
    %120 = arith.maximumf %118, %119 : vector<128x64xf32>
    %121 = vector.shape_cast %120 : vector<128x64xf32> to vector<4x32x64xf32>
    %c0_75 = arith.constant 0 : index
    %c0_76 = arith.constant 0 : index
    %c0_77 = arith.constant 0 : index
    %122 = vector.load %arg7[%c0_75, %c0_76, %c0_77] : memref<4x32x64xf32, #tpu.memory_space<vmem>>, vector<4x32x64xf32>
    tpu.vector_store %arg7[%c0_75, %c0_76, %c0_77], %121 {strides = array<i32>} : memref<4x32x64xf32, #tpu.memory_space<vmem>>, vector<4x32x64xf32>,
    %c0_78 = arith.constant 0 : index
    %c0_79 = arith.constant 0 : index
    %c0_80 = arith.constant 0 : index
    %123 = tpu.strided_load %arg7[%c0_78, %c0_79, %c0_80] {strides = array<i32: 1, 2, 1>} : memref<4x32x64xf32, #tpu.memory_space<vmem>>, vector<4x8x64xf32>
    %c0_81 = arith.constant 0 : index
    %c1_82 = arith.constant 1 : index
    %c0_83 = arith.constant 0 : index
    %124 = tpu.strided_load %arg7[%c0_81, %c1_82, %c0_83] {strides = array<i32: 1, 2, 1>} : memref<4x32x64xf32, #tpu.memory_space<vmem>>, vector<4x8x64xf32>
    %c0_84 = arith.constant 0 : index
    %c16 = arith.constant 16 : index
    %c0_85 = arith.constant 0 : index
    %125 = tpu.strided_load %arg7[%c0_84, %c16, %c0_85] {strides = array<i32: 1, 2, 1>} : memref<4x32x64xf32, #tpu.memory_space<vmem>>, vector<4x8x64xf32>
    %c0_86 = arith.constant 0 : index
    %c17 = arith.constant 17 : index
    %c0_87 = arith.constant 0 : index
    %126 = tpu.strided_load %arg7[%c0_86, %c17, %c0_87] {strides = array<i32: 1, 2, 1>} : memref<4x32x64xf32, #tpu.memory_space<vmem>>, vector<4x8x64xf32>
    %127 = arith.maximumf %123, %124 : vector<4x8x64xf32>
    %128 = arith.maximumf %125, %126 : vector<4x8x64xf32>
    %129 = arith.maximumf %127, %128 : vector<4x8x64xf32>
    %130 = vector.shape_cast %129 : vector<4x8x64xf32> to vector<1x32x64xf32>
    %c0_88 = arith.constant 0 : index
    %c0_89 = arith.constant 0 : index
    %c0_90 = arith.constant 0 : index
    %131 = vector.load %arg5[%c0_88, %c0_89, %c0_90] : memref<1x32x64xf32, #tpu.memory_space<vmem>>, vector<1x32x64xf32>
    tpu.vector_store %arg5[%c0_88, %c0_89, %c0_90], %130 {strides = array<i32>} : memref<1x32x64xf32, #tpu.memory_space<vmem>>, vector<1x32x64xf32>,
    return
  }
  func.func @transform_1(%arg0: i32, %arg1: i32) -> (i32, i32, i32) {
    %c0_i32 = arith.constant 0 : i32
    %c0_i32_0 = arith.constant 0 : i32
    %c0_i32_1 = arith.constant 0 : i32
    %c0_i32_2 = arith.constant 0 : i32
    return %c0_i32, %c0_i32_0, %c0_i32_1 : i32, i32, i32
  }
  func.func @transform_2(%arg0: i32, %arg1: i32) -> (i32, i32) {
    %c0_i32 = arith.constant 0 : i32
    %c0_i32_0 = arith.constant 0 : i32
    %c0_i32_1 = arith.constant 0 : i32
    return %c0_i32, %c0_i32_0 : i32, i32
  }
  func.func @transform_3(%arg0: i32, %arg1: i32) -> (i32, i32, i32) {
    %c0_i32 = arith.constant 0 : i32
    %c0_i32_0 = arith.constant 0 : i32
    return %arg0, %arg1, %c0_i32 : i32, i32, i32
  }
}

module attributes {stable_mosaic.version = 11 : i64} {
  func.func @_conv_mse_kernel(%arg0: i32, %arg1: i32, %arg2: memref<128x128xf32, #tpu.memory_space<any>>, %arg3: memref<128x128xf32, #tpu.memory_space<any>>, %arg4: memref<3x384x128xbf16, #tpu.memory_space<vmem>>, %arg5: memref<1x128xf32, #tpu.memory_space<vmem>>, %arg6: memref<1x1x1x1xf32, #tpu.memory_space<vmem>>, %arg7: memref<96x128xf32, #tpu.memory_space<vmem>>, %arg8: memref<96x128xf32, #tpu.memory_space<vmem>>, %arg9: memref<3x!tpu.dma_semaphore, #tpu.memory_space<semaphore_mem>>) attributes {dimension_semantics = [#tpu.dimension_semantics<parallel>, #tpu.dimension_semantics<parallel>], iteration_bounds = array<i64: 2, 1>, scalar_prefetch = 0 : i64, scratch_operands = 3 : i64, tpu.core_type = #tpu.core_type<tc>, window_params = [{}, {}, {pipeline_mode = #tpu.pipeline_mode<synchronous>, transform_indices = @transform_2, window_bounds = array<i64: 3, 384, 128>}, {pipeline_mode = #tpu.pipeline_mode<synchronous>, transform_indices = @transform_3, window_bounds = array<i64: 1, 128>}, {transform_indices = @transform_4, window_bounds = array<i64: 1, 1, 1, 1>}]} {
    %c8_i32 = arith.constant 8 : i32
    %0 = arith.muli %arg0, %c8_i32 : i32
    %c8_i32_0 = arith.constant 8 : i32
    %1 = arith.muli %arg1, %c8_i32_0 : i32
    %2 = arith.addi %0, %1 : i32
    %c8_i32_1 = arith.constant 8 : i32
    %3 = arith.muli %2, %c8_i32_1 : i32
    %c0_i32 = arith.constant 0 : i32
    %c0_i32_2 = arith.constant 0 : i32
    %4 = tpu.memref_slice %arg2[%3, %c0_i32_2] : memref<128x128xf32, #tpu.memory_space<any>> -> memref<64x128xf32, #tpu.memory_space<any>>
    %c16_i32 = arith.constant 16 : i32
    %c0_i32_3 = arith.constant 0 : i32
    %5 = tpu.memref_slice %arg7[%c16_i32, %c0_i32_3] : memref<96x128xf32, #tpu.memory_space<vmem>> -> memref<64x128xf32, #tpu.memory_space<vmem>>
    %6 = tpu.memref_slice %arg9[%c0_i32] : memref<3x!tpu.dma_semaphore, #tpu.memory_space<semaphore_mem>> -> memref<1x!tpu.dma_semaphore, #tpu.memory_space<semaphore_mem>>
    %7 = tpu.memref_squeeze %6 : memref<1x!tpu.dma_semaphore, #tpu.memory_space<semaphore_mem>> -> memref<!tpu.dma_semaphore, #tpu.memory_space<semaphore_mem>>
    tpu.enqueue_dma source(%4 : memref<64x128xf32, #tpu.memory_space<any>>) target(%5 : memref<64x128xf32, #tpu.memory_space<vmem>>) target_semaphore(%7 : memref<!tpu.dma_semaphore, #tpu.memory_space<semaphore_mem>>)
    %c0_i32_4 = arith.constant 0 : i32
    %8 = arith.cmpi sgt, %arg1, %c0_i32_4 : i32
    %9 = arith.extui %8 : i1 to i32
    %c0_i32_5 = arith.constant 0 : i32
    %10 = arith.cmpi ne, %9, %c0_i32_5 : i32
    scf.if %10 {
      %c8_i32_132 = arith.constant 8 : i32
      %196 = arith.subi %3, %c8_i32_132 : i32
      %c1_i32_133 = arith.constant 1 : i32
      %c0_i32_134 = arith.constant 0 : i32
      %197 = tpu.memref_slice %arg2[%196, %c0_i32_134] : memref<128x128xf32, #tpu.memory_space<any>> -> memref<8x128xf32, #tpu.memory_space<any>>
      %c8_i32_135 = arith.constant 8 : i32
      %c0_i32_136 = arith.constant 0 : i32
      %198 = tpu.memref_slice %arg7[%c8_i32_135, %c0_i32_136] : memref<96x128xf32, #tpu.memory_space<vmem>> -> memref<8x128xf32, #tpu.memory_space<vmem>>
      %199 = tpu.memref_slice %arg9[%c1_i32_133] : memref<3x!tpu.dma_semaphore, #tpu.memory_space<semaphore_mem>> -> memref<1x!tpu.dma_semaphore, #tpu.memory_space<semaphore_mem>>
      %200 = tpu.memref_squeeze %199 : memref<1x!tpu.dma_semaphore, #tpu.memory_space<semaphore_mem>> -> memref<!tpu.dma_semaphore, #tpu.memory_space<semaphore_mem>>
      tpu.enqueue_dma source(%197 : memref<8x128xf32, #tpu.memory_space<any>>) target(%198 : memref<8x128xf32, #tpu.memory_space<vmem>>) target_semaphore(%200 : memref<!tpu.dma_semaphore, #tpu.memory_space<semaphore_mem>>)
      %c1_i32_137 = arith.constant 1 : i32
      %c0_i32_138 = arith.constant 0 : i32
      %201 = tpu.memref_slice %arg2[%196, %c0_i32_138] : memref<128x128xf32, #tpu.memory_space<any>> -> memref<8x128xf32, #tpu.memory_space<any>>
      %c8_i32_139 = arith.constant 8 : i32
      %c0_i32_140 = arith.constant 0 : i32
      %202 = tpu.memref_slice %arg7[%c8_i32_139, %c0_i32_140] : memref<96x128xf32, #tpu.memory_space<vmem>> -> memref<8x128xf32, #tpu.memory_space<vmem>>
      %203 = tpu.memref_slice %arg9[%c1_i32_137] : memref<3x!tpu.dma_semaphore, #tpu.memory_space<semaphore_mem>> -> memref<1x!tpu.dma_semaphore, #tpu.memory_space<semaphore_mem>>
      %204 = tpu.memref_squeeze %203 : memref<1x!tpu.dma_semaphore, #tpu.memory_space<semaphore_mem>> -> memref<!tpu.dma_semaphore, #tpu.memory_space<semaphore_mem>>
      tpu.wait_dma2 semaphore(%204 : memref<!tpu.dma_semaphore, #tpu.memory_space<semaphore_mem>>) src(%201 : memref<8x128xf32, #tpu.memory_space<any>>) dst(%202 : memref<8x128xf32, #tpu.memory_space<vmem>>)
    } else {
    }
    %c0_i32_6 = arith.constant 0 : i32
    %11 = arith.cmpi eq, %arg1, %c0_i32_6 : i32
    %12 = arith.extui %11 : i1 to i32
    %c0_i32_7 = arith.constant 0 : i32
    %13 = arith.cmpi ne, %12, %c0_i32_7 : i32
    scf.if %13 {
      %cst_132 = arith.constant 0.000000e+00 : f32
      %196 = vector.broadcast %cst_132 : f32 to vector<8x128xf32>
      %c8_133 = arith.constant 8 : index
      %c0_134 = arith.constant 0 : index
      %197 = vector.load %arg7[%c8_133, %c0_134] : memref<96x128xf32, #tpu.memory_space<vmem>>, vector<8x128xf32>
      tpu.vector_store %arg7[%c8_133, %c0_134], %196 {strides = array<i32>} : memref<96x128xf32, #tpu.memory_space<vmem>>, vector<8x128xf32>,
    } else {
    }
    %c0_i32_8 = arith.constant 0 : i32
    %14 = arith.cmpi slt, %arg1, %c0_i32_8 : i32
    %15 = arith.extui %14 : i1 to i32
    %c0_i32_9 = arith.constant 0 : i32
    %16 = arith.cmpi ne, %15, %c0_i32_9 : i32
    scf.if %16 {
      %c64_i32 = arith.constant 64 : i32
      %196 = arith.addi %3, %c64_i32 : i32
      %c2_i32 = arith.constant 2 : i32
      %c0_i32_132 = arith.constant 0 : i32
      %197 = tpu.memref_slice %arg2[%196, %c0_i32_132] : memref<128x128xf32, #tpu.memory_space<any>> -> memref<8x128xf32, #tpu.memory_space<any>>
      %c80_i32 = arith.constant 80 : i32
      %c0_i32_133 = arith.constant 0 : i32
      %198 = tpu.memref_slice %arg7[%c80_i32, %c0_i32_133] : memref<96x128xf32, #tpu.memory_space<vmem>> -> memref<8x128xf32, #tpu.memory_space<vmem>>
      %199 = tpu.memref_slice %arg9[%c2_i32] : memref<3x!tpu.dma_semaphore, #tpu.memory_space<semaphore_mem>> -> memref<1x!tpu.dma_semaphore, #tpu.memory_space<semaphore_mem>>
      %200 = tpu.memref_squeeze %199 : memref<1x!tpu.dma_semaphore, #tpu.memory_space<semaphore_mem>> -> memref<!tpu.dma_semaphore, #tpu.memory_space<semaphore_mem>>
      tpu.enqueue_dma source(%197 : memref<8x128xf32, #tpu.memory_space<any>>) target(%198 : memref<8x128xf32, #tpu.memory_space<vmem>>) target_semaphore(%200 : memref<!tpu.dma_semaphore, #tpu.memory_space<semaphore_mem>>)
      %c2_i32_134 = arith.constant 2 : i32
      %c0_i32_135 = arith.constant 0 : i32
      %201 = tpu.memref_slice %arg2[%196, %c0_i32_135] : memref<128x128xf32, #tpu.memory_space<any>> -> memref<8x128xf32, #tpu.memory_space<any>>
      %c80_i32_136 = arith.constant 80 : i32
      %c0_i32_137 = arith.constant 0 : i32
      %202 = tpu.memref_slice %arg7[%c80_i32_136, %c0_i32_137] : memref<96x128xf32, #tpu.memory_space<vmem>> -> memref<8x128xf32, #tpu.memory_space<vmem>>
      %203 = tpu.memref_slice %arg9[%c2_i32_134] : memref<3x!tpu.dma_semaphore, #tpu.memory_space<semaphore_mem>> -> memref<1x!tpu.dma_semaphore, #tpu.memory_space<semaphore_mem>>
      %204 = tpu.memref_squeeze %203 : memref<1x!tpu.dma_semaphore, #tpu.memory_space<semaphore_mem>> -> memref<!tpu.dma_semaphore, #tpu.memory_space<semaphore_mem>>
      tpu.wait_dma2 semaphore(%204 : memref<!tpu.dma_semaphore, #tpu.memory_space<semaphore_mem>>) src(%201 : memref<8x128xf32, #tpu.memory_space<any>>) dst(%202 : memref<8x128xf32, #tpu.memory_space<vmem>>)
    } else {
    }
    %c0_i32_10 = arith.constant 0 : i32
    %17 = arith.cmpi eq, %arg1, %c0_i32_10 : i32
    %18 = arith.extui %17 : i1 to i32
    %c0_i32_11 = arith.constant 0 : i32
    %19 = arith.cmpi ne, %18, %c0_i32_11 : i32
    scf.if %19 {
      %cst_132 = arith.constant 0.000000e+00 : f32
      %196 = vector.broadcast %cst_132 : f32 to vector<8x128xf32>
      %c80 = arith.constant 80 : index
      %c0_133 = arith.constant 0 : index
      %197 = vector.load %arg7[%c80, %c0_133] : memref<96x128xf32, #tpu.memory_space<vmem>>, vector<8x128xf32>
      tpu.vector_store %arg7[%c80, %c0_133], %196 {strides = array<i32>} : memref<96x128xf32, #tpu.memory_space<vmem>>, vector<8x128xf32>,
    } else {
    }
    %cst = arith.constant 0.000000e+00 : f32
    %20 = vector.broadcast %cst : f32 to vector<8x128xf32>
    %c0 = arith.constant 0 : index
    %c0_12 = arith.constant 0 : index
    %21 = vector.load %arg7[%c0, %c0_12] : memref<96x128xf32, #tpu.memory_space<vmem>>, vector<8x128xf32>
    tpu.vector_store %arg7[%c0, %c0_12], %20 {strides = array<i32>} : memref<96x128xf32, #tpu.memory_space<vmem>>, vector<8x128xf32>,
    %cst_13 = arith.constant 0.000000e+00 : f32
    %22 = vector.broadcast %cst_13 : f32 to vector<8x128xf32>
    %c88 = arith.constant 88 : index
    %c0_14 = arith.constant 0 : index
    %23 = vector.load %arg7[%c88, %c0_14] : memref<96x128xf32, #tpu.memory_space<vmem>>, vector<8x128xf32>
    tpu.vector_store %arg7[%c88, %c0_14], %22 {strides = array<i32>} : memref<96x128xf32, #tpu.memory_space<vmem>>, vector<8x128xf32>,
    %c0_i32_15 = arith.constant 0 : i32
    %c0_i32_16 = arith.constant 0 : i32
    %24 = tpu.memref_slice %arg2[%3, %c0_i32_16] : memref<128x128xf32, #tpu.memory_space<any>> -> memref<64x128xf32, #tpu.memory_space<any>>
    %c16_i32_17 = arith.constant 16 : i32
    %c0_i32_18 = arith.constant 0 : i32
    %25 = tpu.memref_slice %arg7[%c16_i32_17, %c0_i32_18] : memref<96x128xf32, #tpu.memory_space<vmem>> -> memref<64x128xf32, #tpu.memory_space<vmem>>
    %26 = tpu.memref_slice %arg9[%c0_i32_15] : memref<3x!tpu.dma_semaphore, #tpu.memory_space<semaphore_mem>> -> memref<1x!tpu.dma_semaphore, #tpu.memory_space<semaphore_mem>>
    %27 = tpu.memref_squeeze %26 : memref<1x!tpu.dma_semaphore, #tpu.memory_space<semaphore_mem>> -> memref<!tpu.dma_semaphore, #tpu.memory_space<semaphore_mem>>
    tpu.wait_dma2 semaphore(%27 : memref<!tpu.dma_semaphore, #tpu.memory_space<semaphore_mem>>) src(%24 : memref<64x128xf32, #tpu.memory_space<any>>) dst(%25 : memref<64x128xf32, #tpu.memory_space<vmem>>)
    %28 = tpu.iota {dimensions = array<i32: 0>} : vector<64x128xi32>
    %c8_i32_19 = arith.constant 8 : i32
    %c0_i32_20 = arith.constant 0 : i32
    %29 = arith.cmpi eq, %c8_i32_19, %c0_i32_20 : i32
    %c1_i32 = arith.constant 1 : i32
    %30 = arith.select %29, %c1_i32, %c8_i32_19 : i32
    %31 = vector.broadcast %30 : i32 to vector<64x128xi32>
    %32 = arith.remsi %28, %31 : vector<64x128xi32>
    %c0_i32_21 = arith.constant 0 : i32
    %33 = vector.broadcast %c0_i32_21 : i32 to vector<64x128xi32>
    %34 = arith.cmpi ne, %32, %33 : vector<64x128xi32>
    %c0_i32_22 = arith.constant 0 : i32
    %35 = vector.broadcast %c0_i32_22 : i32 to vector<64x128xi32>
    %36 = arith.cmpi slt, %32, %35 : vector<64x128xi32>
    %c0_i32_23 = arith.constant 0 : i32
    %37 = arith.cmpi slt, %30, %c0_i32_23 : i32
    %38 = vector.broadcast %37 : i1 to vector<64x128xi1>
    %39 = vector.broadcast %38 : vector<64x128xi1> to vector<64x128xi1>
    %40 = arith.xori %36, %39 : vector<64x128xi1>
    %41 = arith.andi %40, %34 : vector<64x128xi1>
    %42 = vector.broadcast %30 : i32 to vector<64x128xi32>
    %43 = arith.addi %32, %42 : vector<64x128xi32>
    %44 = arith.select %41, %43, %32 : vector<64x128xi1>, vector<64x128xi32>
    %c0_i32_24 = arith.constant 0 : i32
    %45 = vector.broadcast %c0_i32_24 : i32 to vector<64x128xi32>
    %46 = arith.cmpi ne, %44, %45 : vector<64x128xi32>
    %c7_i32 = arith.constant 7 : i32
    %47 = vector.broadcast %c7_i32 : i32 to vector<64x128xi32>
    %48 = arith.cmpi ne, %44, %47 : vector<64x128xi32>
    %cst_25 = arith.constant 0.000000e+00 : f32
    %49 = vector.broadcast %cst_25 : f32 to vector<64x128xf32>
    %c7 = arith.constant 7 : index
    %c0_26 = arith.constant 0 : index
    %50 = vector.load %arg7[%c7, %c0_26] : memref<96x128xf32, #tpu.memory_space<vmem>>, vector<64x128xf32>
    %cst_27 = arith.constant 0.000000e+00 : f32
    %51 = vector.broadcast %cst_27 : f32 to vector<64x128xf32>
    %52 = arith.select %46, %50, %51 : vector<64x128xi1>, vector<64x128xf32>
    %c8 = arith.constant 8 : index
    %c0_28 = arith.constant 0 : index
    %53 = vector.load %arg7[%c8, %c0_28] : memref<96x128xf32, #tpu.memory_space<vmem>>, vector<64x128xf32>
    %c9 = arith.constant 9 : index
    %c0_29 = arith.constant 0 : index
    %54 = vector.load %arg7[%c9, %c0_29] : memref<96x128xf32, #tpu.memory_space<vmem>>, vector<64x128xf32>
    %cst_30 = arith.constant 0.000000e+00 : f32
    %55 = vector.broadcast %cst_30 : f32 to vector<64x128xf32>
    %56 = arith.select %48, %54, %55 : vector<64x128xi1>, vector<64x128xf32>
    %57 = tpu.concatenate %52, %53, %56 in 1 : vector<64x128xf32>, vector<64x128xf32>, vector<64x128xf32> -> vector<64x384xf32>
    %58 = arith.truncf %57 : vector<64x384xf32> to vector<64x384xbf16>
    %c0_31 = arith.constant 0 : index
    %c0_32 = arith.constant 0 : index
    %c0_33 = arith.constant 0 : index
    %59 = vector.load %arg4[%c0_31, %c0_32, %c0_33] : memref<3x384x128xbf16, #tpu.memory_space<vmem>>, vector<1x384x128xbf16>
    %60 = vector.shape_cast %59 : vector<1x384x128xbf16> to vector<384x128xbf16>
    %cst_34 = arith.constant dense<0.000000e+00> : vector<64x128xf32>
    %61 = tpu.matmul %58, %60, %cst_34 {dimension_numbers = #tpu.dot_dimension_numbers<[1], [0], [0], [1], [0, 0, 1, 1], [], []>} : vector<64x384xbf16>, vector<384x128xbf16>, vector<64x128xf32> -> vector<64x128xf32>
    %62 = arith.addf %49, %61 : vector<64x128xf32>
    %c15 = arith.constant 15 : index
    %c0_35 = arith.constant 0 : index
    %63 = vector.load %arg7[%c15, %c0_35] : memref<96x128xf32, #tpu.memory_space<vmem>>, vector<64x128xf32>
    %cst_36 = arith.constant 0.000000e+00 : f32
    %64 = vector.broadcast %cst_36 : f32 to vector<64x128xf32>
    %65 = arith.select %46, %63, %64 : vector<64x128xi1>, vector<64x128xf32>
    %c16 = arith.constant 16 : index
    %c0_37 = arith.constant 0 : index
    %66 = vector.load %arg7[%c16, %c0_37] : memref<96x128xf32, #tpu.memory_space<vmem>>, vector<64x128xf32>
    %c17 = arith.constant 17 : index
    %c0_38 = arith.constant 0 : index
    %67 = vector.load %arg7[%c17, %c0_38] : memref<96x128xf32, #tpu.memory_space<vmem>>, vector<64x128xf32>
    %cst_39 = arith.constant 0.000000e+00 : f32
    %68 = vector.broadcast %cst_39 : f32 to vector<64x128xf32>
    %69 = arith.select %48, %67, %68 : vector<64x128xi1>, vector<64x128xf32>
    %70 = tpu.concatenate %65, %66, %69 in 1 : vector<64x128xf32>, vector<64x128xf32>, vector<64x128xf32> -> vector<64x384xf32>
    %71 = arith.truncf %70 : vector<64x384xf32> to vector<64x384xbf16>
    %c1 = arith.constant 1 : index
    %c0_40 = arith.constant 0 : index
    %c0_41 = arith.constant 0 : index
    %72 = vector.load %arg4[%c1, %c0_40, %c0_41] : memref<3x384x128xbf16, #tpu.memory_space<vmem>>, vector<1x384x128xbf16>
    %73 = vector.shape_cast %72 : vector<1x384x128xbf16> to vector<384x128xbf16>
    %cst_42 = arith.constant dense<0.000000e+00> : vector<64x128xf32>
    %74 = tpu.matmul %71, %73, %cst_42 {dimension_numbers = #tpu.dot_dimension_numbers<[1], [0], [0], [1], [0, 0, 1, 1], [], []>} : vector<64x384xbf16>, vector<384x128xbf16>, vector<64x128xf32> -> vector<64x128xf32>
    %75 = arith.addf %62, %74 : vector<64x128xf32>
    %c23 = arith.constant 23 : index
    %c0_43 = arith.constant 0 : index
    %76 = vector.load %arg7[%c23, %c0_43] : memref<96x128xf32, #tpu.memory_space<vmem>>, vector<64x128xf32>
    %cst_44 = arith.constant 0.000000e+00 : f32
    %77 = vector.broadcast %cst_44 : f32 to vector<64x128xf32>
    %78 = arith.select %46, %76, %77 : vector<64x128xi1>, vector<64x128xf32>
    %c24 = arith.constant 24 : index
    %c0_45 = arith.constant 0 : index
    %79 = vector.load %arg7[%c24, %c0_45] : memref<96x128xf32, #tpu.memory_space<vmem>>, vector<64x128xf32>
    %c25 = arith.constant 25 : index
    %c0_46 = arith.constant 0 : index
    %80 = vector.load %arg7[%c25, %c0_46] : memref<96x128xf32, #tpu.memory_space<vmem>>, vector<64x128xf32>
    %cst_47 = arith.constant 0.000000e+00 : f32
    %81 = vector.broadcast %cst_47 : f32 to vector<64x128xf32>
    %82 = arith.select %48, %80, %81 : vector<64x128xi1>, vector<64x128xf32>
    %83 = tpu.concatenate %78, %79, %82 in 1 : vector<64x128xf32>, vector<64x128xf32>, vector<64x128xf32> -> vector<64x384xf32>
    %84 = arith.truncf %83 : vector<64x384xf32> to vector<64x384xbf16>
    %c2 = arith.constant 2 : index
    %c0_48 = arith.constant 0 : index
    %c0_49 = arith.constant 0 : index
    %85 = vector.load %arg4[%c2, %c0_48, %c0_49] : memref<3x384x128xbf16, #tpu.memory_space<vmem>>, vector<1x384x128xbf16>
    %86 = vector.shape_cast %85 : vector<1x384x128xbf16> to vector<384x128xbf16>
    %cst_50 = arith.constant dense<0.000000e+00> : vector<64x128xf32>
    %87 = tpu.matmul %84, %86, %cst_50 {dimension_numbers = #tpu.dot_dimension_numbers<[1], [0], [0], [1], [0, 0, 1, 1], [], []>} : vector<64x384xbf16>, vector<384x128xbf16>, vector<64x128xf32> -> vector<64x128xf32>
    %88 = arith.addf %75, %87 : vector<64x128xf32>
    %c0_51 = arith.constant 0 : index
    %c0_52 = arith.constant 0 : index
    %89 = vector.load %arg5[%c0_51, %c0_52] : memref<1x128xf32, #tpu.memory_space<vmem>>, vector<1x128xf32>
    %90 = vector.broadcast %89 : vector<1x128xf32> to vector<64x128xf32>
    %91 = arith.addf %88, %90 : vector<64x128xf32>
    %cst_53 = arith.constant 0.000000e+00 : f32
    %92 = vector.broadcast %cst_53 : f32 to vector<64x128xf32>
    %93 = arith.maximumf %91, %92 : vector<64x128xf32>
    %c8_i32_54 = arith.constant 8 : i32
    %94 = arith.muli %arg0, %c8_i32_54 : i32
    %c8_i32_55 = arith.constant 8 : i32
    %95 = arith.muli %arg1, %c8_i32_55 : i32
    %96 = arith.addi %94, %95 : i32
    %c8_i32_56 = arith.constant 8 : i32
    %97 = arith.muli %96, %c8_i32_56 : i32
    %c0_i32_57 = arith.constant 0 : i32
    %c0_i32_58 = arith.constant 0 : i32
    %98 = tpu.memref_slice %arg3[%97, %c0_i32_58] : memref<128x128xf32, #tpu.memory_space<any>> -> memref<64x128xf32, #tpu.memory_space<any>>
    %c16_i32_59 = arith.constant 16 : i32
    %c0_i32_60 = arith.constant 0 : i32
    %99 = tpu.memref_slice %arg8[%c16_i32_59, %c0_i32_60] : memref<96x128xf32, #tpu.memory_space<vmem>> -> memref<64x128xf32, #tpu.memory_space<vmem>>
    %100 = tpu.memref_slice %arg9[%c0_i32_57] : memref<3x!tpu.dma_semaphore, #tpu.memory_space<semaphore_mem>> -> memref<1x!tpu.dma_semaphore, #tpu.memory_space<semaphore_mem>>
    %101 = tpu.memref_squeeze %100 : memref<1x!tpu.dma_semaphore, #tpu.memory_space<semaphore_mem>> -> memref<!tpu.dma_semaphore, #tpu.memory_space<semaphore_mem>>
    tpu.enqueue_dma source(%98 : memref<64x128xf32, #tpu.memory_space<any>>) target(%99 : memref<64x128xf32, #tpu.memory_space<vmem>>) target_semaphore(%101 : memref<!tpu.dma_semaphore, #tpu.memory_space<semaphore_mem>>)
    %c0_i32_61 = arith.constant 0 : i32
    %102 = arith.cmpi sgt, %arg1, %c0_i32_61 : i32
    %103 = arith.extui %102 : i1 to i32
    %c0_i32_62 = arith.constant 0 : i32
    %104 = arith.cmpi ne, %103, %c0_i32_62 : i32
    scf.if %104 {
      %c8_i32_132 = arith.constant 8 : i32
      %196 = arith.subi %97, %c8_i32_132 : i32
      %c1_i32_133 = arith.constant 1 : i32
      %c0_i32_134 = arith.constant 0 : i32
      %197 = tpu.memref_slice %arg3[%196, %c0_i32_134] : memref<128x128xf32, #tpu.memory_space<any>> -> memref<8x128xf32, #tpu.memory_space<any>>
      %c8_i32_135 = arith.constant 8 : i32
      %c0_i32_136 = arith.constant 0 : i32
      %198 = tpu.memref_slice %arg8[%c8_i32_135, %c0_i32_136] : memref<96x128xf32, #tpu.memory_space<vmem>> -> memref<8x128xf32, #tpu.memory_space<vmem>>
      %199 = tpu.memref_slice %arg9[%c1_i32_133] : memref<3x!tpu.dma_semaphore, #tpu.memory_space<semaphore_mem>> -> memref<1x!tpu.dma_semaphore, #tpu.memory_space<semaphore_mem>>
      %200 = tpu.memref_squeeze %199 : memref<1x!tpu.dma_semaphore, #tpu.memory_space<semaphore_mem>> -> memref<!tpu.dma_semaphore, #tpu.memory_space<semaphore_mem>>
      tpu.enqueue_dma source(%197 : memref<8x128xf32, #tpu.memory_space<any>>) target(%198 : memref<8x128xf32, #tpu.memory_space<vmem>>) target_semaphore(%200 : memref<!tpu.dma_semaphore, #tpu.memory_space<semaphore_mem>>)
      %c1_i32_137 = arith.constant 1 : i32
      %c0_i32_138 = arith.constant 0 : i32
      %201 = tpu.memref_slice %arg3[%196, %c0_i32_138] : memref<128x128xf32, #tpu.memory_space<any>> -> memref<8x128xf32, #tpu.memory_space<any>>
      %c8_i32_139 = arith.constant 8 : i32
      %c0_i32_140 = arith.constant 0 : i32
      %202 = tpu.memref_slice %arg8[%c8_i32_139, %c0_i32_140] : memref<96x128xf32, #tpu.memory_space<vmem>> -> memref<8x128xf32, #tpu.memory_space<vmem>>
      %203 = tpu.memref_slice %arg9[%c1_i32_137] : memref<3x!tpu.dma_semaphore, #tpu.memory_space<semaphore_mem>> -> memref<1x!tpu.dma_semaphore, #tpu.memory_space<semaphore_mem>>
      %204 = tpu.memref_squeeze %203 : memref<1x!tpu.dma_semaphore, #tpu.memory_space<semaphore_mem>> -> memref<!tpu.dma_semaphore, #tpu.memory_space<semaphore_mem>>
      tpu.wait_dma2 semaphore(%204 : memref<!tpu.dma_semaphore, #tpu.memory_space<semaphore_mem>>) src(%201 : memref<8x128xf32, #tpu.memory_space<any>>) dst(%202 : memref<8x128xf32, #tpu.memory_space<vmem>>)
    } else {
    }
    %c0_i32_63 = arith.constant 0 : i32
    %105 = arith.cmpi eq, %arg1, %c0_i32_63 : i32
    %106 = arith.extui %105 : i1 to i32
    %c0_i32_64 = arith.constant 0 : i32
    %107 = arith.cmpi ne, %106, %c0_i32_64 : i32
    scf.if %107 {
      %cst_132 = arith.constant 0.000000e+00 : f32
      %196 = vector.broadcast %cst_132 : f32 to vector<8x128xf32>
      %c8_133 = arith.constant 8 : index
      %c0_134 = arith.constant 0 : index
      %197 = vector.load %arg8[%c8_133, %c0_134] : memref<96x128xf32, #tpu.memory_space<vmem>>, vector<8x128xf32>
      tpu.vector_store %arg8[%c8_133, %c0_134], %196 {strides = array<i32>} : memref<96x128xf32, #tpu.memory_space<vmem>>, vector<8x128xf32>,
    } else {
    }
    %c0_i32_65 = arith.constant 0 : i32
    %108 = arith.cmpi slt, %arg1, %c0_i32_65 : i32
    %109 = arith.extui %108 : i1 to i32
    %c0_i32_66 = arith.constant 0 : i32
    %110 = arith.cmpi ne, %109, %c0_i32_66 : i32
    scf.if %110 {
      %c64_i32 = arith.constant 64 : i32
      %196 = arith.addi %97, %c64_i32 : i32
      %c2_i32 = arith.constant 2 : i32
      %c0_i32_132 = arith.constant 0 : i32
      %197 = tpu.memref_slice %arg3[%196, %c0_i32_132] : memref<128x128xf32, #tpu.memory_space<any>> -> memref<8x128xf32, #tpu.memory_space<any>>
      %c80_i32 = arith.constant 80 : i32
      %c0_i32_133 = arith.constant 0 : i32
      %198 = tpu.memref_slice %arg8[%c80_i32, %c0_i32_133] : memref<96x128xf32, #tpu.memory_space<vmem>> -> memref<8x128xf32, #tpu.memory_space<vmem>>
      %199 = tpu.memref_slice %arg9[%c2_i32] : memref<3x!tpu.dma_semaphore, #tpu.memory_space<semaphore_mem>> -> memref<1x!tpu.dma_semaphore, #tpu.memory_space<semaphore_mem>>
      %200 = tpu.memref_squeeze %199 : memref<1x!tpu.dma_semaphore, #tpu.memory_space<semaphore_mem>> -> memref<!tpu.dma_semaphore, #tpu.memory_space<semaphore_mem>>
      tpu.enqueue_dma source(%197 : memref<8x128xf32, #tpu.memory_space<any>>) target(%198 : memref<8x128xf32, #tpu.memory_space<vmem>>) target_semaphore(%200 : memref<!tpu.dma_semaphore, #tpu.memory_space<semaphore_mem>>)
      %c2_i32_134 = arith.constant 2 : i32
      %c0_i32_135 = arith.constant 0 : i32
      %201 = tpu.memref_slice %arg3[%196, %c0_i32_135] : memref<128x128xf32, #tpu.memory_space<any>> -> memref<8x128xf32, #tpu.memory_space<any>>
      %c80_i32_136 = arith.constant 80 : i32
      %c0_i32_137 = arith.constant 0 : i32
      %202 = tpu.memref_slice %arg8[%c80_i32_136, %c0_i32_137] : memref<96x128xf32, #tpu.memory_space<vmem>> -> memref<8x128xf32, #tpu.memory_space<vmem>>
      %203 = tpu.memref_slice %arg9[%c2_i32_134] : memref<3x!tpu.dma_semaphore, #tpu.memory_space<semaphore_mem>> -> memref<1x!tpu.dma_semaphore, #tpu.memory_space<semaphore_mem>>
      %204 = tpu.memref_squeeze %203 : memref<1x!tpu.dma_semaphore, #tpu.memory_space<semaphore_mem>> -> memref<!tpu.dma_semaphore, #tpu.memory_space<semaphore_mem>>
      tpu.wait_dma2 semaphore(%204 : memref<!tpu.dma_semaphore, #tpu.memory_space<semaphore_mem>>) src(%201 : memref<8x128xf32, #tpu.memory_space<any>>) dst(%202 : memref<8x128xf32, #tpu.memory_space<vmem>>)
    } else {
    }
    %c0_i32_67 = arith.constant 0 : i32
    %111 = arith.cmpi eq, %arg1, %c0_i32_67 : i32
    %112 = arith.extui %111 : i1 to i32
    %c0_i32_68 = arith.constant 0 : i32
    %113 = arith.cmpi ne, %112, %c0_i32_68 : i32
    scf.if %113 {
      %cst_132 = arith.constant 0.000000e+00 : f32
      %196 = vector.broadcast %cst_132 : f32 to vector<8x128xf32>
      %c80 = arith.constant 80 : index
      %c0_133 = arith.constant 0 : index
      %197 = vector.load %arg8[%c80, %c0_133] : memref<96x128xf32, #tpu.memory_space<vmem>>, vector<8x128xf32>
      tpu.vector_store %arg8[%c80, %c0_133], %196 {strides = array<i32>} : memref<96x128xf32, #tpu.memory_space<vmem>>, vector<8x128xf32>,
    } else {
    }
    %cst_69 = arith.constant 0.000000e+00 : f32
    %114 = vector.broadcast %cst_69 : f32 to vector<8x128xf32>
    %c0_70 = arith.constant 0 : index
    %c0_71 = arith.constant 0 : index
    %115 = vector.load %arg8[%c0_70, %c0_71] : memref<96x128xf32, #tpu.memory_space<vmem>>, vector<8x128xf32>
    tpu.vector_store %arg8[%c0_70, %c0_71], %114 {strides = array<i32>} : memref<96x128xf32, #tpu.memory_space<vmem>>, vector<8x128xf32>,
    %cst_72 = arith.constant 0.000000e+00 : f32
    %116 = vector.broadcast %cst_72 : f32 to vector<8x128xf32>
    %c88_73 = arith.constant 88 : index
    %c0_74 = arith.constant 0 : index
    %117 = vector.load %arg8[%c88_73, %c0_74] : memref<96x128xf32, #tpu.memory_space<vmem>>, vector<8x128xf32>
    tpu.vector_store %arg8[%c88_73, %c0_74], %116 {strides = array<i32>} : memref<96x128xf32, #tpu.memory_space<vmem>>, vector<8x128xf32>,
    %c0_i32_75 = arith.constant 0 : i32
    %c0_i32_76 = arith.constant 0 : i32
    %118 = tpu.memref_slice %arg3[%97, %c0_i32_76] : memref<128x128xf32, #tpu.memory_space<any>> -> memref<64x128xf32, #tpu.memory_space<any>>
    %c16_i32_77 = arith.constant 16 : i32
    %c0_i32_78 = arith.constant 0 : i32
    %119 = tpu.memref_slice %arg8[%c16_i32_77, %c0_i32_78] : memref<96x128xf32, #tpu.memory_space<vmem>> -> memref<64x128xf32, #tpu.memory_space<vmem>>
    %120 = tpu.memref_slice %arg9[%c0_i32_75] : memref<3x!tpu.dma_semaphore, #tpu.memory_space<semaphore_mem>> -> memref<1x!tpu.dma_semaphore, #tpu.memory_space<semaphore_mem>>
    %121 = tpu.memref_squeeze %120 : memref<1x!tpu.dma_semaphore, #tpu.memory_space<semaphore_mem>> -> memref<!tpu.dma_semaphore, #tpu.memory_space<semaphore_mem>>
    tpu.wait_dma2 semaphore(%121 : memref<!tpu.dma_semaphore, #tpu.memory_space<semaphore_mem>>) src(%118 : memref<64x128xf32, #tpu.memory_space<any>>) dst(%119 : memref<64x128xf32, #tpu.memory_space<vmem>>)
    %122 = tpu.iota {dimensions = array<i32: 0>} : vector<64x128xi32>
    %c8_i32_79 = arith.constant 8 : i32
    %c0_i32_80 = arith.constant 0 : i32
    %123 = arith.cmpi eq, %c8_i32_79, %c0_i32_80 : i32
    %c1_i32_81 = arith.constant 1 : i32
    %124 = arith.select %123, %c1_i32_81, %c8_i32_79 : i32
    %125 = vector.broadcast %124 : i32 to vector<64x128xi32>
    %126 = arith.remsi %122, %125 : vector<64x128xi32>
    %c0_i32_82 = arith.constant 0 : i32
    %127 = vector.broadcast %c0_i32_82 : i32 to vector<64x128xi32>
    %128 = arith.cmpi ne, %126, %127 : vector<64x128xi32>
    %c0_i32_83 = arith.constant 0 : i32
    %129 = vector.broadcast %c0_i32_83 : i32 to vector<64x128xi32>
    %130 = arith.cmpi slt, %126, %129 : vector<64x128xi32>
    %c0_i32_84 = arith.constant 0 : i32
    %131 = arith.cmpi slt, %124, %c0_i32_84 : i32
    %132 = vector.broadcast %131 : i1 to vector<64x128xi1>
    %133 = vector.broadcast %132 : vector<64x128xi1> to vector<64x128xi1>
    %134 = arith.xori %130, %133 : vector<64x128xi1>
    %135 = arith.andi %134, %128 : vector<64x128xi1>
    %136 = vector.broadcast %124 : i32 to vector<64x128xi32>
    %137 = arith.addi %126, %136 : vector<64x128xi32>
    %138 = arith.select %135, %137, %126 : vector<64x128xi1>, vector<64x128xi32>
    %c0_i32_85 = arith.constant 0 : i32
    %139 = vector.broadcast %c0_i32_85 : i32 to vector<64x128xi32>
    %140 = arith.cmpi ne, %138, %139 : vector<64x128xi32>
    %c7_i32_86 = arith.constant 7 : i32
    %141 = vector.broadcast %c7_i32_86 : i32 to vector<64x128xi32>
    %142 = arith.cmpi ne, %138, %141 : vector<64x128xi32>
    %cst_87 = arith.constant 0.000000e+00 : f32
    %143 = vector.broadcast %cst_87 : f32 to vector<64x128xf32>
    %c7_88 = arith.constant 7 : index
    %c0_89 = arith.constant 0 : index
    %144 = vector.load %arg8[%c7_88, %c0_89] : memref<96x128xf32, #tpu.memory_space<vmem>>, vector<64x128xf32>
    %cst_90 = arith.constant 0.000000e+00 : f32
    %145 = vector.broadcast %cst_90 : f32 to vector<64x128xf32>
    %146 = arith.select %140, %144, %145 : vector<64x128xi1>, vector<64x128xf32>
    %c8_91 = arith.constant 8 : index
    %c0_92 = arith.constant 0 : index
    %147 = vector.load %arg8[%c8_91, %c0_92] : memref<96x128xf32, #tpu.memory_space<vmem>>, vector<64x128xf32>
    %c9_93 = arith.constant 9 : index
    %c0_94 = arith.constant 0 : index
    %148 = vector.load %arg8[%c9_93, %c0_94] : memref<96x128xf32, #tpu.memory_space<vmem>>, vector<64x128xf32>
    %cst_95 = arith.constant 0.000000e+00 : f32
    %149 = vector.broadcast %cst_95 : f32 to vector<64x128xf32>
    %150 = arith.select %142, %148, %149 : vector<64x128xi1>, vector<64x128xf32>
    %151 = tpu.concatenate %146, %147, %150 in 1 : vector<64x128xf32>, vector<64x128xf32>, vector<64x128xf32> -> vector<64x384xf32>
    %152 = arith.truncf %151 : vector<64x384xf32> to vector<64x384xbf16>
    %c0_96 = arith.constant 0 : index
    %c0_97 = arith.constant 0 : index
    %c0_98 = arith.constant 0 : index
    %153 = vector.load %arg4[%c0_96, %c0_97, %c0_98] : memref<3x384x128xbf16, #tpu.memory_space<vmem>>, vector<1x384x128xbf16>
    %154 = vector.shape_cast %153 : vector<1x384x128xbf16> to vector<384x128xbf16>
    %cst_99 = arith.constant dense<0.000000e+00> : vector<64x128xf32>
    %155 = tpu.matmul %152, %154, %cst_99 {dimension_numbers = #tpu.dot_dimension_numbers<[1], [0], [0], [1], [0, 0, 1, 1], [], []>} : vector<64x384xbf16>, vector<384x128xbf16>, vector<64x128xf32> -> vector<64x128xf32>
    %156 = arith.addf %143, %155 : vector<64x128xf32>
    %c15_100 = arith.constant 15 : index
    %c0_101 = arith.constant 0 : index
    %157 = vector.load %arg8[%c15_100, %c0_101] : memref<96x128xf32, #tpu.memory_space<vmem>>, vector<64x128xf32>
    %cst_102 = arith.constant 0.000000e+00 : f32
    %158 = vector.broadcast %cst_102 : f32 to vector<64x128xf32>
    %159 = arith.select %140, %157, %158 : vector<64x128xi1>, vector<64x128xf32>
    %c16_103 = arith.constant 16 : index
    %c0_104 = arith.constant 0 : index
    %160 = vector.load %arg8[%c16_103, %c0_104] : memref<96x128xf32, #tpu.memory_space<vmem>>, vector<64x128xf32>
    %c17_105 = arith.constant 17 : index
    %c0_106 = arith.constant 0 : index
    %161 = vector.load %arg8[%c17_105, %c0_106] : memref<96x128xf32, #tpu.memory_space<vmem>>, vector<64x128xf32>
    %cst_107 = arith.constant 0.000000e+00 : f32
    %162 = vector.broadcast %cst_107 : f32 to vector<64x128xf32>
    %163 = arith.select %142, %161, %162 : vector<64x128xi1>, vector<64x128xf32>
    %164 = tpu.concatenate %159, %160, %163 in 1 : vector<64x128xf32>, vector<64x128xf32>, vector<64x128xf32> -> vector<64x384xf32>
    %165 = arith.truncf %164 : vector<64x384xf32> to vector<64x384xbf16>
    %c1_108 = arith.constant 1 : index
    %c0_109 = arith.constant 0 : index
    %c0_110 = arith.constant 0 : index
    %166 = vector.load %arg4[%c1_108, %c0_109, %c0_110] : memref<3x384x128xbf16, #tpu.memory_space<vmem>>, vector<1x384x128xbf16>
    %167 = vector.shape_cast %166 : vector<1x384x128xbf16> to vector<384x128xbf16>
    %cst_111 = arith.constant dense<0.000000e+00> : vector<64x128xf32>
    %168 = tpu.matmul %165, %167, %cst_111 {dimension_numbers = #tpu.dot_dimension_numbers<[1], [0], [0], [1], [0, 0, 1, 1], [], []>} : vector<64x384xbf16>, vector<384x128xbf16>, vector<64x128xf32> -> vector<64x128xf32>
    %169 = arith.addf %156, %168 : vector<64x128xf32>
    %c23_112 = arith.constant 23 : index
    %c0_113 = arith.constant 0 : index
    %170 = vector.load %arg8[%c23_112, %c0_113] : memref<96x128xf32, #tpu.memory_space<vmem>>, vector<64x128xf32>
    %cst_114 = arith.constant 0.000000e+00 : f32
    %171 = vector.broadcast %cst_114 : f32 to vector<64x128xf32>
    %172 = arith.select %140, %170, %171 : vector<64x128xi1>, vector<64x128xf32>
    %c24_115 = arith.constant 24 : index
    %c0_116 = arith.constant 0 : index
    %173 = vector.load %arg8[%c24_115, %c0_116] : memref<96x128xf32, #tpu.memory_space<vmem>>, vector<64x128xf32>
    %c25_117 = arith.constant 25 : index
    %c0_118 = arith.constant 0 : index
    %174 = vector.load %arg8[%c25_117, %c0_118] : memref<96x128xf32, #tpu.memory_space<vmem>>, vector<64x128xf32>
    %cst_119 = arith.constant 0.000000e+00 : f32
    %175 = vector.broadcast %cst_119 : f32 to vector<64x128xf32>
    %176 = arith.select %142, %174, %175 : vector<64x128xi1>, vector<64x128xf32>
    %177 = tpu.concatenate %172, %173, %176 in 1 : vector<64x128xf32>, vector<64x128xf32>, vector<64x128xf32> -> vector<64x384xf32>
    %178 = arith.truncf %177 : vector<64x384xf32> to vector<64x384xbf16>
    %c2_120 = arith.constant 2 : index
    %c0_121 = arith.constant 0 : index
    %c0_122 = arith.constant 0 : index
    %179 = vector.load %arg4[%c2_120, %c0_121, %c0_122] : memref<3x384x128xbf16, #tpu.memory_space<vmem>>, vector<1x384x128xbf16>
    %180 = vector.shape_cast %179 : vector<1x384x128xbf16> to vector<384x128xbf16>
    %cst_123 = arith.constant dense<0.000000e+00> : vector<64x128xf32>
    %181 = tpu.matmul %178, %180, %cst_123 {dimension_numbers = #tpu.dot_dimension_numbers<[1], [0], [0], [1], [0, 0, 1, 1], [], []>} : vector<64x384xbf16>, vector<384x128xbf16>, vector<64x128xf32> -> vector<64x128xf32>
    %182 = arith.addf %169, %181 : vector<64x128xf32>
    %c0_124 = arith.constant 0 : index
    %c0_125 = arith.constant 0 : index
    %183 = vector.load %arg5[%c0_124, %c0_125] : memref<1x128xf32, #tpu.memory_space<vmem>>, vector<1x128xf32>
    %184 = vector.broadcast %183 : vector<1x128xf32> to vector<64x128xf32>
    %185 = arith.addf %182, %184 : vector<64x128xf32>
    %cst_126 = arith.constant 0.000000e+00 : f32
    %186 = vector.broadcast %cst_126 : f32 to vector<64x128xf32>
    %187 = arith.maximumf %185, %186 : vector<64x128xf32>
    %188 = arith.subf %93, %187 : vector<64x128xf32>
    %189 = arith.mulf %188, %188 : vector<64x128xf32>
    %190 = vector.shape_cast %189 : vector<64x128xf32> to vector<1x64x128xf32>
    %cst_127 = arith.constant dense<0.000000e+00> : vector<1xf32>
    %191 = vector.multi_reduction <add>, %190, %cst_127 [1, 2] : vector<1x64x128xf32> to vector<1xf32>
    %192 = vector.shape_cast %191 : vector<1xf32> to vector<1x1x1xf32>
    %193 = vector.extract %192[0, 0, 0] : f32 from vector<1x1x1xf32>
    %194 = vector.broadcast %193 : f32 to vector<1x1x1x1xf32>
    %c0_128 = arith.constant 0 : index
    %c0_129 = arith.constant 0 : index
    %c0_130 = arith.constant 0 : index
    %c0_131 = arith.constant 0 : index
    %195 = vector.load %arg6[%c0_128, %c0_129, %c0_130, %c0_131] : memref<1x1x1x1xf32, #tpu.memory_space<vmem>>, vector<1x1x1x1xf32>
    tpu.vector_store %arg6[%c0_128, %c0_129, %c0_130, %c0_131], %194 {strides = array<i32>} : memref<1x1x1x1xf32, #tpu.memory_space<vmem>>, vector<1x1x1x1xf32>,
    return
  }
  func.func @transform_2(%arg0: i32, %arg1: i32) -> (i32, i32, i32) {
    %c0_i32 = arith.constant 0 : i32
    %c0_i32_0 = arith.constant 0 : i32
    %c0_i32_1 = arith.constant 0 : i32
    %c0_i32_2 = arith.constant 0 : i32
    return %c0_i32, %c0_i32_0, %c0_i32_1 : i32, i32, i32
  }
  func.func @transform_3(%arg0: i32, %arg1: i32) -> (i32, i32) {
    %c0_i32 = arith.constant 0 : i32
    %c0_i32_0 = arith.constant 0 : i32
    %c0_i32_1 = arith.constant 0 : i32
    return %c0_i32, %c0_i32_0 : i32, i32
  }
  func.func @transform_4(%arg0: i32, %arg1: i32) -> (i32, i32, i32, i32) {
    %c0_i32 = arith.constant 0 : i32
    %c0_i32_0 = arith.constant 0 : i32
    %c0_i32_1 = arith.constant 0 : i32
    return %arg0, %arg1, %c0_i32, %c0_i32_0 : i32, i32, i32, i32
  }
}

</mosaic_0001>

<bundles_post_ra>
// kernel: vgg_perceptual_loss.7
= control target key start
LH: loop header
LB: loop body
LE: loop exit
PB: predicated region body
PF: predicated region fallthrough
CT: control target
= control target key end

     0   :  { %s2997_s12 = smov 0   ;;  %s2999_s13 = smov 0   ;;  %s3649_s0 = inlined_call_operand.vmem [shape: f32[512,3], index: 0, kind: input, shape index: {}]   ;;  %s3650_s1 = inlined_call_operand.vmem [shape: bf16[3,9,64], index: 1, kind: input, shape index: {}]   ;;  %s3651_s2 = inlined_call_operand.vmem [shape: f32[1,64], index: 2, kind: input, shape index: {}]   ;;  %s3652_s3 = inlined_call_operand.vmem [shape: f32[2,256,64], index: 3, kind: output, shape index: {}]  }
   0x1   :  { %s3001_s14 = smov 0   ;;  %s3003_s15 = smov 0  }
   0x2   :  { %s3005_s16 = smov 0  }
   0x3 LB: > { %s22_s17 = sadd.s32 1, %s2963_s14  ;;  %s25_s18 = sadd.s32 1, %s2967_s15  ;;  %s2971_s16 = sphi %s3005_s16, %s13_s16   ;;  %s2967_s15 = sphi %s3003_s15, %s3761_s15   ;;  %s2963_s14 = sphi %s3001_s14, %s3760_s14   ;;  %s2959_s13 = sphi %s2999_s13, %s3759_s13   ;;  %s2955_s12 = sphi %s2997_s12, %s3758_s12  }
   0x4   : > { %p23_p0 = scmp.ge.s32.totalorder %s22_s17, 2  ;;  %p2394_p1 = scmp.ge.s32.totalorder %s2971_s16, 1 }
   0x5   : > { %p117_p2 = scmp.lt.s32.totalorder %s2971_s16, 5 }
   0x6   : > { %s3763_s17 = smov (%p23_p0, %s22_s17), 0  ;;  %s3765_s18 = smov (!%p23_p0, %s25_s18), %s2967_s15 }
   0x7   : > { %p118_p3 = pnand %p2394_p1, %p117_p2  ;;  %p27_p4 = scmp.ge.s32.totalorder %s3765_s18, 2 }
   0x9   : > { %s3767_s18 = smov (%p27_p4, %s3765_s18), 0  ;;  %121 = sbr.rel (%p118_p3) target bundleno = 450 (0x1c2), region = 28 }
  0x10   : > { %s2395_s19 = sshll.u32 %s2955_s12, 4  ;;  %p139_p5 = scmp.lt.s32.totalorder %s2959_s13, 1 }
  0x11   : > { %p141_p6 = scmp.lt.s32.totalorder %s2395_s19, 31  ;;  %s2398_s20 = sshll.u32 %s2959_s13, 4 }
  0x12   : > { %s3769_s13 = smov (!%p139_p5, %s2959_s13), 1  ;;  %s2399_s22 = sshll.u32 %s2955_s12, 3 }
  0x13   : > { %s3771_s19 = smov (!%p141_p6, %s2395_s19), 31  ;;  %s2396_s21 = sshll.u32 %s3769_s13, 5 }
  0x14   : > { %s144_s23 = sadd.s32 %s2396_s21, %s3771_s19  ;;  %s3031_s24 = sadd.s32 %s2399_s22, %s2398_s20 }
  0x15   : > { %s2397_s25 = sshll.u32 %s144_s23, 3  ;;  %s2400_s26 = sshll.u32 %s3031_s24, 4 }
  0x16   : > { %s3037_s29 = scalar_lea.vmem %s3652_s3, %s2397_s25  ;;  %s3044_s5 = scalar_lea.vmem %s3649_s0, %s2400_s26 }
  0x17   : > { %v187_v0 = vld [vmem:[%s3044_s5] sm:$0xff]  ;;  %v189_v1 = vld [vmem:[%s3044_s5 + $0x8] sm:$0xff]  ;;  %v191_v2 = vld [vmem:[%s3044_s5 + $0x10] sm:$0xff] }
  0x18   : > { %188 = vst [vmem:[#allocation2 + $0x18] sm:$0xff] %v187_v0  ;;  %190 = vst [vmem:[#allocation2 + $0x20] sm:$0xff] %v189_v1  ;;  %v193_v3 = vld [vmem:[%s3044_s5 + $0x18] sm:$0xff]  ;;  %v195_v4 = vld [vmem:[%s3044_s5 + $0x20] sm:$0xff] }
  0x19   : > { %192 = vst [vmem:[#allocation2 + $0x28] sm:$0xff] %v191_v2  ;;  %v197_v5 = vld [vmem:[%s3044_s5 + $0x28] sm:$0xff]  ;;  %194 = vst [vmem:[#allocation2 + $0x30] sm:$0xff] %v193_v3  ;;  %v199_v6 = vld [vmem:[%s3044_s5 + $0x30] sm:$0xff] }
  0x1a   : > { %196 = vst [vmem:[#allocation2 + $0x38] sm:$0xff] %v195_v4  ;;  %198 = vst [vmem:[#allocation2 + $0x40] sm:$0xff] %v197_v5  ;;  %v201_v7 = vld [vmem:[%s3044_s5 + $0x38] sm:$0xff]  ;;  %v203_v8 = vld [vmem:[%s3044_s5 + $0x40] sm:$0xff] }
  0x1b   : > { %200 = vst [vmem:[#allocation2 + $0x48] sm:$0xff] %v199_v6  ;;  %202 = vst [vmem:[#allocation2 + $0x50] sm:$0xff] %v201_v7  ;;  %v205_v9 = vld [vmem:[%s3044_s5 + $0x48] sm:$0xff]  ;;  %v207_v10 = vld [vmem:[%s3044_s5 + $0x50] sm:$0xff] }
  0x1c   : > { %204 = vst [vmem:[#allocation2 + $0x58] sm:$0xff] %v203_v8  ;;  %v209_v11 = vld [vmem:[%s3044_s5 + $0x58] sm:$0xff]  ;;  %206 = vst [vmem:[#allocation2 + $0x60] sm:$0xff] %v205_v9  ;;  %v211_v12 = vld [vmem:[%s3044_s5 + $0x60] sm:$0xff] }
  0x1d   : > { %208 = vst [vmem:[#allocation2 + $0x68] sm:$0xff] %v207_v10  ;;  %210 = vst [vmem:[#allocation2 + $0x70] sm:$0xff] %v209_v11  ;;  %v213_v13 = vld [vmem:[%s3044_s5 + $0x68] sm:$0xff]  ;;  %v215_v14 = vld [vmem:[%s3044_s5 + $0x70] sm:$0xff] }
  0x1e   : > { %212 = vst [vmem:[#allocation2 + $0x78] sm:$0xff] %v211_v12  ;;  %214 = vst [vmem:[#allocation2 + $0x80] sm:$0xff] %v213_v13  ;;  %v217_v15 = vld [vmem:[%s3044_s5 + $0x78] sm:$0xff] }
  0x1f   : > { %216 = vst [vmem:[#allocation2 + $0x88] sm:$0xff] %v215_v14  ;;  %218 = vst [vmem:[#allocation2 + $0x90] sm:$0xff] %v217_v15 }
  0x20   : > { %226 = vsyncadd [#allocation3], 2048  ;;  %p2401_p7 = scmp.le.s32.totalorder %s2955_s12, 0 }
  0x21   : > { %s2402_s6 = sadd.s32 (!%p2401_p7), 4294967280, %s2400_s26 }
  0x22   : > { %230 = sbr.rel (%p2401_p7) target bundleno = 44 (0x2c), region = 66  ;;  %s232_s9 = scalar_lea.vmem (!%p2401_p7), %s3649_s0, %s2402_s6 }
  0x23   : > { %v267_v16 = vld [vmem:[%s232_s9] sm:$0xff] (!%p2401_p7)  ;;  %v269_v17 = vld [vmem:[%s232_s9 + $0x8] sm:$0xff] (!%p2401_p7) }
  0x24   : > { %268 = vst [vmem:[#allocation2 + $0x8] sm:$0xff] (!%p2401_p7), %v267_v16  ;;  %270 = vst [vmem:[#allocation2 + $0x10] sm:$0xff] (!%p2401_p7), %v269_v17 }
  0x29   : > { %278 = vsyncadd [#allocation3 + $0x1], 256 }
  0x2a   : > { %2947 = dma.done.wait [#allocation3 + $0x1], 256 }
  0x2b   : > { %2948 = vsyncadd [#allocation3 + $0x1], 4294967040 }
  0x2c PF: > { %p2403_p8 = scmp.ne.s32.totalorder %s2955_s12, 0 }
  0x2d   : > { %vm286_vm0 = vcmask (!%p2403_p8), 23552   ;;  %v2973_v18 = vmov (!%p2403_p8), 0.0  }
  0x2e   : > { %285 = sbr.rel (%p2403_p8) target bundleno = 53 (0x35), region = 104  ;;  %287 = vst.msk [vmem:[#allocation2 + $0x8] sm:$0xff] (!%p2403_p8), %vm286_vm0, %v2973_v18  ;;  %288 = vst.msk [vmem:[#allocation2 + $0x10] sm:$0xff] (!%p2403_p8), %vm286_vm0, %v2973_v18 }
  0x35 PF: > { %p2404_p9 = scmp.ge.s32.totalorder %s2955_s12, 1 }
  0x36   : > { %v2408_v19 = vld [vmem:[%s3044_s5 + $0x80] sm:$0xff] (!%p2404_p9)  ;;  %v2409_v20 = vld [vmem:[%s3044_s5 + $0x88] sm:$0xff] (!%p2404_p9) }
  0x37   : > { %292 = sbr.rel (%p2404_p9) target bundleno = 65 (0x41), region = 108  ;;  %330 = vst [vmem:[#allocation2 + $0x98] sm:$0xff] (!%p2404_p9), %v2408_v19  ;;  %332 = vst [vmem:[#allocation2 + $0xa0] sm:$0xff] (!%p2404_p9), %v2409_v20 }
  0x3e   : > { %340 = vsyncadd [#allocation3 + $0x2], 256 }
  0x3f   : > { %2949 = dma.done.wait [#allocation3 + $0x2], 256 }
  0x40   : > { %2950 = vsyncadd [#allocation3 + $0x2], 4294967040 }
  0x41 PF: > { %p2411_p10 = scmp.ne.s32.totalorder %s2955_s12, 1 }
  0x42   : > { %vm348_vm1 = vcmask (!%p2411_p10), 23552   ;;  %v2974_v21 = vmov (!%p2411_p10), 0.0  }
  0x43   : > { %347 = sbr.rel (%p2411_p10) target bundleno = 74 (0x4a), region = 146  ;;  %349 = vst.msk [vmem:[#allocation2 + $0x98] sm:$0xff] (!%p2411_p10), %vm348_vm1, %v2974_v21  ;;  %350 = vst.msk [vmem:[#allocation2 + $0xa0] sm:$0xff] (!%p2411_p10), %vm348_vm1, %v2974_v21 }
  0x4a PF: > { %vm3653_vm2 = vcmask 23552   ;;  %v2975_v22 = vmov 0.0  }
  0x4b   : > { %352 = vst.msk [vmem:[#allocation2] sm:$0xff] %vm3653_vm2, %v2975_v22  ;;  %353 = vst.msk [vmem:[#allocation2 + $0xa8] sm:$0xff] %vm3653_vm2, %v2975_v22 }
  0x4c   : > { %2951 = dma.done.wait [#allocation3], 2048 }
  0x4d   : > { %2952 = vsyncadd [#allocation3], 4294965248  ;;  %vm731_vm3 = vcmask 1040384   ;;  %v357_v23 = vlaneseq  ;;  %vm732_vm4 = vcmask 1041408   ;;  %v2976_v24 = vmov 65535   ;;  %v630_v27 = vld [vmem:[#allocation2 + $0x8] sm:$0xff] }
  0x4e   : > { %v733_v25 = vsel %vm731_vm3, 4294967295, %v2976_v24  ;;  %v2921_v26 = vld [vmem:[%s3650_s1] ss:$0 sps:$4 sm:$0x66]   ;;  %v631_v29 = vld [vmem:[#allocation2 + $0x10] sm:$0xff]  ;;  %v1147_v33 = vld [vmem:[#allocation2 + $0x18] sm:$0xff] }
  0x4f   : > { %v2922_v28 = vld [vmem:[%s3650_s1 + $0x8] ss:$0 sps:$4 sm:$0x66]   ;;  %v700_v30 = vshrl.u32 %v2921_v26, 16  ;;  %v703_v31 = vshll.u32 %v2921_v26, 16  ;;  %v687_v32 = vpack.c.bf16 %v631_v29, %v630_v27  ;;  %v1148_v34 = vld [vmem:[#allocation2 + $0x20] sm:$0xff] }
  0x50   : > { %v3081_v35 = vshrl.u32 %v357_v23, 7  ;;  %v1358_v36 = vshrl.u32 %v2922_v28, 16  ;;  %v1361_v37 = vshll.u32 %v2922_v28, 16  ;;  %v1345_v38 = vpack.c.bf16 %v1148_v34, %v1147_v33  ;;  %v2923_v41 = vld [vmem:[%s3650_s1 + $0x8] sm:$0x18]   ;;  %v1150_v53 = vld [vmem:[#allocation2 + $0x30] sm:$0xff] }
  0x51   : > { %v702_v39 = vrot.slane %v700_v30, 1  ;;  %v705_v40 = vrot.slane %v703_v31, 2  ;;  %2587 = vmatprep.mubr.msk.bf16.mxu1 %vm3653_vm2, %v687_v32  ;;  %v3088_v42 = vsel %vm732_vm4, %v733_v25, 0  ;;  %v686_v45 = vld [vmem:[%s3650_s1] sm:$0x3]  ;;  %v1520_v47 = vrot.slane %v2923_v41, 3 }
  0x52   : > { %v1360_v43 = vrot.slane %v1358_v36, 1  ;;  %v1363_v44 = vrot.slane %v1361_v37, 2  ;;  %2659 = vmatprep.mubr.msk.bf16.mxu0 %vm3653_vm2, %v1345_v38  ;;  %v359_v48 = vadd.s32 8, %v3081_v35  ;;  %v860_v51 = vand.u32 %v3088_v42, %v686_v45  ;;  %v1149_v52 = vld [vmem:[#allocation2 + $0x28] sm:$0xff]  ;;  %v1151_v56 = vld [vmem:[#allocation2 + $0x38] sm:$0xff]  ;;  %v1152_v57 = vld [vmem:[#allocation2 + $0x40] sm:$0xff] }
  0x53   : > { %v706_v46 = vor.u32 %v705_v40, %v702_v39  ;;  %v1546_v55 = vand.u32 %v1520_v47, %v3088_v42  ;;  %v2468_v59 = vld [vmem:[%s3650_s1 + $0x10] sm:$0x3]  ;;  %v3105_v60 = vpack.c.bf16 %v1150_v53, %v1149_v52  ;;  %v3108_v61 = vpack.c.bf16 %v1152_v57, %v1151_v56  ;;  %v3120_v2 = vld [vmem:[#allocation2 + $0x21] sm:$0xff]  ;;  %v3131_v7 = vld [vmem:[#allocation2 + $0x19] sm:$0xff] }
  0x54   : > { %v1364_v49 = vor.u32 %v1363_v44, %v1360_v43  ;;  %v385_v58 = vand.u32 15, %v359_v48  ;;  %v361_v62 = vadd.s32 24, %v3081_v35  ;;  %v3112_v63 = vand.u32 %v2468_v59, %v3088_v42  ;;  %v2924_v3 = vld [vmem:[%s3650_s1] sm:$0x18]   ;;  %v1153_v4 = vld [vmem:[#allocation2 + $0x48] sm:$0xff]  ;;  %v1154_v5 = vld [vmem:[#allocation2 + $0x50] sm:$0xff] }
  0x55   : > { %v736_v50 = vand.u32 %v3088_v42, %v706_v46  ;;  %v363_v0 = vadd.s32 40, %v3081_v35  ;;  %v974_v6 = vrot.slane %v2924_v3, 3  ;;  %v3140_v12 = vpack.c.bf16 %v1154_v5, %v1153_v4  ;;  %v3148_v15 = vld [vmem:[#allocation2 + $0x31] sm:$0xff]  ;;  %v2925_v17 = vld [vmem:[%s3650_s1 + $0x10] ss:$0 sps:$4 sm:$0x66]  }
  0x56   : > { %v3098_v54 = vand.u32 %v1364_v49, %v3088_v42  ;;  %vm3116_vm5 = vcmp.ne.s32.totalorder %v385_v58, 15  ;;  %v399_v9 = vand.u32 15, %v361_v62  ;;  %v365_v16 = vadd.s32 56, %v3081_v35  ;;  %v3160_v19 = vld [vmem:[#allocation2 + $0x41] sm:$0xff]  ;;  %v640_v21 = vld [vmem:[#allocation2 + $0x58] sm:$0xff]  ;;  %v3169_v24 = vld [vmem:[#allocation2 + $0x29] sm:$0xff] }
  0x57   : > { %2585 = vmatprep.subr.bf16.mxu1 %v736_v50  ;;  %v1180_v8 = vsel %vm3116_vm5, %v3120_v2, 0.0  ;;  %v413_v10 = vand.u32 15, %v363_v0  ;;  %v3138_v11 = vand.u32 %v974_v6, %v3088_v42  ;;  %v367_v20 = vadd.s32 72, %v3081_v35  ;;  %v641_v22 = vld [vmem:[#allocation2 + $0x60] sm:$0xff]  ;;  %v642_v26 = vld [vmem:[#allocation2 + $0x68] sm:$0xff]  ;;  %v643_v27 = vld [vmem:[#allocation2 + $0x70] sm:$0xff] }
  0x58   : > { %2657 = vmatprep.subr.bf16.mxu0 %v3098_v54  ;;  %2586 = vmatpush3.bf16.msra.mxu1 %v736_v50  ;;  %v1505_v13 = vpack.c.bf16 %v1180_v8, %v3131_v7  ;;  %vm3144_vm6 = vcmp.ne.s32.totalorder %v399_v9, 15  ;;  %v378_v23 = vand.u32 15, %v3081_v35  ;;  %v1904_v28 = vshrl.u32 %v2925_v17, 16  ;;  %v3174_v30 = vld [vmem:[#allocation2 + $0x39] sm:$0xff]  ;;  %v3192_v47 = vld [vmem:[#allocation2 + $0x51] sm:$0xff]  ;;  %v598_v49 = vld [vmem:[#allocation2 + $0x7] sm:$0xff] }
  0x59   : > { %2658 = vmatpush3.bf16.msra.mxu0 %v3098_v54  ;;  %2603 = vmatprep.subr.bf16.mxu1 %v860_v51  ;;  %vm3156_vm7 = vcmp.ne.s32.totalorder %v413_v10, 15  ;;  %v1182_v25 = vsel %vm3144_vm6, %v3148_v15, 0.0  ;;  %v1907_v29 = vshll.u32 %v2925_v17, 16  ;;  %v427_v32 = vand.u32 15, %v365_v16  ;;  %v3204_v52 = vld [vmem:[#allocation2 + $0x61] sm:$0xff]  ;;  %v644_v57 = vld [vmem:[#allocation2 + $0x78] sm:$0xff] }
  0x5a   : > { %2675 = vmatprep.subr.bf16.mxu0 %v1546_v55  ;;  %v1184_v31 = vsel %vm3156_vm7, %v3160_v19, 0.0  ;;  %v360_v33 = vadd.s32 16, %v3081_v35  ;;  %v369_v34 = vadd.s32 88, %v3081_v35  ;;  %v3181_v36 = vpack.c.bf16 %v641_v22, %v640_v21  ;;  %v645_v58 = vld [vmem:[#allocation2 + $0x80] sm:$0xff]  ;;  %v3215_v59 = vld [vmem:[#allocation2 + $0x49] sm:$0xff]  ;;  %v3231_v8 = vld [vmem:[#allocation2 + $0x17] sm:$0xff] }
  0x5b   : > { %2588 = vmatmul.mubr.msk.bf16.vlgmr.msra.gmra.mrb[0].mxu1 %vm3653_vm2, %v1345_v38  ;;  %v441_v37 = vand.u32 15, %v367_v20  ;;  %v1906_v38 = vrot.slane %v1904_v28, 1  ;;  %v1909_v39 = vrot.slane %v1907_v29, 2  ;;  %v1506_v40 = vpack.c.bf16 %v1182_v25, %v3169_v24  ;;  %v599_v0 = vld [vmem:[#allocation2 + $0xf] sm:$0xff]  ;;  %v3222_v5 = vld [vmem:[#allocation2 + $0x59] sm:$0xff]  ;;  %v3255_v28 = vld [vmem:[#allocation2 + $0x27] sm:$0xff] }
  0x5c   : > { %2660 = vmatmul.mubr.msk.bf16.vlgmr.msra.gmra.mrb[0].mxu0 %vm3653_vm2, %v3105_v60  ;;  %2604 = vmatpush3.bf16.msra.mxu1 %v860_v51  ;;  %v3184_v41 = vpack.c.bf16 %v643_v27, %v642_v26  ;;  %v1507_v43 = vpack.c.bf16 %v1184_v31, %v3174_v30  ;;  %v362_v44 = vadd.s32 32, %v3081_v35  ;;  %vm3188_vm8 = vcmp.ne.s32.totalorder %v427_v32, 15  ;;  %v3241_v16 = vld [vmem:[#allocation2 + $0x71] sm:$0xff]  ;;  %v3246_v25 = vld [vmem:[#allocation2 + $0x1f] sm:$0xff]  ;;  %v3258_v31 = vld [vmem:[#allocation2 + $0x69] sm:$0xff] }
  0x5d   : > { %2676 = vmatpush3.bf16.msra.mxu0 %v1546_v55  ;;  %2591 = vmatprep.mubr.msk.bf16.mxu1 %vm3653_vm2, %v3105_v60  ;;  %v1910_v45 = vor.u32 %v1909_v39, %v1906_v38  ;;  %vm3194_vm9 = vcmp.ne.s32.totalorder %v378_v23, 0  ;;  %v3670_v48 = vmov 0  ;;  %v392_v50 = vand.u32 15, %v360_v33  ;;  %v3274_v39 = vld [vmem:[#allocation2 + $0x2f] sm:$0xff] }
  0x5e   : > { %2663 = vmatprep.mubr.msk.bf16.mxu0 %vm3653_vm2, %v3108_v61  ;;  %2693 = vmatprep.subr.bf16.mxu0 %v3112_v63  ;;  %v3671_v48 = vsel %vm3194_vm9, 4294967295, %v3670_v48  ;;  %vm3200_vm10 = vcmp.ne.s32.totalorder %v441_v37, 15  ;;  %v455_v53 = vand.u32 15, %v369_v34  ;;  %v371_v55 = vadd.s32 104, %v3081_v35  ;;  %v3269_v37 = vld [vmem:[#allocation2 + $0x81] sm:$0xff]  ;;  %3683 = vst [vmem:[#allocation11_spill] sm:$0xff] %v3274_v39 }
  0x5f   : > { %2621 = vmatprep.subr.bf16.mxu1 %v3138_v11  ;;  %v3208_v56 = vand.u32 %v1910_v45, %v3088_v42  ;;  %v1186_v62 = vsel %vm3188_vm8, %v3192_v47, 0.0  ;;  %v614_v3 = vsel %vm3194_vm9, %v598_v49, 0.0  ;;  %v406_v4 = vand.u32 15, %v362_v44 }
  0x60   : > { %v1188_v6 = vsel %vm3200_vm10, %v3204_v52, 0.0  ;;  %vm3227_vm11 = vcmp.ne.s32.totalorder %v392_v50, 0  ;;  %v364_v9 = vadd.s32 48, %v3081_v35  ;;  %v3235_v10 = vpack.c.bf16 %v645_v58, %v644_v57 }
  0x61   : > { %vm3237_vm12 = vcmp.ne.s32.totalorder %v455_v53, 15  ;;  %v469_v17 = vand.u32 15, %v371_v55  ;;  %v1508_v20 = vpack.c.bf16 %v1186_v62, %v3215_v59  ;;  %v678_v21 = vpack.c.bf16 %v599_v0, %v614_v3  ;;  %v3290_v55 = vld [vmem:[#allocation2 + $0x79] sm:$0xff] }
  0x62   : > { %3676 = vst [vmem:[#allocation10_spill] sm:$0xff] %v3235_v10  ;;  %v373_v22 = vadd.s32 120, %v3081_v35  ;;  %v1509_v23 = vpack.c.bf16 %v1188_v6, %v3222_v5  ;;  %v616_v26 = vsel %vm3227_vm11, %v3231_v8, 0.0  ;;  %vm3251_vm13 = vcmp.ne.s32.totalorder %v406_v4, 0  ;;  %v2438_v6 = vld [vmem:[%s3650_s1 + $0x8] sm:$0x3] }
  0x63   : > { %2592 = vmatmul.mubr.msk.bf16.gmra.mrb[4].mxu1 %vm3653_vm2, %v3108_v61  ;;  %v3679_v27 = vmov 0  ;;  %v366_v29 = vadd.s32 64, %v3081_v35  ;;  %v1190_v32 = vsel %vm3237_vm12, %v3241_v16, 0.0  ;;  %v420_v33 = vand.u32 15, %v364_v9 }
  0x64   : > { %2664 = vmatmul.mubr.msk.bf16.gmra.mrb[4].mxu0 %vm3653_vm2, %v3140_v12  ;;  %2595 = vmatprep.mubr.msk.bf16.mxu1 %vm3653_vm2, %v3140_v12  ;;  %v3680_v27 = vsel %vm3251_vm13, 4294967295, %v3679_v27  ;;  %vm3265_vm14 = vcmp.ne.s32.totalorder %v469_v17, 15  ;;  %v679_v38 = vpack.c.bf16 %v3246_v25, %v616_v26  ;;  %v1726_v44 = vsel %vm3116_vm5, %v3148_v15, 0.0 }
  0x65   : > { %2677 = vmatprep.mubr.msk.bf16.mxu0 %vm3653_vm2, %v1505_v13  ;;  %v1510_v45 = vpack.c.bf16 %v1190_v32, %v3258_v31  ;;  %v434_v49 = vand.u32 15, %v366_v29  ;;  %v3285_v50 = vpack.c.bf16 %v1726_v44, %v3169_v24  ;;  %v1728_v53 = vsel %vm3144_vm6, %v3160_v19, 0.0  ;;  %v3330_v32 = vld [vmem:[#allocation2 + $0x37] sm:$0xff] }
  0x66   : > { %v1192_v57 = vsel %vm3265_vm14, %v3269_v37, 0.0  ;;  %vm3295_vm15 = vcmp.ne.s32.totalorder %v420_v33, 0  ;;  %v3300_v62 = vpack.c.bf16 %v1728_v53, %v3174_v30  ;;  %v1730_v0 = vsel %vm3156_vm7, %v3192_v47, 0.0  ;;  %v1177_v33 = vld [vmem:[#allocation2 + $0x89] sm:$0xff]  ;;  %v3729_v13 = vld [vmem:[#allocation11_spill] sm:$0xff] }
  0x67   : > { %3684 = vst [vmem:[#allocation12_spill] sm:$0xff] %v3285_v50  ;;  %v368_v4 = vadd.s32 80, %v3081_v35  ;;  %v3311_v9 = vpack.c.bf16 %v1730_v0, %v3215_v59  ;;  %v1732_v17 = vsel %vm3188_vm8, %v3204_v52, 0.0  ;;  %v1736_v26 = vsel %vm3237_vm12, %v3269_v37, 0.0  ;;  %v3344_v0 = vld [vmem:[#allocation2 + $0x47] sm:$0xff] }
  0x68   : > { %3687 = vst [vmem:[#allocation13_spill] sm:$0xff] %v3300_v62  ;;  %v1511_v29 = vpack.c.bf16 %v1192_v57, %v3290_v55  ;;  %vm3340_vm1 = vcmp.ne.s32.totalorder %v434_v49, 0  ;;  %v370_v57 = vadd.s32 96, %v3081_v35  ;;  %v620_v49 = vsel %vm3295_vm15, %v3330_v32, 0.0 }
  0x69   : > { %3688 = vst [vmem:[#allocation14_spill] sm:$0xff] %v3311_v9  ;;  %v665_v1 = vsel %vm3144_vm6, %v3120_v2, 0.0  ;;  %v3731_v34 = vld [vmem:[#allocation10_spill] sm:$0xff] }
  0x6b   : > { %2596 = vmatmul.mubr.msk.bf16.gmra.mrb[8].mxu1 %vm3653_vm2, %v3181_v36 }
  0x6c   : > { %2678 = vmatmul.mubr.msk.bf16.vlgmr.msra.gmra.mrb[0].mxu0 %vm3653_vm2, %v1506_v40  ;;  %2599 = vmatprep.mubr.msk.bf16.mxu1 %vm3653_vm2, %v3184_v41  ;;  %v618_v40 = vsel %vm3251_vm13, %v3255_v28, 0.0 }
  0x6d   : > { %2694 = vmatpush3.bf16.msra.mxu0 %v3112_v63  ;;  %2681 = vmatprep.mubr.msk.bf16.mxu0 %vm3653_vm2, %v1507_v43  ;;  %v3674_v63 = vmov 0  ;;  %v483_v43 = vand.u32 15, %v373_v22  ;;  %v680_v3 = vpack.c.bf16 %v3274_v39, %v618_v40  ;;  %v3321_v22 = vpack.c.bf16 %v1732_v17, %v3222_v5 }
  0x6e   : > { %v3675_v63 = vsel %vm3227_vm11, 4294967295, %v3674_v63  ;;  %2711 = vmatprep.subr.bf16.mxu0 %v3208_v56  ;;  %v3348_v17 = vand.u32 %v2438_v6, %v3088_v42  ;;  %v3737_v58 = vld [vmem:[#allocation12_spill] sm:$0xff] }
  0x6f   : > { %vm3316_vm0 = vcmp.ne.s32.totalorder %v483_v43, 15  ;;  %3691 = vst [vmem:[#allocation15_spill] sm:$0xff] %v3321_v22  ;;  %v3336_v43 = vpack.c.bf16 %v1736_v26, %v3290_v55  ;;  %v3364_v26 = vld [vmem:[#allocation2 + $0x4f] sm:$0xff] }
  0x71   : > { %3693 = vst [vmem:[#allocation17_spill] sm:$0xff] %v3336_v43 }
  0x73   : > { %2600 = vmatmul.mubr.msk.bf16.gmra.mrb[12].mxu1 %vm3653_vm2, %v3235_v10  ;;  %v3420_v10 = vld [vmem:[#allocation2 + $0x77] sm:$0xff] }
  0x74   : > { %2682 = vmatmul.mubr.msk.bf16.gmra.mrb[4].mxu0 %vm3653_vm2, %v1508_v20  ;;  %2605 = vmatprep.mubr.msk.bf16.mxu1 %vm3653_vm2, %v678_v21  ;;  %v3689_v20 = vmov 0  ;;  %v1178_v21 = vld [vmem:[#allocation2 + $0x91] sm:$0xff] }
  0x75   : > { %2685 = vmatprep.mubr.msk.bf16.mxu0 %vm3653_vm2, %v1509_v23  ;;  %v3690_v20 = vsel %vm3316_vm0, 4294967295, %v3689_v20  ;;  %v1734_v23 = vsel %vm3200_vm10, %v3241_v16, 0.0  ;;  %v1738_v44 = vsel %vm3265_vm14, %v1178_v21, 0.0  ;;  %v1194_v6 = vsel %vm3316_vm0, %v1178_v21, 0.0 }
  0x76   : > { %v3333_v40 = vpack.c.bf16 %v1734_v23, %v3258_v31  ;;  %v3350_v22 = vpack.c.bf16 %v1738_v44, %v1177_v33  ;;  %v3355_v23 = vld [vmem:[#allocation2 + $0x3f] sm:$0xff]  ;;  %v462_v44 = vand.u32 15, %v370_v57  ;;  %v3387_v57 = vld [vmem:[#allocation2 + $0x67] sm:$0xff] }
  0x77   : > { %v3746_v9 = vld [vmem:[#allocation15_spill] sm:$0xff] }
  0x78   : > { %3692 = vst [vmem:[#allocation16_spill] sm:$0xff] %v3333_v40  ;;  %3696 = vst [vmem:[#allocation18_spill] sm:$0xff] %v3350_v22  ;;  %v3380_v40 = vld [vmem:[#allocation2 + $0x57] sm:$0xff]  ;;  %vm3383_vm4 = vcmp.ne.s32.totalorder %v462_v44, 0  ;;  %v3751_v50 = vld [vmem:[#allocation17_spill] sm:$0xff] }
  0x7b   : > { %2606 = vmatmul.mubr.msk.bf16.vlgmr.msra.gmra.mrb[0].mxu1 %vm3653_vm2, %v679_v38  ;;  %v622_v38 = vsel %vm3340_vm1, %v3344_v0, 0.0 }
  0x7c   : > { %2686 = vmatmul.mubr.msk.bf16.gmra.mrb[8].mxu0 %vm3653_vm2, %v1510_v45  ;;  %2622 = vmatpush3.bf16.msra.mxu1 %v3138_v11  ;;  %v448_v11 = vand.u32 15, %v368_v4  ;;  %v1677_v45 = vsel %vm3194_vm9, %v3255_v28, 0.0  ;;  %v682_v22 = vpack.c.bf16 %v3364_v26, %v622_v38  ;;  %v372_v4 = vadd.s32 112, %v3081_v35  ;;  %v3404_v38 = vld [vmem:[#allocation2 + $0x6f] sm:$0xff] }
  0x7d   : > { %2609 = vmatprep.mubr.msk.bf16.mxu1 %vm3653_vm2, %v680_v3  ;;  %2689 = vmatprep.mubr.msk.bf16.mxu0 %vm3653_vm2, %v1511_v29  ;;  %v681_v3 = vpack.c.bf16 %v3355_v23, %v620_v49  ;;  %v1512_v29 = vpack.c.bf16 %v1194_v6, %v1177_v33  ;;  %v1741_v21 = vpack.c.bf16 %v3274_v39, %v1677_v45  ;;  %v2926_v33 = vld [vmem:[%s3650_s1 + $0x10] sm:$0x18]   ;;  %v3395_v49 = vld [vmem:[#allocation2 + $0x5f] sm:$0xff]  ;;  %v1679_v6 = vsel %vm3227_vm11, %v3330_v32, 0.0 }
  0x7e   : > { %2639 = vmatprep.subr.bf16.mxu1 %v3348_v17  ;;  %vm3376_vm3 = vcmp.ne.s32.totalorder %v448_v11, 0  ;;  %v626_v11 = vsel %vm3383_vm4, %v3387_v57, 0.0  ;;  %v476_v45 = vand.u32 15, %v372_v4  ;;  %v2066_v44 = vrot.slane %v2926_v33, 3  ;;  %v647_v4 = vld [vmem:[#allocation2 + $0x11] sm:$0xff]  ;;  %v3426_v33 = vld [vmem:[#allocation2 + $0x7f] sm:$0xff] }
  0x7f   : > { %v624_v35 = vsel %vm3376_vm3, %v3380_v40, 0.0  ;;  %vm3703_vm11 = vcmask 23552  }
  0x80   : > { %v2092_v39 = vand.u32 %v2066_v44, %v3088_v42  ;;  %vm3705_vm9 = vmmov %vm3703_vm11  ;;  %v1683_v42 = vsel %vm3295_vm15, %v3380_v40, 0.0 }
  0x81   : > { %vm3706_vm0 = vmmov %vm3705_vm9  ;;  %v1744_v44 = vpack.c.bf16 %v3395_v49, %v1683_v42  ;;  %v960_v42 = vpack.c.bf16 %v665_v1, %v3131_v7  ;;  %v1676_v7 = vld [vmem:[#allocation2 + $0x9f] sm:$0xff] }
  0x82   : > { %vm3711_vm6 = vmmov %vm3706_vm0 }
  0x83   : > { %2610 = vmatmul.mubr.msk.bf16.gmra.mrb[4].mxu1 %vm3653_vm2, %v681_v3  ;;  %v683_v3 = vpack.c.bf16 %v3395_v49, %v624_v35 }
  0x84   : > { %2690 = vmatmul.mubr.msk.bf16.gmra.mrb[12].mxu0 %vm3653_vm2, %v1512_v29  ;;  %2613 = vmatprep.mubr.msk.bf16.mxu1 %vm3653_vm2, %v682_v22  ;;  %v1681_v22 = vsel %vm3251_vm13, %v3344_v0, 0.0  ;;  %v1742_v29 = vpack.c.bf16 %v3355_v23, %v1679_v6  ;;  %vm3704_vm13 = vmmov %vm3703_vm11  ;;  %v646_v6 = vld [vmem:[#allocation2 + $0x9] sm:$0xff] }
  0x85   : > { %2695 = vmatprep.mubr.msk.bf16.mxu0 %vm3653_vm2, %v1741_v21  ;;  %v684_v21 = vpack.c.bf16 %v3404_v38, %v626_v11  ;;  %v1743_v62 = vpack.c.bf16 %v3364_v26, %v1681_v22  ;;  %vm3416_vm2 = vcmp.ne.s32.totalorder %v476_v45, 0  ;;  %v663_v11 = vsel %vm3116_vm5, %v647_v4, 0.0  ;;  %vm3710_vm5 = vmmov %vm3706_vm0  ;;  %v3459_v4 = vld [vmem:[#allocation2 + $0x8f] sm:$0xff] }
  0x86   : > { %v628_v35 = vsel %vm3416_vm2, %v3420_v10, 0.0  ;;  %v1685_v45 = vsel %vm3340_vm1, %v3387_v57, 0.0 }
  0x87   : > { %v685_v22 = vpack.c.bf16 %v3426_v33, %v628_v35 }
  0x8b   : > { %2614 = vmatmul.mubr.msk.bf16.gmra.mrb[8].mxu1 %vm3703_vm11, %v683_v3  ;;  %v3445_v3 = vld [vmem:[#allocation2 + $0x87] sm:$0xff]  ;;  %vm3708_vm11 = vmmov %vm3706_vm0 }
  0x8c   : > { %2696 = vmatmul.mubr.msk.bf16.vlgmr.msra.gmra.mrb[0].mxu0 %vm3704_vm13, %v1742_v29  ;;  %2617 = vmatprep.mubr.msk.bf16.mxu1 %vm3705_vm9, %v684_v21  ;;  %vm3707_vm9 = vmmov %vm3706_vm0  ;;  %v1687_v29 = vsel %vm3376_vm3, %v3420_v10, 0.0  ;;  %v667_v21 = vsel %vm3156_vm7, %v3148_v15, 0.0  ;;  %v1689_v35 = vsel %vm3383_vm4, %v3445_v3, 0.0  ;;  %v669_v15 = vsel %vm3188_vm8, %v3160_v19, 0.0 }
  0x8d   : > { %2712 = vmatpush3.bf16.msra.mxu0 %v3208_v56  ;;  %2699 = vmatprep.mubr.msk.bf16.mxu0 %vm3706_vm0, %v1743_v62  ;;  %v959_v56 = vpack.c.bf16 %v663_v11, %v646_v6  ;;  %v1745_v62 = vpack.c.bf16 %v3404_v38, %v1685_v45  ;;  %vm3709_vm13 = vmmov %vm3706_vm0  ;;  %v1746_v2 = vpack.c.bf16 %v3426_v33, %v1687_v29  ;;  %v1675_v11 = vld [vmem:[#allocation2 + $0x97] sm:$0xff]  ;;  %v673_v19 = vsel %vm3237_vm12, %v3204_v52, 0.0 }
  0x8e   : > { %2729 = vmatprep.subr.bf16.mxu0 %v2092_v39  ;;  %v961_v14 = vpack.c.bf16 %v667_v21, %v3169_v24  ;;  %v1747_v6 = vpack.c.bf16 %v3459_v4, %v1689_v35  ;;  %vm3712_vm7 = vmmov %vm3706_vm0  ;;  %v1691_v18 = vsel %vm3416_vm2, %v1675_v11, 0.0  ;;  %v671_v24 = vsel %vm3200_vm10, %v3192_v47, 0.0 }
  0x8f   : > { %v1748_v45 = vpack.c.bf16 %v1676_v7, %v1691_v18  ;;  %v963_v46 = vpack.c.bf16 %v671_v24, %v3215_v59  ;;  %vm3714_vm8 = vmmov %vm3706_vm0  ;;  %v964_v47 = vpack.c.bf16 %v673_v19, %v3222_v5  ;;  %vm3720_vm12 = vnez %v3690_v20  ;;  %v3584_v20 = vld [vmem:[%s3651_s2] ss:$0 sm:$0xff] }
  0x90   : > { %vm3718_vm10 = vmmov %vm3706_vm0  ;;  %v677_v52 = vsel %vm3720_vm12, %v3269_v37, 0.0  ;;  %v1139_v37 = vsel %vm3340_vm1, %v3380_v40, 0.0  ;;  %v1143_v40 = vsel %vm3383_vm4, %v3420_v10, 0.0  ;;  %v1145_v43 = vsel %vm3416_vm2, %v3445_v3, 0.0 }
  0x91   : > { %v966_v59 = vpack.c.bf16 %v677_v52, %v3290_v55  ;;  %vm3739_vm1 = vmmov %vm3706_vm0  ;;  %v1202_v10 = vpack.c.bf16 %v3459_v4, %v1145_v43 }
  0x92   : > { %vm3745_vm4 = vmmov %vm3706_vm0 }
  0x93   : > { %2618 = vmatmul.mubr.msk.bf16.gmra.mrb[12].mxu1 %vm3707_vm9, %v685_v22  ;;  %vm3713_vm9 = vmmov %vm3706_vm0 }
  0x94   : > { %2700 = vmatmul.mubr.msk.bf16.gmra.mrb[4].mxu0 %vm3708_vm11, %v1744_v44  ;;  %2623 = vmatprep.mubr.msk.bf16.mxu1 %vm3709_vm13, %v959_v56  ;;  %vm3715_vm11 = vmmov %vm3706_vm0 }
  0x95   : > { %2703 = vmatprep.mubr.msk.bf16.mxu0 %vm3710_vm5, %v1745_v62  ;;  %vm3716_vm13 = vmmov %vm3706_vm0 }
  0x96   : > { %vm3717_vm5 = vmmov %vm3706_vm0 }
  0x97   : > { %vm3752_vm2 = vmmov %vm3706_vm0 }
  0x9b   : > { %2624 = vmatmul.mubr.msk.bf16.vlgmr.msra.gmra.mrb[0].mxu1 %vm3711_vm6, %v960_v42  ;;  %vm3719_vm6 = vmmov %vm3706_vm0 }
  0x9c   : > { %2704 = vmatmul.mubr.msk.bf16.gmra.mrb[8].mxu0 %vm3706_vm0, %v1746_v2  ;;  %2640 = vmatpush3.bf16.msra.mxu1 %v3348_v17  ;;  %v962_v17 = vpack.c.bf16 %v669_v15, %v3174_v30  ;;  %v675_v30 = vsel %vm3265_vm14, %v3241_v16, 0.0  ;;  %vm3722_vm14 = vnez %v3671_v48  ;;  %v1705_v48 = vld [vmem:[#allocation2 + $0x88] sm:$0xff] }
  0x9d   : > { %2627 = vmatprep.mubr.msk.bf16.mxu1 %vm3712_vm7, %v961_v14  ;;  %2707 = vmatprep.mubr.msk.bf16.mxu0 %vm3713_vm9, %v1747_v6  ;;  %v965_v51 = vpack.c.bf16 %v675_v30, %v3258_v31  ;;  %vm3721_vm7 = vmmov %vm3706_vm0 }
  0x9e   : > { %2747 = vmatprep.subr.bf16.mxu1 %v3098_v54  ;;  %vm3723_vm9 = vmmov %vm3706_vm0 }
  0xa3   : > { %2628 = vmatmul.mubr.msk.bf16.gmra.mrb[4].mxu1 %vm3714_vm8, %v962_v17  ;;  %vm3724_vm8 = vmmov %vm3706_vm0 }
  0xa4   : > { %2708 = vmatmul.mubr.msk.bf16.gmra.mrb[12].mxu0 %vm3715_vm11, %v1748_v45  ;;  %2631 = vmatprep.mubr.msk.bf16.mxu1 %vm3716_vm13, %v963_v46  ;;  %vm3725_vm11 = vmmov %vm3706_vm0  ;;  %vm3726_vm13 = vnez %v3675_v63  ;;  %v1137_v63 = vsel %vm3295_vm15, %v3344_v0, 0.0  ;;  %v1201_v0 = vpack.c.bf16 %v3426_v33, %v1143_v40  ;;  %v1723_v33 = vld [vmem:[#allocation2 + $0x99] sm:$0xff] }
  0xa5   : > { %2713 = vmatprep.mubr.msk.bf16.mxu0 %vm3717_vm5, %v3105_v60  ;;  %v1131_v60 = vsel %vm3722_vm14, %v3231_v8, 0.0  ;;  %vm3727_vm5 = vmmov %vm3706_vm0  ;;  %v1706_v8 = vld [vmem:[#allocation2 + $0x90] sm:$0xff] }
  0xa6   : > { %v1195_v5 = vpack.c.bf16 %v3246_v25, %v1131_v60  ;;  %v1897_v31 = vpack.c.bf16 %v1706_v8, %v1705_v48  ;;  %vm3733_vm14 = vmmov %vm3706_vm0 }
  0xa7   : > { %vm3736_vm15 = vmmov %vm3706_vm0 }
  0xab   : > { %2632 = vmatmul.mubr.msk.bf16.gmra.mrb[8].mxu1 %vm3718_vm10, %v964_v47  ;;  %vm3728_vm10 = vnez %v3680_v27  ;;  %v1707_v27 = vld [vmem:[#allocation2 + $0x98] sm:$0xff] }
  0xac   : > { %2714 = vmatmul.mubr.msk.bf16.vlgmr.msra.gmra.mrb[0].mxu0 %vm3719_vm6, %v3108_v61  ;;  %2635 = vmatprep.mubr.msk.bf16.mxu1 %vm3706_vm0, %v965_v51  ;;  %v1133_v61 = vsel %vm3726_vm13, %v3255_v28, 0.0  ;;  %vm3730_vm6 = vmmov %vm3706_vm0  ;;  %v1708_v28 = vld [vmem:[#allocation2 + $0xa0] sm:$0xff] }
  0xad   : > { %2730 = vmatpush3.bf16.msra.mxu0 %v2092_v39  ;;  %2717 = vmatprep.mubr.msk.bf16.mxu0 %vm3721_vm7, %v3140_v12  ;;  %v1135_v12 = vsel %vm3728_vm10, %v3330_v32, 0.0  ;;  %v1196_v16 = vpack.c.bf16 %v3729_v13, %v1133_v61  ;;  %vm3732_vm7 = vmmov %vm3706_vm0  ;;  %v1198_v39 = vpack.c.bf16 %v3364_v26, %v1137_v63  ;;  %v1898_v55 = vpack.c.bf16 %v1708_v28, %v1707_v27  ;;  %v3743_v26 = vld [vmem:[#allocation14_spill] sm:$0xff] }
  0xae   : > { %v1197_v25 = vpack.c.bf16 %v3355_v23, %v1135_v12  ;;  %v1199_v32 = vpack.c.bf16 %v3395_v49, %v1139_v37  ;;  %v3740_v23 = vld [vmem:[#allocation13_spill] sm:$0xff]  ;;  %vm3741_vm13 = vmmov %vm3706_vm0 }
  0xaf   : > { %vm3747_vm10 = vmmov %vm3706_vm0  ;;  %v1724_v49 = vld [vmem:[#allocation2 + $0xa1] sm:$0xff] }
  0xb3   : > { %2636 = vmatmul.mubr.msk.bf16.gmra.mrb[12].mxu1 %vm3723_vm9, %v966_v59  ;;  %vm3734_vm9 = vmmov %vm3706_vm0 }
  0xb4   : > { %2718 = vmatmul.mubr.msk.bf16.gmra.mrb[4].mxu0 %vm3724_vm8, %v3181_v36  ;;  %2641 = vmatprep.mubr.msk.bf16.mxu1 %vm3725_vm11, %v1195_v5  ;;  %vm3735_vm8 = vmmov %vm3706_vm0 }
  0xb5   : > { %2721 = vmatprep.mubr.msk.bf16.mxu0 %vm3727_vm5, %v3184_v41  ;;  %vm3738_vm11 = vmmov %vm3706_vm0 }
  0xb6   : > { %vm3742_vm5 = vmmov %vm3706_vm0 }
  0xbb   : > { %2642 = vmatmul.mubr.msk.bf16.vlgmr.msra.gmra.mrb[0].mxu1 %vm3730_vm6, %v1196_v16  ;;  %vm3748_vm6 = vmmov %vm3706_vm0 }
  0xbc   : > { %2722 = vmatmul.mubr.msk.bf16.gmra.mrb[8].mxu0 %vm3706_vm0, %v3731_v34  ;;  %2748 = vmatpush3.bf16.msra.mxu1 %v3098_v54  ;;  %v1141_v54 = vsel %vm3376_vm3, %v3387_v57, 0.0  ;;  %vm3744_vm3 = vmmov %vm3706_vm0  ;;  %v3749_v57 = vld [vmem:[#allocation16_spill] sm:$0xff] }
  0xbd   : > { %2645 = vmatprep.mubr.msk.bf16.mxu1 %vm3732_vm7, %v1197_v25  ;;  %2725 = vmatprep.mubr.msk.bf16.mxu0 %vm3733_vm14, %v1897_v31  ;;  %v1200_v53 = vpack.c.bf16 %v3404_v38, %v1141_v54  ;;  %vm3750_vm7 = vmmov %vm3706_vm0  ;;  %v3754_v38 = vld [vmem:[#allocation18_spill] sm:$0xff] }
  0xbe   : > { %vm3753_vm14 = vmmov %vm3706_vm0 }
  0xc3   : > { %2646 = vmatmul.mubr.msk.bf16.gmra.mrb[4].mxu1 %vm3734_vm9, %v1198_v39  ;;  %vm3755_vm9 = vmmov %vm3706_vm0 }
  0xc4   : > { %2726 = vmatmul.mubr.msk.bf16.gmra.mrb[12].mxu0 %vm3735_vm8, %v1898_v55  ;;  %2649 = vmatprep.mubr.msk.bf16.mxu1 %vm3736_vm15, %v1199_v32  ;;  %vm3756_vm8 = vmmov %vm3706_vm0 }
  0xc5   : > { %2731 = vmatprep.mubr.msk.bf16.mxu0 %vm3738_vm11, %v3737_v58  ;;  %vm3757_vm15 = vmmov %vm3706_vm0 }
  0xcb   : > { %2650 = vmatmul.mubr.msk.bf16.gmra.mrb[8].mxu1 %vm3739_vm1, %v1200_v53 }
  0xcc   : > { %2732 = vmatmul.mubr.msk.bf16.vlgmr.msra.gmra.mrb[0].mxu0 %vm3741_vm13, %v3740_v23  ;;  %2653 = vmatprep.mubr.msk.bf16.mxu1 %vm3742_vm5, %v1201_v0 }
  0xcd   : > { %2735 = vmatprep.mubr.msk.bf16.mxu0 %vm3744_vm3, %v3743_v26 }
  0xd3   : > { %2654 = vmatmul.mubr.msk.bf16.gmra.mrb[12].mxu1 %vm3745_vm4, %v1202_v10 }
  0xd4   : > { %2736 = vmatmul.mubr.msk.bf16.gmra.mrb[4].mxu0 %vm3747_vm10, %v3746_v9  ;;  %2667 = vmatprep.mubr.msk.bf16.mxu1 %vm3748_vm6, %v3181_v36  ;;  %v1740_v36 = vsel %vm3720_vm12, %v1724_v49, 0.0  ;;  %vm2246_vm12 = vcmask 523264  }
  0xd5   : > { %2739 = vmatprep.mubr.msk.bf16.mxu0 %vm3706_vm0, %v3749_v57  ;;  %v2058_v22 = vpack.c.bf16 %v1740_v36, %v1723_v33 }
  0xdb   : > { %2668 = vmatmul.mubr.msk.bf16.vlgmr.msra.gmra.mrb[8].mxu1 %vm3750_vm7, %v3184_v41 }
  0xdc   : > { %2740 = vmatmul.mubr.msk.bf16.gmra.mrb[8].mxu0 %vm3752_vm2, %v3751_v50  ;;  %2671 = vmatprep.mubr.msk.bf16.mxu1 %vm3753_vm14, %v3731_v34 }
  0xdd   : > { %2743 = vmatprep.mubr.msk.bf16.mxu0 %vm3755_vm9, %v3754_v38 }
  0xe3   : > { %2672 = vmatmul.mubr.msk.bf16.gmra.mrb[12].mxu1 %vm3756_vm8, %v1897_v31 }
  0xe4   : > { %2744 = vmatmul.mubr.msk.bf16.gmra.mrb[12].mxu0 %vm3757_vm15, %v2058_v22 }
 0x18e   : > { %v2643_v44 = vpop.f32.mrb[0].mxu1 }
 0x18f   : > { %v1266_v41 = vpop.f32.mrb[1].mxu1 }
 0x190   : > { %v2644_v56 = vpop.f32.mrb[2].mxu1 }
 0x191   : > { %v1269_v62 = vpop.f32.mrb[3].mxu1 }
 0x196   : > { %v2647_v3 = vpop.f32.mrb[4].mxu1 }
 0x197   : > { %v1282_v1 = vpop.f32.mrb[5].mxu1 }
 0x198   : > { %v2648_v29 = vpop.f32.mrb[6].mxu1 }
 0x199   : > { %v1285_v21 = vpop.f32.mrb[7].mxu1 }
 0x19f   : > { %v2733_v4 = vpop.f32.mrb[0].mxu0 }
 0x1a0   : > { %v2749_v35 = vadd.f32 %v2733_v4, %v2643_v44  ;;  %v2128_v42 = vpop.f32.mrb[1].mxu0 }
 0x1a1   : > { %v2750_v2 = vadd.f32 %v2128_v42, %v1266_v41  ;;  %v2734_v14 = vpop.f32.mrb[2].mxu0 }
 0x1a2   : > { %v2216_v6 = vadd.f32 %v2749_v35, %v3584_v20  ;;  %v2751_v11 = vadd.f32 %v2734_v14, %v2644_v56  ;;  %v2131_v15 = vpop.f32.mrb[3].mxu0 }
 0x1a3   : > { %v2214_v7 = vadd.f32 %v2750_v2, %v3584_v20  ;;  %v2752_v18 = vadd.f32 %v2131_v15, %v1269_v62 }
 0x1a4   : > { %v2232_v24 = vmax.f32 %v2216_v6, 0.0  ;;  %v2217_v17 = vadd.f32 %v2751_v11, %v3584_v20 }
 0x1a5   : > { %v2230_v45 = vmax.f32 %v2214_v7, 0.0  ;;  %v2215_v46 = vadd.f32 %v2752_v18, %v3584_v20 }
 0x1a6   : > { %2249 = vst.msk [vmem:[%s3037_s29 + $0x10] sm:$0xff] %vm2246_vm12, %v2232_v24  ;;  %v2233_v19 = vmax.f32 %v2217_v17, 0.0 }
 0x1a7   : > { %2247 = vst.msk [vmem:[%s3037_s29] sm:$0xff] %vm2246_vm12, %v2230_v45  ;;  %v2231_v30 = vmax.f32 %v2215_v46, 0.0  ;;  %v2737_v47 = vpop.f32.mrb[4].mxu0 }
 0x1a8   : > { %2250 = vst.msk [vmem:[%s3037_s29 + $0x18] sm:$0xff] %vm2246_vm12, %v2233_v19  ;;  %v2753_v51 = vadd.f32 %v2737_v47, %v2647_v3  ;;  %v2144_v52 = vpop.f32.mrb[5].mxu0 }
 0x1a9   : > { %2248 = vst.msk [vmem:[%s3037_s29 + $0x8] sm:$0xff] %vm2246_vm12, %v2231_v30  ;;  %v2754_v60 = vadd.f32 %v2144_v52, %v1282_v1  ;;  %v2738_v59 = vpop.f32.mrb[6].mxu0 }
 0x1aa   : > { %v2220_v5 = vadd.f32 %v2753_v51, %v3584_v20  ;;  %v2755_v61 = vadd.f32 %v2738_v59, %v2648_v29  ;;  %v2147_v12 = vpop.f32.mrb[7].mxu0 }
 0x1ab   : > { %v2218_v48 = vadd.f32 %v2754_v60, %v3584_v20  ;;  %v2756_v8 = vadd.f32 %v2147_v12, %v1285_v21 }
 0x1ac   : > { %v2236_v13 = vmax.f32 %v2220_v5, 0.0  ;;  %v2221_v16 = vadd.f32 %v2755_v61, %v3584_v20 }
 0x1ad   : > { %v2234_v25 = vmax.f32 %v2218_v48, 0.0  ;;  %v2219_v31 = vadd.f32 %v2756_v8, %v3584_v20 }
 0x1ae   : > { %2253 = vst.msk [vmem:[%s3037_s29 + $0x30] sm:$0xff] %vm2246_vm12, %v2236_v13  ;;  %v2237_v34 = vmax.f32 %v2221_v16, 0.0  ;;  %v2669_v63 = vpop.f32.mrb[8].mxu1 }
 0x1af   : > { %2251 = vst.msk [vmem:[%s3037_s29 + $0x20] sm:$0xff] %vm2246_vm12, %v2234_v25  ;;  %v2235_v27 = vmax.f32 %v2219_v31, 0.0  ;;  %v2741_v28 = vpop.f32.mrb[8].mxu0  ;;  %v1458_v37 = vpop.f32.mrb[9].mxu1 }
 0x1b0   : > { %2254 = vst.msk [vmem:[%s3037_s29 + $0x38] sm:$0xff] %vm2246_vm12, %v2237_v34  ;;  %v2757_v39 = vadd.f32 %v2741_v28, %v2669_v63  ;;  %v2160_v55 = vpop.f32.mrb[9].mxu0  ;;  %v2670_v32 = vpop.f32.mrb[10].mxu1 }
 0x1b1   : > { %2252 = vst.msk [vmem:[%s3037_s29 + $0x28] sm:$0xff] %vm2246_vm12, %v2235_v27  ;;  %v2758_v54 = vadd.f32 %v2160_v55, %v1458_v37  ;;  %v2742_v58 = vpop.f32.mrb[10].mxu0  ;;  %v1461_v40 = vpop.f32.mrb[11].mxu1 }
 0x1b2   : > { %v2224_v53 = vadd.f32 %v2757_v39, %v3584_v20  ;;  %v2759_v0 = vadd.f32 %v2742_v58, %v2670_v32  ;;  %v2163_v23 = vpop.f32.mrb[11].mxu0 }
 0x1b3   : > { %v2222_v43 = vadd.f32 %v2758_v54, %v3584_v20  ;;  %v2760_v26 = vadd.f32 %v2163_v23, %v1461_v40 }
 0x1b4   : > { %v2240_v10 = vmax.f32 %v2224_v53, 0.0  ;;  %v2225_v9 = vadd.f32 %v2759_v0, %v3584_v20 }
 0x1b5   : > { %v2238_v57 = vmax.f32 %v2222_v43, 0.0  ;;  %v2223_v49 = vadd.f32 %v2760_v26, %v3584_v20 }
 0x1b6   : > { %2257 = vst.msk [vmem:[%s3037_s29 + $0x50] sm:$0xff] %vm2246_vm12, %v2240_v10  ;;  %v2241_v50 = vmax.f32 %v2225_v9, 0.0  ;;  %v2673_v38 = vpop.f32.mrb[12].mxu1 }
 0x1b7   : > { %2255 = vst.msk [vmem:[%s3037_s29 + $0x40] sm:$0xff] %vm2246_vm12, %v2238_v57  ;;  %v2239_v33 = vmax.f32 %v2223_v49, 0.0  ;;  %v2745_v36 = vpop.f32.mrb[12].mxu0  ;;  %v1474_v22 = vpop.f32.mrb[13].mxu1 }
 0x1b8   : > { %2258 = vst.msk [vmem:[%s3037_s29 + $0x58] sm:$0xff] %vm2246_vm12, %v2241_v50  ;;  %v2761_v44 = vadd.f32 %v2745_v36, %v2673_v38  ;;  %v2176_v41 = vpop.f32.mrb[13].mxu0  ;;  %v2674_v56 = vpop.f32.mrb[14].mxu1 }
 0x1b9   : > { %2256 = vst.msk [vmem:[%s3037_s29 + $0x48] sm:$0xff] %vm2246_vm12, %v2239_v33  ;;  %v2762_v62 = vadd.f32 %v2176_v41, %v1474_v22  ;;  %v2746_v3 = vpop.f32.mrb[14].mxu0  ;;  %v1477_v1 = vpop.f32.mrb[15].mxu1 }
 0x1ba   : > { %v2228_v29 = vadd.f32 %v2761_v44, %v3584_v20  ;;  %v2763_v21 = vadd.f32 %v2746_v3, %v2674_v56  ;;  %v2179_v4 = vpop.f32.mrb[15].mxu0 }
 0x1bb   : > { %v2226_v35 = vadd.f32 %v2762_v62, %v3584_v20  ;;  %v2764_v42 = vadd.f32 %v2179_v4, %v1477_v1 }
 0x1bc   : > { %v2244_v2 = vmax.f32 %v2228_v29, 0.0  ;;  %v2229_v14 = vadd.f32 %v2763_v21, %v3584_v20 }
 0x1bd   : > { %v2242_v6 = vmax.f32 %v2226_v35, 0.0  ;;  %v2227_v11 = vadd.f32 %v2764_v42, %v3584_v20 }
 0x1be   : > { %2261 = vst.msk [vmem:[%s3037_s29 + $0x70] sm:$0xff] %vm2246_vm12, %v2244_v2  ;;  %v2245_v15 = vmax.f32 %v2229_v14, 0.0 }
 0x1bf   : > { %2259 = vst.msk [vmem:[%s3037_s29 + $0x60] sm:$0xff] %vm2246_vm12, %v2242_v6  ;;  %v2243_v7 = vmax.f32 %v2227_v11, 0.0 }
 0x1c0   : > { %2262 = vst.msk [vmem:[%s3037_s29 + $0x78] sm:$0xff] %vm2246_vm12, %v2245_v15 }
 0x1c1   : > { %2260 = vst.msk [vmem:[%s3037_s29 + $0x68] sm:$0xff] %vm2246_vm12, %v2243_v7 }
 0x1c2 PF: > { %s13_s16 = sadd.s32 1, %s2971_s16   ;;  %s3758_s12 = smov %s2963_s14 }
 0x1c3   : > { %p10_p11 = scmp.ge.s32.totalorder %s13_s16, 6   ;;  %s3759_s13 = smov %s2967_s15 }
 0x1c4   : > { %s3760_s14 = smov %s3763_s17  ;;  %s3761_s15 = smov %s3767_s18 }
 0x1c5   :  { %12 = sbr.rel (!%p10_p11) target bundleno = 3 (0x3), region = 209 }
 0x1cc   :  { %2293 = vsyncmov [#allocation3] }
 0x1cf   :  { %s2294_s29 = vpop.sfrf %2293 }
 0x1d0   :  { %p2501_p12 = scmp.ne.s32.totalorder %s2294_s29, 0 }
 0x1d2   :  { %2298 = shalt.err (%p2501_p12)  }
 0x1d3   :  { %2300 = vsyncmov [#allocation3 + $0x1] }
 0x1d6   :  { %s2301_s9 = vpop.sfrf %2300 }
 0x1d7   :  { %p2502_p13 = scmp.ne.s32.totalorder %s2301_s9, 0 }
 0x1d9   :  { %2305 = shalt.err (%p2502_p13)  }
 0x1da   :  { %2307 = vsyncmov [#allocation3 + $0x2] }
 0x1dd   :  { %s2308_s10 = vpop.sfrf %2307 }
 0x1de   :  { %p2503_p0 = scmp.ne.s32.totalorder %s2308_s10, 0 }
 0x1e0   :  { %2312 = shalt.err (%p2503_p0)  }

// kernel: vgg_perceptual_loss.9
= control target key start
LH: loop header
LB: loop body
LE: loop exit
PB: predicated region body
PF: predicated region fallthrough
CT: control target
= control target key end

     0   :  { %s2344_s12 = smov 0   ;;  %s2346_s13 = smov 0   ;;  %s2798_s0 = inlined_call_operand.vmem [shape: f32[128,64], index: 0, kind: input, shape index: {}]   ;;  %s2799_s1 = inlined_call_operand.vmem [shape: bf16[3,192,128], index: 1, kind: input, shape index: {}]   ;;  %s2800_s2 = inlined_call_operand.vmem [shape: f32[1,128], index: 2, kind: input, shape index: {}]   ;;  %s2801_s3 = inlined_call_operand.vmem [shape: f32[2,64,128], index: 3, kind: output, shape index: {}]  }
   0x1   :  { %s2348_s14 = smov 0  }
   0x2 LB: > { %s25_s15 = sadd.s32 1, %s2317_s13  ;;  %p1809_p0 = scmp.ge.s32.totalorder %s2321_s14, 1  ;;  %s2321_s14 = sphi %s2348_s14, %s13_s14   ;;  %s2317_s13 = sphi %s2346_s13, %s2866_s13   ;;  %s2313_s12 = sphi %s2344_s12, %s2865_s12  }
   0x3   : > { %p27_p1 = scmp.ge.s32.totalorder %s25_s15, 2  ;;  %p117_p2 = scmp.lt.s32.totalorder %s2321_s14, 3 }
   0x5   : > { %s2868_s15 = smov (%p27_p1, %s25_s15), 0  ;;  %p118_p3 = pnand %p1809_p0, %p117_p2 }
   0x6   : > { %p139_p4 = scmp.lt.s32.totalorder (!%p118_p3), %s2313_s12, 1  ;;  %s1946_s16 = sshll.u32 (!%p118_p3), %s2313_s12, 6 }
   0x7   : > { %121 = sbr.rel (%p118_p3) target bundleno = 325 (0x145), region = 28  ;;  %s153_s19 = scalar_lea.vmem (!%p118_p3), %s2798_s0, %s1946_s16 }
   0x8   : > { %v187_v0 = vld [vmem:[%s153_s19] sm:$0xff] (!%p118_p3)  ;;  %v189_v1 = vld [vmem:[%s153_s19 + $0x8] sm:$0xff] (!%p118_p3)  ;;  %v191_v2 = vld [vmem:[%s153_s19 + $0x10] sm:$0xff] (!%p118_p3) }
   0x9   : > { %188 = vst [vmem:[#allocation2 + $0x10] sm:$0xff] (!%p118_p3), %v187_v0  ;;  %190 = vst [vmem:[#allocation2 + $0x18] sm:$0xff] (!%p118_p3), %v189_v1  ;;  %v193_v3 = vld [vmem:[%s153_s19 + $0x18] sm:$0xff] (!%p118_p3)  ;;  %v195_v4 = vld [vmem:[%s153_s19 + $0x20] sm:$0xff] (!%p118_p3) }
   0xa   : > { %192 = vst [vmem:[#allocation2 + $0x20] sm:$0xff] (!%p118_p3), %v191_v2  ;;  %v197_v5 = vld [vmem:[%s153_s19 + $0x28] sm:$0xff] (!%p118_p3)  ;;  %194 = vst [vmem:[#allocation2 + $0x28] sm:$0xff] (!%p118_p3), %v193_v3  ;;  %v199_v6 = vld [vmem:[%s153_s19 + $0x30] sm:$0xff] (!%p118_p3) }
   0xb   : > { %196 = vst [vmem:[#allocation2 + $0x30] sm:$0xff] (!%p118_p3), %v195_v4  ;;  %198 = vst [vmem:[#allocation2 + $0x38] sm:$0xff] (!%p118_p3), %v197_v5  ;;  %v201_v7 = vld [vmem:[%s153_s19 + $0x38] sm:$0xff] (!%p118_p3) }
   0xc   : > { %200 = vst [vmem:[#allocation2 + $0x40] sm:$0xff] (!%p118_p3), %v199_v6  ;;  %202 = vst [vmem:[#allocation2 + $0x48] sm:$0xff] (!%p118_p3), %v201_v7 }
   0xe   : > { %s2870_s12 = smov (!%p139_p4, %s2313_s12), 1 }
   0xf   : > { %s1945_s20 = sshll.u32 %s2870_s12, 6 }
  0x10   : > { %s2368_s23 = scalar_lea.vmem %s2801_s3, %s1945_s20 }
  0x11   : > { %210 = vsyncadd [#allocation3], 1024  ;;  %vm2802_vm0 = vcmask 523264   ;;  %v2323_v8 = vmov 0.0  }
  0x12   : > { %269 = vst.msk [vmem:[#allocation2 + $0x8] sm:$0xff] %vm2802_vm0, %v2323_v8  ;;  %327 = vst.msk [vmem:[#allocation2 + $0x50] sm:$0xff] %vm2802_vm0, %v2323_v8 }
  0x13   : > { %329 = vst.msk [vmem:[#allocation2] sm:$0xff] %vm2802_vm0, %v2323_v8  ;;  %330 = vst.msk [vmem:[#allocation2 + $0x58] sm:$0xff] %vm2802_vm0, %v2323_v8 }
  0x14   : > { %2309 = dma.done.wait [#allocation3], 1024 }
  0x15   : > { %2310 = vsyncadd [#allocation3], 4294966272  ;;  %v2261_v9 = vld [vmem:[%s2799_s1 + $0x20] sm:$0xff]   ;;  %v2263_v11 = vld [vmem:[%s2799_s1 + $0x28] sm:$0xff]   ;;  %v334_v12 = vlaneseq  ;;  %v2821_v60 = vmov 0  ;;  %v2823_v62 = vmov 0 }
  0x16   : > { %v2262_v10 = vld [vmem:[%s2799_s1 + $0x80] sm:$0xff]   ;;  %2020 = vmatprep.subr.bf16.mxu1 %v2261_v9  ;;  %v2264_v13 = vld [vmem:[%s2799_s1 + $0x88] sm:$0xff]   ;;  %v2265_v14 = vld [vmem:[%s2799_s1 + $0x30] sm:$0xff]  }
  0x17   : > { %2084 = vmatprep.subr.bf16.mxu0 %v2262_v10  ;;  %2021 = vmatpush3.bf16.msra.mxu1 %v2261_v9  ;;  %v2266_v15 = vld [vmem:[%s2799_s1 + $0x90] sm:$0xff]   ;;  %v335_v16 = vshrl.u32 %v334_v12, 7  ;;  %v2267_v17 = vld [vmem:[%s2799_s1 + $0x38] sm:$0xff]   ;;  %v474_v24 = vld [vmem:[#allocation2 + $0x20] sm:$0xff] }
  0x18   : > { %2085 = vmatpush3.bf16.msra.mxu0 %v2262_v10  ;;  %2022 = vmatprep.subr.bf16.mxu1 %v2263_v11  ;;  %v472_v19 = vld [vmem:[#allocation2 + $0x10] sm:$0xff]  ;;  %v859_v20 = vld [vmem:[#allocation2 + $0x18] sm:$0xff]  ;;  %v2269_v26 = vld [vmem:[%s2799_s1] sm:$0xff]  }
  0x19   : > { %2086 = vmatprep.subr.bf16.mxu0 %v2264_v13  ;;  %v471_v18 = vld [vmem:[#allocation2 + $0x8] sm:$0xff]  ;;  %v2268_v21 = vld [vmem:[%s2799_s1 + $0x98] sm:$0xff]   ;;  %v1004_v23 = vpack.c.bf16 %v859_v20, %v472_v19  ;;  %v336_v25 = vadd.s32 8, %v335_v16  ;;  %v337_v27 = vadd.s32 16, %v335_v16  ;;  %v338_v29 = vadd.s32 24, %v335_v16  ;;  %v2270_v30 = vld [vmem:[%s2799_s1 + $0xa0] sm:$0xff]  }
  0x1a   : > { %v507_v22 = vpack.c.bf16 %v472_v19, %v471_v18  ;;  %v861_v28 = vld [vmem:[#allocation2 + $0x28] sm:$0xff]  ;;  %v2406_v31 = vpack.c.bf16 %v474_v24, %v859_v20  ;;  %v476_v32 = vld [vmem:[#allocation2 + $0x30] sm:$0xff]  ;;  %v347_v33 = vand.u32 7, %v335_v16  ;;  %v2408_v34 = vadd.s32 32, %v335_v16  ;;  %v863_v37 = vld [vmem:[#allocation2 + $0x38] sm:$0xff] }
  0x1b   : > { %2023 = vmatpush3.bf16.msra.mxu1 %v2263_v11  ;;  %2092 = vmatprep.mubr.msk.bf16.mxu0 %vm2802_vm0, %v1004_v23  ;;  %v2410_v35 = vadd.s32 40, %v335_v16  ;;  %v1005_v36 = vpack.c.bf16 %v861_v28, %v474_v24  ;;  %v354_v38 = vand.u32 7, %v336_v25  ;;  %v361_v39 = vand.u32 7, %v337_v27  ;;  %v2271_v41 = vld [vmem:[%s2799_s1 + $0x8] sm:$0xff]   ;;  %v478_v47 = vld [vmem:[#allocation2 + $0x40] sm:$0xff]  ;;  %v2445_v54 = vld [vmem:[#allocation2 + $0x11] sm:$0xff] }
  0x1c   : > { %2087 = vmatpush3.bf16.msra.mxu0 %v2264_v13  ;;  %2024 = vmatprep.subr.bf16.mxu1 %v2265_v14  ;;  %v2412_v40 = vadd.s32 48, %v335_v16  ;;  %v368_v42 = vand.u32 7, %v338_v29  ;;  %v2272_v43 = vld [vmem:[%s2799_s1 + $0xa8] sm:$0xff]   ;;  %v2420_v44 = vpack.c.bf16 %v476_v32, %v861_v28  ;;  %v2422_v45 = vadd.s32 56, %v335_v16  ;;  %v2273_v55 = vld [vmem:[%s2799_s1 + $0x10] sm:$0xff]   ;;  %v2452_v57 = vld [vmem:[#allocation2 + $0x19] sm:$0xff] }
  0x1d   : > { %2088 = vmatprep.subr.bf16.mxu0 %v2266_v15  ;;  %2028 = vmatprep.mubr.msk.bf16.mxu1 %vm2802_vm0, %v507_v22  ;;  %v1006_v46 = vpack.c.bf16 %v863_v37, %v476_v32  ;;  %vm2426_vm1 = vcmp.ne.s32.totalorder %v347_v33, 0  ;;  %vm2431_vm2 = vcmp.ne.s32.totalorder %v354_v38, 0  ;;  %v455_v50 = vld [vmem:[#allocation2 + $0x7] sm:$0xff]  ;;  %v2435_v51 = vld [vmem:[#allocation2 + $0xf] sm:$0xff]  ;;  %vm2437_vm3 = vcmp.ne.s32.totalorder %v347_v33, 7  ;;  %v2275_v2 = vld [vmem:[%s2799_s1 + $0x18] sm:$0xff]  }
  0x1e   : > { %vm2441_vm4 = vcmp.ne.s32.totalorder %v354_v38, 7  ;;  %v2450_v56 = vld [vmem:[#allocation2 + $0x48] sm:$0xff]  ;;  %vm2454_vm5 = vcmp.ne.s32.totalorder %v361_v39, 0  ;;  %vm2458_vm6 = vcmp.ne.s32.totalorder %v368_v42, 0  ;;  %vm2462_vm7 = vcmp.ne.s32.totalorder %v361_v39, 7  ;;  %v2274_v61 = vld [vmem:[%s2799_s1 + $0xb0] sm:$0xff]  }
  0x1f   : > { %2025 = vmatpush3.bf16.msra.mxu1 %v2265_v14  ;;  %v2822_v60 = vsel %vm2462_vm7, 4294967295, %v2821_v60  ;;  %vm2471_vm8 = vcmp.ne.s32.totalorder %v368_v42, 7  ;;  %v375_v63 = vand.u32 7, %v2408_v34  ;;  %v382_v0 = vand.u32 7, %v2410_v35  ;;  %v2491_v6 = vld [vmem:[#allocation2 + $0x17] sm:$0xff]  ;;  %v2500_v10 = vld [vmem:[#allocation2 + $0x1f] sm:$0xff] }
  0x20   : > { %2089 = vmatpush3.bf16.msra.mxu0 %v2266_v15  ;;  %2026 = vmatprep.subr.bf16.mxu1 %v2267_v17  ;;  %v2824_v62 = vsel %vm2471_vm8, 4294967295, %v2823_v62  ;;  %v2478_v1 = vpack.c.bf16 %v478_v47, %v863_v37  ;;  %v463_v3 = vsel %vm2426_vm1, %v455_v50, 0.0  ;;  %v464_v4 = vsel %vm2431_vm2, %v2435_v51, 0.0  ;;  %v2276_v8 = vld [vmem:[%s2799_s1 + $0xb8] sm:$0xff]   ;;  %v2502_v11 = vld [vmem:[#allocation2 + $0x21] sm:$0xff]  ;;  %v2505_v14 = vld [vmem:[#allocation2 + $0x29] sm:$0xff] }
  0x21   : > { %2090 = vmatprep.subr.bf16.mxu0 %v2268_v21  ;;  %v874_v5 = vsel %vm2437_vm3, %v2445_v54, 0.0  ;;  %v1007_v7 = vpack.c.bf16 %v2450_v56, %v478_v47  ;;  %v875_v9 = vsel %vm2441_vm4, %v2452_v57, 0.0  ;;  %v389_v12 = vand.u32 7, %v2412_v40  ;;  %v2277_v22 = vld [vmem:[%s2799_s1 + $0x40] sm:$0xff]   ;;  %v2534_v24 = vld [vmem:[#allocation2 + $0x2f] sm:$0xff]  ;;  %v2581_v42 = vld [vmem:[#allocation2 + $0x37] sm:$0xff] }
  0x22   : > { %v495_v13 = vpack.c.bf16 %v464_v4, %v463_v3  ;;  %v396_v15 = vand.u32 7, %v2422_v45  ;;  %v1125_v16 = vpack.c.bf16 %v875_v9, %v874_v5  ;;  %vm2510_vm9 = vcmp.ne.s32.totalorder %v375_v63, 0  ;;  %v2532_v23 = vld [vmem:[#allocation2 + $0x27] sm:$0xff]  ;;  %v2546_v28 = vld [vmem:[#allocation2 + $0x31] sm:$0xff]  ;;  %v2548_v29 = vld [vmem:[#allocation2 + $0x39] sm:$0xff] }
  0x23   : > { %2027 = vmatpush3.bf16.msra.mxu1 %v2267_v17  ;;  %v2825_v17 = vmov 0  ;;  %vm2514_vm10 = vcmp.ne.s32.totalorder %v382_v0, 0  ;;  %v2827_v18 = vmov 0  ;;  %vm2518_vm11 = vcmp.ne.s32.totalorder %v375_v63, 7  ;;  %v2279_v34 = vld [vmem:[%s2799_s1 + $0x48] sm:$0xff]   ;;  %v2296_v52 = vld [vmem:[%s2799_s1 + $0x118] sm:$0xff]  }
  0x24   : > { %2091 = vmatpush3.bf16.msra.mxu0 %v2268_v21  ;;  %2036 = vmatprep.subr.bf16.mxu1 %v2269_v26  ;;  %v2826_v17 = vsel %vm2510_vm9, 4294967295, %v2825_v17  ;;  %v2828_v18 = vsel %vm2514_vm10, 4294967295, %v2827_v18  ;;  %v465_v20 = vsel %vm2454_vm5, %v2491_v6, 0.0  ;;  %v466_v21 = vsel %vm2458_vm6, %v2500_v10, 0.0  ;;  %v2280_v39 = vld [vmem:[%s2799_s1 + $0xc8] sm:$0xff]  }
  0x25   : > { %2100 = vmatprep.subr.bf16.mxu0 %v2270_v30  ;;  %vm2536_vm12 = vcmp.ne.s32.totalorder %v382_v0, 7  ;;  %v877_v27 = vsel %vm2471_vm8, %v2505_v14, 0.0  ;;  %vm2554_vm13 = vcmp.ne.s32.totalorder %v389_v12, 0  ;;  %v496_v33 = vpack.c.bf16 %v466_v21, %v465_v20  ;;  %v2281_v0 = vld [vmem:[%s2799_s1 + $0x50] sm:$0xff]   ;;  %v2283_v20 = vld [vmem:[%s2799_s1 + $0x58] sm:$0xff]  }
  0x26   : > { %2029 = vmatmul.mubr.msk.bf16.vlgmr.msra.gmra.mrb[0].mxu1 %vm2802_vm0, %v2406_v31  ;;  %v467_v35 = vsel %vm2510_vm9, %v2532_v23, 0.0  ;;  %vm2568_vm14 = vcmp.ne.s32.totalorder %v396_v15, 0  ;;  %v878_v40 = vsel %vm2518_vm11, %v2546_v28, 0.0  ;;  %vm2585_vm15 = vcmp.ne.s32.totalorder %v389_v12, 7  ;;  %v479_v3 = vld [vmem:[#allocation2 + $0x9] sm:$0xff] }
  0x27   : > { %2093 = vmatmul.mubr.msk.bf16.vlgmr.msra.gmra.mrb[0].mxu0 %vm2802_vm0, %v1005_v36  ;;  %2037 = vmatpush3.bf16.msra.mxu1 %v2269_v26  ;;  %v876_v26 = vsel %vm2462_vm7, %v2502_v11, 0.0  ;;  %v468_v36 = vsel %vm2514_vm10, %v2534_v24, 0.0  ;;  %vm2841_vm10 = vcmask 523264   ;;  %v469_v63 = vsel %vm2554_vm13, %v2581_v42, 0.0 }
  0x28   : > { %2101 = vmatpush3.bf16.msra.mxu0 %v2270_v30  ;;  %2038 = vmatprep.subr.bf16.mxu1 %v2271_v41  ;;  %v2278_v30 = vld [vmem:[%s2799_s1 + $0xc0] sm:$0xff]   ;;  %v1126_v38 = vpack.c.bf16 %v877_v27, %v876_v26  ;;  %v497_v47 = vpack.c.bf16 %v468_v36, %v467_v35  ;;  %vm2842_vm9 = vmmov %vm2841_vm10  ;;  %v487_v9 = vsel %vm2437_vm3, %v479_v3, 0.0  ;;  %v488_v12 = vsel %vm2441_vm4, %v2445_v54, 0.0  ;;  %v2284_v54 = vld [vmem:[%s2799_s1 + $0xd8] sm:$0xff]  }
  0x29   : > { %2102 = vmatprep.subr.bf16.mxu0 %v2272_v43  ;;  %2032 = vmatprep.mubr.msk.bf16.mxu1 %vm2802_vm0, %v2420_v44  ;;  %v721_v21 = vpack.c.bf16 %v488_v12, %v487_v9  ;;  %v489_v26 = vsel %vm2462_vm7, %v2452_v57, 0.0  ;;  %v490_v27 = vsel %vm2471_vm8, %v2502_v11, 0.0  ;;  %v2286_v35 = vld [vmem:[%s2799_s1 + $0xe0] sm:$0xff]   ;;  %vm2847_vm8 = vnez %v2828_v18  ;;  %v1253_v3 = vld [vmem:[#allocation2 + $0x4f] sm:$0xff]  ;;  %vm2848_vm7 = vmmov %vm2842_vm9 }
  0x2a   : > { %2096 = vmatprep.mubr.msk.bf16.mxu0 %vm2802_vm0, %v1006_v46  ;;  %v2589_v46 = vld [vmem:[#allocation2 + $0x41] sm:$0xff]  ;;  %v722_v36 = vpack.c.bf16 %v490_v27, %v489_v26  ;;  %v1261_v12 = vsel %vm2568_vm14, %v1253_v3, 0.0  ;;  %v852_v48 = vsel %vm2454_vm5, %v2500_v10, 0.0  ;;  %v853_v49 = vsel %vm2458_vm6, %v2532_v23, 0.0  ;;  %v1269_v18 = vld [vmem:[#allocation2 + $0x50] sm:$0xff] }
  0x2b   : > { %2039 = vmatpush3.bf16.msra.mxu1 %v2271_v41  ;;  %v879_v41 = vsel %vm2536_vm12, %v2548_v29, 0.0  ;;  %v880_v4 = vsel %vm2585_vm15, %v2589_v46, 0.0  ;;  %v855_v59 = vsel %vm2847_vm8, %v2581_v42, 0.0  ;;  %v1278_v32 = vsel %vm2437_vm3, %v2452_v57, 0.0  ;;  %v1277_v27 = vld [vmem:[#allocation2 + $0x51] sm:$0xff] }
  0x2c   : > { %2103 = vmatpush3.bf16.msra.mxu0 %v2272_v43  ;;  %2040 = vmatprep.subr.bf16.mxu1 %v2273_v55  ;;  %v2583_v43 = vld [vmem:[#allocation2 + $0x3f] sm:$0xff]  ;;  %v1279_v37 = vsel %vm2441_vm4, %v2502_v11, 0.0 }
  0x2d   : > { %2104 = vmatprep.subr.bf16.mxu0 %v2274_v61  ;;  %v1529_v53 = vpack.c.bf16 %v1279_v37, %v1278_v32 }
  0x2e   : > { %2033 = vmatmul.mubr.msk.bf16.gmra.mrb[4].mxu1 %vm2802_vm0, %v2478_v1 }
  0x2f   : > { %2097 = vmatmul.mubr.msk.bf16.gmra.mrb[4].mxu0 %vm2802_vm0, %v1007_v7  ;;  %2041 = vmatpush3.bf16.msra.mxu1 %v2273_v55  ;;  %v2595_v55 = vld [vmem:[#allocation2 + $0x49] sm:$0xff] }
  0x30   : > { %2105 = vmatpush3.bf16.msra.mxu0 %v2274_v61  ;;  %2042 = vmatprep.subr.bf16.mxu1 %v2275_v2  ;;  %v1127_v61 = vpack.c.bf16 %v879_v41, %v878_v40  ;;  %v2282_v7 = vld [vmem:[%s2799_s1 + $0xd0] sm:$0xff]   ;;  %v1284_v57 = vsel %vm2585_vm15, %v2595_v55, 0.0 }
  0x31   : > { %2106 = vmatprep.subr.bf16.mxu0 %v2276_v8  ;;  %2044 = vmatprep.mubr.msk.bf16.mxu1 %vm2802_vm0, %v495_v13 }
  0x32   : > { %2108 = vmatprep.mubr.msk.bf16.mxu0 %vm2802_vm0, %v1125_v16  ;;  %vm2591_vm0 = vcmp.ne.s32.totalorder %v396_v15, 7  ;;  %v1254_v15 = vsel %vm2426_vm1, %v2491_v6, 0.0  ;;  %v1255_v16 = vsel %vm2431_vm2, %v2500_v10, 0.0  ;;  %v2294_v10 = vld [vmem:[%s2799_s1 + $0x108] sm:$0xff]  }
  0x33   : > { %2043 = vmatpush3.bf16.msra.mxu1 %v2275_v2  ;;  %v470_v2 = vsel %vm2568_vm14, %v2583_v43, 0.0  ;;  %v881_v5 = vsel %vm2591_vm0, %v2595_v55, 0.0  ;;  %v1285_v11 = vsel %vm2591_vm0, %v1277_v27, 0.0 }
  0x34   : > { %2107 = vmatpush3.bf16.msra.mxu0 %v2276_v8  ;;  %2052 = vmatprep.subr.bf16.mxu1 %v2277_v22  ;;  %v498_v8 = vpack.c.bf16 %v470_v2, %v469_v63  ;;  %v1128_v13 = vpack.c.bf16 %v881_v5, %v880_v4  ;;  %v2288_v63 = vld [vmem:[%s2799_s1 + $0xe8] sm:$0xff]   ;;  %v493_v5 = vsel %vm2585_vm15, %v2548_v29, 0.0 }
  0x35   : > { %2116 = vmatprep.subr.bf16.mxu0 %v2278_v30  ;;  %v1252_v2 = vld [vmem:[#allocation2 + $0x47] sm:$0xff] }
  0x36   : > { %2045 = vmatmul.mubr.msk.bf16.vlgmr.msra.gmra.mrb[0].mxu1 %vm2841_vm10, %v496_v33  ;;  %vm2843_vm10 = vmmov %vm2842_vm9  ;;  %v2285_v33 = vld [vmem:[%s2799_s1 + $0x60] sm:$0xff]   ;;  %v1260_v9 = vsel %vm2554_vm13, %v1252_v2, 0.0 }
  0x37   : > { %2109 = vmatmul.mubr.msk.bf16.vlgmr.msra.gmra.mrb[0].mxu0 %vm2842_vm9, %v1126_v38  ;;  %2053 = vmatpush3.bf16.msra.mxu1 %v2277_v22  ;;  %v1286_v22 = vpack.c.bf16 %v1255_v16, %v1254_v15  ;;  %v491_v38 = vsel %vm2518_vm11, %v2505_v14, 0.0  ;;  %v850_v16 = vsel %vm2426_vm1, %v2435_v51, 0.0  ;;  %vm2850_vm1 = vmmov %vm2848_vm7  ;;  %v2293_v51 = vld [vmem:[%s2799_s1 + $0x100] sm:$0xff]  }
  0x38   : > { %2117 = vmatpush3.bf16.msra.mxu0 %v2278_v30  ;;  %2054 = vmatprep.subr.bf16.mxu1 %v2279_v34  ;;  %v1256_v30 = vsel %vm2454_vm5, %v2532_v23, 0.0  ;;  %vm2853_vm5 = vmmov %vm2850_vm1 }
  0x39   : > { %2118 = vmatprep.subr.bf16.mxu0 %v2280_v39  ;;  %2048 = vmatprep.mubr.msk.bf16.mxu1 %vm2843_vm10, %v497_v47  ;;  %vm2844_vm10 = vmmov %vm2842_vm9  ;;  %v1259_v47 = vsel %vm2847_vm8, %v2583_v43, 0.0 }
  0x3a   : > { %2112 = vmatprep.mubr.msk.bf16.mxu0 %vm2842_vm9, %v1127_v61  ;;  %v2287_v61 = vld [vmem:[%s2799_s1 + $0x68] sm:$0xff]   ;;  %vm2855_vm8 = vmmov %vm2850_vm1 }
  0x3b   : > { %2055 = vmatpush3.bf16.msra.mxu1 %v2279_v34  ;;  %v1257_v34 = vsel %vm2458_vm6, %v2534_v24, 0.0  ;;  %vm2854_vm6 = vmmov %vm2850_vm1 }
  0x3c   : > { %2119 = vmatpush3.bf16.msra.mxu0 %v2280_v39  ;;  %2056 = vmatprep.subr.bf16.mxu1 %v2281_v0  ;;  %v492_v39 = vsel %vm2536_vm12, %v2546_v28, 0.0  ;;  %v1287_v40 = vpack.c.bf16 %v1257_v34, %v1256_v30  ;;  %vm2857_vm3 = vmmov %vm2850_vm1 }
  0x3d   : > { %2120 = vmatprep.subr.bf16.mxu0 %v2282_v7  ;;  %vm2858_vm4 = vmmov %vm2850_vm1 }
  0x3e   : > { %2049 = vmatmul.mubr.msk.bf16.gmra.mrb[4].mxu1 %vm2844_vm10, %v498_v8  ;;  %vm2845_vm10 = vmmov %vm2842_vm9  ;;  %v2289_v8 = vld [vmem:[%s2799_s1 + $0x70] sm:$0xff]  }
  0x3f   : > { %2113 = vmatmul.mubr.msk.bf16.gmra.mrb[4].mxu0 %vm2842_vm9, %v1128_v13  ;;  %2057 = vmatpush3.bf16.msra.mxu1 %v2281_v0  ;;  %v723_v0 = vpack.c.bf16 %v492_v39, %v491_v38  ;;  %v2290_v13 = vld [vmem:[%s2799_s1 + $0xf0] sm:$0xff]  }
  0x40   : > { %2121 = vmatpush3.bf16.msra.mxu0 %v2282_v7  ;;  %2058 = vmatprep.subr.bf16.mxu1 %v2283_v20  ;;  %v494_v7 = vsel %vm2591_vm0, %v2589_v46, 0.0  ;;  %vm2863_vm0 = vmmov %vm2850_vm1 }
  0x41   : > { %2122 = vmatprep.subr.bf16.mxu0 %v2284_v54  ;;  %2060 = vmatprep.mubr.msk.bf16.mxu1 %vm2845_vm10, %v721_v21  ;;  %vm2846_vm10 = vnez %v2826_v17  ;;  %v724_v15 = vpack.c.bf16 %v494_v7, %v493_v5  ;;  %v2291_v21 = vld [vmem:[%s2799_s1 + $0x78] sm:$0xff]   ;;  %v857_v17 = vsel %vm2568_vm14, %v1252_v2, 0.0  ;;  %vm2862_vm14 = vmmov %vm2850_vm1 }
  0x42   : > { %2124 = vmatprep.mubr.msk.bf16.mxu0 %vm2842_vm9, %v1286_v22  ;;  %v1258_v41 = vsel %vm2846_vm10, %v2581_v42, 0.0  ;;  %v2292_v22 = vld [vmem:[%s2799_s1 + $0xf8] sm:$0xff]   ;;  %v854_v58 = vsel %vm2846_vm10, %v2534_v24, 0.0  ;;  %v2295_v24 = vld [vmem:[%s2799_s1 + $0x110] sm:$0xff]   ;;  %vm2856_vm10 = vmmov %vm2850_vm1  ;;  %v1411_v42 = vpack.c.bf16 %v1269_v18, %v2450_v56 }
  0x43   : > { %2059 = vmatpush3.bf16.msra.mxu1 %v2283_v20  ;;  %v1288_v4 = vpack.c.bf16 %v1259_v47, %v1258_v41  ;;  %v851_v20 = vsel %vm2431_vm2, %v2491_v6, 0.0  ;;  %vm2851_vm2 = vmmov %vm2850_vm1  ;;  %v883_v6 = vpack.c.bf16 %v853_v49, %v852_v48  ;;  %v884_v23 = vpack.c.bf16 %v855_v59, %v854_v58  ;;  %v1939_v47 = vld [vmem:[%s2800_s2] ss:$0 sm:$0xff] }
  0x44   : > { %2123 = vmatpush3.bf16.msra.mxu0 %v2284_v54  ;;  %2068 = vmatprep.subr.bf16.mxu1 %v2285_v33  ;;  %v1289_v54 = vpack.c.bf16 %v1261_v12, %v1260_v9  ;;  %v882_v26 = vpack.c.bf16 %v851_v20, %v850_v16  ;;  %vm2864_vm15 = vmmov %vm2863_vm0 }
  0x45   : > { %2132 = vmatprep.subr.bf16.mxu0 %v2286_v35 }
  0x46   : > { %2061 = vmatmul.mubr.msk.bf16.vlgmr.msra.gmra.mrb[0].mxu1 %vm2842_vm9, %v722_v36  ;;  %vm2849_vm9 = vmmov %vm2848_vm7 }
  0x47   : > { %2125 = vmatmul.mubr.msk.bf16.vlgmr.msra.gmra.mrb[0].mxu0 %vm2848_vm7, %v1287_v40  ;;  %2069 = vmatpush3.bf16.msra.mxu1 %v2285_v33 }
  0x48   : > { %2133 = vmatpush3.bf16.msra.mxu0 %v2286_v35  ;;  %2070 = vmatprep.subr.bf16.mxu1 %v2287_v61 }
  0x49   : > { %2134 = vmatprep.subr.bf16.mxu0 %v2288_v63  ;;  %2064 = vmatprep.mubr.msk.bf16.mxu1 %vm2848_vm7, %v723_v0 }
  0x4a   : > { %2128 = vmatprep.mubr.msk.bf16.mxu0 %vm2849_vm9, %v1288_v4  ;;  %vm2852_vm9 = vmmov %vm2850_vm1 }
  0x4b   : > { %2071 = vmatpush3.bf16.msra.mxu1 %v2287_v61 }
  0x4c   : > { %2135 = vmatpush3.bf16.msra.mxu0 %v2288_v63  ;;  %2072 = vmatprep.subr.bf16.mxu1 %v2289_v8 }
  0x4d   : > { %2136 = vmatprep.subr.bf16.mxu0 %v2290_v13 }
  0x4e   : > { %2065 = vmatmul.mubr.msk.bf16.gmra.mrb[4].mxu1 %vm2848_vm7, %v724_v15 }
  0x4f   : > { %2129 = vmatmul.mubr.msk.bf16.gmra.mrb[4].mxu0 %vm2850_vm1, %v1289_v54  ;;  %2073 = vmatpush3.bf16.msra.mxu1 %v2289_v8 }
  0x50   : > { %2137 = vmatpush3.bf16.msra.mxu0 %v2290_v13  ;;  %2074 = vmatprep.subr.bf16.mxu1 %v2291_v21 }
  0x51   : > { %2138 = vmatprep.subr.bf16.mxu0 %v2292_v22  ;;  %2076 = vmatprep.mubr.msk.bf16.mxu1 %vm2851_vm2, %v882_v26 }
  0x52   : > { %2140 = vmatprep.mubr.msk.bf16.mxu0 %vm2852_vm9, %v2406_v31  ;;  %v856_v31 = vsel %vm2554_vm13, %v2583_v43, 0.0  ;;  %v1282_v43 = vsel %vm2518_vm11, %v2548_v29, 0.0  ;;  %vm2859_vm11 = vnez %v2822_v60  ;;  %vm2861_vm13 = vmmov %vm2850_vm1  ;;  %v1532_v29 = vpack.c.bf16 %v1285_v11, %v1284_v57 }
  0x53   : > { %2075 = vmatpush3.bf16.msra.mxu1 %v2291_v21  ;;  %v1280_v19 = vsel %vm2859_vm11, %v2505_v14, 0.0 }
  0x54   : > { %2139 = vmatpush3.bf16.msra.mxu0 %v2292_v22  ;;  %2164 = vmatprep.subr.bf16.mxu1 %v2293_v51 }
  0x55   : > { %2148 = vmatprep.subr.bf16.mxu0 %v2293_v51 }
  0x56   : > { %2077 = vmatmul.mubr.msk.bf16.vlgmr.msra.gmra.mrb[0].mxu1 %vm2853_vm5, %v883_v6 }
  0x57   : > { %2141 = vmatmul.mubr.msk.bf16.vlgmr.msra.gmra.mrb[0].mxu0 %vm2854_vm6, %v2420_v44  ;;  %2168 = vmatpush3.bf16.msra.mxu1 %v2293_v51  ;;  %v885_v44 = vpack.c.bf16 %v857_v17, %v856_v31 }
  0x58   : > { %2149 = vmatpush3.bf16.msra.mxu0 %v2293_v51  ;;  %2165 = vmatprep.subr.bf16.mxu1 %v2294_v10 }
  0x59   : > { %2150 = vmatprep.subr.bf16.mxu0 %v2294_v10  ;;  %2080 = vmatprep.mubr.msk.bf16.mxu1 %vm2855_vm8, %v884_v23 }
  0x5a   : > { %2144 = vmatprep.mubr.msk.bf16.mxu0 %vm2856_vm10, %v2478_v1  ;;  %v1283_v1 = vsel %vm2536_vm12, %v2589_v46, 0.0  ;;  %vm2860_vm12 = vnez %v2824_v62 }
  0x5b   : > { %2169 = vmatpush3.bf16.msra.mxu1 %v2294_v10  ;;  %v1531_v56 = vpack.c.bf16 %v1283_v1, %v1282_v43  ;;  %v1281_v25 = vsel %vm2860_vm12, %v2546_v28, 0.0 }
  0x5c   : > { %2151 = vmatpush3.bf16.msra.mxu0 %v2294_v10  ;;  %2166 = vmatprep.subr.bf16.mxu1 %v2295_v24  ;;  %v1530_v45 = vpack.c.bf16 %v1281_v25, %v1280_v19 }
  0x5d   : > { %2152 = vmatprep.subr.bf16.mxu0 %v2295_v24 }
  0x5e   : > { %2081 = vmatmul.mubr.msk.bf16.gmra.mrb[4].mxu1 %vm2857_vm3, %v885_v44 }
  0x5f   : > { %2145 = vmatmul.mubr.msk.bf16.gmra.mrb[4].mxu0 %vm2858_vm4, %v1411_v42  ;;  %2170 = vmatpush3.bf16.msra.mxu1 %v2295_v24 }
  0x60   : > { %2153 = vmatpush3.bf16.msra.mxu0 %v2295_v24  ;;  %2167 = vmatprep.subr.bf16.mxu1 %v2296_v52 }
  0x61   : > { %2154 = vmatprep.subr.bf16.mxu0 %v2296_v52  ;;  %2156 = vmatprep.mubr.msk.bf16.mxu0 %vm2861_vm13, %v1529_v53 }
  0x62   : > { %2160 = vmatprep.mubr.msk.bf16.mxu1 %vm2862_vm14, %v1531_v56 }
  0x63   : > { %2171 = vmatpush3.bf16.msra.mxu1 %v2296_v52 }
  0x64   : > { %2155 = vmatpush3.bf16.msra.mxu0 %v2296_v52 }
  0x66   : > { %2161 = vmatmul.mubr.msk.bf16.vlgmr.msra.gmra.mrb[8].mxu1 %vm2863_vm0, %v1532_v29 }
  0x67   : > { %2157 = vmatmul.mubr.msk.bf16.vlgmr.msra.gmra.mrb[0].mxu0 %vm2864_vm15, %v1530_v45 }
 0x129   : > { %v2078_v46 = vpop.f32.mrb[0].mxu1 }
 0x12a   : > { %v965_v60 = vpop.f32.mrb[1].mxu1 }
 0x12b   : > { %v2079_v14 = vpop.f32.mrb[2].mxu1 }
 0x12c   : > { %v968_v50 = vpop.f32.mrb[3].mxu1 }
 0x131   : > { %v2082_v55 = vpop.f32.mrb[4].mxu1 }
 0x132   : > { %v2146_v62 = vpop.f32.mrb[4].mxu0  ;;  %v981_v28 = vpop.f32.mrb[5].mxu1 }
 0x133   : > { %v2176_v30 = vadd.f32 %v2146_v62, %v2082_v55  ;;  %v1506_v33 = vpop.f32.mrb[5].mxu0  ;;  %v2083_v34 = vpop.f32.mrb[6].mxu1 }
 0x134   : > { %v2178_v35 = vadd.f32 %v1506_v33, %v981_v28  ;;  %v2147_v36 = vpop.f32.mrb[6].mxu0  ;;  %v984_v38 = vpop.f32.mrb[7].mxu1 }
 0x135   : > { %v2180_v39 = vadd.f32 %v2147_v36, %v2083_v34  ;;  %v1509_v40 = vpop.f32.mrb[7].mxu0 }
 0x136   : > { %v2182_v41 = vadd.f32 %v1509_v40, %v984_v38 }
 0x139   : > { %v2162_v61 = vpop.f32.mrb[8].mxu1 }
 0x13a   : > { %v2158_v63 = vpop.f32.mrb[0].mxu0  ;;  %v2177_v0 = vadd.f32 %v2176_v30, %v2162_v61  ;;  %v1627_v2 = vpop.f32.mrb[9].mxu1 }
 0x13b   : > { %v2172_v3 = vadd.f32 %v2158_v63, %v2078_v46  ;;  %v1611_v4 = vpop.f32.mrb[1].mxu0  ;;  %v2179_v5 = vadd.f32 %v2178_v35, %v1627_v2  ;;  %v2163_v7 = vpop.f32.mrb[10].mxu1 }
 0x13c   : > { %v1663_v8 = vadd.f32 %v2177_v0, %v1939_v47  ;;  %v2173_v9 = vadd.f32 %v1611_v4, %v965_v60  ;;  %v2159_v12 = vpop.f32.mrb[2].mxu0  ;;  %v2181_v13 = vadd.f32 %v2180_v39, %v2163_v7  ;;  %v1630_v15 = vpop.f32.mrb[11].mxu1 }
 0x13d   : > { %v1659_v16 = vadd.f32 %v2172_v3, %v1939_v47  ;;  %v1661_v20 = vadd.f32 %v2179_v5, %v1939_v47  ;;  %v2174_v54 = vadd.f32 %v2159_v12, %v2079_v14  ;;  %v1614_v21 = vpop.f32.mrb[3].mxu0  ;;  %v2183_v22 = vadd.f32 %v2182_v41, %v1630_v15 }
 0x13e   : > { %v1671_v26 = vmax.f32 %v1663_v8, 0.0  ;;  %v1657_v48 = vadd.f32 %v2173_v9, %v1939_v47  ;;  %v1664_v49 = vadd.f32 %v2181_v13, %v1939_v47  ;;  %v2175_v51 = vadd.f32 %v1614_v21, %v968_v50 }
 0x13f   : > { %v1667_v6 = vmax.f32 %v1659_v16, 0.0  ;;  %v1669_v58 = vmax.f32 %v1661_v20, 0.0  ;;  %v1660_v59 = vadd.f32 %v2174_v54, %v1939_v47  ;;  %v1662_v10 = vadd.f32 %v2183_v22, %v1939_v47 }
 0x140   : > { %1679 = vst [vmem:[%s2368_s23 + $0x30] sm:$0xff] %v1671_v26  ;;  %v1665_v23 = vmax.f32 %v1657_v48, 0.0  ;;  %v1672_v31 = vmax.f32 %v1664_v49, 0.0  ;;  %v1658_v17 = vadd.f32 %v2175_v51, %v1939_v47 }
 0x141   : > { %1675 = vst [vmem:[%s2368_s23 + $0x10] sm:$0xff] %v1667_v6  ;;  %1677 = vst [vmem:[%s2368_s23 + $0x20] sm:$0xff] %v1669_v58  ;;  %v1668_v18 = vmax.f32 %v1660_v59, 0.0  ;;  %v1670_v24 = vmax.f32 %v1662_v10, 0.0 }
 0x142   : > { %1673 = vst [vmem:[%s2368_s23] sm:$0xff] %v1665_v23  ;;  %1680 = vst [vmem:[%s2368_s23 + $0x38] sm:$0xff] %v1672_v31  ;;  %v1666_v44 = vmax.f32 %v1658_v17, 0.0 }
 0x143   : > { %1676 = vst [vmem:[%s2368_s23 + $0x18] sm:$0xff] %v1668_v18  ;;  %1678 = vst [vmem:[%s2368_s23 + $0x28] sm:$0xff] %v1670_v24 }
 0x144   : > { %1674 = vst [vmem:[%s2368_s23 + $0x8] sm:$0xff] %v1666_v44 }
 0x145 PF: > { %s13_s14 = sadd.s32 1, %s2321_s14   ;;  %s2865_s12 = smov %s2317_s13 }
 0x146   : > { %p10_p5 = scmp.ge.s32.totalorder %s13_s14, 4   ;;  %s2866_s13 = smov %s2868_s15 }
 0x148   :  { %12 = sbr.rel (!%p10_p5) target bundleno = 2 (0x2), region = 209 }
 0x14f   :  { %1711 = vsyncmov [#allocation3] }
 0x152   :  { %s1712_s29 = vpop.sfrf %1711 }
 0x153   :  { %p1942_p6 = scmp.ne.s32.totalorder %s1712_s29, 0 }
 0x155   :  { %1716 = shalt.err (%p1942_p6)  }
 0x156   :  { %1718 = vsyncmov [#allocation3 + $0x1] }
 0x159   :  { %s1719_s30 = vpop.sfrf %1718 }
 0x15a   :  { %p1943_p7 = scmp.ne.s32.totalorder %s1719_s30, 0 }
 0x15c   :  { %1723 = shalt.err (%p1943_p7)  }
 0x15d   :  { %1725 = vsyncmov [#allocation3 + $0x2] }
 0x160   :  { %s1726_s23 = vpop.sfrf %1725 }
 0x161   :  { %p1944_p8 = scmp.ne.s32.totalorder %s1726_s23, 0 }
 0x163   :  { %1730 = shalt.err (%p1944_p8)  }

// kernel: vgg_perceptual_loss.8
= control target key start
LH: loop header
LB: loop body
LE: loop exit
PB: predicated region body
PF: predicated region fallthrough
CT: control target
= control target key end

     0   :  { %s3422_s12 = smov 0   ;;  %s3424_s13 = smov 0   ;;  %s4145_s0 = inlined_call_operand.vmem [shape: f32[512,64], index: 0, kind: input, shape index: {}]   ;;  %s4146_s1 = inlined_call_operand.vmem [shape: bf16[3,192,64], index: 1, kind: input, shape index: {}]   ;;  %s4147_s2 = inlined_call_operand.vmem [shape: f32[1,64], index: 2, kind: input, shape index: {}]   ;;  %s4148_s3 = inlined_call_operand.vmem [shape: f32[2,64,64], index: 3, kind: output, shape index: {}]  }
   0x1   :  { %s3426_s14 = smov 0   ;;  %s3428_s15 = smov 0  }
   0x2   :  { %s3430_s16 = smov 0  }
   0x3 LB: > { %s22_s17 = sadd.s32 1, %s3389_s14  ;;  %s25_s18 = sadd.s32 1, %s3393_s15  ;;  %s3397_s16 = sphi %s3430_s16, %s13_s16   ;;  %s3393_s15 = sphi %s3428_s15, %s4281_s15   ;;  %s3389_s14 = sphi %s3426_s14, %s4280_s14   ;;  %s3385_s13 = sphi %s3424_s13, %s4279_s13   ;;  %s3381_s12 = sphi %s3422_s12, %s4278_s12  }
   0x4   : > { %p23_p0 = scmp.ge.s32.totalorder %s22_s17, 2  ;;  %p2634_p1 = scmp.ge.s32.totalorder %s3397_s16, 1 }
   0x5   : > { %p117_p2 = scmp.lt.s32.totalorder %s3397_s16, 5 }
   0x6   : > { %s4283_s17 = smov (%p23_p0, %s22_s17), 0  ;;  %s4285_s18 = smov (!%p23_p0, %s25_s18), %s3393_s15 }
   0x7   : > { %p118_p3 = pnand %p2634_p1, %p117_p2  ;;  %p27_p4 = scmp.ge.s32.totalorder %s4285_s18, 2 }
   0x9   : > { %s4287_s18 = smov (%p27_p4, %s4285_s18), 0  ;;  %121 = sbr.rel (%p118_p3) target bundleno = 466 (0x1d2), region = 28 }
  0x10   : > { %s2635_s19 = sshll.u32 %s3381_s12, 2  ;;  %p139_p5 = scmp.lt.s32.totalorder %s3385_s13, 1 }
  0x11   : > { %p141_p6 = scmp.lt.s32.totalorder %s2635_s19, 7  ;;  %s2638_s20 = sshll.u32 %s3385_s13, 4 }
  0x12   : > { %s4289_s13 = smov (!%p139_p5, %s3385_s13), 1  ;;  %s2639_s22 = sshll.u32 %s3381_s12, 3 }
  0x13   : > { %s4291_s19 = smov (!%p141_p6, %s2635_s19), 7  ;;  %s2636_s21 = sshll.u32 %s4289_s13, 3 }
  0x14   : > { %s144_s23 = sadd.s32 %s2636_s21, %s4291_s19  ;;  %s3456_s24 = sadd.s32 %s2639_s22, %s2638_s20 }
  0x15   : > { %s2637_s25 = sshll.u32 %s144_s23, 3  ;;  %s2640_s26 = sshll.u32 %s3456_s24, 4 }
  0x16   : > { %s3462_s29 = scalar_lea.vmem %s4148_s3, %s2637_s25  ;;  %s3469_s5 = scalar_lea.vmem %s4145_s0, %s2640_s26 }
  0x17   : > { %v187_v0 = vld [vmem:[%s3469_s5] sm:$0xff]  ;;  %v189_v1 = vld [vmem:[%s3469_s5 + $0x8] sm:$0xff]  ;;  %v191_v2 = vld [vmem:[%s3469_s5 + $0x10] sm:$0xff] }
  0x18   : > { %188 = vst [vmem:[#allocation2 + $0x18] sm:$0xff] %v187_v0  ;;  %190 = vst [vmem:[#allocation2 + $0x20] sm:$0xff] %v189_v1  ;;  %v193_v3 = vld [vmem:[%s3469_s5 + $0x18] sm:$0xff]  ;;  %v195_v4 = vld [vmem:[%s3469_s5 + $0x20] sm:$0xff] }
  0x19   : > { %192 = vst [vmem:[#allocation2 + $0x28] sm:$0xff] %v191_v2  ;;  %v197_v5 = vld [vmem:[%s3469_s5 + $0x28] sm:$0xff]  ;;  %194 = vst [vmem:[#allocation2 + $0x30] sm:$0xff] %v193_v3  ;;  %v199_v6 = vld [vmem:[%s3469_s5 + $0x30] sm:$0xff] }
  0x1a   : > { %196 = vst [vmem:[#allocation2 + $0x38] sm:$0xff] %v195_v4  ;;  %198 = vst [vmem:[#allocation2 + $0x40] sm:$0xff] %v197_v5  ;;  %v201_v7 = vld [vmem:[%s3469_s5 + $0x38] sm:$0xff]  ;;  %v203_v8 = vld [vmem:[%s3469_s5 + $0x40] sm:$0xff] }
  0x1b   : > { %200 = vst [vmem:[#allocation2 + $0x48] sm:$0xff] %v199_v6  ;;  %202 = vst [vmem:[#allocation2 + $0x50] sm:$0xff] %v201_v7  ;;  %v205_v9 = vld [vmem:[%s3469_s5 + $0x48] sm:$0xff]  ;;  %v207_v10 = vld [vmem:[%s3469_s5 + $0x50] sm:$0xff] }
  0x1c   : > { %204 = vst [vmem:[#allocation2 + $0x58] sm:$0xff] %v203_v8  ;;  %v209_v11 = vld [vmem:[%s3469_s5 + $0x58] sm:$0xff]  ;;  %206 = vst [vmem:[#allocation2 + $0x60] sm:$0xff] %v205_v9  ;;  %v211_v12 = vld [vmem:[%s3469_s5 + $0x60] sm:$0xff] }
  0x1d   : > { %208 = vst [vmem:[#allocation2 + $0x68] sm:$0xff] %v207_v10  ;;  %210 = vst [vmem:[#allocation2 + $0x70] sm:$0xff] %v209_v11  ;;  %v213_v13 = vld [vmem:[%s3469_s5 + $0x68] sm:$0xff]  ;;  %v215_v14 = vld [vmem:[%s3469_s5 + $0x70] sm:$0xff] }
  0x1e   : > { %212 = vst [vmem:[#allocation2 + $0x78] sm:$0xff] %v211_v12  ;;  %214 = vst [vmem:[#allocation2 + $0x80] sm:$0xff] %v213_v13  ;;  %v217_v15 = vld [vmem:[%s3469_s5 + $0x78] sm:$0xff] }
  0x1f   : > { %216 = vst [vmem:[#allocation2 + $0x88] sm:$0xff] %v215_v14  ;;  %218 = vst [vmem:[#allocation2 + $0x90] sm:$0xff] %v217_v15 }
  0x20   : > { %226 = vsyncadd [#allocation4], 2048  ;;  %p2641_p7 = scmp.le.s32.totalorder %s3381_s12, 0 }
  0x21   : > { %s2642_s6 = sadd.s32 (!%p2641_p7), 4294967280, %s2640_s26 }
  0x22   : > { %230 = sbr.rel (%p2641_p7) target bundleno = 44 (0x2c), region = 66  ;;  %s232_s9 = scalar_lea.vmem (!%p2641_p7), %s4145_s0, %s2642_s6 }
  0x23   : > { %v267_v16 = vld [vmem:[%s232_s9] sm:$0xff] (!%p2641_p7)  ;;  %v269_v17 = vld [vmem:[%s232_s9 + $0x8] sm:$0xff] (!%p2641_p7) }
  0x24   : > { %268 = vst [vmem:[#allocation2 + $0x8] sm:$0xff] (!%p2641_p7), %v267_v16  ;;  %270 = vst [vmem:[#allocation2 + $0x10] sm:$0xff] (!%p2641_p7), %v269_v17 }
  0x29   : > { %278 = vsyncadd [#allocation4 + $0x1], 256 }
  0x2a   : > { %3373 = dma.done.wait [#allocation4 + $0x1], 256 }
  0x2b   : > { %3374 = vsyncadd [#allocation4 + $0x1], 4294967040 }
  0x2c PF: > { %p2643_p8 = scmp.ne.s32.totalorder %s3381_s12, 0 }
  0x2d   : > { %vm286_vm0 = vcmask (!%p2643_p8), 523264   ;;  %v3399_v18 = vmov (!%p2643_p8), 0.0  }
  0x2e   : > { %285 = sbr.rel (%p2643_p8) target bundleno = 53 (0x35), region = 104  ;;  %287 = vst.msk [vmem:[#allocation2 + $0x8] sm:$0xff] (!%p2643_p8), %vm286_vm0, %v3399_v18  ;;  %288 = vst.msk [vmem:[#allocation2 + $0x10] sm:$0xff] (!%p2643_p8), %vm286_vm0, %v3399_v18 }
  0x35 PF: > { %p2644_p9 = scmp.ge.s32.totalorder %s3381_s12, 1 }
  0x36   : > { %v2648_v19 = vld [vmem:[%s3469_s5 + $0x80] sm:$0xff] (!%p2644_p9)  ;;  %v2649_v20 = vld [vmem:[%s3469_s5 + $0x88] sm:$0xff] (!%p2644_p9) }
  0x37   : > { %292 = sbr.rel (%p2644_p9) target bundleno = 65 (0x41), region = 108  ;;  %330 = vst [vmem:[#allocation2 + $0x98] sm:$0xff] (!%p2644_p9), %v2648_v19  ;;  %332 = vst [vmem:[#allocation2 + $0xa0] sm:$0xff] (!%p2644_p9), %v2649_v20 }
  0x3e   : > { %340 = vsyncadd [#allocation4 + $0x2], 256 }
  0x3f   : > { %3375 = dma.done.wait [#allocation4 + $0x2], 256 }
  0x40   : > { %3376 = vsyncadd [#allocation4 + $0x2], 4294967040 }
  0x41 PF: > { %p2651_p10 = scmp.ne.s32.totalorder %s3381_s12, 1 }
  0x42   : > { %vm348_vm1 = vcmask (!%p2651_p10), 523264   ;;  %v3400_v21 = vmov (!%p2651_p10), 0.0  }
  0x43   : > { %347 = sbr.rel (%p2651_p10) target bundleno = 74 (0x4a), region = 146  ;;  %349 = vst.msk [vmem:[#allocation2 + $0x98] sm:$0xff] (!%p2651_p10), %vm348_vm1, %v3400_v21  ;;  %350 = vst.msk [vmem:[#allocation2 + $0xa0] sm:$0xff] (!%p2651_p10), %vm348_vm1, %v3400_v21 }
  0x4a PF: > { %vm4151_vm2 = vcmask 523264   ;;  %v3401_v22 = vmov 0.0  }
  0x4b   : > { %352 = vst.msk [vmem:[#allocation2] sm:$0xff] %vm4151_vm2, %v3401_v22  ;;  %353 = vst.msk [vmem:[#allocation2 + $0xa8] sm:$0xff] %vm4151_vm2, %v3401_v22 }
  0x4c   : > { %3377 = dma.done.wait [#allocation4], 2048 }
  0x4d   : > { %3378 = vsyncadd [#allocation4], 4294965248  ;;  %v3317_v23 = vld [vmem:[%s4146_s1 + $0x20] sm:$0xff]   ;;  %v3319_v25 = vld [vmem:[%s4146_s1 + $0x28] sm:$0xff]   ;;  %v357_v26 = vlaneseq  ;;  %v4170_v14 = vmov 0 }
  0x4e   : > { %v3506_v24 = vld [vmem:[%s4146_s1 + $0x80] sm:$0xff]   ;;  %2922 = vmatprep.subr.bf16.mxu1 %v3317_v23  ;;  %v3515_v27 = vld [vmem:[%s4146_s1 + $0x88] sm:$0xff]   ;;  %v3321_v28 = vld [vmem:[%s4146_s1 + $0x30] sm:$0xff]  }
  0x4f   : > { %3018 = vmatprep.subr.bf16.mxu0 %v3506_v24  ;;  %2923 = vmatpush3.bf16.msra.mxu1 %v3317_v23  ;;  %4161 = vst [vmem:[#allocation11_spill] sm:$0xff] %v3515_v27  ;;  %v3525_v29 = vld [vmem:[%s4146_s1 + $0x90] sm:$0xff]   ;;  %v3323_v30 = vld [vmem:[%s4146_s1 + $0x38] sm:$0xff]   ;;  %v3530_v31 = vshrl.u32 %v357_v26, 7  ;;  %v630_v33 = vld [vmem:[#allocation2 + $0x8] sm:$0xff] }
  0x50   : > { %3019 = vmatpush3.bf16.msra.mxu0 %v3506_v24  ;;  %2924 = vmatprep.subr.bf16.mxu1 %v3319_v25  ;;  %4162 = vst [vmem:[#allocation12_spill] sm:$0xff] %v3525_v29  ;;  %v3535_v32 = vld [vmem:[%s4146_s1 + $0x98] sm:$0xff]   ;;  %v631_v34 = vld [vmem:[#allocation2 + $0x10] sm:$0xff]  ;;  %v1210_v37 = vld [vmem:[#allocation2 + $0x20] sm:$0xff] }
  0x51   : > { %3020 = vmatprep.subr.bf16.mxu0 %v3515_v27  ;;  %4163 = vst [vmem:[#allocation13_spill] sm:$0xff] %v3535_v32  ;;  %v1209_v35 = vld [vmem:[#allocation2 + $0x18] sm:$0xff]  ;;  %v694_v36 = vpack.c.bf16 %v631_v34, %v630_v33  ;;  %v3325_v39 = vld [vmem:[%s4146_s1] sm:$0xff]   ;;  %v359_v40 = vadd.s32 8, %v3530_v31  ;;  %v1211_v41 = vld [vmem:[#allocation2 + $0x28] sm:$0xff]  ;;  %v361_v50 = vadd.s32 24, %v3530_v31 }
  0x52   : > { %v1435_v38 = vpack.c.bf16 %v1210_v37, %v1209_v35  ;;  %v1212_v42 = vld [vmem:[#allocation2 + $0x30] sm:$0xff]  ;;  %v3326_v43 = vld [vmem:[%s4146_s1 + $0xa0] sm:$0xff]   ;;  %v1213_v44 = vld [vmem:[#allocation2 + $0x38] sm:$0xff]  ;;  %v363_v54 = vadd.s32 40, %v3530_v31  ;;  %v365_v58 = vadd.s32 56, %v3530_v31  ;;  %v378_v0 = vand.u32 15, %v3530_v31 }
  0x53   : > { %2925 = vmatpush3.bf16.msra.mxu1 %v3319_v25  ;;  %2930 = vmatprep.mubr.msk.bf16.mxu1 %vm4151_vm2, %v694_v36  ;;  %v1214_v45 = vld [vmem:[#allocation2 + $0x40] sm:$0xff]  ;;  %v385_v46 = vand.u32 15, %v359_v40  ;;  %v3550_v47 = vpack.c.bf16 %v1212_v42, %v1211_v41  ;;  %v3327_v48 = vld [vmem:[%s4146_s1 + $0xa8] sm:$0xff]   ;;  %v1216_v56 = vld [vmem:[#allocation2 + $0x50] sm:$0xff]  ;;  %v399_v62 = vand.u32 15, %v361_v50  ;;  %v367_v1 = vadd.s32 72, %v3530_v31 }
  0x54   : > { %3021 = vmatpush3.bf16.msra.mxu0 %v3515_v27  ;;  %2926 = vmatprep.subr.bf16.mxu1 %v3321_v28  ;;  %v3556_v49 = vpack.c.bf16 %v1214_v45, %v1213_v44  ;;  %v3328_v51 = vld [vmem:[%s4146_s1 + $0x8] sm:$0xff]   ;;  %v3331_v57 = vld [vmem:[%s4146_s1 + $0x10] sm:$0xff]   ;;  %v3583_v60 = vld [vmem:[#allocation2 + $0x19] sm:$0xff]  ;;  %v413_v63 = vand.u32 15, %v363_v54  ;;  %v360_v3 = vadd.s32 16, %v3530_v31  ;;  %v369_v4 = vadd.s32 88, %v3530_v31 }
  0x55   : > { %3022 = vmatprep.subr.bf16.mxu0 %v3525_v29  ;;  %3026 = vmatprep.mubr.msk.bf16.mxu0 %vm4151_vm2, %v1435_v38  ;;  %vm3563_vm3 = vcmp.ne.s32.totalorder %v385_v46, 15  ;;  %v3567_v53 = vld [vmem:[#allocation2 + $0x21] sm:$0xff]  ;;  %v3329_v59 = vld [vmem:[%s4146_s1 + $0xb0] sm:$0xff]   ;;  %v3330_v5 = vld [vmem:[%s4146_s1 + $0xb8] sm:$0xff]   ;;  %v427_v7 = vand.u32 15, %v365_v58  ;;  %vm3598_vm4 = vcmp.ne.s32.totalorder %v399_v62, 15 }
  0x56   : > { %v1215_v55 = vld [vmem:[#allocation2 + $0x48] sm:$0xff]  ;;  %v1242_v61 = vsel %vm3563_vm3, %v3567_v53, 0.0  ;;  %v3602_v9 = vld [vmem:[#allocation2 + $0x31] sm:$0xff]  ;;  %vm3606_vm5 = vcmp.ne.s32.totalorder %v413_v63, 15  ;;  %vm3615_vm6 = vcmp.ne.s32.totalorder %v378_v0, 0  ;;  %v441_v15 = vand.u32 15, %v367_v1 }
  0x57   : > { %2927 = vmatpush3.bf16.msra.mxu1 %v3321_v28  ;;  %v3590_v2 = vpack.c.bf16 %v1216_v56, %v1215_v55  ;;  %v1612_v6 = vpack.c.bf16 %v1242_v61, %v3583_v60  ;;  %v640_v10 = vld [vmem:[#allocation2 + $0x58] sm:$0xff]  ;;  %v3610_v12 = vld [vmem:[#allocation2 + $0x41] sm:$0xff]  ;;  %v4171_v14 = vsel %vm3615_vm6, 4294967295, %v4170_v14  ;;  %v3623_v17 = vld [vmem:[#allocation2 + $0x29] sm:$0xff]  ;;  %v392_v19 = vand.u32 15, %v360_v3 }
  0x58   : > { %3023 = vmatpush3.bf16.msra.mxu0 %v3525_v29  ;;  %2928 = vmatprep.subr.bf16.mxu1 %v3323_v30  ;;  %v3333_v13 = vld [vmem:[%s4146_s1 + $0x18] sm:$0xff]   ;;  %v641_v16 = vld [vmem:[#allocation2 + $0x60] sm:$0xff]  ;;  %v642_v18 = vld [vmem:[#allocation2 + $0x68] sm:$0xff]  ;;  %v455_v20 = vand.u32 15, %v369_v4  ;;  %v1854_v21 = vsel %vm3563_vm3, %v3602_v9, 0.0  ;;  %v1244_v22 = vsel %vm3598_vm4, %v3602_v9, 0.0 }
  0x59   : > { %3024 = vmatprep.subr.bf16.mxu0 %v3535_v32  ;;  %v643_v23 = vld [vmem:[#allocation2 + $0x70] sm:$0xff]  ;;  %v3633_v25 = vpack.c.bf16 %v1854_v21, %v3623_v17  ;;  %v3332_v26 = vld [vmem:[%s4146_s1 + $0xc0] sm:$0xff]   ;;  %v362_v34 = vadd.s32 32, %v3530_v31  ;;  %v371_v35 = vadd.s32 104, %v3530_v31  ;;  %v3647_v36 = vpack.c.bf16 %v641_v16, %v640_v10  ;;  %v3334_v45 = vld [vmem:[%s4146_s1 + $0xc8] sm:$0xff]  }
  0x5a   : > { %v3638_v28 = vld [vmem:[#allocation2 + $0x39] sm:$0xff]  ;;  %v3643_v33 = vld [vmem:[#allocation2 + $0x51] sm:$0xff]  ;;  %v3656_v40 = vpack.c.bf16 %v643_v23, %v642_v18  ;;  %v1856_v41 = vsel %vm3598_vm4, %v3610_v12, 0.0  ;;  %vm3665_vm7 = vcmp.ne.s32.totalorder %v427_v7, 15  ;;  %vm3672_vm8 = vcmp.ne.s32.totalorder %v441_v15, 15  ;;  %v598_v50 = vld [vmem:[#allocation2 + $0x7] sm:$0xff] }
  0x5b   : > { %2929 = vmatpush3.bf16.msra.mxu1 %v3323_v30  ;;  %4172 = vst [vmem:[#allocation14_spill] sm:$0xff] %v3633_v25  ;;  %v1246_v30 = vsel %vm3606_vm5, %v3610_v12, 0.0  ;;  %v3652_v37 = vld [vmem:[%s4146_s1 + $0x40] sm:$0xff]   ;;  %v1858_v42 = vsel %vm3606_vm5, %v3643_v33, 0.0  ;;  %vm3676_vm9 = vcmp.ne.s32.totalorder %v392_v19, 0  ;;  %vm3680_vm10 = vcmp.ne.s32.totalorder %v455_v20, 15 }
  0x5c   : > { %3025 = vmatpush3.bf16.msra.mxu0 %v3535_v32  ;;  %2946 = vmatprep.subr.bf16.mxu1 %v3325_v39  ;;  %v644_v54 = vld [vmem:[#allocation2 + $0x78] sm:$0xff]  ;;  %v645_v55 = vld [vmem:[#allocation2 + $0x80] sm:$0xff]  ;;  %v469_v58 = vand.u32 15, %v371_v35  ;;  %v3692_v61 = vld [vmem:[#allocation2 + $0x49] sm:$0xff]  ;;  %v373_v62 = vadd.s32 120, %v3530_v31  ;;  %v1248_v63 = vsel %vm3665_vm7, %v3643_v33, 0.0  ;;  %v3702_v3 = vpack.c.bf16 %v1856_v41, %v3638_v28 }
  0x5d   : > { %3042 = vmatprep.subr.bf16.mxu0 %v3326_v43  ;;  %v3686_v56 = vld [vmem:[#allocation2 + $0x61] sm:$0xff]  ;;  %v599_v0 = vld [vmem:[#allocation2 + $0xf] sm:$0xff]  ;;  %v614_v1 = vsel %vm3615_vm6, %v598_v50, 0.0  ;;  %v3705_v4 = vpack.c.bf16 %v1858_v42, %v3692_v61  ;;  %v366_v10 = vadd.s32 64, %v3530_v31  ;;  %v1615_v15 = vpack.c.bf16 %v1248_v63, %v3692_v61  ;;  %v3728_v21 = vld [vmem:[#allocation2 + $0x17] sm:$0xff] }
  0x5e   : > { %2931 = vmatmul.mubr.msk.bf16.vlgmr.msra.gmra.mrb[0].mxu1 %vm4151_vm2, %v1435_v38  ;;  %v364_v38 = vadd.s32 48, %v3530_v31  ;;  %4181 = vst [vmem:[#allocation15_spill] sm:$0xff] %v3702_v3  ;;  %v3336_v7 = vld [vmem:[%s4146_s1 + $0xd0] sm:$0xff]   ;;  %v678_v16 = vpack.c.bf16 %v599_v0, %v614_v1  ;;  %v4183_v18 = vmov 0  ;;  %vm3723_vm12 = vcmp.ne.s32.totalorder %v469_v58, 15  ;;  %v3816_v3 = vld [vmem:[#allocation2 + $0x3f] sm:$0xff] }
  0x5f   : > { %3027 = vmatmul.mubr.msk.bf16.vlgmr.msra.gmra.mrb[0].mxu0 %vm4151_vm2, %v3550_v47  ;;  %2947 = vmatpush3.bf16.msra.mxu1 %v3325_v39  ;;  %v1613_v39 = vpack.c.bf16 %v1244_v22, %v3623_v17  ;;  %4182 = vst [vmem:[#allocation16_spill] sm:$0xff] %v3705_v4  ;;  %v3730_v22 = vld [vmem:[#allocation2 + $0x71] sm:$0xff]  ;;  %v434_v35 = vand.u32 15, %v366_v10  ;;  %v368_v41 = vadd.s32 80, %v3530_v31  ;;  %v370_v42 = vadd.s32 96, %v3530_v31  ;;  %v3810_v4 = vld [vmem:[#allocation2 + $0x47] sm:$0xff] }
  0x60   : > { %3043 = vmatpush3.bf16.msra.mxu0 %v3326_v43  ;;  %2934 = vmatprep.mubr.msk.bf16.mxu1 %vm4151_vm2, %v3550_v47  ;;  %v1614_v43 = vpack.c.bf16 %v1246_v30, %v3638_v28  ;;  %v3736_v30 = vld [vmem:[#allocation2 + $0x1f] sm:$0xff]  ;;  %v1252_v50 = vsel %vm3680_vm10, %v3730_v22, 0.0  ;;  %v1862_v63 = vsel %vm3672_vm8, %v3730_v22, 0.0  ;;  %v3782_v1 = vld [vmem:[#allocation2 + $0x37] sm:$0xff]  ;;  %v372_v32 = vadd.s32 112, %v3530_v31  ;;  %v3342_v29 = vld [vmem:[%s4146_s1 + $0xe8] sm:$0xff]  }
  0x61   : > { %3044 = vmatprep.subr.bf16.mxu0 %v3327_v48  ;;  %3030 = vmatprep.mubr.msk.bf16.mxu0 %vm4151_vm2, %v3556_v49  ;;  %vm3798_vm15 = vcmp.ne.s32.totalorder %v434_v35, 0  ;;  %v647_v27 = vld [vmem:[#allocation2 + $0x11] sm:$0xff]  ;;  %v3923_v52 = vld [vmem:[#allocation2 + $0x87] sm:$0xff] }
  0x62   : > { %2948 = vmatprep.subr.bf16.mxu1 %v3328_v51  ;;  %v3352_v19 = vld [vmem:[%s4146_s1 + $0x118] sm:$0xff]  }
  0x63   : > { %2949 = vmatpush3.bf16.msra.mxu1 %v3328_v51 }
  0x64   : > { %3045 = vmatpush3.bf16.msra.mxu0 %v3327_v48  ;;  %2950 = vmatprep.subr.bf16.mxu1 %v3331_v57  ;;  %v4177_v48 = vmov 0 }
  0x65   : > { %3046 = vmatprep.subr.bf16.mxu0 %v3329_v59  ;;  %v4178_v48 = vsel %vm3676_vm9, 4294967295, %v4177_v48 }
  0x66   : > { %2935 = vmatmul.mubr.msk.bf16.gmra.mrb[4].mxu1 %vm4151_vm2, %v3556_v49 }
  0x67   : > { %3031 = vmatmul.mubr.msk.bf16.gmra.mrb[4].mxu0 %vm4151_vm2, %v3590_v2  ;;  %2938 = vmatprep.mubr.msk.bf16.mxu1 %vm4151_vm2, %v3590_v2 }
  0x68   : > { %3047 = vmatpush3.bf16.msra.mxu0 %v3329_v59  ;;  %3050 = vmatprep.mubr.msk.bf16.mxu0 %vm4151_vm2, %v1612_v6  ;;  %v420_v59 = vand.u32 15, %v364_v38  ;;  %v1250_v6 = vsel %vm3672_vm8, %v3686_v56, 0.0  ;;  %v3743_v38 = vld [vmem:[#allocation2 + $0x27] sm:$0xff] }
  0x69   : > { %3048 = vmatprep.subr.bf16.mxu0 %v3330_v5  ;;  %2951 = vmatpush3.bf16.msra.mxu1 %v3331_v57  ;;  %v406_v57 = vand.u32 15, %v362_v34  ;;  %v3338_v34 = vld [vmem:[%s4146_s1 + $0xd8] sm:$0xff]  }
  0x6a   : > { %2952 = vmatprep.subr.bf16.mxu1 %v3333_v13  ;;  %vm3732_vm13 = vcmp.ne.s32.totalorder %v420_v59, 0  ;;  %v3773_v59 = vld [vmem:[%s4146_s1 + $0xe0] sm:$0xff]  }
  0x6b   : > { %vm3719_vm11 = vcmp.ne.s32.totalorder %v406_v57, 0  ;;  %v3765_v57 = vld [vmem:[#allocation2 + $0x79] sm:$0xff] }
  0x6c   : > { %3049 = vmatpush3.bf16.msra.mxu0 %v3330_v5  ;;  %v3707_v5 = vld [vmem:[#allocation2 + $0x59] sm:$0xff]  ;;  %v4184_v18 = vsel %vm3719_vm11, 4294967295, %v4183_v18 }
  0x6d   : > { %3066 = vmatprep.subr.bf16.mxu0 %v3332_v26  ;;  %2953 = vmatpush3.bf16.msra.mxu1 %v3333_v13  ;;  %v3716_v13 = vpack.c.bf16 %v645_v55, %v644_v54  ;;  %v1616_v20 = vpack.c.bf16 %v1250_v6, %v3707_v5  ;;  %v3760_v54 = vld [vmem:[#allocation2 + $0x2f] sm:$0xff]  ;;  %v618_v55 = vsel %vm3719_vm11, %v3743_v38, 0.0  ;;  %v4189_v6 = vmov 0 }
  0x6e   : > { %2939 = vmatmul.mubr.msk.bf16.gmra.mrb[8].mxu1 %vm4151_vm2, %v3647_v36  ;;  %2970 = vmatprep.subr.bf16.mxu1 %v3652_v37 }
  0x6f   : > { %3051 = vmatmul.mubr.msk.bf16.vlgmr.msra.gmra.mrb[0].mxu0 %vm4151_vm2, %v1613_v39  ;;  %2942 = vmatprep.mubr.msk.bf16.mxu1 %vm4151_vm2, %v3656_v40  ;;  %v3745_v39 = vld [vmem:[#allocation2 + $0x81] sm:$0xff] }
  0x70   : > { %3067 = vmatpush3.bf16.msra.mxu0 %v3332_v26  ;;  %3054 = vmatprep.mubr.msk.bf16.mxu0 %vm4151_vm2, %v1614_v43  ;;  %v483_v26 = vand.u32 15, %v373_v62  ;;  %v616_v43 = vsel %vm3676_vm9, %v3728_v21, 0.0  ;;  %v1254_v58 = vsel %vm3723_vm12, %v3745_v39, 0.0  ;;  %v1860_v62 = vsel %vm3665_vm7, %v3686_v56, 0.0 }
  0x71   : > { %3068 = vmatprep.subr.bf16.mxu0 %v3334_v45  ;;  %v679_v0 = vpack.c.bf16 %v3736_v30, %v616_v43 }
  0x72   : > { %vm3784_vm14 = vcmp.ne.s32.totalorder %v483_v26, 15  ;;  %v1864_v26 = vsel %vm3680_vm10, %v3745_v39, 0.0 }
  0x73   : > { %v4190_v6 = vsel %vm3784_vm14, 4294967295, %v4189_v6 }
  0x74   : > { %3069 = vmatpush3.bf16.msra.mxu0 %v3334_v45  ;;  %v3754_v45 = vld [vmem:[#allocation2 + $0x69] sm:$0xff] }
  0x75   : > { %3070 = vmatprep.subr.bf16.mxu0 %v3336_v7  ;;  %v3792_v10 = vpack.c.bf16 %v1862_v63, %v3754_v45  ;;  %v1618_v63 = vpack.c.bf16 %v1254_v58, %v3765_v57  ;;  %v3827_v58 = vld [vmem:[#allocation2 + $0x4f] sm:$0xff] }
  0x76   : > { %2943 = vmatmul.mubr.msk.bf16.gmra.mrb[12].mxu1 %vm4151_vm2, %v3716_v13 }
  0x77   : > { %3055 = vmatmul.mubr.msk.bf16.gmra.mrb[4].mxu0 %vm4151_vm2, %v1615_v15  ;;  %2954 = vmatprep.mubr.msk.bf16.mxu1 %vm4151_vm2, %v678_v16  ;;  %4192 = vst [vmem:[#allocation18_spill] sm:$0xff] %v3792_v10  ;;  %v1617_v15 = vpack.c.bf16 %v1252_v50, %v3754_v45  ;;  %v3337_v16 = vld [vmem:[%s4146_s1 + $0x48] sm:$0xff]   ;;  %v1240_v10 = vld [vmem:[#allocation2 + $0x91] sm:$0xff]  ;;  %v448_v50 = vand.u32 15, %v368_v41 }
  0x78   : > { %3058 = vmatprep.mubr.msk.bf16.mxu0 %vm4151_vm2, %v1616_v20  ;;  %3071 = vmatpush3.bf16.msra.mxu0 %v3336_v7  ;;  %v3789_v7 = vpack.c.bf16 %v1860_v62, %v3707_v5  ;;  %v1239_v20 = vld [vmem:[#allocation2 + $0x89] sm:$0xff]  ;;  %v680_v62 = vpack.c.bf16 %v3760_v54, %v618_v55  ;;  %v1866_v35 = vsel %vm3723_vm12, %v1240_v10, 0.0  ;;  %v620_v55 = vsel %vm3732_vm13, %v3782_v1, 0.0 }
  0x79   : > { %3072 = vmatprep.subr.bf16.mxu0 %v3338_v34  ;;  %v1256_v41 = vsel %vm3784_vm14, %v1240_v10, 0.0  ;;  %v462_v10 = vand.u32 15, %v370_v42  ;;  %vm3843_vm0 = vcmp.ne.s32.totalorder %v448_v50, 0  ;;  %v3854_v42 = vld [vmem:[#allocation2 + $0x67] sm:$0xff]  ;;  %v1807_v50 = vsel %vm3676_vm9, %v3782_v1, 0.0 }
  0x7a   : > { %4191 = vst [vmem:[#allocation17_spill] sm:$0xff] %v3789_v7  ;;  %v3808_v7 = vpack.c.bf16 %v1864_v26, %v3765_v57  ;;  %v3339_v26 = vld [vmem:[%s4146_s1 + $0x50] sm:$0xff]   ;;  %v1203_v23 = vsel %vm3843_vm0, %v3854_v42, 0.0 }
  0x7b   : > { %vm3850_vm1 = vcmp.ne.s32.totalorder %v462_v10, 0  ;;  %v3343_v10 = vld [vmem:[%s4146_s1 + $0x60] sm:$0xff]  }
  0x7c   : > { %3073 = vmatpush3.bf16.msra.mxu0 %v3338_v34  ;;  %4195 = vst [vmem:[#allocation19_spill] sm:$0xff] %v3808_v7  ;;  %v3821_v34 = vpack.c.bf16 %v1866_v35, %v1239_v20  ;;  %v1619_v35 = vpack.c.bf16 %v1256_v41, %v1239_v20  ;;  %v3847_v7 = vld [vmem:[#allocation2 + $0x57] sm:$0xff]  ;;  %v3862_v20 = vld [vmem:[#allocation2 + $0x5f] sm:$0xff]  ;;  %v626_v41 = vsel %vm3850_vm1, %v3854_v42, 0.0 }
  0x7d   : > { %3090 = vmatprep.subr.bf16.mxu0 %v3773_v59  ;;  %v624_v31 = vsel %vm3843_vm0, %v3847_v7, 0.0 }
  0x7e   : > { %2955 = vmatmul.mubr.msk.bf16.vlgmr.msra.gmra.mrb[0].mxu1 %vm4151_vm2, %v679_v0  ;;  %4196 = vst [vmem:[#allocation20_spill] sm:$0xff] %v3821_v34  ;;  %v622_v0 = vsel %vm3798_vm15, %v3810_v4, 0.0  ;;  %v4241_v34 = vld [vmem:[#allocation15_spill] sm:$0xff] }
  0x7f   : > { %3059 = vmatmul.mubr.msk.bf16.gmra.mrb[8].mxu0 %vm4151_vm2, %v1617_v15  ;;  %2971 = vmatpush3.bf16.msra.mxu1 %v3652_v37  ;;  %v1805_v37 = vsel %vm3615_vm6, %v3743_v38, 0.0  ;;  %v681_v15 = vpack.c.bf16 %v3816_v3, %v620_v55  ;;  %v3871_v55 = vld [vmem:[#allocation2 + $0x6f] sm:$0xff] }
  0x80   : > { %2958 = vmatprep.mubr.msk.bf16.mxu1 %vm4151_vm2, %v680_v62  ;;  %3062 = vmatprep.mubr.msk.bf16.mxu0 %vm4151_vm2, %v1618_v63  ;;  %v682_v62 = vpack.c.bf16 %v3827_v58, %v622_v0  ;;  %v1869_v63 = vpack.c.bf16 %v3760_v54, %v1805_v37  ;;  %v476_v0 = vand.u32 15, %v372_v32  ;;  %v1809_v37 = vsel %vm3719_vm11, %v3810_v4, 0.0  ;;  %v3890_v32 = vld [vmem:[#allocation2 + $0x77] sm:$0xff] }
  0x81   : > { %2972 = vmatprep.subr.bf16.mxu1 %v3337_v16  ;;  %vm4203_vm11 = vcmask 523264   ;;  %v1205_v43 = vsel %vm3850_vm1, %v3890_v32, 0.0 }
  0x82   : > { %vm4204_vm9 = vmmov %vm4203_vm11 }
  0x83   : > { %2973 = vmatpush3.bf16.msra.mxu1 %v3337_v16  ;;  %v3341_v16 = vld [vmem:[%s4146_s1 + $0x58] sm:$0xff]   ;;  %vm4205_vm6 = vmmov %vm4204_vm9 }
  0x84   : > { %2974 = vmatprep.subr.bf16.mxu1 %v3339_v26  ;;  %vm4206_vm14 = vmmov %vm4205_vm6 }
  0x86   : > { %2959 = vmatmul.mubr.msk.bf16.gmra.mrb[4].mxu1 %vm4151_vm2, %v681_v15  ;;  %v683_v15 = vpack.c.bf16 %v3862_v20, %v624_v31  ;;  %v3898_v31 = vld [vmem:[#allocation2 + $0x7f] sm:$0xff] }
  0x87   : > { %3063 = vmatmul.mubr.msk.bf16.gmra.mrb[12].mxu0 %vm4151_vm2, %v1619_v35  ;;  %2962 = vmatprep.mubr.msk.bf16.mxu1 %vm4151_vm2, %v682_v62  ;;  %v684_v35 = vpack.c.bf16 %v3871_v55, %v626_v41  ;;  %v1871_v62 = vpack.c.bf16 %v3827_v58, %v1809_v37  ;;  %v646_v41 = vld [vmem:[#allocation2 + $0x9] sm:$0xff]  ;;  %v1813_v37 = vsel %vm3798_vm15, %v3854_v42, 0.0  ;;  %v4244_v42 = vld [vmem:[#allocation16_spill] sm:$0xff] }
  0x88   : > { %3074 = vmatprep.mubr.msk.bf16.mxu0 %vm4151_vm2, %v1869_v63  ;;  %2975 = vmatpush3.bf16.msra.mxu1 %v3339_v26  ;;  %v1870_v26 = vpack.c.bf16 %v3816_v3, %v1807_v50  ;;  %vm3886_vm2 = vcmp.ne.s32.totalorder %v476_v0, 0  ;;  %v663_v0 = vsel %vm3563_vm3, %v647_v27, 0.0  ;;  %v3346_v27 = vld [vmem:[%s4146_s1 + $0xf8] sm:$0xff]   ;;  %vm4207_vm3 = vmmov %vm4205_vm6  ;;  %v4253_v63 = vld [vmem:[#allocation19_spill] sm:$0xff] }
  0x89   : > { %2976 = vmatprep.subr.bf16.mxu1 %v3341_v16  ;;  %v628_v50 = vsel %vm3886_vm2, %v3890_v32, 0.0  ;;  %v1207_v25 = vsel %vm3886_vm2, %v3923_v52, 0.0 }
  0x8c   : > { %2977 = vmatpush3.bf16.msra.mxu1 %v3341_v16  ;;  %v1811_v16 = vsel %vm3732_vm13, %v3847_v7, 0.0 }
  0x8d   : > { %2994 = vmatprep.subr.bf16.mxu1 %v3343_v10 }
  0x8e   : > { %2963 = vmatmul.mubr.msk.bf16.gmra.mrb[8].mxu1 %vm4203_vm11, %v683_v15  ;;  %v3344_v15 = vld [vmem:[%s4146_s1 + $0xf0] sm:$0xff]   ;;  %vm4210_vm11 = vmmov %vm4207_vm3 }
  0x8f   : > { %3075 = vmatmul.mubr.msk.bf16.vlgmr.msra.gmra.mrb[0].mxu0 %vm4204_vm9, %v1870_v26  ;;  %2966 = vmatprep.mubr.msk.bf16.mxu1 %vm4205_vm6, %v684_v35  ;;  %v1872_v26 = vpack.c.bf16 %v3862_v20, %v1811_v16  ;;  %v1000_v35 = vpack.c.bf16 %v663_v0, %v646_v41  ;;  %vm4208_vm6 = vmmov %vm4207_vm3  ;;  %v667_v16 = vsel %vm3606_vm5, %v3602_v9, 0.0  ;;  %v3937_v41 = vld [vmem:[#allocation2 + $0x8f] sm:$0xff]  ;;  %v1817_v0 = vsel %vm3850_vm1, %v3923_v52, 0.0  ;;  %v4256_v52 = vld [vmem:[#allocation20_spill] sm:$0xff] }
  0x90   : > { %3091 = vmatpush3.bf16.msra.mxu0 %v3773_v59  ;;  %3078 = vmatprep.mubr.msk.bf16.mxu0 %vm4206_vm14, %v1871_v62  ;;  %v685_v59 = vpack.c.bf16 %v3898_v31, %v628_v50  ;;  %v1873_v62 = vpack.c.bf16 %v3871_v55, %v1813_v37  ;;  %vm4209_vm9 = vmmov %vm4207_vm3  ;;  %v665_v50 = vsel %vm3598_vm4, %v3567_v53, 0.0  ;;  %v3348_v53 = vld [vmem:[%s4146_s1 + $0x100] sm:$0xff]   ;;  %v1875_v11 = vpack.c.bf16 %v3937_v41, %v1817_v0  ;;  %v3345_v9 = vld [vmem:[%s4146_s1 + $0x68] sm:$0xff]  }
  0x91   : > { %3092 = vmatprep.subr.bf16.mxu0 %v3342_v29  ;;  %v1001_v8 = vpack.c.bf16 %v665_v50, %v3583_v60  ;;  %vm4211_vm4 = vmmov %vm4207_vm3  ;;  %v669_v60 = vsel %vm3665_vm7, %v3610_v12, 0.0  ;;  %v3350_v50 = vld [vmem:[%s4146_s1 + $0x108] sm:$0xff]  }
  0x92   : > { %vm4212_vm5 = vmmov %vm4207_vm3  ;;  %v1003_v44 = vpack.c.bf16 %v669_v60, %v3638_v28  ;;  %v675_v28 = vsel %vm3723_vm12, %v3730_v22, 0.0  ;;  %vm4221_vm12 = vnez %v4190_v6  ;;  %v1834_v22 = vld [vmem:[#allocation2 + $0x90] sm:$0xff]  ;;  %v4088_v60 = vld [vmem:[%s4147_s2] ss:$0 sm:$0xff] }
  0x93   : > { %vm4213_vm14 = vmmov %vm4207_vm3 }
  0x94   : > { %3093 = vmatpush3.bf16.msra.mxu0 %v3342_v29  ;;  %v1815_v29 = vsel %vm3843_vm0, %v3890_v32, 0.0  ;;  %vm4214_vm7 = vmmov %vm4207_vm3  ;;  %v4247_v32 = vld [vmem:[#allocation17_spill] sm:$0xff] }
  0x95   : > { %3094 = vmatprep.subr.bf16.mxu0 %v3344_v15  ;;  %v1874_v37 = vpack.c.bf16 %v3898_v31, %v1815_v29  ;;  %v1263_v29 = vpack.c.bf16 %v3898_v31, %v1205_v43  ;;  %vm4242_vm0 = vmmov %vm4207_vm3  ;;  %v4250_v31 = vld [vmem:[#allocation18_spill] sm:$0xff] }
  0x96   : > { %2967 = vmatmul.mubr.msk.bf16.gmra.mrb[12].mxu1 %vm4207_vm3, %v685_v59  ;;  %v1803_v59 = vld [vmem:[#allocation2 + $0x97] sm:$0xff]  ;;  %vm4245_vm1 = vmmov %vm4242_vm0 }
  0x97   : > { %3079 = vmatmul.mubr.msk.bf16.gmra.mrb[4].mxu0 %vm4208_vm6, %v1872_v26  ;;  %2978 = vmatprep.mubr.msk.bf16.mxu1 %vm4209_vm9, %v1000_v35  ;;  %v1819_v26 = vsel %vm3886_vm2, %v1803_v59, 0.0  ;;  %v671_v35 = vsel %vm3672_vm8, %v3643_v33, 0.0  ;;  %vm4215_vm6 = vmmov %vm4207_vm3  ;;  %v673_v33 = vsel %vm3680_vm10, %v3686_v56, 0.0  ;;  %v3351_v56 = vld [vmem:[%s4146_s1 + $0x110] sm:$0xff]  }
  0x98   : > { %3082 = vmatprep.mubr.msk.bf16.mxu0 %vm4210_vm11, %v1873_v62  ;;  %3095 = vmatpush3.bf16.msra.mxu0 %v3344_v15  ;;  %v1002_v15 = vpack.c.bf16 %v667_v16, %v3623_v17  ;;  %v1804_v17 = vld [vmem:[#allocation2 + $0x9f] sm:$0xff]  ;;  %v1004_v62 = vpack.c.bf16 %v671_v35, %v3692_v61  ;;  %vm4216_vm8 = vmmov %vm4207_vm3  ;;  %v1005_v46 = vpack.c.bf16 %v673_v33, %v3707_v5 }
  0x99   : > { %3096 = vmatprep.subr.bf16.mxu0 %v3346_v27  ;;  %v1876_v12 = vpack.c.bf16 %v1804_v17, %v1819_v26  ;;  %vm4217_vm9 = vmmov %vm4207_vm3  ;;  %v1006_v61 = vpack.c.bf16 %v675_v28, %v3754_v45  ;;  %v1852_v16 = vld [vmem:[#allocation2 + $0xa1] sm:$0xff] }
  0x9a   : > { %vm4218_vm10 = vmmov %vm4207_vm3 }
  0x9b   : > { %vm4219_vm11 = vmmov %vm4207_vm3 }
  0x9c   : > { %3097 = vmatpush3.bf16.msra.mxu0 %v3346_v27  ;;  %v3349_v27 = vld [vmem:[%s4146_s1 + $0x78] sm:$0xff]   ;;  %vm4254_vm2 = vmmov %vm4242_vm0 }
  0x9d   : > { %3114 = vmatprep.subr.bf16.mxu0 %v3348_v53 }
  0x9e   : > { %2979 = vmatmul.mubr.msk.bf16.vlgmr.msra.gmra.mrb[0].mxu1 %vm4211_vm4, %v1001_v8  ;;  %vm4220_vm4 = vmmov %vm4207_vm3 }
  0x9f   : > { %3083 = vmatmul.mubr.msk.bf16.gmra.mrb[8].mxu0 %vm4212_vm5, %v1874_v37  ;;  %2995 = vmatpush3.bf16.msra.mxu1 %v3343_v10  ;;  %v3347_v10 = vld [vmem:[%s4146_s1 + $0x70] sm:$0xff]   ;;  %vm4222_vm5 = vmmov %vm4207_vm3 }
  0xa0   : > { %2982 = vmatprep.mubr.msk.bf16.mxu1 %vm4213_vm14, %v1002_v15  ;;  %3086 = vmatprep.mubr.msk.bf16.mxu0 %vm4207_vm3, %v1875_v11  ;;  %vm4223_vm14 = vnez %v4171_v14 }
  0xa1   : > { %2996 = vmatprep.subr.bf16.mxu1 %v3345_v9  ;;  %v1193_v51 = vsel %vm4223_vm14, %v3728_v21, 0.0  ;;  %v1833_v21 = vld [vmem:[#allocation2 + $0x88] sm:$0xff]  ;;  %vm4232_vm14 = vmmov %vm4207_vm3 }
  0xa2   : > { %v1257_v5 = vpack.c.bf16 %v3736_v30, %v1193_v51  ;;  %v2053_v45 = vpack.c.bf16 %v1834_v22, %v1833_v21 }
  0xa3   : > { %2997 = vmatpush3.bf16.msra.mxu1 %v3345_v9 }
  0xa4   : > { %2998 = vmatprep.subr.bf16.mxu1 %v3347_v10 }
  0xa6   : > { %2983 = vmatmul.mubr.msk.bf16.gmra.mrb[4].mxu1 %vm4214_vm7, %v1003_v44  ;;  %vm4224_vm7 = vmmov %vm4207_vm3 }
  0xa7   : > { %3087 = vmatmul.mubr.msk.bf16.gmra.mrb[12].mxu0 %vm4215_vm6, %v1876_v12  ;;  %2986 = vmatprep.mubr.msk.bf16.mxu1 %vm4216_vm8, %v1004_v62  ;;  %vm4225_vm6 = vmmov %vm4207_vm3  ;;  %vm4226_vm8 = vnez %v4178_v48  ;;  %v1199_v48 = vsel %vm3732_vm13, %v3810_v4, 0.0  ;;  %v4234_v4 = vld [vmem:[#allocation12_spill] sm:$0xff] }
  0xa8   : > { %3098 = vmatprep.mubr.msk.bf16.mxu0 %vm4217_vm9, %v3550_v47  ;;  %2999 = vmatpush3.bf16.msra.mxu1 %v3347_v10  ;;  %v677_v47 = vsel %vm4221_vm12, %v3745_v39, 0.0  ;;  %vm4227_vm9 = vmmov %vm4207_vm3 }
  0xa9   : > { %3000 = vmatprep.subr.bf16.mxu1 %v3349_v27  ;;  %vm4235_vm13 = vmmov %vm4207_vm3 }
  0xac   : > { %3001 = vmatpush3.bf16.msra.mxu1 %v3349_v27 }
  0xad   : > { %3138 = vmatprep.subr.bf16.mxu1 %v3506_v24 }
  0xae   : > { %2987 = vmatmul.mubr.msk.bf16.gmra.mrb[8].mxu1 %vm4218_vm10, %v1005_v46  ;;  %vm4228_vm10 = vnez %v4184_v18  ;;  %v1835_v18 = vld [vmem:[#allocation2 + $0x98] sm:$0xff] }
  0xaf   : > { %3099 = vmatmul.mubr.msk.bf16.vlgmr.msra.gmra.mrb[0].mxu0 %vm4219_vm11, %v3556_v49  ;;  %2990 = vmatprep.mubr.msk.bf16.mxu1 %vm4220_vm4, %v1006_v61  ;;  %v1007_v49 = vpack.c.bf16 %v677_v47, %v3765_v57  ;;  %v1197_v14 = vsel %vm4228_vm10, %v3782_v1, 0.0  ;;  %vm4229_vm11 = vmmov %vm4207_vm3  ;;  %v1260_v57 = vpack.c.bf16 %v3827_v58, %v1199_v48  ;;  %v4239_v58 = vld [vmem:[#allocation13_spill] sm:$0xff] }
  0xb0   : > { %3115 = vmatpush3.bf16.msra.mxu0 %v3348_v53  ;;  %3102 = vmatprep.mubr.msk.bf16.mxu0 %vm4222_vm5, %v3590_v2  ;;  %v1195_v2 = vsel %vm4226_vm8, %v3743_v38, 0.0  ;;  %v1259_v39 = vpack.c.bf16 %v3816_v3, %v1197_v14  ;;  %vm4230_vm4 = vmmov %vm4207_vm3  ;;  %v1836_v38 = vld [vmem:[#allocation2 + $0xa0] sm:$0xff]  ;;  %v1201_v3 = vsel %vm3798_vm15, %v3847_v7, 0.0  ;;  %v4237_v7 = vld [vmem:[#allocation14_spill] sm:$0xff] }
  0xb1   : > { %3116 = vmatprep.subr.bf16.mxu0 %v3350_v50  ;;  %v1258_v30 = vpack.c.bf16 %v3760_v54, %v1195_v2  ;;  %vm4231_vm5 = vmmov %vm4207_vm3  ;;  %v4233_v54 = vld [vmem:[#allocation11_spill] sm:$0xff]  ;;  %v2054_v1 = vpack.c.bf16 %v1836_v38, %v1835_v18 }
  0xb2   : > { %vm4238_vm15 = vmmov %vm4207_vm3 }
  0xb3   : > { %vm4243_vm8 = vmmov %vm4242_vm0 }
  0xb4   : > { %3117 = vmatpush3.bf16.msra.mxu0 %v3350_v50  ;;  %vm4248_vm10 = vmmov %vm4242_vm0 }
  0xb5   : > { %3118 = vmatprep.subr.bf16.mxu0 %v3351_v56 }
  0xb6   : > { %2991 = vmatmul.mubr.msk.bf16.gmra.mrb[12].mxu1 %vm4207_vm3, %v1007_v49 }
  0xb7   : > { %3103 = vmatmul.mubr.msk.bf16.gmra.mrb[4].mxu0 %vm4224_vm7, %v3647_v36  ;;  %3002 = vmatprep.mubr.msk.bf16.mxu1 %vm4225_vm6, %v1257_v5  ;;  %vm4236_vm7 = vmmov %vm4207_vm3 }
  0xb8   : > { %3106 = vmatprep.mubr.msk.bf16.mxu0 %vm4227_vm9, %v3656_v40  ;;  %3119 = vmatpush3.bf16.msra.mxu0 %v3351_v56  ;;  %vm4240_vm6 = vmmov %vm4207_vm3 }
  0xb9   : > { %3120 = vmatprep.subr.bf16.mxu0 %v3352_v19  ;;  %vm4246_vm9 = vmmov %vm4242_vm0 }
  0xbc   : > { %3121 = vmatpush3.bf16.msra.mxu0 %v3352_v19 }
  0xbe   : > { %3003 = vmatmul.mubr.msk.bf16.vlgmr.msra.gmra.mrb[0].mxu1 %vm4229_vm11, %v1258_v30  ;;  %vm4249_vm11 = vmmov %vm4242_vm0 }
  0xbf   : > { %3107 = vmatmul.mubr.msk.bf16.gmra.mrb[8].mxu0 %vm4230_vm4, %v3716_v13  ;;  %3142 = vmatpush3.bf16.msra.mxu1 %v3506_v24  ;;  %v1261_v24 = vpack.c.bf16 %v3862_v20, %v1201_v3  ;;  %v1262_v20 = vpack.c.bf16 %v3871_v55, %v1203_v23  ;;  %v1264_v55 = vpack.c.bf16 %v3937_v41, %v1207_v25  ;;  %vm4251_vm4 = vmmov %vm4242_vm0  ;;  %v1851_v41 = vld [vmem:[#allocation2 + $0x99] sm:$0xff] }
  0xc0   : > { %3006 = vmatprep.mubr.msk.bf16.mxu1 %vm4231_vm5, %v1259_v39  ;;  %3110 = vmatprep.mubr.msk.bf16.mxu0 %vm4232_vm14, %v2053_v45  ;;  %vm4252_vm5 = vmmov %vm4242_vm0 }
  0xc1   : > { %3139 = vmatprep.subr.bf16.mxu1 %v4233_v54  ;;  %vm4255_vm14 = vmmov %vm4242_vm0 }
  0xc3   : > { %3143 = vmatpush3.bf16.msra.mxu1 %v4233_v54 }
  0xc4   : > { %3140 = vmatprep.subr.bf16.mxu1 %v4234_v4 }
  0xc6   : > { %3007 = vmatmul.mubr.msk.bf16.gmra.mrb[4].mxu1 %vm4235_vm13, %v1260_v57  ;;  %vm4257_vm13 = vmmov %vm4242_vm0 }
  0xc7   : > { %3111 = vmatmul.mubr.msk.bf16.gmra.mrb[12].mxu0 %vm4207_vm3, %v2054_v1  ;;  %3010 = vmatprep.mubr.msk.bf16.mxu1 %vm4236_vm7, %v1261_v24  ;;  %vm4258_vm3 = vmmov %vm4242_vm0 }
  0xc8   : > { %3122 = vmatprep.mubr.msk.bf16.mxu0 %vm4238_vm15, %v4237_v7  ;;  %3144 = vmatpush3.bf16.msra.mxu1 %v4234_v4  ;;  %vm4259_vm7 = vmmov %vm4242_vm0 }
  0xc9   : > { %3141 = vmatprep.subr.bf16.mxu1 %v4239_v58  ;;  %vm4261_vm15 = vmmov %vm4242_vm0 }
  0xcc   : > { %3145 = vmatpush3.bf16.msra.mxu1 %v4239_v58 }
  0xce   : > { %3011 = vmatmul.mubr.msk.bf16.gmra.mrb[8].mxu1 %vm4240_vm6, %v1262_v20  ;;  %vm4262_vm6 = vmmov %vm4242_vm0 }
  0xcf   : > { %3123 = vmatmul.mubr.msk.bf16.vlgmr.msra.gmra.mrb[0].mxu0 %vm4242_vm0, %v4241_v34  ;;  %3014 = vmatprep.mubr.msk.bf16.mxu1 %vm4243_vm8, %v1263_v29  ;;  %vm4263_vm8 = vmmov %vm4242_vm0 }
  0xd0   : > { %3126 = vmatprep.mubr.msk.bf16.mxu0 %vm4245_vm1, %v4244_v42  ;;  %vm4264_vm1 = vmmov %vm4242_vm0 }
  0xd6   : > { %3015 = vmatmul.mubr.msk.bf16.gmra.mrb[12].mxu1 %vm4246_vm9, %v1264_v55  ;;  %vm4265_vm9 = vmmov %vm4242_vm0 }
  0xd7   : > { %3127 = vmatmul.mubr.msk.bf16.gmra.mrb[4].mxu0 %vm4248_vm10, %v4247_v32  ;;  %3034 = vmatprep.mubr.msk.bf16.mxu1 %vm4249_vm11, %v3647_v36  ;;  %v1868_v36 = vsel %vm4221_vm12, %v1852_v16, 0.0  ;;  %vm4260_vm12 = vmmov %vm4242_vm0 }
  0xd8   : > { %3130 = vmatprep.mubr.msk.bf16.mxu0 %vm4251_vm4, %v4250_v31  ;;  %v2231_v0 = vpack.c.bf16 %v1868_v36, %v1851_v41  ;;  %vm4266_vm10 = vmmov %vm4242_vm0 }
  0xd9   : > { %vm4267_vm11 = vmmov %vm4242_vm0 }
  0xda   : > { %vm4268_vm4 = vmmov %vm4242_vm0 }
  0xde   : > { %3035 = vmatmul.mubr.msk.bf16.vlgmr.msra.gmra.mrb[8].mxu1 %vm4252_vm5, %v3656_v40  ;;  %vm4269_vm5 = vmmov %vm4242_vm0 }
  0xdf   : > { %3131 = vmatmul.mubr.msk.bf16.gmra.mrb[8].mxu0 %vm4254_vm2, %v4253_v63  ;;  %3038 = vmatprep.mubr.msk.bf16.mxu1 %vm4255_vm14, %v3716_v13  ;;  %vm4270_vm2 = vmmov %vm4242_vm0 }
  0xe0   : > { %3134 = vmatprep.mubr.msk.bf16.mxu0 %vm4257_vm13, %v4256_v52  ;;  %vm4271_vm14 = vmmov %vm4242_vm0 }
  0xe1   : > { %vm4272_vm13 = vmmov %vm4242_vm0 }
  0xe6   : > { %3039 = vmatmul.mubr.msk.bf16.gmra.mrb[12].mxu1 %vm4258_vm3, %v2053_v45  ;;  %vm4273_vm3 = vmmov %vm4242_vm0 }
  0xe7   : > { %3135 = vmatmul.mubr.msk.bf16.gmra.mrb[12].mxu0 %vm4259_vm7, %v2231_v0  ;;  %vm4274_vm7 = vmmov %vm4242_vm0 }
 0x191   : > { %v3004_v53 = vpop.f32.mrb[0].mxu1 }
 0x192   : > { %v1356_v40 = vpop.f32.mrb[1].mxu1 }
 0x193   : > { %v3005_v8 = vpop.f32.mrb[2].mxu1 }
 0x194   : > { %v1359_v37 = vpop.f32.mrb[3].mxu1 }
 0x199   : > { %v3008_v15 = vpop.f32.mrb[4].mxu1 }
 0x19a   : > { %v1372_v11 = vpop.f32.mrb[5].mxu1 }
 0x19b   : > { %v3009_v9 = vpop.f32.mrb[6].mxu1 }
 0x19c   : > { %v1375_v13 = vpop.f32.mrb[7].mxu1 }
 0x1a2   : > { %v3124_v59 = vpop.f32.mrb[0].mxu0 }
 0x1a3   : > { %v3146_v6 = vadd.f32 %v3124_v59, %v3004_v53  ;;  %v2322_v17 = vpop.f32.mrb[1].mxu0 }
 0x1a4   : > { %v3147_v26 = vadd.f32 %v2322_v17, %v1356_v40  ;;  %v3125_v35 = vpop.f32.mrb[2].mxu0 }
 0x1a5   : > { %v2410_v10 = vadd.f32 %v3146_v6, %v4088_v60  ;;  %v3148_v44 = vadd.f32 %v3125_v35, %v3005_v8  ;;  %v2325_v12 = vpop.f32.mrb[3].mxu0 }
 0x1a6   : > { %v2408_v62 = vadd.f32 %v3147_v26, %v4088_v60  ;;  %v3149_v27 = vadd.f32 %v2325_v12, %v1359_v37 }
 0x1a7   : > { %v2426_v33 = vmax.f32 %v2410_v10, 0.0  ;;  %v2411_v28 = vadd.f32 %v3148_v44, %v4088_v60 }
 0x1a8   : > { %v2424_v46 = vmax.f32 %v2408_v62, 0.0  ;;  %v2409_v61 = vadd.f32 %v3149_v27, %v4088_v60 }
 0x1a9   : > { %2442 = vst.msk [vmem:[#allocation3 + $0x10] sm:$0xff] %vm4260_vm12, %v2426_v33  ;;  %v2427_v50 = vmax.f32 %v2411_v28, 0.0  ;;  %vm4275_vm12 = vmmov %vm4242_vm0 }
 0x1aa   : > { %2440 = vst.msk [vmem:[#allocation3] sm:$0xff] %vm4261_vm15, %v2424_v46  ;;  %v2425_v47 = vmax.f32 %v2409_v61, 0.0  ;;  %v3128_v51 = vpop.f32.mrb[4].mxu0  ;;  %vm4276_vm15 = vmmov %vm4242_vm0 }
 0x1ab   : > { %2443 = vst.msk [vmem:[#allocation3 + $0x18] sm:$0xff] %vm4262_vm6, %v2427_v50  ;;  %v3150_v56 = vadd.f32 %v3128_v51, %v3008_v15  ;;  %v2338_v49 = vpop.f32.mrb[5].mxu0  ;;  %vm4277_vm6 = vmmov %vm4242_vm0 }
 0x1ac   : > { %2441 = vst.msk [vmem:[#allocation3 + $0x8] sm:$0xff] %vm4242_vm0, %v2425_v47  ;;  %v3151_v5 = vadd.f32 %v2338_v49, %v1372_v11  ;;  %v3129_v19 = vpop.f32.mrb[6].mxu0 }
 0x1ad   : > { %v2414_v2 = vadd.f32 %v3150_v56, %v4088_v60  ;;  %v3152_v14 = vadd.f32 %v3129_v19, %v3009_v9  ;;  %v2341_v21 = vpop.f32.mrb[7].mxu0 }
 0x1ae   : > { %v2412_v22 = vadd.f32 %v3151_v5, %v4088_v60  ;;  %v3153_v30 = vadd.f32 %v2341_v21, %v1375_v13 }
 0x1af   : > { %v2430_v39 = vmax.f32 %v2414_v2, 0.0  ;;  %v2415_v45 = vadd.f32 %v3152_v14, %v4088_v60 }
 0x1b0   : > { %v2428_v48 = vmax.f32 %v2412_v22, 0.0  ;;  %v2413_v18 = vadd.f32 %v3153_v30, %v4088_v60 }
 0x1b1   : > { %2446 = vst.msk [vmem:[#allocation3 + $0x30] sm:$0xff] %vm4263_vm8, %v2430_v39  ;;  %v2431_v38 = vmax.f32 %v2415_v45, 0.0  ;;  %v3036_v3 = vpop.f32.mrb[8].mxu1 }
 0x1b2   : > { %v2472_v54 = vld [vmem:[#allocation3 + $0x10] ss:$2 sm:$0xff]  ;;  %v2480_v57 = vld [vmem:[#allocation3 + $0x11] ss:$2 sm:$0xff]  ;;  %2444 = vst.msk [vmem:[#allocation3 + $0x20] sm:$0xff] %vm4264_vm1, %v2428_v48  ;;  %v2429_v1 = vmax.f32 %v2413_v18, 0.0 }
 0x1b3   : > { %v3132_v24 = vpop.f32.mrb[8].mxu0  ;;  %v2491_v4 = vmax.f32 %v2472_v54, %v2480_v57  ;;  %v2456_v23 = vld [vmem:[#allocation3] ss:$2 sm:$0xff]  ;;  %v2464_v7 = vld [vmem:[#allocation3 + $0x1] ss:$2 sm:$0xff]  ;;  %2447 = vst.msk [vmem:[#allocation3 + $0x38] sm:$0xff] %vm4265_vm9, %v2431_v38 }
 0x1b4   : > { %v3154_v43 = vadd.f32 %v3132_v24, %v3036_v3  ;;  %v1565_v58 = vpop.f32.mrb[9].mxu1  ;;  %v2354_v20 = vpop.f32.mrb[9].mxu0  ;;  %v2487_v29 = vmax.f32 %v2456_v23, %v2464_v7  ;;  %2445 = vst.msk [vmem:[#allocation3 + $0x28] sm:$0xff] %vm4266_vm10, %v2429_v1 }
 0x1b5   : > { %v3155_v34 = vadd.f32 %v2354_v20, %v1565_v58  ;;  %v3037_v25 = vpop.f32.mrb[10].mxu1  ;;  %v3133_v42 = vpop.f32.mrb[10].mxu0 }
 0x1b6   : > { %v2418_v55 = vadd.f32 %v3154_v43, %v4088_v60  ;;  %v3156_v32 = vadd.f32 %v3133_v42, %v3037_v25  ;;  %v1568_v31 = vpop.f32.mrb[11].mxu1  ;;  %v2357_v16 = vpop.f32.mrb[11].mxu0  ;;  %v2495_v63 = vmax.f32 %v2487_v29, %v2491_v4 }
 0x1b7   : > { %v2416_v52 = vadd.f32 %v3155_v34, %v4088_v60  ;;  %v3157_v41 = vadd.f32 %v2357_v16, %v1568_v31 }
 0x1b8   : > { %v2434_v36 = vmax.f32 %v2418_v55, 0.0  ;;  %v2419_v0 = vadd.f32 %v3156_v32, %v4088_v60  ;;  %2499 = vst.msk [vmem:[%s3462_s29] sm:$0xff] %vm4267_vm11, %v2495_v63 }
 0x1b9   : > { %v2432_v53 = vmax.f32 %v2416_v52, 0.0  ;;  %v2417_v40 = vadd.f32 %v3157_v41, %v4088_v60  ;;  %v3040_v37 = vpop.f32.mrb[12].mxu1 }
 0x1ba   : > { %2450 = vst.msk [vmem:[#allocation3 + $0x50] sm:$0xff] %vm4268_vm4, %v2434_v36  ;;  %v2435_v8 = vmax.f32 %v2419_v0, 0.0  ;;  %v2474_v15 = vld [vmem:[#allocation3 + $0x30] ss:$2 sm:$0xff]  ;;  %v2482_v11 = vld [vmem:[#allocation3 + $0x31] ss:$2 sm:$0xff] }
 0x1bb   : > { %2448 = vst.msk [vmem:[#allocation3 + $0x40] sm:$0xff] %vm4269_vm5, %v2432_v53  ;;  %v2433_v9 = vmax.f32 %v2417_v40, 0.0  ;;  %v3136_v13 = vpop.f32.mrb[12].mxu0  ;;  %v2492_v59 = vmax.f32 %v2474_v15, %v2482_v11  ;;  %v2458_v6 = vld [vmem:[#allocation3 + $0x20] ss:$2 sm:$0xff]  ;;  %v1581_v35 = vpop.f32.mrb[13].mxu1 }
 0x1bc   : > { %v2466_v17 = vld [vmem:[#allocation3 + $0x21] ss:$2 sm:$0xff]  ;;  %2451 = vst.msk [vmem:[#allocation3 + $0x58] sm:$0xff] %vm4270_vm2, %v2435_v8  ;;  %v3158_v26 = vadd.f32 %v3136_v13, %v3040_v37  ;;  %v2370_v10 = vpop.f32.mrb[13].mxu0  ;;  %v3041_v62 = vpop.f32.mrb[14].mxu1 }
 0x1bd   : > { %v2488_v44 = vmax.f32 %v2458_v6, %v2466_v17  ;;  %2449 = vst.msk [vmem:[#allocation3 + $0x48] sm:$0xff] %vm4271_vm14, %v2433_v9  ;;  %v3159_v12 = vadd.f32 %v2370_v10, %v1581_v35  ;;  %v3137_v27 = vpop.f32.mrb[14].mxu0  ;;  %v1584_v46 = vpop.f32.mrb[15].mxu1 }
 0x1be   : > { %v2422_v33 = vadd.f32 %v3158_v26, %v4088_v60  ;;  %v3160_v28 = vadd.f32 %v3137_v27, %v3041_v62  ;;  %v2373_v61 = vpop.f32.mrb[15].mxu0 }
 0x1bf   : > { %v2496_v50 = vmax.f32 %v2488_v44, %v2492_v59  ;;  %v2420_v47 = vadd.f32 %v3159_v12, %v4088_v60  ;;  %v3161_v51 = vadd.f32 %v2373_v61, %v1584_v46 }
 0x1c0   : > { %v2438_v56 = vmax.f32 %v2422_v33, 0.0  ;;  %v2423_v49 = vadd.f32 %v3160_v28, %v4088_v60 }
 0x1c1   : > { %2500 = vst.msk [vmem:[%s3462_s29 + $0x8] sm:$0xff] %vm4272_vm13, %v2496_v50  ;;  %v2436_v5 = vmax.f32 %v2420_v47, 0.0  ;;  %v2421_v19 = vadd.f32 %v3161_v51, %v4088_v60 }
 0x1c2   : > { %2454 = vst.msk [vmem:[#allocation3 + $0x70] sm:$0xff] %vm4273_vm3, %v2438_v56  ;;  %v2439_v2 = vmax.f32 %v2423_v49, 0.0 }
 0x1c3   : > { %v2476_v14 = vld [vmem:[#allocation3 + $0x50] ss:$2 sm:$0xff]  ;;  %v2484_v21 = vld [vmem:[#allocation3 + $0x51] ss:$2 sm:$0xff]  ;;  %2452 = vst.msk [vmem:[#allocation3 + $0x60] sm:$0xff] %vm4274_vm7, %v2436_v5  ;;  %v2437_v22 = vmax.f32 %v2421_v19, 0.0 }
 0x1c4   : > { %v2493_v30 = vmax.f32 %v2476_v14, %v2484_v21  ;;  %v2460_v39 = vld [vmem:[#allocation3 + $0x40] ss:$2 sm:$0xff]  ;;  %v2468_v45 = vld [vmem:[#allocation3 + $0x41] ss:$2 sm:$0xff]  ;;  %2455 = vst.msk [vmem:[#allocation3 + $0x78] sm:$0xff] %vm4275_vm12, %v2439_v2 }
 0x1c5   : > { %v2489_v48 = vmax.f32 %v2460_v39, %v2468_v45  ;;  %2453 = vst.msk [vmem:[#allocation3 + $0x68] sm:$0xff] %vm4276_vm15, %v2437_v22 }
 0x1c7   : > { %v2497_v18 = vmax.f32 %v2489_v48, %v2493_v30 }
 0x1c9   : > { %2501 = vst.msk [vmem:[%s3462_s29 + $0x10] sm:$0xff] %vm4277_vm6, %v2497_v18 }
 0x1cb   : > { %v2478_v60 = vld [vmem:[#allocation3 + $0x70] ss:$2 sm:$0xff]  ;;  %v2486_v38 = vld [vmem:[#allocation3 + $0x71] ss:$2 sm:$0xff] }
 0x1cc   : > { %v2494_v3 = vmax.f32 %v2478_v60, %v2486_v38  ;;  %v2462_v54 = vld [vmem:[#allocation3 + $0x60] ss:$2 sm:$0xff]  ;;  %v2470_v57 = vld [vmem:[#allocation3 + $0x61] ss:$2 sm:$0xff] }
 0x1cd   : > { %v2490_v1 = vmax.f32 %v2462_v54, %v2470_v57 }
 0x1cf   : > { %v2498_v24 = vmax.f32 %v2490_v1, %v2494_v3 }
 0x1d1   : > { %2502 = vst.msk [vmem:[%s3462_s29 + $0x18] sm:$0xff] %vm4242_vm0, %v2498_v24 }
 0x1d2 PF: > { %s13_s16 = sadd.s32 1, %s3397_s16   ;;  %s4278_s12 = smov %s3389_s14 }
 0x1d3   : > { %p10_p11 = scmp.ge.s32.totalorder %s13_s16, 6   ;;  %s4279_s13 = smov %s3393_s15 }
 0x1d4   : > { %s4280_s14 = smov %s4283_s17  ;;  %s4281_s15 = smov %s4287_s18 }
 0x1d5   :  { %12 = sbr.rel (!%p10_p11) target bundleno = 3 (0x3), region = 224 }
 0x1dc   :  { %2533 = vsyncmov [#allocation4] }
 0x1df   :  { %s2534_s29 = vpop.sfrf %2533 }
 0x1e0   :  { %p2811_p12 = scmp.ne.s32.totalorder %s2534_s29, 0 }
 0x1e2   :  { %2538 = shalt.err (%p2811_p12)  }
 0x1e3   :  { %2540 = vsyncmov [#allocation4 + $0x1] }
 0x1e6   :  { %s2541_s26 = vpop.sfrf %2540 }
 0x1e7   :  { %p2812_p13 = scmp.ne.s32.totalorder %s2541_s26, 0 }
 0x1e9   :  { %2545 = shalt.err (%p2812_p13)  }
 0x1ea   :  { %2547 = vsyncmov [#allocation4 + $0x2] }
 0x1ed   :  { %s2548_s27 = vpop.sfrf %2547 }
 0x1ee   :  { %p2813_p0 = scmp.ne.s32.totalorder %s2548_s27, 0 }
 0x1f0   :  { %2552 = shalt.err (%p2813_p0)  }

// kernel: vgg_perceptual_loss.13
= control target key start
LH: loop header
LB: loop body
LE: loop exit
PB: predicated region body
PF: predicated region fallthrough
CT: control target
= control target key end

     0   :  { %s4333_s15 = smov 0   ;;  %s4335_s16 = smov 0   ;;  %s5246_s0 = inlined_call_operand.vmem [shape: f32[128,128], index: 0, kind: input, shape index: {}]   ;;  %s5247_s1 = inlined_call_operand.vmem [shape: f32[128,128], index: 1, kind: input, shape index: {}]   ;;  %s5248_s2 = inlined_call_operand.vmem [shape: bf16[3,384,128], index: 2, kind: input, shape index: {}]   ;;  %s5249_s3 = inlined_call_operand.vmem [shape: f32[1,128], index: 3, kind: input, shape index: {}]   ;;  %s5250_s4 = inlined_call_operand.vmem [shape: f32[2,1,1,1], index: 4, kind: output, shape index: {}]  }
   0x1   :  { %s4337_s17 = smov 0  }
   0x2 LB: > { %s26_s18 = sadd.s32 1, %s4301_s16  ;;  %p3069_p0 = scmp.ge.s32.totalorder %s4305_s17, 1  ;;  %s4305_s17 = sphi %s4337_s17, %s14_s17   ;;  %s4301_s16 = sphi %s4335_s16, %s5278_s16   ;;  %s4297_s15 = sphi %s4333_s15, %s5277_s15  }
   0x3   : > { %p28_p1 = scmp.ge.s32.totalorder %s26_s18, 2  ;;  %p118_p2 = scmp.lt.s32.totalorder %s4305_s17, 3 }
   0x5   : > { %s5280_s18 = smov (%p28_p1, %s26_s18), 0  ;;  %p119_p3 = pnand %p3069_p0, %p118_p2 }
   0x6   : > { %p136_p4 = scmp.lt.s32.totalorder (!%p119_p3), %s4297_s15, 1  ;;  %s3569_s19 = sshll.u32 (!%p119_p3), %s4297_s15, 6 }
   0x7   : > { %122 = sbr.rel (%p119_p3) target bundleno = 932 (0x3a4), region = 28  ;;  %s147_s22 = scalar_lea.vmem (!%p119_p3), %s5246_s0, %s3569_s19 }
   0x8   : > { %v181_v0 = vld [vmem:[%s147_s22] sm:$0xff] (!%p119_p3)  ;;  %v183_v1 = vld [vmem:[%s147_s22 + $0x8] sm:$0xff] (!%p119_p3)  ;;  %v185_v2 = vld [vmem:[%s147_s22 + $0x10] sm:$0xff] (!%p119_p3) }
   0x9   : > { %182 = vst [vmem:[#allocation2 + $0x10] sm:$0xff] (!%p119_p3), %v181_v0  ;;  %184 = vst [vmem:[#allocation2 + $0x18] sm:$0xff] (!%p119_p3), %v183_v1  ;;  %v187_v3 = vld [vmem:[%s147_s22 + $0x18] sm:$0xff] (!%p119_p3)  ;;  %v189_v4 = vld [vmem:[%s147_s22 + $0x20] sm:$0xff] (!%p119_p3) }
   0xa   : > { %186 = vst [vmem:[#allocation2 + $0x20] sm:$0xff] (!%p119_p3), %v185_v2  ;;  %v191_v5 = vld [vmem:[%s147_s22 + $0x28] sm:$0xff] (!%p119_p3)  ;;  %188 = vst [vmem:[#allocation2 + $0x28] sm:$0xff] (!%p119_p3), %v187_v3  ;;  %v193_v6 = vld [vmem:[%s147_s22 + $0x30] sm:$0xff] (!%p119_p3) }
   0xb   : > { %190 = vst [vmem:[#allocation2 + $0x30] sm:$0xff] (!%p119_p3), %v189_v4  ;;  %192 = vst [vmem:[#allocation2 + $0x38] sm:$0xff] (!%p119_p3), %v191_v5  ;;  %v195_v7 = vld [vmem:[%s147_s22 + $0x38] sm:$0xff] (!%p119_p3) }
   0xc   : > { %194 = vst [vmem:[#allocation2 + $0x40] sm:$0xff] (!%p119_p3), %v193_v6  ;;  %196 = vst [vmem:[#allocation2 + $0x48] sm:$0xff] (!%p119_p3), %v195_v7 }
   0xe   : > { %s5282_s15 = smov (!%p136_p4, %s4297_s15), 1 }
   0xf   : > { %s141_s25 = scalar_lea.vmem %s5250_s4, %s5282_s15 }
  0x10   : > { %204 = vsyncadd [#allocation4], 1024  ;;  %v4307_v8 = vmov 0.0  }
  0x11   : > { %262 = vst [vmem:[#allocation2 + $0x8] sm:$0xff] %v4307_v8  ;;  %319 = vst [vmem:[#allocation2 + $0x50] sm:$0xff] %v4307_v8 }
  0x12   : > { %320 = vst [vmem:[#allocation2] sm:$0xff] %v4307_v8  ;;  %321 = vst [vmem:[#allocation2 + $0x58] sm:$0xff] %v4307_v8 }
  0x13   : > { %4291 = dma.done.wait [#allocation4], 1024 }
  0x14   : > { %4292 = vsyncadd [#allocation4], 4294966272  ;;  %s1580_s28 = scalar_lea.vmem %s5247_s1, %s3569_s19  ;;  %v4135_v17 = vld [vmem:[%s5248_s2 + $0x100] sm:$0xff]   ;;  %v4138_v20 = vld [vmem:[%s5248_s2 + $0x108] sm:$0xff]   ;;  %v325_v25 = vlaneseq }
  0x15   : > { %v1614_v9 = vld [vmem:[%s1580_s28] sm:$0xff]  ;;  %v1616_v10 = vld [vmem:[%s1580_s28 + $0x8] sm:$0xff]  ;;  %v1618_v11 = vld [vmem:[%s1580_s28 + $0x10] sm:$0xff]  ;;  %3572 = vmatprep.subr.bf16.mxu0 %v4135_v17 }
  0x16   : > { %1615 = vst [vmem:[#allocation3 + $0x10] sm:$0xff] %v1614_v9  ;;  %1617 = vst [vmem:[#allocation3 + $0x18] sm:$0xff] %v1616_v10  ;;  %v1620_v12 = vld [vmem:[%s1580_s28 + $0x18] sm:$0xff]  ;;  %v1622_v13 = vld [vmem:[%s1580_s28 + $0x20] sm:$0xff]  ;;  %v4408_v30 = vshrl.u32 %v325_v25, 7 }
  0x17   : > { %1619 = vst [vmem:[#allocation3 + $0x20] sm:$0xff] %v1618_v11  ;;  %v1624_v14 = vld [vmem:[%s1580_s28 + $0x28] sm:$0xff]  ;;  %1621 = vst [vmem:[#allocation3 + $0x28] sm:$0xff] %v1620_v12  ;;  %v1626_v15 = vld [vmem:[%s1580_s28 + $0x30] sm:$0xff] }
  0x18   : > { %1623 = vst [vmem:[#allocation3 + $0x30] sm:$0xff] %v1622_v13  ;;  %1625 = vst [vmem:[#allocation3 + $0x38] sm:$0xff] %v1624_v14  ;;  %v1628_v16 = vld [vmem:[%s1580_s28 + $0x38] sm:$0xff]  ;;  %v4136_v18 = vld [vmem:[%s5248_s2 + $0x140] sm:$0xff]   ;;  %v327_v34 = vadd.s32 8, %v4408_v30  ;;  %v338_v37 = vand.u32 7, %v4408_v30 }
  0x19   : > { %1627 = vst [vmem:[#allocation3 + $0x40] sm:$0xff] %v1626_v15  ;;  %1629 = vst [vmem:[#allocation3 + $0x48] sm:$0xff] %v1628_v16  ;;  %v4137_v19 = vld [vmem:[%s5248_s2 + $0xc0] sm:$0xff]   ;;  %3884 = vmatprep.subr.bf16.mxu1 %v4136_v18  ;;  %v4139_v21 = vld [vmem:[%s5248_s2 + $0x148] sm:$0xff]   ;;  %v4428_v38 = vadd.s32 16, %v4408_v30  ;;  %v4431_v39 = vadd.s32 24, %v4408_v30 }
  0x1a   : > { %3573 = vmatpush3.bf16.msra.mxu0 %v4137_v19  ;;  %3885 = vmatpush3.bf16.msra.mxu1 %v4136_v18  ;;  %v4140_v22 = vld [vmem:[%s5248_s2 + $0xc8] sm:$0xff]   ;;  %v4141_v23 = vld [vmem:[%s5248_s2 + $0x110] sm:$0xff]   ;;  %v4144_v27 = vld [vmem:[%s5248_s2 + $0x118] sm:$0xff]   ;;  %v345_v41 = vand.u32 7, %v327_v34  ;;  %vm4442_vm0 = vcmp.ne.s32.totalorder %v338_v37, 0  ;;  %vm4467_vm2 = vcmp.ne.s32.totalorder %v338_v37, 7 }
  0x1b   : > { %3574 = vmatprep.subr.bf16.mxu0 %v4138_v20  ;;  %3886 = vmatprep.subr.bf16.mxu1 %v4139_v21  ;;  %v4142_v24 = vld [vmem:[%s5248_s2 + $0x150] sm:$0xff]   ;;  %v4145_v28 = vld [vmem:[%s5248_s2 + $0x158] sm:$0xff]   ;;  %v4147_v31 = vld [vmem:[%s5248_s2 + $0x120] sm:$0xff]   ;;  %v352_v46 = vand.u32 7, %v4428_v38  ;;  %v359_v47 = vand.u32 7, %v4431_v39  ;;  %v330_v12 = vadd.s32 32, %v4408_v30 }
  0x1c   : > { %v4143_v26 = vld [vmem:[%s5248_s2 + $0xd0] sm:$0xff]   ;;  %v4146_v29 = vld [vmem:[%s5248_s2 + $0xd8] sm:$0xff]   ;;  %v4148_v32 = vld [vmem:[%s5248_s2 + $0x160] sm:$0xff]   ;;  %vm4446_vm1 = vcmp.ne.s32.totalorder %v345_v41, 0  ;;  %vm439_vm3 = vcmp.ne.s32.totalorder %v345_v41, 7  ;;  %v331_v17 = vadd.s32 40, %v4408_v30 }
  0x1d   : > { %v4149_v33 = vld [vmem:[%s5248_s2 + $0xe0] sm:$0xff]   ;;  %v4150_v35 = vld [vmem:[%s5248_s2 + $0x128] sm:$0xff]   ;;  %v4153_v42 = vld [vmem:[%s5248_s2 + $0x130] sm:$0xff]   ;;  %vm440_vm5 = vcmp.ne.s32.totalorder %v352_v46, 7  ;;  %vm441_vm6 = vcmp.ne.s32.totalorder %v359_v47, 7  ;;  %vm432_vm9 = vcmp.ne.s32.totalorder %v352_v46, 0 }
  0x1e   : > { %3575 = vmatpush3.bf16.msra.mxu0 %v4140_v22  ;;  %3887 = vmatpush3.bf16.msra.mxu1 %v4139_v21  ;;  %v4151_v36 = vld [vmem:[%s5248_s2 + $0x168] sm:$0xff]   ;;  %v4154_v43 = vld [vmem:[%s5248_s2 + $0x170] sm:$0xff]   ;;  %v4457_v50 = vld [vmem:[#allocation2 + $0x18] sm:$0xff]  ;;  %vm433_vm10 = vcmp.ne.s32.totalorder %v359_v47, 0  ;;  %v366_v21 = vand.u32 7, %v330_v12  ;;  %v332_v22 = vadd.s32 48, %v4408_v30 }
  0x1f   : > { %3576 = vmatprep.subr.bf16.mxu0 %v4141_v23  ;;  %3888 = vmatprep.subr.bf16.mxu1 %v4142_v24  ;;  %v4152_v40 = vld [vmem:[%s5248_s2 + $0xe8] sm:$0xff]   ;;  %v4155_v48 = vld [vmem:[%s5248_s2 + $0xf0] sm:$0xff]   ;;  %v4156_v51 = vld [vmem:[%s5248_s2 + $0x138] sm:$0xff]   ;;  %v373_v25 = vand.u32 7, %v331_v17 }
  0x20   : > { %v4455_v49 = vld [vmem:[#allocation2 + $0x10] sm:$0xff]  ;;  %v4157_v52 = vld [vmem:[%s5248_s2 + $0x178] sm:$0xff]   ;;  %vm4482_vm4 = vmpackc.low %vm4446_vm1, %vm4442_vm0  ;;  %vm4576_vm12 = vcmp.ne.s32.totalorder %v366_v21, 0  ;;  %vm442_vm1 = vcmp.ne.s32.totalorder %v366_v21, 7 }
  0x21   : > { %v566_v53 = vpack.c.bf16 %v4457_v50, %v4455_v49  ;;  %v4158_v55 = vld [vmem:[%s5248_s2 + $0xf8] sm:$0xff]   ;;  %v4474_v56 = vld [vmem:[#allocation2 + $0xf] sm:$0xff]  ;;  %v4490_v61 = vld [vmem:[#allocation2 + $0x21] sm:$0xff]  ;;  %vm435_vm13 = vcmp.ne.s32.totalorder %v373_v25, 0 }
  0x22   : > { %3577 = vmatpush3.bf16.msra.mxu0 %v4143_v26  ;;  %3889 = vmatpush3.bf16.msra.mxu1 %v4142_v24  ;;  %v4476_v57 = vld [vmem:[#allocation2 + $0x17] sm:$0xff]  ;;  %v4492_v62 = vld [vmem:[#allocation2 + $0x29] sm:$0xff]  ;;  %vm4496_vm7 = vmpackc.low %vm439_vm3, %vm4467_vm2  ;;  %vm443_vm2 = vcmp.ne.s32.totalorder %v373_v25, 7 }
  0x23   : > { %3578 = vmatprep.subr.bf16.mxu0 %v4144_v27  ;;  %3890 = vmatprep.subr.bf16.mxu1 %v4145_v28  ;;  %v4486_v59 = vld [vmem:[#allocation2 + $0x11] sm:$0xff]  ;;  %v4488_v60 = vld [vmem:[#allocation2 + $0x19] sm:$0xff]  ;;  %vm4512_vm8 = vmpackc.low %vm441_vm6, %vm440_vm5  ;;  %v3150_v5 = vpack.c.bf16 %v4476_v57, %v4474_v56  ;;  %v3165_v6 = vpack.c.bf16 %v4492_v62, %v4490_v61  ;;  %v333_v27 = vadd.s32 56, %v4408_v30 }
  0x24   : > { %802 = vmatprep.mubr.bf16.mxu0 %v566_v53  ;;  %v3162_v0 = vpack.c.bf16 %v4488_v60, %v4486_v59  ;;  %v4159_v1 = vld [vmem:[%s5248_s2 + $0x40] sm:$0xff]   ;;  %v4162_v9 = vld [vmem:[%s5248_s2 + $0x48] sm:$0xff]   ;;  %v4165_v18 = vld [vmem:[%s5248_s2 + $0x50] sm:$0xff]  }
  0x25   : > { %v4505_v2 = vld [vmem:[#allocation2 + $0x20] sm:$0xff]  ;;  %v4163_v10 = vld [vmem:[%s5248_s2 + $0x88] sm:$0xff]   ;;  %v4166_v19 = vld [vmem:[%s5248_s2 + $0x90] sm:$0xff]   ;;  %v387_v38 = vand.u32 7, %v333_v27  ;;  %v3213_v27 = vpack.c.bf16 %v4490_v61, %v4488_v60 }
  0x26   : > { %3579 = vmatpush3.bf16.msra.mxu0 %v4146_v29  ;;  %3891 = vmatpush3.bf16.msra.mxu1 %v4145_v28  ;;  %v4160_v3 = vld [vmem:[%s5248_s2 + $0x80] sm:$0xff]   ;;  %v4529_v11 = vld [vmem:[#allocation2 + $0x28] sm:$0xff]  ;;  %vm4552_vm11 = vmpackc.low %vm433_vm10, %vm432_vm9 }
  0x27   : > { %3580 = vmatprep.subr.bf16.mxu0 %v4147_v31  ;;  %3892 = vmatprep.subr.bf16.mxu1 %v4148_v32  ;;  %v4161_v7 = vld [vmem:[%s5248_s2] sm:$0xff]   ;;  %v4164_v13 = vld [vmem:[%s5248_s2 + $0x8] sm:$0xff]   ;;  %v569_v14 = vpack.c.bf16 %v4529_v11, %v4505_v2  ;;  %v4167_v24 = vld [vmem:[%s5248_s2 + $0x10] sm:$0xff]   ;;  %vm437_vm0 = vcmp.ne.s32.totalorder %v387_v38, 0  ;;  %vm445_vm9 = vcmp.ne.s32.totalorder %v387_v38, 7 }
  0x28   : > { %3900 = vmatprep.mubr.msk.bf16.mxu1 %vm4496_vm7, %v3162_v0  ;;  %v4541_v15 = vld [vmem:[#allocation2 + $0x1f] sm:$0xff]  ;;  %v4543_v16 = vld [vmem:[#allocation2 + $0x27] sm:$0xff]  ;;  %v4572_v31 = vld [vmem:[#allocation2 + $0x30] sm:$0xff] }
  0x29   : > { %v3153_v23 = vpack.c.bf16 %v4543_v16, %v4541_v15  ;;  %v4168_v26 = vld [vmem:[%s5248_s2 + $0x58] sm:$0xff]   ;;  %v4584_v34 = vld [vmem:[#allocation2 + $0x2f] sm:$0xff]  ;;  %v4171_v37 = vld [vmem:[%s5248_s2 + $0x60] sm:$0xff]  }
  0x2a   : > { %3581 = vmatpush3.bf16.msra.mxu0 %v4149_v33  ;;  %3893 = vmatpush3.bf16.msra.mxu1 %v4148_v32  ;;  %v4169_v28 = vld [vmem:[%s5248_s2 + $0x98] sm:$0xff]   ;;  %v4172_v39 = vld [vmem:[%s5248_s2 + $0xa0] sm:$0xff]   ;;  %vm4596_vm14 = vmpackc.low %vm435_vm13, %vm4576_vm12 }
  0x2b   : > { %3582 = vmatprep.subr.bf16.mxu0 %v4150_v35  ;;  %3894 = vmatprep.subr.bf16.mxu1 %v4151_v36  ;;  %v4170_v29 = vld [vmem:[%s5248_s2 + $0x18] sm:$0xff]   ;;  %v4174_v44 = vld [vmem:[%s5248_s2 + $0x68] sm:$0xff]   ;;  %v4615_v46 = vld [vmem:[#allocation2 + $0x40] sm:$0xff] }
  0x2c   : > { %v4574_v32 = vld [vmem:[#allocation2 + $0x38] sm:$0xff]  ;;  %v4175_v45 = vld [vmem:[%s5248_s2 + $0xa8] sm:$0xff]   ;;  %vm4638_vm5 = vmpackc.low %vm443_vm2, %vm442_vm1 }
  0x2d   : > { %v572_v30 = vpack.c.bf16 %v4574_v32, %v4572_v31  ;;  %v4586_v35 = vld [vmem:[#allocation2 + $0x37] sm:$0xff]  ;;  %v470_v47 = vld [vmem:[#allocation2 + $0x9] sm:$0xff]  ;;  %v4184_v25 = vld [vmem:[%s5248_s2 + $0x200] sm:$0xff]  }
  0x2e   : > { %3583 = vmatpush3.bf16.msra.mxu0 %v4152_v40  ;;  %3895 = vmatpush3.bf16.msra.mxu1 %v4151_v36  ;;  %v380_v36 = vand.u32 7, %v332_v22  ;;  %v3156_v41 = vpack.c.bf16 %v4586_v35, %v4584_v34  ;;  %v4624_v53 = vld [vmem:[#allocation2 + $0x47] sm:$0xff]  ;;  %v475_v0 = vld [vmem:[#allocation2 + $0x31] sm:$0xff] }
  0x2f   : > { %3584 = vmatprep.subr.bf16.mxu0 %v4153_v42  ;;  %3896 = vmatprep.subr.bf16.mxu1 %v4154_v43  ;;  %v4173_v42 = vld [vmem:[%s5248_s2 + $0x20] sm:$0xff]   ;;  %v4651_v12 = vld [vmem:[#allocation2 + $0x49] sm:$0xff]  ;;  %v4703_v60 = vpack.c.bf16 %v475_v0, %v4492_v62  ;;  %v4193_v38 = vld [vmem:[%s5248_s2 + $0x218] sm:$0xff]  }
  0x30   : > { %vm4605_vm15 = vcmp.ne.s32.totalorder %v380_v36, 0  ;;  %vm444_vm6 = vcmp.ne.s32.totalorder %v380_v36, 7  ;;  %v446_v22 = vld [vmem:[#allocation2 + $0x7] sm:$0xff]  ;;  %v4190_v62 = vld [vmem:[%s5248_s2 + $0x210] sm:$0xff]  }
  0x31   : > { %vm4632_vm3 = vmpackc.low %vm437_vm0, %vm4605_vm15  ;;  %v4187_v33 = vld [vmem:[%s5248_s2 + $0x208] sm:$0xff]  }
  0x32   : > { %3585 = vmatpush3.bf16.msra.mxu0 %v4155_v48  ;;  %3897 = vmatpush3.bf16.msra.mxu1 %v4154_v43  ;;  %v4176_v48 = vld [vmem:[%s5248_s2 + $0x28] sm:$0xff]   ;;  %vm4656_vm10 = vmpackc.low %vm445_vm9, %vm444_vm6 }
  0x33   : > { %3586 = vmatprep.subr.bf16.mxu0 %v4156_v51  ;;  %3898 = vmatprep.subr.bf16.mxu1 %v4157_v52  ;;  %v4620_v51 = vld [vmem:[#allocation2 + $0x48] sm:$0xff] }
  0x34   : > { %v575_v54 = vpack.c.bf16 %v4620_v51, %v4615_v46  ;;  %v4188_v61 = vld [vmem:[%s5248_s2 + $0x188] sm:$0xff]  }
  0x35   : > { %v4199_v43 = vld [vmem:[%s5248_s2 + $0x228] sm:$0xff]  }
  0x36   : > { %3587 = vmatpush3.bf16.msra.mxu0 %v4158_v55  ;;  %3899 = vmatpush3.bf16.msra.mxu1 %v4157_v52  ;;  %v4622_v52 = vld [vmem:[#allocation2 + $0x3f] sm:$0xff] }
  0x37   : > { %3624 = vmatprep.subr.bf16.mxu0 %v4159_v1  ;;  %3908 = vmatprep.subr.bf16.mxu1 %v4160_v3  ;;  %v4636_v1 = vld [vmem:[#allocation2 + $0x39] sm:$0xff] }
  0x39   : > { %3151 = vmatmul.mubr.msk.bf16.vlgmr.msra.gmra.mrb[0].mxu0 %vm4482_vm4, %v3150_v5  ;;  %3901 = vmatmul.mubr.msk.bf16.vlgmr.msra.gmra.mrb[0].mxu1 %vm4512_vm8, %v3165_v6  ;;  %v3168_v5 = vpack.c.bf16 %v4636_v1, %v475_v0  ;;  %v462_v6 = vld [vmem:[#allocation2 + $0x8] sm:$0xff]  ;;  %v1197_v0 = vld [vmem:[#allocation2 + $0x50] sm:$0xff] }
  0x3a   : > { %3625 = vmatpush3.bf16.msra.mxu0 %v4161_v7  ;;  %3909 = vmatpush3.bf16.msra.mxu1 %v4160_v3  ;;  %v4177_v7 = vld [vmem:[%s5248_s2 + $0x70] sm:$0xff]   ;;  %v487_v21 = vpack.c.bf16 %v4455_v49, %v462_v6  ;;  %v4183_v49 = vld [vmem:[%s5248_s2 + $0x1c0] sm:$0xff]  }
  0x3b   : > { %3626 = vmatprep.subr.bf16.mxu0 %v4162_v9  ;;  %3910 = vmatprep.subr.bf16.mxu1 %v4163_v10  ;;  %v4178_v9 = vld [vmem:[%s5248_s2 + $0xb0] sm:$0xff]  }
  0x3c   : > { %810 = vmatprep.mubr.bf16.mxu0 %v569_v14  ;;  %3904 = vmatprep.mubr.msk.bf16.mxu1 %vm4638_vm5, %v3168_v5  ;;  %v3159_v14 = vpack.c.bf16 %v4624_v53, %v4622_v52  ;;  %v1181_v5 = vld [vmem:[#allocation2 + $0x4f] sm:$0xff] }
  0x3d   : > { %v3303_v6 = vpack.c.bf16 %v1181_v5, %v4624_v53 }
  0x3e   : > { %3627 = vmatpush3.bf16.msra.mxu0 %v4164_v13  ;;  %3911 = vmatpush3.bf16.msra.mxu1 %v4163_v10  ;;  %v477_v10 = vld [vmem:[#allocation2 + $0x41] sm:$0xff]  ;;  %v3210_v13 = vpack.c.bf16 %v4486_v59, %v470_v47  ;;  %v4180_v59 = vld [vmem:[%s5248_s2 + $0x78] sm:$0xff]  }
  0x3f   : > { %3628 = vmatprep.subr.bf16.mxu0 %v4165_v18  ;;  %3912 = vmatprep.subr.bf16.mxu1 %v4166_v19  ;;  %v3171_v18 = vpack.c.bf16 %v4651_v12, %v477_v10  ;;  %v3219_v36 = vpack.c.bf16 %v477_v10, %v4636_v1  ;;  %v4204_v47 = vld [vmem:[%s5248_s2 + $0x1f8] sm:$0xff]   ;;  %v1224_v1 = vpack.c.bf16 %v1197_v0, %v4620_v51 }
  0x41   : > { %3154 = vmatmul.mubr.msk.bf16.gmra.mrb[4].mxu0 %vm4552_vm11, %v3153_v23  ;;  %3905 = vmatmul.mubr.msk.bf16.gmra.mrb[4].mxu1 %vm4656_vm10, %v3171_v18  ;;  %v4181_v23 = vld [vmem:[%s5248_s2 + $0xb8] sm:$0xff]  }
  0x42   : > { %3629 = vmatpush3.bf16.msra.mxu0 %v4167_v24  ;;  %3913 = vmatpush3.bf16.msra.mxu1 %v4166_v19  ;;  %v4179_v19 = vld [vmem:[%s5248_s2 + $0x30] sm:$0xff]   ;;  %v4182_v24 = vld [vmem:[%s5248_s2 + $0x38] sm:$0xff]  }
  0x43   : > { %3630 = vmatprep.subr.bf16.mxu0 %v4168_v26  ;;  %3914 = vmatprep.subr.bf16.mxu1 %v4169_v28  ;;  %v3198_v26 = vpack.c.bf16 %v4474_v56, %v446_v22  ;;  %v4700_v56 = vpack.c.bf16 %v4505_v2, %v4457_v50  ;;  %v4189_v50 = vld [vmem:[%s5248_s2 + $0x1d0] sm:$0xff]   ;;  %v3201_v2 = vpack.c.bf16 %v4541_v15, %v4476_v57  ;;  %v4194_v15 = vld [vmem:[%s5248_s2 + $0x198] sm:$0xff]  }
  0x44   : > { %818 = vmatprep.mubr.bf16.mxu0 %v572_v30  ;;  %3924 = vmatprep.mubr.msk.bf16.mxu1 %vm4496_vm7, %v3210_v13  ;;  %v4191_v30 = vld [vmem:[%s5248_s2 + $0x190] sm:$0xff]   ;;  %v493_v57 = vpack.c.bf16 %v4572_v31, %v4529_v11  ;;  %v4196_v11 = vld [vmem:[%s5248_s2 + $0x220] sm:$0xff]   ;;  %v3204_v31 = vpack.c.bf16 %v4584_v34, %v4543_v16  ;;  %v4200_v16 = vld [vmem:[%s5248_s2 + $0x1a8] sm:$0xff]  }
  0x45   : > { %v4201_v34 = vld [vmem:[%s5248_s2 + $0x1f0] sm:$0xff]  }
  0x46   : > { %3631 = vmatpush3.bf16.msra.mxu0 %v4170_v29  ;;  %3915 = vmatpush3.bf16.msra.mxu1 %v4169_v28  ;;  %v4185_v28 = vld [vmem:[%s5248_s2 + $0x180] sm:$0xff]   ;;  %v4186_v29 = vld [vmem:[%s5248_s2 + $0x1c8] sm:$0xff]  }
  0x47   : > { %3632 = vmatprep.subr.bf16.mxu0 %v4171_v37  ;;  %3916 = vmatprep.subr.bf16.mxu1 %v4172_v39  ;;  %v4192_v37 = vld [vmem:[%s5248_s2 + $0x1d8] sm:$0xff]  }
  0x49   : > { %3157 = vmatmul.mubr.msk.bf16.gmra.mrb[8].mxu0 %vm4596_vm14, %v3156_v41  ;;  %v4197_v41 = vld [vmem:[%s5248_s2 + $0x1a0] sm:$0xff]  }
  0x4a   : > { %3633 = vmatpush3.bf16.msra.mxu0 %v4173_v42  ;;  %3917 = vmatpush3.bf16.msra.mxu1 %v4172_v39  ;;  %v4195_v39 = vld [vmem:[%s5248_s2 + $0x1e0] sm:$0xff]   ;;  %v4198_v42 = vld [vmem:[%s5248_s2 + $0x1e8] sm:$0xff]  }
  0x4b   : > { %3634 = vmatprep.subr.bf16.mxu0 %v4174_v44  ;;  %3918 = vmatprep.subr.bf16.mxu1 %v4175_v45  ;;  %v496_v44 = vpack.c.bf16 %v4615_v46, %v4574_v32  ;;  %v3207_v32 = vpack.c.bf16 %v4622_v52, %v4586_v35  ;;  %v4203_v46 = vld [vmem:[%s5248_s2 + $0x1b0] sm:$0xff]   ;;  %v4206_v35 = vld [vmem:[%s5248_s2 + $0x1b8] sm:$0xff]  }
  0x4c   : > { %826 = vmatprep.mubr.bf16.mxu0 %v575_v54  ;;  %v1205_v52 = vld [vmem:[#allocation2 + $0x51] sm:$0xff] }
  0x4d   : > { %v3315_v54 = vpack.c.bf16 %v1205_v52, %v4651_v12 }
  0x4e   : > { %3635 = vmatpush3.bf16.msra.mxu0 %v4176_v48  ;;  %3919 = vmatpush3.bf16.msra.mxu1 %v4175_v45  ;;  %v4202_v45 = vld [vmem:[%s5248_s2 + $0x230] sm:$0xff]   ;;  %v4205_v48 = vld [vmem:[%s5248_s2 + $0x238] sm:$0xff]  }
  0x4f   : > { %3636 = vmatprep.subr.bf16.mxu0 %v4177_v7  ;;  %3920 = vmatprep.subr.bf16.mxu1 %v4178_v9 }
  0x51   : > { %3160 = vmatmul.mubr.msk.bf16.gmra.mrb[12].mxu0 %vm4632_vm3, %v3159_v14 }
  0x52   : > { %3637 = vmatpush3.bf16.msra.mxu0 %v4179_v19  ;;  %3921 = vmatpush3.bf16.msra.mxu1 %v4178_v9 }
  0x53   : > { %3638 = vmatprep.subr.bf16.mxu0 %v4180_v59  ;;  %3922 = vmatprep.subr.bf16.mxu1 %v4181_v23 }
  0x54   : > { %1076 = vmatprep.mubr.bf16.mxu0 %v487_v21 }
  0x56   : > { %3639 = vmatpush3.bf16.msra.mxu0 %v4182_v24  ;;  %3923 = vmatpush3.bf16.msra.mxu1 %v4181_v23 }
  0x57   : > { %3676 = vmatprep.subr.bf16.mxu0 %v4183_v49  ;;  %3932 = vmatprep.subr.bf16.mxu1 %v4184_v25 }
  0x59   : > { %3199 = vmatmul.mubr.msk.bf16.vlgmr.msra.gmra.mrb[16].mxu0 %vm4482_vm4, %v3198_v26  ;;  %3925 = vmatmul.mubr.msk.bf16.vlgmr.msra.gmra.mrb[0].mxu1 %vm4512_vm8, %v3213_v27 }
  0x5a   : > { %3677 = vmatpush3.bf16.msra.mxu0 %v4185_v28  ;;  %3933 = vmatpush3.bf16.msra.mxu1 %v4184_v25 }
  0x5b   : > { %3678 = vmatprep.subr.bf16.mxu0 %v4186_v29  ;;  %3934 = vmatprep.subr.bf16.mxu1 %v4187_v33 }
  0x5c   : > { %1084 = vmatprep.mubr.bf16.mxu0 %v4700_v56  ;;  %3928 = vmatprep.mubr.msk.bf16.mxu1 %vm4638_vm5, %v4703_v60 }
  0x5e   : > { %3679 = vmatpush3.bf16.msra.mxu0 %v4188_v61  ;;  %3935 = vmatpush3.bf16.msra.mxu1 %v4187_v33 }
  0x5f   : > { %3680 = vmatprep.subr.bf16.mxu0 %v4189_v50  ;;  %3936 = vmatprep.subr.bf16.mxu1 %v4190_v62 }
  0x61   : > { %3202 = vmatmul.mubr.msk.bf16.gmra.mrb[20].mxu0 %vm4552_vm11, %v3201_v2  ;;  %3929 = vmatmul.mubr.msk.bf16.gmra.mrb[4].mxu1 %vm4656_vm10, %v3219_v36 }
  0x62   : > { %3681 = vmatpush3.bf16.msra.mxu0 %v4191_v30  ;;  %3937 = vmatpush3.bf16.msra.mxu1 %v4190_v62 }
  0x63   : > { %3682 = vmatprep.subr.bf16.mxu0 %v4192_v37  ;;  %3938 = vmatprep.subr.bf16.mxu1 %v4193_v38 }
  0x64   : > { %1092 = vmatprep.mubr.bf16.mxu0 %v493_v57  ;;  %3948 = vmatprep.mubr.msk.bf16.mxu1 %vm4496_vm7, %v3213_v27 }
  0x66   : > { %3683 = vmatpush3.bf16.msra.mxu0 %v4194_v15  ;;  %3939 = vmatpush3.bf16.msra.mxu1 %v4193_v38 }
  0x67   : > { %3684 = vmatprep.subr.bf16.mxu0 %v4195_v39  ;;  %3940 = vmatprep.subr.bf16.mxu1 %v4196_v11 }
  0x69   : > { %3205 = vmatmul.mubr.msk.bf16.gmra.mrb[24].mxu0 %vm4596_vm14, %v3204_v31 }
  0x6a   : > { %3685 = vmatpush3.bf16.msra.mxu0 %v4197_v41  ;;  %3941 = vmatpush3.bf16.msra.mxu1 %v4196_v11 }
  0x6b   : > { %3686 = vmatprep.subr.bf16.mxu0 %v4198_v42  ;;  %3942 = vmatprep.subr.bf16.mxu1 %v4199_v43 }
  0x6c   : > { %1100 = vmatprep.mubr.bf16.mxu0 %v496_v44 }
  0x6e   : > { %3687 = vmatpush3.bf16.msra.mxu0 %v4200_v16  ;;  %3943 = vmatpush3.bf16.msra.mxu1 %v4199_v43 }
  0x6f   : > { %3688 = vmatprep.subr.bf16.mxu0 %v4201_v34  ;;  %3944 = vmatprep.subr.bf16.mxu1 %v4202_v45 }
  0x71   : > { %3208 = vmatmul.mubr.msk.bf16.gmra.mrb[28].mxu0 %vm4632_vm3, %v3207_v32 }
  0x72   : > { %3689 = vmatpush3.bf16.msra.mxu0 %v4203_v46  ;;  %3945 = vmatpush3.bf16.msra.mxu1 %v4202_v45 }
  0x73   : > { %3690 = vmatprep.subr.bf16.mxu0 %v4204_v47  ;;  %3946 = vmatprep.subr.bf16.mxu1 %v4205_v48 }
  0x74   : > { %1451 = vmatprep.mubr.bf16.mxu0 %v4700_v56 }
  0x76   : > { %3691 = vmatpush3.bf16.msra.mxu0 %v4206_v35  ;;  %3947 = vmatpush3.bf16.msra.mxu1 %v4205_v48 }
  0x79   : > { %3295 = vmatmul.mubr.msk.bf16.vlgmr.msra.gmra.mrb[32].mxu0 %vm4482_vm4, %v3201_v2  ;;  %3949 = vmatmul.mubr.msk.bf16.vlgmr.msra.gmra.mrb[0].mxu1 %vm4512_vm8, %v4703_v60 }
  0x7a   : > { %1459 = vmatprep.mubr.bf16.mxu0 %v493_v57  ;;  %3952 = vmatprep.mubr.msk.bf16.mxu1 %vm4638_vm5, %v3219_v36 }
  0x81   : > { %3298 = vmatmul.mubr.msk.bf16.gmra.mrb[36].mxu0 %vm4552_vm11, %v3204_v31  ;;  %3953 = vmatmul.mubr.msk.bf16.gmra.mrb[4].mxu1 %vm4656_vm10, %v3315_v54 }
  0x82   : > { %1467 = vmatprep.mubr.bf16.mxu0 %v496_v44 }
  0x89   : > { %3301 = vmatmul.mubr.msk.bf16.gmra.mrb[40].mxu0 %vm4596_vm14, %v3207_v32 }
  0x8a   : > { %1475 = vmatprep.mubr.bf16.mxu0 %v1224_v1 }
  0x91   : > { %3304 = vmatmul.mubr.msk.bf16.gmra.mrb[44].mxu0 %vm4632_vm3, %v3303_v6 }
 0x10c   : > { %v3588_v7 = vpop.f32.mrb[0].mxu0 }
 0x10d   : > { %v3589_v9 = vpop.f32.mrb[1].mxu0 }
 0x10e   : > { %v3590_v10 = vadd.f32 %v3589_v9, %v3588_v7  ;;  %v3591_v12 = vpop.f32.mrb[2].mxu0 }
 0x10f   : > { %v3592_v13 = vpop.f32.mrb[3].mxu0 }
 0x110   : > { %v3593_v14 = vadd.f32 %v3592_v13, %v3591_v12 }
 0x114   : > { %v3594_v18 = vpop.f32.mrb[4].mxu0 }
 0x115   : > { %v3595_v19 = vpop.f32.mrb[5].mxu0 }
 0x116   : > { %v3596_v59 = vadd.f32 %v3595_v19, %v3594_v18  ;;  %v3597_v51 = vpop.f32.mrb[6].mxu0 }
 0x117   : > { %v3598_v21 = vpop.f32.mrb[7].mxu0 }
 0x118   : > { %v3599_v22 = vadd.f32 %v3598_v21, %v3597_v51 }
 0x11c   : > { %v3600_v23 = vpop.f32.mrb[8].mxu0 }
 0x11d   : > { %v3601_v24 = vpop.f32.mrb[9].mxu0 }
 0x11e   : > { %v3602_v49 = vadd.f32 %v3601_v24, %v3600_v23  ;;  %v3603_v25 = vpop.f32.mrb[10].mxu0  ;;  %v3317_v23 = vld [vmem:[%s5249_s3] ss:$0 sm:$0xff] }
 0x11f   : > { %v3604_v53 = vpop.f32.mrb[11].mxu0 }
 0x120   : > { %v3605_v26 = vadd.f32 %v3604_v53, %v3603_v25 }
 0x124   : > { %v3606_v27 = vpop.f32.mrb[12].mxu0 }
 0x125   : > { %v3607_v28 = vpop.f32.mrb[13].mxu0 }
 0x126   : > { %v3608_v29 = vadd.f32 %v3607_v28, %v3606_v27  ;;  %v3609_v33 = vpop.f32.mrb[14].mxu0 }
 0x127   : > { %v3610_v56 = vpop.f32.mrb[15].mxu0 }
 0x128   : > { %v3611_v60 = vadd.f32 %v3610_v56, %v3609_v33 }
 0x12c   : > { %v3640_v61 = vpop.f32.mrb[16].mxu0 }
 0x12d   : > { %v3641_v50 = vpop.f32.mrb[17].mxu0 }
 0x12e   : > { %v3642_v62 = vadd.f32 %v3641_v50, %v3640_v61  ;;  %v3643_v2 = vpop.f32.mrb[18].mxu0 }
 0x12f   : > { %v3644_v30 = vpop.f32.mrb[19].mxu0 }
 0x130   : > { %v4031_v36 = vadd.f32 %v3642_v62, %v3590_v10  ;;  %v3645_v37 = vadd.f32 %v3644_v30, %v3643_v2 }
 0x132   : > { %v4037_v38 = vadd.f32 %v3645_v37, %v3593_v14 }
 0x134   : > { %v3646_v57 = vpop.f32.mrb[20].mxu0 }
 0x135   : > { %v3647_v15 = vpop.f32.mrb[21].mxu0 }
 0x136   : > { %v3648_v39 = vadd.f32 %v3647_v15, %v3646_v57  ;;  %v3649_v11 = vpop.f32.mrb[22].mxu0 }
 0x137   : > { %v3650_v31 = vpop.f32.mrb[23].mxu0 }
 0x138   : > { %v4028_v41 = vadd.f32 %v3648_v39, %v3596_v59  ;;  %v3651_v42 = vadd.f32 %v3650_v31, %v3649_v11 }
 0x13a   : > { %v4034_v43 = vadd.f32 %v3651_v42, %v3599_v22 }
 0x13c   : > { %v3652_v44 = vpop.f32.mrb[24].mxu0 }
 0x13d   : > { %v3653_v16 = vpop.f32.mrb[25].mxu0 }
 0x13e   : > { %v3654_v34 = vadd.f32 %v3653_v16, %v3652_v44  ;;  %v3655_v45 = vpop.f32.mrb[26].mxu0 }
 0x13f   : > { %v3656_v32 = vpop.f32.mrb[27].mxu0 }
 0x140   : > { %v4043_v46 = vadd.f32 %v3654_v34, %v3602_v49  ;;  %v3657_v47 = vadd.f32 %v3656_v32, %v3655_v45 }
 0x142   : > { %v4049_v48 = vadd.f32 %v3657_v47, %v3605_v26 }
 0x144   : > { %v3658_v35 = vpop.f32.mrb[28].mxu0 }
 0x145   : > { %v3659_v52 = vpop.f32.mrb[29].mxu0 }
 0x146   : > { %v3660_v54 = vadd.f32 %v3659_v52, %v3658_v35  ;;  %v3661_v0 = vpop.f32.mrb[30].mxu0 }
 0x147   : > { %v3662_v1 = vpop.f32.mrb[31].mxu0 }
 0x148   : > { %v4040_v5 = vadd.f32 %v3660_v54, %v3608_v29  ;;  %v3663_v6 = vadd.f32 %v3662_v1, %v3661_v0 }
 0x14a   : > { %v4046_v7 = vadd.f32 %v3663_v6, %v3611_v60 }
 0x14c   : > { %v3692_v9 = vpop.f32.mrb[32].mxu0  ;;  %v3950_v10 = vpop.f32.mrb[0].mxu1 }
 0x14d   : > { %v3693_v12 = vpop.f32.mrb[33].mxu0  ;;  %v1518_v13 = vpop.f32.mrb[1].mxu1 }
 0x14e   : > { %v3694_v14 = vadd.f32 %v3693_v12, %v3692_v9  ;;  %v3695_v18 = vpop.f32.mrb[34].mxu0  ;;  %v3951_v19 = vpop.f32.mrb[2].mxu1 }
 0x14f   : > { %v3696_v59 = vpop.f32.mrb[35].mxu0  ;;  %v1521_v51 = vpop.f32.mrb[3].mxu1 }
 0x150   : > { %v4032_v21 = vadd.f32 %v4031_v36, %v3694_v14  ;;  %v3697_v22 = vadd.f32 %v3696_v59, %v3695_v18 }
 0x152   : > { %v4033_v24 = vadd.f32 %v4032_v21, %v1518_v13  ;;  %v4038_v49 = vadd.f32 %v4037_v38, %v3697_v22 }
 0x154   : > { %v4813_v25 = vadd.f32 %v4033_v24, %v3317_v23  ;;  %v4039_v53 = vadd.f32 %v4038_v49, %v1521_v51  ;;  %v3698_v26 = vpop.f32.mrb[36].mxu0  ;;  %v3954_v27 = vpop.f32.mrb[4].mxu1 }
 0x155   : > { %v3699_v28 = vpop.f32.mrb[37].mxu0  ;;  %v1534_v29 = vpop.f32.mrb[5].mxu1 }
 0x156   : > { %v1572_v33 = vmax.f32 %v4813_v25, 0.0  ;;  %v4816_v56 = vadd.f32 %v4039_v53, %v3317_v23  ;;  %v3700_v60 = vadd.f32 %v3699_v28, %v3698_v26  ;;  %v3701_v61 = vpop.f32.mrb[38].mxu0  ;;  %v3955_v50 = vpop.f32.mrb[6].mxu1 }
 0x157   : > { %v3702_v62 = vpop.f32.mrb[39].mxu0  ;;  %v1537_v2 = vpop.f32.mrb[7].mxu1 }
 0x158   : > { %v1573_v30 = vmax.f32 %v4816_v56, 0.0  ;;  %v4029_v36 = vadd.f32 %v4028_v41, %v3700_v60  ;;  %v3703_v37 = vadd.f32 %v3702_v62, %v3701_v61 }
 0x15a   : > { %v4030_v38 = vadd.f32 %v4029_v36, %v3950_v10  ;;  %v4035_v57 = vadd.f32 %v4034_v43, %v3703_v37 }
 0x15c   : > { %v4819_v15 = vadd.f32 %v4030_v38, %v3317_v23  ;;  %v4036_v39 = vadd.f32 %v4035_v57, %v3951_v19  ;;  %v3704_v11 = vpop.f32.mrb[40].mxu0 }
 0x15d   : > { %v3705_v31 = vpop.f32.mrb[41].mxu0 }
 0x15e   : > { %v1574_v42 = vmax.f32 %v4819_v15, 0.0  ;;  %v4822_v44 = vadd.f32 %v4036_v39, %v3317_v23  ;;  %v3706_v16 = vadd.f32 %v3705_v31, %v3704_v11  ;;  %v3707_v34 = vpop.f32.mrb[42].mxu0 }
 0x15f   : > { %v3708_v45 = vpop.f32.mrb[43].mxu0 }
 0x160   : > { %v1575_v32 = vmax.f32 %v4822_v44, 0.0  ;;  %v4044_v47 = vadd.f32 %v4043_v46, %v3706_v16  ;;  %v3709_v35 = vadd.f32 %v3708_v45, %v3707_v34 }
 0x162   : > { %v4045_v41 = vadd.f32 %v4044_v47, %v1534_v29  ;;  %v4050_v52 = vadd.f32 %v4049_v48, %v3709_v35 }
 0x164   : > { %v4825_v54 = vadd.f32 %v4045_v41, %v3317_v23  ;;  %v4051_v43 = vadd.f32 %v4050_v52, %v1537_v2  ;;  %v3710_v0 = vpop.f32.mrb[44].mxu0 }
 0x165   : > { %v3711_v1 = vpop.f32.mrb[45].mxu0 }
 0x166   : > { %v1576_v6 = vmax.f32 %v4825_v54, 0.0  ;;  %v4828_v9 = vadd.f32 %v4051_v43, %v3317_v23  ;;  %v3712_v10 = vadd.f32 %v3711_v1, %v3710_v0  ;;  %v3713_v12 = vpop.f32.mrb[46].mxu0 }
 0x167   : > { %v3714_v13 = vpop.f32.mrb[47].mxu0 }
 0x168   : > { %v1577_v14 = vmax.f32 %v4828_v9, 0.0  ;;  %v4041_v18 = vadd.f32 %v4040_v5, %v3712_v10  ;;  %v3715_v19 = vadd.f32 %v3714_v13, %v3713_v12 }
 0x16a   : > { %v4042_v46 = vadd.f32 %v4041_v18, %v3954_v27  ;;  %v4047_v59 = vadd.f32 %v4046_v7, %v3715_v19 }
 0x16c   : > { %v4831_v51 = vadd.f32 %v4042_v46, %v3317_v23  ;;  %v4048_v48 = vadd.f32 %v4047_v59, %v3955_v50 }
 0x16e   : > { %v1578_v21 = vmax.f32 %v4831_v51, 0.0  ;;  %v4834_v22 = vadd.f32 %v4048_v48, %v3317_v23 }
 0x170   : > { %v1579_v24 = vmax.f32 %v4834_v22, 0.0 }
 0x171   : > { %1637 = vsyncadd [#allocation4], 1024  ;;  %1693 = vst [vmem:[#allocation3 + $0x8] sm:$0xff] %v4307_v8 }
 0x172   : > { %1749 = vst [vmem:[#allocation3 + $0x50] sm:$0xff] %v4307_v8  ;;  %1750 = vst [vmem:[#allocation3] sm:$0xff] %v4307_v8 }
 0x173   : > { %1751 = vst [vmem:[#allocation3 + $0x58] sm:$0xff] %v4307_v8 }
 0x174   : > { %4293 = dma.done.wait [#allocation4], 1024 }
 0x175   : > { %4294 = vsyncadd [#allocation4], 4294966272  ;;  %v4207_v5 = vld [vmem:[%s5248_s2 + $0x100] sm:$0xff]   ;;  %v4210_v8 = vld [vmem:[%s5248_s2 + $0x108] sm:$0xff]  }
 0x176   : > { %v4208_v7 = vld [vmem:[%s5248_s2 + $0x140] sm:$0xff]   ;;  %3728 = vmatprep.subr.bf16.mxu0 %v4207_v5  ;;  %v4211_v49 = vld [vmem:[%s5248_s2 + $0x148] sm:$0xff]   ;;  %v4213_v26 = vld [vmem:[%s5248_s2 + $0x110] sm:$0xff]  }
 0x177   : > { %v4209_v23 = vld [vmem:[%s5248_s2 + $0xc0] sm:$0xff]   ;;  %3956 = vmatprep.subr.bf16.mxu1 %v4208_v7  ;;  %v4212_v53 = vld [vmem:[%s5248_s2 + $0xc8] sm:$0xff]   ;;  %v4214_v27 = vld [vmem:[%s5248_s2 + $0x150] sm:$0xff]  }
 0x178   : > { %3729 = vmatpush3.bf16.msra.mxu0 %v4209_v23  ;;  %3957 = vmatpush3.bf16.msra.mxu1 %v4208_v7  ;;  %v4215_v28 = vld [vmem:[%s5248_s2 + $0xd0] sm:$0xff]   ;;  %v4216_v29 = vld [vmem:[%s5248_s2 + $0x118] sm:$0xff]   ;;  %v4219_v50 = vld [vmem:[%s5248_s2 + $0x120] sm:$0xff]  }
 0x179   : > { %3730 = vmatprep.subr.bf16.mxu0 %v4210_v8  ;;  %3958 = vmatprep.subr.bf16.mxu1 %v4211_v49  ;;  %v4217_v60 = vld [vmem:[%s5248_s2 + $0x158] sm:$0xff]   ;;  %v4220_v62 = vld [vmem:[%s5248_s2 + $0x160] sm:$0xff]   ;;  %v4222_v36 = vld [vmem:[%s5248_s2 + $0x128] sm:$0xff]  }
 0x17a   : > { %v4218_v61 = vld [vmem:[%s5248_s2 + $0xd8] sm:$0xff]   ;;  %v4221_v2 = vld [vmem:[%s5248_s2 + $0xe0] sm:$0xff]   ;;  %v4223_v37 = vld [vmem:[%s5248_s2 + $0x168] sm:$0xff]  }
 0x17b   : > { %v4224_v38 = vld [vmem:[%s5248_s2 + $0xe8] sm:$0xff]   ;;  %v4225_v57 = vld [vmem:[%s5248_s2 + $0x130] sm:$0xff]   ;;  %v4906_v16 = vld [vmem:[#allocation3 + $0x18] sm:$0xff] }
 0x17c   : > { %3731 = vmatpush3.bf16.msra.mxu0 %v4212_v53  ;;  %3959 = vmatpush3.bf16.msra.mxu1 %v4211_v49  ;;  %v4226_v39 = vld [vmem:[%s5248_s2 + $0x170] sm:$0xff]   ;;  %v4228_v34 = vld [vmem:[%s5248_s2 + $0x138] sm:$0xff]   ;;  %v4927_v1 = vld [vmem:[#allocation3 + $0x21] sm:$0xff] }
 0x17d   : > { %3732 = vmatprep.subr.bf16.mxu0 %v4213_v26  ;;  %3960 = vmatprep.subr.bf16.mxu1 %v4214_v27  ;;  %v4227_v11 = vld [vmem:[%s5248_s2 + $0xf0] sm:$0xff]   ;;  %v4229_v45 = vld [vmem:[%s5248_s2 + $0x178] sm:$0xff]   ;;  %v4231_v12 = vld [vmem:[%s5248_s2 + $0x40] sm:$0xff]  }
 0x17e   : > { %v4904_v31 = vld [vmem:[#allocation3 + $0x10] sm:$0xff]  ;;  %v4230_v35 = vld [vmem:[%s5248_s2 + $0xf8] sm:$0xff]   ;;  %v4232_v13 = vld [vmem:[%s5248_s2 + $0x80] sm:$0xff]  }
 0x17f   : > { %v1874_v47 = vpack.c.bf16 %v4906_v16, %v4904_v31  ;;  %v4919_v41 = vld [vmem:[#allocation3 + $0xf] sm:$0xff]  ;;  %v4921_v52 = vld [vmem:[#allocation3 + $0x17] sm:$0xff]  ;;  %v4939_v19 = vld [vmem:[#allocation3 + $0x20] sm:$0xff] }
 0x180   : > { %3733 = vmatpush3.bf16.msra.mxu0 %v4215_v28  ;;  %3961 = vmatpush3.bf16.msra.mxu1 %v4214_v27  ;;  %v4923_v43 = vld [vmem:[#allocation3 + $0x11] sm:$0xff]  ;;  %v4925_v0 = vld [vmem:[#allocation3 + $0x19] sm:$0xff]  ;;  %v4937_v18 = vld [vmem:[#allocation3 + $0x29] sm:$0xff]  ;;  %v3396_v46 = vpack.c.bf16 %v4921_v52, %v4919_v41 }
 0x181   : > { %3734 = vmatprep.subr.bf16.mxu0 %v4216_v29  ;;  %3962 = vmatprep.subr.bf16.mxu1 %v4217_v60  ;;  %v3408_v10 = vpack.c.bf16 %v4925_v0, %v4923_v43  ;;  %v3411_v59 = vpack.c.bf16 %v4937_v18, %v4927_v1  ;;  %v4233_v48 = vld [vmem:[%s5248_s2] sm:$0xff]   ;;  %v4234_v5 = vld [vmem:[%s5248_s2 + $0x48] sm:$0xff]   ;;  %v4237_v27 = vld [vmem:[%s5248_s2 + $0x50] sm:$0xff]  }
 0x182   : > { %2109 = vmatprep.mubr.bf16.mxu0 %v1874_v47  ;;  %v4235_v7 = vld [vmem:[%s5248_s2 + $0x88] sm:$0xff]   ;;  %v4961_v49 = vld [vmem:[#allocation3 + $0x1f] sm:$0xff]  ;;  %v4238_v28 = vld [vmem:[%s5248_s2 + $0x90] sm:$0xff]  }
 0x183   : > { %3972 = vmatprep.mubr.msk.bf16.mxu1 %vm4496_vm7, %v3408_v10  ;;  %v4236_v23 = vld [vmem:[%s5248_s2 + $0x8] sm:$0xff]   ;;  %v5014_v47 = vld [vmem:[#allocation3 + $0x40] sm:$0xff]  ;;  %v2504_v58 = vld [vmem:[#allocation3 + $0x50] sm:$0xff] }
 0x184   : > { %3735 = vmatpush3.bf16.msra.mxu0 %v4218_v61  ;;  %3963 = vmatpush3.bf16.msra.mxu1 %v4217_v60  ;;  %v4959_v8 = vld [vmem:[#allocation3 + $0x28] sm:$0xff]  ;;  %v4239_v60 = vld [vmem:[%s5248_s2 + $0x10] sm:$0xff]   ;;  %v4240_v61 = vld [vmem:[%s5248_s2 + $0x58] sm:$0xff]  }
 0x185   : > { %3736 = vmatprep.subr.bf16.mxu0 %v4219_v50  ;;  %3964 = vmatprep.subr.bf16.mxu1 %v4220_v62  ;;  %v1877_v53 = vpack.c.bf16 %v4959_v8, %v4939_v19  ;;  %v4969_v26 = vld [vmem:[#allocation3 + $0x27] sm:$0xff]  ;;  %v4241_v50 = vld [vmem:[%s5248_s2 + $0x98] sm:$0xff]   ;;  %v2488_v4 = vld [vmem:[#allocation3 + $0x4f] sm:$0xff] }
 0x186   : > { %v3399_v29 = vpack.c.bf16 %v4969_v26, %v4961_v49  ;;  %v1778_v10 = vld [vmem:[#allocation3 + $0x9] sm:$0xff] }
 0x187   : > { %v4271_v63 = vld [vmem:[%s5248_s2 + $0x228] sm:$0xff]  }
 0x188   : > { %3737 = vmatpush3.bf16.msra.mxu0 %v4221_v2  ;;  %3965 = vmatpush3.bf16.msra.mxu1 %v4220_v62  ;;  %v4988_v62 = vld [vmem:[#allocation3 + $0x30] sm:$0xff]  ;;  %v4990_v2 = vld [vmem:[#allocation3 + $0x38] sm:$0xff] }
 0x189   : > { %3738 = vmatprep.subr.bf16.mxu0 %v4222_v36  ;;  %3966 = vmatprep.subr.bf16.mxu1 %v4223_v37  ;;  %v4242_v36 = vld [vmem:[%s5248_s2 + $0x18] sm:$0xff]  }
 0x18c   : > { %3739 = vmatpush3.bf16.msra.mxu0 %v4224_v38  ;;  %3967 = vmatpush3.bf16.msra.mxu1 %v4223_v37  ;;  %v1880_v37 = vpack.c.bf16 %v4990_v2, %v4988_v62  ;;  %v4997_v38 = vld [vmem:[#allocation3 + $0x2f] sm:$0xff] }
 0x18d   : > { %3740 = vmatprep.subr.bf16.mxu0 %v4225_v57  ;;  %3968 = vmatprep.subr.bf16.mxu1 %v4226_v39  ;;  %v5001_v57 = vld [vmem:[#allocation3 + $0x37] sm:$0xff] }
 0x190   : > { %3741 = vmatpush3.bf16.msra.mxu0 %v4227_v11  ;;  %3969 = vmatpush3.bf16.msra.mxu1 %v4226_v39  ;;  %v4243_v39 = vld [vmem:[%s5248_s2 + $0x60] sm:$0xff]  }
 0x191   : > { %3742 = vmatprep.subr.bf16.mxu0 %v4228_v34  ;;  %3970 = vmatprep.subr.bf16.mxu1 %v4229_v45  ;;  %v4244_v11 = vld [vmem:[%s5248_s2 + $0xa0] sm:$0xff]   ;;  %v3402_v34 = vpack.c.bf16 %v5001_v57, %v4997_v38 }
 0x194   : > { %3743 = vmatpush3.bf16.msra.mxu0 %v4230_v35  ;;  %3971 = vmatpush3.bf16.msra.mxu1 %v4229_v45  ;;  %v4245_v45 = vld [vmem:[%s5248_s2 + $0x20] sm:$0xff]   ;;  %v5016_v35 = vld [vmem:[#allocation3 + $0x48] sm:$0xff] }
 0x195   : > { %3780 = vmatprep.subr.bf16.mxu0 %v4231_v12  ;;  %3980 = vmatprep.subr.bf16.mxu1 %v4232_v13  ;;  %v4246_v12 = vld [vmem:[%s5248_s2 + $0x68] sm:$0xff]  }
 0x197   : > { %3397 = vmatmul.mubr.msk.bf16.vlgmr.msra.gmra.mrb[48].mxu0 %vm4482_vm4, %v3396_v46  ;;  %3973 = vmatmul.mubr.msk.bf16.vlgmr.msra.gmra.mrb[8].mxu1 %vm4512_vm8, %v3411_v59  ;;  %v1783_v46 = vld [vmem:[#allocation3 + $0x31] sm:$0xff]  ;;  %v4248_v59 = vld [vmem:[%s5248_s2 + $0x28] sm:$0xff]  }
 0x198   : > { %3781 = vmatpush3.bf16.msra.mxu0 %v4233_v48  ;;  %3981 = vmatpush3.bf16.msra.mxu1 %v4232_v13  ;;  %v4247_v13 = vld [vmem:[%s5248_s2 + $0xa8] sm:$0xff]   ;;  %v1883_v48 = vpack.c.bf16 %v5016_v35, %v5014_v47 }
 0x199   : > { %3782 = vmatprep.subr.bf16.mxu0 %v4234_v5  ;;  %3982 = vmatprep.subr.bf16.mxu1 %v4235_v7  ;;  %v5029_v5 = vld [vmem:[#allocation3 + $0x3f] sm:$0xff] }
 0x19a   : > { %2117 = vmatprep.mubr.bf16.mxu0 %v1877_v53 }
 0x19c   : > { %3783 = vmatpush3.bf16.msra.mxu0 %v4236_v23  ;;  %3983 = vmatpush3.bf16.msra.mxu1 %v4235_v7  ;;  %v1784_v7 = vld [vmem:[#allocation3 + $0x39] sm:$0xff]  ;;  %v5033_v23 = vld [vmem:[#allocation3 + $0x47] sm:$0xff] }
 0x19d   : > { %3784 = vmatprep.subr.bf16.mxu0 %v4237_v27  ;;  %3984 = vmatprep.subr.bf16.mxu1 %v4238_v28  ;;  %v3414_v53 = vpack.c.bf16 %v1784_v7, %v1783_v46  ;;  %v4249_v27 = vld [vmem:[%s5248_s2 + $0x70] sm:$0xff]   ;;  %v3549_v3 = vpack.c.bf16 %v2488_v4, %v5033_v23 }
 0x19f   : > { %3400 = vmatmul.mubr.msk.bf16.gmra.mrb[52].mxu0 %vm4552_vm11, %v3399_v29  ;;  %v5038_v29 = vld [vmem:[#allocation3 + $0x49] sm:$0xff]  ;;  %3976 = vmatprep.mubr.msk.bf16.mxu1 %vm4638_vm5, %v3414_v53 }
 0x1a0   : > { %3785 = vmatpush3.bf16.msra.mxu0 %v4239_v60  ;;  %3985 = vmatpush3.bf16.msra.mxu1 %v4238_v28  ;;  %v1785_v28 = vld [vmem:[#allocation3 + $0x41] sm:$0xff]  ;;  %v4250_v60 = vld [vmem:[%s5248_s2 + $0xb0] sm:$0xff]  }
 0x1a1   : > { %3786 = vmatprep.subr.bf16.mxu0 %v4240_v61  ;;  %3986 = vmatprep.subr.bf16.mxu1 %v4241_v50  ;;  %v3417_v61 = vpack.c.bf16 %v5038_v29, %v1785_v28  ;;  %v4258_v53 = vld [vmem:[%s5248_s2 + $0x1c8] sm:$0xff]  }
 0x1a2   : > { %2125 = vmatprep.mubr.bf16.mxu0 %v1880_v37  ;;  %v3405_v37 = vpack.c.bf16 %v5033_v23, %v5029_v5 }
 0x1a3   : > { %3977 = vmatmul.mubr.msk.bf16.gmra.mrb[12].mxu1 %vm4656_vm10, %v3417_v61  ;;  %v4264_v61 = vld [vmem:[%s5248_s2 + $0x1d8] sm:$0xff]  }
 0x1a4   : > { %3787 = vmatpush3.bf16.msra.mxu0 %v4242_v36  ;;  %3987 = vmatpush3.bf16.msra.mxu1 %v4241_v50  ;;  %v1770_v50 = vld [vmem:[#allocation3 + $0x8] sm:$0xff]  ;;  %v3456_v36 = vpack.c.bf16 %v4923_v43, %v1778_v10  ;;  %v4252_v43 = vld [vmem:[%s5248_s2 + $0x78] sm:$0xff]  }
 0x1a5   : > { %3788 = vmatprep.subr.bf16.mxu0 %v4243_v39  ;;  %3988 = vmatprep.subr.bf16.mxu1 %v4244_v11  ;;  %v4251_v39 = vld [vmem:[%s5248_s2 + $0x30] sm:$0xff]   ;;  %v4254_v10 = vld [vmem:[%s5248_s2 + $0x38] sm:$0xff]  }
 0x1a6   : > { %3996 = vmatprep.mubr.msk.bf16.mxu1 %vm4496_vm7, %v3456_v36  ;;  %v4270_v36 = vld [vmem:[%s5248_s2 + $0x1e8] sm:$0xff]  }
 0x1a7   : > { %3403 = vmatmul.mubr.msk.bf16.gmra.mrb[56].mxu0 %vm4596_vm14, %v3402_v34  ;;  %v1795_v34 = vpack.c.bf16 %v4904_v31, %v1770_v50  ;;  %v4256_v31 = vld [vmem:[%s5248_s2 + $0x200] sm:$0xff]   ;;  %v4265_v50 = vld [vmem:[%s5248_s2 + $0x218] sm:$0xff]  }
 0x1a8   : > { %3789 = vmatpush3.bf16.msra.mxu0 %v4245_v45  ;;  %3989 = vmatpush3.bf16.msra.mxu1 %v4244_v11  ;;  %v4253_v11 = vld [vmem:[%s5248_s2 + $0xb8] sm:$0xff]   ;;  %v1754_v45 = vld [vmem:[#allocation3 + $0x7] sm:$0xff] }
 0x1a9   : > { %3790 = vmatprep.subr.bf16.mxu0 %v4246_v12  ;;  %3990 = vmatprep.subr.bf16.mxu1 %v4247_v13  ;;  %v4255_v12 = vld [vmem:[%s5248_s2 + $0x1c0] sm:$0xff]  }
 0x1aa   : > { %2133 = vmatprep.mubr.bf16.mxu0 %v1883_v48  ;;  %v4257_v48 = vld [vmem:[%s5248_s2 + $0x180] sm:$0xff]  }
 0x1ac   : > { %3791 = vmatpush3.bf16.msra.mxu0 %v4248_v59  ;;  %3991 = vmatpush3.bf16.msra.mxu1 %v4247_v13  ;;  %v3444_v13 = vpack.c.bf16 %v4919_v41, %v1754_v45  ;;  %v3459_v59 = vpack.c.bf16 %v4927_v1, %v4925_v0  ;;  %v5088_v41 = vpack.c.bf16 %v4939_v19, %v4906_v16  ;;  %v4260_v1 = vld [vmem:[%s5248_s2 + $0x188] sm:$0xff]   ;;  %v4261_v16 = vld [vmem:[%s5248_s2 + $0x1d0] sm:$0xff]  }
 0x1ad   : > { %3792 = vmatprep.subr.bf16.mxu0 %v4249_v27  ;;  %3992 = vmatprep.subr.bf16.mxu1 %v4250_v60  ;;  %v4259_v27 = vld [vmem:[%s5248_s2 + $0x208] sm:$0xff]   ;;  %v5091_v0 = vpack.c.bf16 %v1783_v46, %v4937_v18  ;;  %v4262_v18 = vld [vmem:[%s5248_s2 + $0x210] sm:$0xff]   ;;  %v3447_v19 = vpack.c.bf16 %v4961_v49, %v4921_v52  ;;  %v1801_v52 = vpack.c.bf16 %v4988_v62, %v4959_v8  ;;  %v4266_v49 = vld [vmem:[%s5248_s2 + $0x198] sm:$0xff]  }
 0x1ae   : > { %v4263_v46 = vld [vmem:[%s5248_s2 + $0x190] sm:$0xff]   ;;  %v4268_v8 = vld [vmem:[%s5248_s2 + $0x220] sm:$0xff]   ;;  %v3450_v62 = vpack.c.bf16 %v4997_v38, %v4969_v26  ;;  %v4272_v26 = vld [vmem:[%s5248_s2 + $0x1a8] sm:$0xff]   ;;  %v2531_v45 = vpack.c.bf16 %v2504_v58, %v5016_v35 }
 0x1af   : > { %3406 = vmatmul.mubr.msk.bf16.gmra.mrb[60].mxu0 %vm4632_vm3, %v3405_v37  ;;  %v1804_v37 = vpack.c.bf16 %v5014_v47, %v4990_v2  ;;  %v4273_v38 = vld [vmem:[%s5248_s2 + $0x1f0] sm:$0xff]   ;;  %v3453_v2 = vpack.c.bf16 %v5029_v5, %v5001_v57  ;;  %v4278_v57 = vld [vmem:[%s5248_s2 + $0x1b8] sm:$0xff]  }
 0x1b0   : > { %3793 = vmatpush3.bf16.msra.mxu0 %v4251_v39  ;;  %3993 = vmatpush3.bf16.msra.mxu1 %v4250_v60  ;;  %v3465_v60 = vpack.c.bf16 %v1785_v28, %v1784_v7  ;;  %v4267_v7 = vld [vmem:[%s5248_s2 + $0x1e0] sm:$0xff]   ;;  %v4274_v39 = vld [vmem:[%s5248_s2 + $0x230] sm:$0xff]  }
 0x1b1   : > { %3794 = vmatprep.subr.bf16.mxu0 %v4252_v43  ;;  %3994 = vmatprep.subr.bf16.mxu1 %v4253_v11  ;;  %v4269_v28 = vld [vmem:[%s5248_s2 + $0x1a0] sm:$0xff]   ;;  %v4275_v47 = vld [vmem:[%s5248_s2 + $0x1b0] sm:$0xff]   ;;  %v4276_v43 = vld [vmem:[%s5248_s2 + $0x1f8] sm:$0xff]  }
 0x1b2   : > { %2383 = vmatprep.mubr.bf16.mxu0 %v1795_v34  ;;  %v2512_v5 = vld [vmem:[#allocation3 + $0x51] sm:$0xff] }
 0x1b3   : > { %v3561_v34 = vpack.c.bf16 %v2512_v5, %v5038_v29 }
 0x1b4   : > { %3795 = vmatpush3.bf16.msra.mxu0 %v4254_v10  ;;  %3995 = vmatpush3.bf16.msra.mxu1 %v4253_v11  ;;  %v4277_v11 = vld [vmem:[%s5248_s2 + $0x238] sm:$0xff]  }
 0x1b5   : > { %3832 = vmatprep.subr.bf16.mxu0 %v4255_v12  ;;  %4004 = vmatprep.subr.bf16.mxu1 %v4256_v31 }
 0x1b7   : > { %3445 = vmatmul.mubr.msk.bf16.vlgmr.msra.gmra.mrb[64].mxu0 %vm4482_vm4, %v3444_v13  ;;  %3997 = vmatmul.mubr.msk.bf16.vlgmr.msra.gmra.mrb[8].mxu1 %vm4512_vm8, %v3459_v59 }
 0x1b8   : > { %3833 = vmatpush3.bf16.msra.mxu0 %v4257_v48  ;;  %4005 = vmatpush3.bf16.msra.mxu1 %v4256_v31 }
 0x1b9   : > { %3834 = vmatprep.subr.bf16.mxu0 %v4258_v53  ;;  %4006 = vmatprep.subr.bf16.mxu1 %v4259_v27 }
 0x1ba   : > { %2391 = vmatprep.mubr.bf16.mxu0 %v5088_v41  ;;  %4000 = vmatprep.mubr.msk.bf16.mxu1 %vm4638_vm5, %v5091_v0 }
 0x1bc   : > { %3835 = vmatpush3.bf16.msra.mxu0 %v4260_v1  ;;  %4007 = vmatpush3.bf16.msra.mxu1 %v4259_v27 }
 0x1bd   : > { %3836 = vmatprep.subr.bf16.mxu0 %v4261_v16  ;;  %4008 = vmatprep.subr.bf16.mxu1 %v4262_v18 }
 0x1bf   : > { %3448 = vmatmul.mubr.msk.bf16.gmra.mrb[68].mxu0 %vm4552_vm11, %v3447_v19  ;;  %4001 = vmatmul.mubr.msk.bf16.gmra.mrb[12].mxu1 %vm4656_vm10, %v3465_v60 }
 0x1c0   : > { %3837 = vmatpush3.bf16.msra.mxu0 %v4263_v46  ;;  %4009 = vmatpush3.bf16.msra.mxu1 %v4262_v18 }
 0x1c1   : > { %3838 = vmatprep.subr.bf16.mxu0 %v4264_v61  ;;  %4010 = vmatprep.subr.bf16.mxu1 %v4265_v50 }
 0x1c2   : > { %2399 = vmatprep.mubr.bf16.mxu0 %v1801_v52  ;;  %4020 = vmatprep.mubr.msk.bf16.mxu1 %vm4496_vm7, %v3459_v59 }
 0x1c4   : > { %3839 = vmatpush3.bf16.msra.mxu0 %v4266_v49  ;;  %4011 = vmatpush3.bf16.msra.mxu1 %v4265_v50 }
 0x1c5   : > { %3840 = vmatprep.subr.bf16.mxu0 %v4267_v7  ;;  %4012 = vmatprep.subr.bf16.mxu1 %v4268_v8 }
 0x1c7   : > { %3451 = vmatmul.mubr.msk.bf16.gmra.mrb[72].mxu0 %vm4596_vm14, %v3450_v62 }
 0x1c8   : > { %3841 = vmatpush3.bf16.msra.mxu0 %v4269_v28  ;;  %4013 = vmatpush3.bf16.msra.mxu1 %v4268_v8 }
 0x1c9   : > { %3842 = vmatprep.subr.bf16.mxu0 %v4270_v36  ;;  %4014 = vmatprep.subr.bf16.mxu1 %v4271_v63 }
 0x1ca   : > { %2407 = vmatprep.mubr.bf16.mxu0 %v1804_v37 }
 0x1cc   : > { %3843 = vmatpush3.bf16.msra.mxu0 %v4272_v26  ;;  %4015 = vmatpush3.bf16.msra.mxu1 %v4271_v63 }
 0x1cd   : > { %3844 = vmatprep.subr.bf16.mxu0 %v4273_v38  ;;  %4016 = vmatprep.subr.bf16.mxu1 %v4274_v39 }
 0x1cf   : > { %3454 = vmatmul.mubr.msk.bf16.gmra.mrb[76].mxu0 %vm4632_vm3, %v3453_v2 }
 0x1d0   : > { %3845 = vmatpush3.bf16.msra.mxu0 %v4275_v47  ;;  %4017 = vmatpush3.bf16.msra.mxu1 %v4274_v39 }
 0x1d1   : > { %3846 = vmatprep.subr.bf16.mxu0 %v4276_v43  ;;  %4018 = vmatprep.subr.bf16.mxu1 %v4277_v11 }
 0x1d2   : > { %2757 = vmatprep.mubr.bf16.mxu0 %v5088_v41 }
 0x1d4   : > { %3847 = vmatpush3.bf16.msra.mxu0 %v4278_v57  ;;  %4019 = vmatpush3.bf16.msra.mxu1 %v4277_v11 }
 0x1d7   : > { %3541 = vmatmul.mubr.msk.bf16.vlgmr.msra.gmra.mrb[80].mxu0 %vm4482_vm4, %v3447_v19  ;;  %4021 = vmatmul.mubr.msk.bf16.vlgmr.msra.gmra.mrb[8].mxu1 %vm4512_vm8, %v5091_v0  ;;  %vm2919_vm4 = vcmask 0  }
 0x1d8   : > { %2765 = vmatprep.mubr.bf16.mxu0 %v1801_v52  ;;  %4024 = vmatprep.mubr.msk.bf16.mxu1 %vm4638_vm5, %v3465_v60 }
 0x1df   : > { %3544 = vmatmul.mubr.msk.bf16.gmra.mrb[84].mxu0 %vm4552_vm11, %v3450_v62  ;;  %4025 = vmatmul.mubr.msk.bf16.gmra.mrb[12].mxu1 %vm4656_vm10, %v3561_v34 }
 0x1e0   : > { %2773 = vmatprep.mubr.bf16.mxu0 %v1804_v37 }
 0x1e7   : > { %3547 = vmatmul.mubr.msk.bf16.gmra.mrb[88].mxu0 %vm4596_vm14, %v3453_v2 }
 0x1e8   : > { %2781 = vmatprep.mubr.bf16.mxu0 %v2531_v45 }
 0x1ef   : > { %3550 = vmatmul.mubr.msk.bf16.gmra.mrb[92].mxu0 %vm4632_vm3, %v3549_v3 }
 0x26a   : > { %v3744_v29 = vpop.f32.mrb[48].mxu0 }
 0x26b   : > { %v3745_v20 = vpop.f32.mrb[49].mxu0 }
 0x26c   : > { %v3746_v10 = vadd.f32 %v3745_v20, %v3744_v29  ;;  %v3747_v12 = vpop.f32.mrb[50].mxu0 }
 0x26d   : > { %v3748_v17 = vpop.f32.mrb[51].mxu0 }
 0x26e   : > { %v3749_v31 = vadd.f32 %v3748_v17, %v3747_v12 }
 0x272   : > { %v3750_v13 = vpop.f32.mrb[52].mxu0 }
 0x273   : > { %v3751_v59 = vpop.f32.mrb[53].mxu0 }
 0x274   : > { %v3752_v48 = vadd.f32 %v3751_v59, %v3750_v13  ;;  %v3753_v35 = vpop.f32.mrb[54].mxu0 }
 0x275   : > { %v3754_v53 = vpop.f32.mrb[55].mxu0 }
 0x276   : > { %v3755_v40 = vadd.f32 %v3754_v53, %v3753_v35 }
 0x27a   : > { %v3756_v27 = vpop.f32.mrb[56].mxu0 }
 0x27b   : > { %v3757_v41 = vpop.f32.mrb[57].mxu0 }
 0x27c   : > { %v3758_v0 = vadd.f32 %v3757_v41, %v3756_v27  ;;  %v3759_v1 = vpop.f32.mrb[58].mxu0 }
 0x27d   : > { %v3760_v23 = vpop.f32.mrb[59].mxu0 }
 0x27e   : > { %v3761_v16 = vadd.f32 %v3760_v23, %v3759_v1 }
 0x282   : > { %v3762_v55 = vpop.f32.mrb[60].mxu0 }
 0x283   : > { %v3763_v18 = vpop.f32.mrb[61].mxu0 }
 0x284   : > { %v3764_v19 = vadd.f32 %v3763_v18, %v3762_v55  ;;  %v3765_v46 = vpop.f32.mrb[62].mxu0  ;;  %v5204_v18 = vld [vmem:[%s5249_s3] ss:$0 sm:$0xff] }
 0x285   : > { %v3766_v60 = vpop.f32.mrb[63].mxu0 }
 0x286   : > { %v3767_v61 = vadd.f32 %v3766_v60, %v3765_v46 }
 0x28a   : > { %v3796_v50 = vpop.f32.mrb[64].mxu0 }
 0x28b   : > { %v3797_v52 = vpop.f32.mrb[65].mxu0 }
 0x28c   : > { %v3798_v49 = vadd.f32 %v3797_v52, %v3796_v50  ;;  %v3799_v7 = vpop.f32.mrb[66].mxu0 }
 0x28d   : > { %v3800_v8 = vpop.f32.mrb[67].mxu0 }
 0x28e   : > { %v4055_v62 = vadd.f32 %v3798_v49, %v3746_v10  ;;  %v3801_v28 = vadd.f32 %v3800_v8, %v3799_v7 }
 0x290   : > { %v4061_v36 = vadd.f32 %v3801_v28, %v3749_v31 }
 0x292   : > { %v3802_v63 = vpop.f32.mrb[68].mxu0 }
 0x293   : > { %v3803_v37 = vpop.f32.mrb[69].mxu0 }
 0x294   : > { %v3804_v26 = vadd.f32 %v3803_v37, %v3802_v63  ;;  %v3805_v38 = vpop.f32.mrb[70].mxu0 }
 0x295   : > { %v3806_v39 = vpop.f32.mrb[71].mxu0 }
 0x296   : > { %v4052_v2 = vadd.f32 %v3804_v26, %v3752_v48  ;;  %v3807_v47 = vadd.f32 %v3806_v39, %v3805_v38 }
 0x298   : > { %v4058_v43 = vadd.f32 %v3807_v47, %v3755_v40 }
 0x29a   : > { %v3808_v11 = vpop.f32.mrb[72].mxu0 }
 0x29b   : > { %v3809_v57 = vpop.f32.mrb[73].mxu0 }
 0x29c   : > { %v3810_v5 = vadd.f32 %v3809_v57, %v3808_v11  ;;  %v3811_v34 = vpop.f32.mrb[74].mxu0 }
 0x29d   : > { %v3812_v58 = vpop.f32.mrb[75].mxu0 }
 0x29e   : > { %v4067_v45 = vadd.f32 %v3810_v5, %v3758_v0  ;;  %v3813_v4 = vadd.f32 %v3812_v58, %v3811_v34 }
 0x2a0   : > { %v4073_v3 = vadd.f32 %v3813_v4, %v3761_v16 }
 0x2a2   : > { %v3814_v29 = vpop.f32.mrb[76].mxu0 }
 0x2a3   : > { %v3815_v20 = vpop.f32.mrb[77].mxu0 }
 0x2a4   : > { %v3816_v10 = vadd.f32 %v3815_v20, %v3814_v29  ;;  %v3817_v12 = vpop.f32.mrb[78].mxu0 }
 0x2a5   : > { %v3818_v17 = vpop.f32.mrb[79].mxu0 }
 0x2a6   : > { %v5197_v31 = vadd.f32 %v3816_v10, %v3764_v19  ;;  %v3819_v13 = vadd.f32 %v3818_v17, %v3817_v12 }
 0x2a8   : > { %v5199_v59 = vadd.f32 %v3819_v13, %v3767_v61 }
 0x2aa   : > { %v3848_v48 = vpop.f32.mrb[80].mxu0  ;;  %v4022_v35 = vpop.f32.mrb[8].mxu1 }
 0x2ab   : > { %v3849_v53 = vpop.f32.mrb[81].mxu0  ;;  %v2824_v40 = vpop.f32.mrb[9].mxu1 }
 0x2ac   : > { %v3850_v27 = vadd.f32 %v3849_v53, %v3848_v48  ;;  %v3851_v41 = vpop.f32.mrb[82].mxu0  ;;  %v4023_v1 = vpop.f32.mrb[10].mxu1 }
 0x2ad   : > { %v3852_v0 = vpop.f32.mrb[83].mxu0  ;;  %v2827_v23 = vpop.f32.mrb[11].mxu1 }
 0x2ae   : > { %v4056_v16 = vadd.f32 %v4055_v62, %v3850_v27  ;;  %v3853_v55 = vadd.f32 %v3852_v0, %v3851_v41 }
 0x2b0   : > { %v4057_v19 = vadd.f32 %v4056_v16, %v2824_v40  ;;  %v4062_v46 = vadd.f32 %v4061_v36, %v3853_v55 }
 0x2b2   : > { %v2870_v60 = vadd.f32 %v4057_v19, %v5204_v18  ;;  %v4063_v61 = vadd.f32 %v4062_v46, %v2827_v23  ;;  %v3854_v50 = vpop.f32.mrb[84].mxu0  ;;  %v4026_v52 = vpop.f32.mrb[12].mxu1 }
 0x2b3   : > { %v3855_v49 = vpop.f32.mrb[85].mxu0  ;;  %v2840_v7 = vpop.f32.mrb[13].mxu1 }
 0x2b4   : > { %v2878_v8 = vmax.f32 %v2870_v60, 0.0  ;;  %v2871_v28 = vadd.f32 %v4063_v61, %v5204_v18  ;;  %v3856_v63 = vadd.f32 %v3855_v49, %v3854_v50  ;;  %v3857_v62 = vpop.f32.mrb[86].mxu0  ;;  %v4027_v37 = vpop.f32.mrb[14].mxu1 }
 0x2b5   : > { %v3858_v26 = vpop.f32.mrb[87].mxu0  ;;  %v2843_v38 = vpop.f32.mrb[15].mxu1 }
 0x2b6   : > { %v2886_v39 = vsub.f32 %v1572_v33, %v2878_v8  ;;  %v2879_v47 = vmax.f32 %v2871_v28, 0.0  ;;  %v4053_v36 = vadd.f32 %v4052_v2, %v3856_v63  ;;  %v3859_v11 = vadd.f32 %v3858_v26, %v3857_v62 }
 0x2b8   : > { %v2887_v57 = vsub.f32 %v1573_v30, %v2879_v47  ;;  %v4054_v5 = vadd.f32 %v4053_v36, %v4022_v35  ;;  %v4059_v34 = vadd.f32 %v4058_v43, %v3859_v11  ;;  %v2894_v58 = vmul.f32 %v2886_v39, %v2886_v39 }
 0x2ba   : > { %v2895_v4 = vmul.f32 %v2887_v57, %v2887_v57  ;;  %v2872_v29 = vadd.f32 %v4054_v5, %v5204_v18  ;;  %v4060_v20 = vadd.f32 %v4059_v34, %v4023_v1  ;;  %v3860_v10 = vpop.f32.mrb[88].mxu0 }
 0x2bb   : > { %v3861_v12 = vpop.f32.mrb[89].mxu0 }
 0x2bc   : > { %v2902_v17 = vadd.f32 %v2895_v4, %v2894_v58  ;;  %v2880_v13 = vmax.f32 %v2872_v29, 0.0  ;;  %v2873_v25 = vadd.f32 %v4060_v20, %v5204_v18  ;;  %v3862_v33 = vadd.f32 %v3861_v12, %v3860_v10  ;;  %v3863_v48 = vpop.f32.mrb[90].mxu0 }
 0x2bd   : > { %v3864_v2 = vpop.f32.mrb[91].mxu0 }
 0x2be   : > { %v2888_v56 = vsub.f32 %v1574_v42, %v2880_v13  ;;  %v2881_v30 = vmax.f32 %v2873_v25, 0.0  ;;  %v4068_v35 = vadd.f32 %v4067_v45, %v3862_v33  ;;  %v3865_v43 = vadd.f32 %v3864_v2, %v3863_v48 }
 0x2c0   : > { %v2896_v53 = vmul.f32 %v2888_v56, %v2888_v56  ;;  %v2889_v40 = vsub.f32 %v1575_v32, %v2881_v30  ;;  %v4069_v27 = vadd.f32 %v4068_v35, %v2840_v7  ;;  %v4074_v41 = vadd.f32 %v4073_v3, %v3865_v43 }
 0x2c2   : > { %v2897_v1 = vmul.f32 %v2889_v40, %v2889_v40  ;;  %v2874_v0 = vadd.f32 %v4069_v27, %v5204_v18  ;;  %v4075_v23 = vadd.f32 %v4074_v41, %v2843_v38  ;;  %v3866_v16 = vpop.f32.mrb[92].mxu0  ;;  %v2903_v55 = vadd.f32 %v2902_v17, %v2896_v53 }
 0x2c3   : > { %v3867_v19 = vpop.f32.mrb[93].mxu0 }
 0x2c4   : > { %v2882_v46 = vmax.f32 %v2874_v0, 0.0  ;;  %v2875_v15 = vadd.f32 %v4075_v23, %v5204_v18  ;;  %v3868_v42 = vadd.f32 %v3867_v19, %v3866_v16  ;;  %v3869_v60 = vpop.f32.mrb[94].mxu0  ;;  %v2904_v45 = vadd.f32 %v2903_v55, %v2897_v1 }
 0x2c5   : > { %v3870_v61 = vpop.f32.mrb[95].mxu0 }
 0x2c6   : > { %v2890_v44 = vsub.f32 %v1576_v6, %v2882_v46  ;;  %v4065_v32 = vadd.f32 %v5197_v31, %v3868_v42  ;;  %v3871_v3 = vadd.f32 %v3870_v61, %v3869_v60  ;;  %v2883_v50 = vmax.f32 %v2875_v15, 0.0 }
 0x2c8   : > { %v4066_v49 = vadd.f32 %v4065_v32, %v4026_v52  ;;  %v4071_v7 = vadd.f32 %v5199_v59, %v3871_v3  ;;  %v2891_v8 = vsub.f32 %v1577_v14, %v2883_v50  ;;  %v2898_v28 = vmul.f32 %v2890_v44, %v2890_v44 }
 0x2ca   : > { %v4072_v63 = vadd.f32 %v4071_v7, %v4027_v37  ;;  %v2876_v62 = vadd.f32 %v4066_v49, %v5204_v18  ;;  %v2899_v26 = vmul.f32 %v2891_v8, %v2891_v8  ;;  %v2905_v38 = vadd.f32 %v2904_v45, %v2898_v28 }
 0x2cc   : > { %v2877_v39 = vadd.f32 %v4072_v63, %v5204_v18  ;;  %v2884_v54 = vmax.f32 %v2876_v62, 0.0  ;;  %v2906_v6 = vadd.f32 %v2905_v38, %v2899_v26 }
 0x2ce   : > { %v2885_v47 = vmax.f32 %v2877_v39, 0.0  ;;  %v2892_v31 = vsub.f32 %v1578_v21, %v2884_v54 }
 0x2d0   : > { %v2893_v59 = vsub.f32 %v1579_v24, %v2885_v47  ;;  %v2900_v52 = vmul.f32 %v2892_v31, %v2892_v31 }
 0x2d2   : > { %v2901_v9 = vmul.f32 %v2893_v59, %v2893_v59  ;;  %v2907_v14 = vadd.f32 %v2906_v6, %v2900_v52 }
 0x2d4   : > { %v2908_v37 = vadd.f32 %v2907_v14, %v2901_v9 }
 0x2d6   : > { %2909 = vadd.xlane.f32.xlu0 %v2908_v37 }
 0x363   : > { %v2910_v36 = vpop.xlane.xlu0 %2909 }
 0x364   : > { %v2911_v11 = vrot.slane %v2910_v36, 4 }
 0x366   : > { %v2912_v57 = vadd.f32 %v2911_v11, %v2910_v36 }
 0x368   : > { %v2913_v5 = vrot.slane %v2912_v57, 2 }
 0x36a   : > { %v2914_v18 = vadd.f32 %v2913_v5, %v2912_v57 }
 0x36c   : > { %v2915_v34 = vrot.slane %v2914_v18, 1 }
 0x36e   : > { %v2916_v58 = vadd.f32 %v2915_v34, %v2914_v18 }
 0x370   : > { %4108 = vpush %v2916_v58 }
 0x3a1   : > { %s4109_s27 = spop %4108 }
 0x3a2   : > { %v2918_v51 = vstv %s4109_s27 }
 0x3a3   : > { %2920 = vst.msk [vmem:[%s141_s25] sm:$0x1] %vm2919_vm4, %v2918_v51 }
 0x3a4 PF: > { %s14_s17 = sadd.s32 1, %s4305_s17   ;;  %s5277_s15 = smov %s4301_s16 }
 0x3a5   : > { %p11_p5 = scmp.ge.s32.totalorder %s14_s17, 4   ;;  %s5278_s16 = smov %s5280_s18 }
 0x3a7   :  { %13 = sbr.rel (!%p11_p5) target bundleno = 2 (0x2), region = 359 }
 0x3ae   :  { %2944 = vsyncmov [#allocation4] }
 0x3b1   :  { %s2945_s30 = vpop.sfrf %2944 }
 0x3b2   :  { %p3566_p6 = scmp.ne.s32.totalorder %s2945_s30, 0 }
 0x3b4   :  { %2949 = shalt.err (%p3566_p6)  }
 0x3b5   :  { %2951 = vsyncmov [#allocation4 + $0x1] }
 0x3b8   :  { %s2952_s5 = vpop.sfrf %2951 }
 0x3b9   :  { %p3567_p7 = scmp.ne.s32.totalorder %s2952_s5, 0 }
 0x3bb   :  { %2956 = shalt.err (%p3567_p7)  }
 0x3bc   :  { %2958 = vsyncmov [#allocation4 + $0x2] }
 0x3bf   :  { %s2959_s25 = vpop.sfrf %2958 }
 0x3c0   :  { %p3568_p8 = scmp.ne.s32.totalorder %s2959_s25, 0 }
 0x3c2   :  { %2963 = shalt.err (%p3568_p8)  }

</bundles_post_ra>
